<compile_context>
chip_gen: v5e
topology: v5e:2x2
jax: 0.10.0
libtpu: 0.0.40
codegen_flags: <defaults>
</compile_context>

<pallas_src>
import jax
import jax.numpy as jnp
from jax.experimental import pallas as pl
from jax.experimental.pallas import tpu as pltpu

# MLP layer sizes, matching the nn.Sequential in Net.__init__
LAYER_DIMS = [32 * 32 * 3, 512, 256, 128, 64, 32, 16, 16, 16, 10]
N_LAYERS = len(LAYER_DIMS) - 1          # 9 Linear layers
N_BIG = 4                               # layers 0..3 shipped as individual bf16 weights
IN_DIM = LAYER_DIMS[0]
NUM_CLASSES = LAYER_DIMS[-1]
TAIL_ROWS = sum(LAYER_DIMS[i] for i in range(N_BIG, N_LAYERS))        # 64+32+16+16+16 = 144
TAIL_COLS = max(LAYER_DIMS[i + 1] for i in range(N_BIG, N_LAYERS))    # 32
BIAS_COLS = max(LAYER_DIMS[1:])                                       # 512


def _round_up(a, m):
    return (a + m - 1) // m * m


def mlp_kernel(x_ref, w0_ref, w1_ref, w2_ref, w3_ref, w_tail_ref, b_ref, out_ref):
    """One batch tile of the full MLP forward.

    x_ref:       (TM, 3072) f32 batch tile (changes per grid step)
    w0..w3_ref:  big bf16 weights, VMEM resident across all grid steps
    w_tail_ref:  (144, 32) bf16 -- layers 4..8 packed row-wise, zero padded
    b_ref:       (9, 512) f32   -- bias of layer i in row i, zero padded
    out_ref:     (TM, 10) f32 softmax probabilities
    """
    h = x_ref[...]  # f32

    # Big layers 0..3 (individual bf16 weights).
    big_refs = (w0_ref, w1_ref, w2_ref, w3_ref)
    for i in range(N_BIG):
        dout = LAYER_DIMS[i + 1]
        b = b_ref[i:i + 1, :dout]                                   # (1, dout) f32
        h = jnp.dot(h.astype(jnp.bfloat16), big_refs[i][...],
                    preferred_element_type=jnp.float32) + b
        h = jnp.maximum(h, 0.0)                                     # ReLU

    # Tail layers 4..8 (packed bf16 weights, static slices -> zero-cost views).
    off = 0
    for i in range(N_BIG, N_LAYERS):
        din, dout = LAYER_DIMS[i], LAYER_DIMS[i + 1]
        w = w_tail_ref[off:off + din, :dout]                        # (din, dout) bf16
        b = b_ref[i:i + 1, :dout]                                   # (1, dout) f32
        h = jnp.dot(h.astype(jnp.bfloat16), w,
                    preferred_element_type=jnp.float32) + b
        if i < N_LAYERS - 1:
            h = jnp.maximum(h, 0.0)                                 # ReLU (not after last layer)
        off += din

    # Softmax over dim=1 (class axis); reciprocal + multiply instead of divide.
    m = jnp.max(h, axis=-1, keepdims=True)
    e = jnp.exp(h - m)
    s = jnp.sum(e, axis=-1, keepdims=True)
    out_ref[...] = (e * pl.reciprocal(s, approx=False)).astype(out_ref.dtype)


def make_params(key):
    """Deterministic f32 parameter init (Kaiming-uniform-ish, like torch defaults)."""
    params = []
    for i in range(N_LAYERS):
        fan_in, fan_out = LAYER_DIMS[i], LAYER_DIMS[i + 1]
        key, kw, kb = jax.random.split(key, 3)
        bound = 1.0 / jnp.sqrt(fan_in)
        w = jax.random.uniform(kw, (fan_in, fan_out), jnp.float32, -bound, bound)
        b = jax.random.uniform(kb, (fan_out,), jnp.float32, -bound, bound)
        params.append((w, b))
    return params


def pack_params(params):
    """Convert f32 params into the kernel's shipped format:
       4 individual bf16 weights, one packed bf16 tail-weight array, one packed f32 bias array."""
    ws_bf16 = [w.astype(jnp.bfloat16) for w, _ in params]
    big = ws_bf16[:N_BIG]

    w_tail = jnp.zeros((TAIL_ROWS, TAIL_COLS), jnp.bfloat16)
    off = 0
    for i in range(N_BIG, N_LAYERS):
        din, dout = LAYER_DIMS[i], LAYER_DIMS[i + 1]
        w_tail = w_tail.at[off:off + din, :dout].set(ws_bf16[i])
        off += din

    b_pack = jnp.zeros((N_LAYERS, BIAS_COLS), jnp.float32)
    for i, (_, b) in enumerate(params):
        b_pack = b_pack.at[i, :LAYER_DIMS[i + 1]].set(b)

    return (*big, w_tail, b_pack)


@jax.jit
def net_forward(x, w0, w1, w2, w3, w_tail, b_pack):
    batch = x.shape[0]
    # Batch tile: fill MXU rows when batch allows, stay sublane-aligned otherwise.
    tm = min(256, _round_up(batch, 8))
    padded = _round_up(batch, tm)
    if padded != batch:
        x = jnp.pad(x, ((0, padded - batch), (0, 0)))
    n_tiles = padded // tm

    out = pl.pallas_call(
        mlp_kernel,
        out_shape=jax.ShapeDtypeStruct((padded, NUM_CLASSES), jnp.float32),
        grid_spec=pltpu.PrefetchScalarGridSpec(
            num_scalar_prefetch=0,
            grid=(n_tiles,),
            in_specs=[
                pl.BlockSpec((tm, IN_DIM), lambda i: (i, 0)),   # x: tiled over batch
                pl.BlockSpec(w0.shape, lambda i: (0, 0)),       # weights: constant block ->
                pl.BlockSpec(w1.shape, lambda i: (0, 0)),       #   DMA'd once, VMEM resident
                pl.BlockSpec(w2.shape, lambda i: (0, 0)),
                pl.BlockSpec(w3.shape, lambda i: (0, 0)),
                pl.BlockSpec(w_tail.shape, lambda i: (0, 0)),
                pl.BlockSpec(b_pack.shape, lambda i: (0, 0)),
            ],
            out_specs=pl.BlockSpec((tm, NUM_CLASSES), lambda i: (i, 0)),
        ),
        compiler_params=pltpu.CompilerParams(
            dimension_semantics=("parallel",),   # batch tiles are independent (megacore on v7x)
            vmem_limit_bytes=40 << 20,           # headroom on v7x's 64 MiB physical VMEM
        ),
    )(x, w0, w1, w2, w3, w_tail, b_pack)

    return out[:batch]


def net_forward_ref(x, params):
    """Pure-JAX reference using the same bf16 weight / bf16 matmul-input numerics."""
    h = x
    for i, (w, b) in enumerate(params):
        h = jnp.dot(h.astype(jnp.bfloat16), w.astype(jnp.bfloat16),
                    preferred_element_type=jnp.float32) + b
        if i < N_LAYERS - 1:
            h = jnp.maximum(h, 0.0)
    return jax.nn.softmax(h, axis=1)


if __name__ == "__main__":
    key = jax.random.PRNGKey(0)
    key, kx, kp = jax.random.split(key, 3)

    batch = 8
    x = jax.random.normal(kx, (batch, IN_DIM), jnp.float32)
    params = make_params(kp)
    packed = pack_params(params)

    out = net_forward(x, *packed)
    out = jax.block_until_ready(out)

    ref = net_forward_ref(x, params)
    assert out.shape == (batch, NUM_CLASSES), out.shape
    assert jnp.allclose(jnp.sum(out, axis=1), 1.0, atol=1e-5), "softmax rows must sum to 1"
    assert jnp.allclose(out, ref, atol=1e-2, rtol=0.0), "mismatch vs bf16 reference"

    print("KERNEL_OK")
</pallas_src>

<mosaic_0001>
module attributes {stable_mosaic.version = 11 : i64} {
  func.func @mlp_kernel(%arg0: i32, %arg1: memref<8x3072xf32, #tpu.memory_space<vmem>>, %arg2: memref<3072x512xbf16, #tpu.memory_space<vmem>>, %arg3: memref<512x256xbf16, #tpu.memory_space<vmem>>, %arg4: memref<256x128xbf16, #tpu.memory_space<vmem>>, %arg5: memref<128x64xbf16, #tpu.memory_space<vmem>>, %arg6: memref<144x32xbf16, #tpu.memory_space<vmem>>, %arg7: memref<9x512xf32, #tpu.memory_space<vmem>>, %arg8: memref<8x10xf32, #tpu.memory_space<vmem>>) attributes {dimension_semantics = [#tpu.dimension_semantics<parallel>], iteration_bounds = array<i64: 1>, scalar_prefetch = 0 : i64, scratch_operands = 0 : i64, tpu.core_type = #tpu.core_type<tc>, window_params = [{transform_indices = @transform_0, window_bounds = array<i64: 8, 3072>}, {pipeline_mode = #tpu.pipeline_mode<synchronous>, transform_indices = @transform_1, window_bounds = array<i64: 3072, 512>}, {pipeline_mode = #tpu.pipeline_mode<synchronous>, transform_indices = @transform_2, window_bounds = array<i64: 512, 256>}, {pipeline_mode = #tpu.pipeline_mode<synchronous>, transform_indices = @transform_3, window_bounds = array<i64: 256, 128>}, {pipeline_mode = #tpu.pipeline_mode<synchronous>, transform_indices = @transform_4, window_bounds = array<i64: 128, 64>}, {pipeline_mode = #tpu.pipeline_mode<synchronous>, transform_indices = @transform_5, window_bounds = array<i64: 144, 32>}, {pipeline_mode = #tpu.pipeline_mode<synchronous>, transform_indices = @transform_6, window_bounds = array<i64: 9, 512>}, {transform_indices = @transform_7, window_bounds = array<i64: 8, 10>}]} {
    %c0 = arith.constant 0 : index
    %c0_0 = arith.constant 0 : index
    %0 = vector.load %arg1[%c0, %c0_0] : memref<8x3072xf32, #tpu.memory_space<vmem>>, vector<8x3072xf32>
    %c0_1 = arith.constant 0 : index
    %c0_2 = arith.constant 0 : index
    %1 = vector.load %arg7[%c0_1, %c0_2] : memref<9x512xf32, #tpu.memory_space<vmem>>, vector<1x512xf32>
    %2 = arith.truncf %0 : vector<8x3072xf32> to vector<8x3072xbf16>
    %c0_3 = arith.constant 0 : index
    %c0_4 = arith.constant 0 : index
    %3 = vector.load %arg2[%c0_3, %c0_4] : memref<3072x512xbf16, #tpu.memory_space<vmem>>, vector<3072x512xbf16>
    %cst = arith.constant dense<0.000000e+00> : vector<8x512xf32>
    %4 = tpu.matmul %2, %3, %cst {dimension_numbers = #tpu.dot_dimension_numbers<[1], [0], [0], [1], [0, 0, 1, 1], [], []>} : vector<8x3072xbf16>, vector<3072x512xbf16>, vector<8x512xf32> -> vector<8x512xf32>
    %5 = vector.broadcast %1 : vector<1x512xf32> to vector<8x512xf32>
    %6 = arith.addf %4, %5 : vector<8x512xf32>
    %cst_5 = arith.constant 0.000000e+00 : f32
    %7 = vector.broadcast %cst_5 : f32 to vector<8x512xf32>
    %8 = arith.maximumf %6, %7 : vector<8x512xf32>
    %c1 = arith.constant 1 : index
    %c0_6 = arith.constant 0 : index
    %9 = vector.load %arg7[%c1, %c0_6] : memref<9x512xf32, #tpu.memory_space<vmem>>, vector<1x256xf32>
    %10 = arith.truncf %8 : vector<8x512xf32> to vector<8x512xbf16>
    %c0_7 = arith.constant 0 : index
    %c0_8 = arith.constant 0 : index
    %11 = vector.load %arg3[%c0_7, %c0_8] : memref<512x256xbf16, #tpu.memory_space<vmem>>, vector<512x256xbf16>
    %cst_9 = arith.constant dense<0.000000e+00> : vector<8x256xf32>
    %12 = tpu.matmul %10, %11, %cst_9 {dimension_numbers = #tpu.dot_dimension_numbers<[1], [0], [0], [1], [0, 0, 1, 1], [], []>} : vector<8x512xbf16>, vector<512x256xbf16>, vector<8x256xf32> -> vector<8x256xf32>
    %13 = vector.broadcast %9 : vector<1x256xf32> to vector<8x256xf32>
    %14 = arith.addf %12, %13 : vector<8x256xf32>
    %cst_10 = arith.constant 0.000000e+00 : f32
    %15 = vector.broadcast %cst_10 : f32 to vector<8x256xf32>
    %16 = arith.maximumf %14, %15 : vector<8x256xf32>
    %c2 = arith.constant 2 : index
    %c0_11 = arith.constant 0 : index
    %17 = vector.load %arg7[%c2, %c0_11] : memref<9x512xf32, #tpu.memory_space<vmem>>, vector<1x128xf32>
    %18 = arith.truncf %16 : vector<8x256xf32> to vector<8x256xbf16>
    %c0_12 = arith.constant 0 : index
    %c0_13 = arith.constant 0 : index
    %19 = vector.load %arg4[%c0_12, %c0_13] : memref<256x128xbf16, #tpu.memory_space<vmem>>, vector<256x128xbf16>
    %cst_14 = arith.constant dense<0.000000e+00> : vector<8x128xf32>
    %20 = tpu.matmul %18, %19, %cst_14 {dimension_numbers = #tpu.dot_dimension_numbers<[1], [0], [0], [1], [0, 0, 1, 1], [], []>} : vector<8x256xbf16>, vector<256x128xbf16>, vector<8x128xf32> -> vector<8x128xf32>
    %21 = vector.broadcast %17 : vector<1x128xf32> to vector<8x128xf32>
    %22 = arith.addf %20, %21 : vector<8x128xf32>
    %cst_15 = arith.constant 0.000000e+00 : f32
    %23 = vector.broadcast %cst_15 : f32 to vector<8x128xf32>
    %24 = arith.maximumf %22, %23 : vector<8x128xf32>
    %c3 = arith.constant 3 : index
    %c0_16 = arith.constant 0 : index
    %25 = vector.load %arg7[%c3, %c0_16] : memref<9x512xf32, #tpu.memory_space<vmem>>, vector<1x64xf32>
    %26 = arith.truncf %24 : vector<8x128xf32> to vector<8x128xbf16>
    %c0_17 = arith.constant 0 : index
    %c0_18 = arith.constant 0 : index
    %27 = vector.load %arg5[%c0_17, %c0_18] : memref<128x64xbf16, #tpu.memory_space<vmem>>, vector<128x64xbf16>
    %cst_19 = arith.constant dense<0.000000e+00> : vector<8x64xf32>
    %28 = tpu.matmul %26, %27, %cst_19 {dimension_numbers = #tpu.dot_dimension_numbers<[1], [0], [0], [1], [0, 0, 1, 1], [], []>} : vector<8x128xbf16>, vector<128x64xbf16>, vector<8x64xf32> -> vector<8x64xf32>
    %29 = vector.broadcast %25 : vector<1x64xf32> to vector<8x64xf32>
    %30 = arith.addf %28, %29 : vector<8x64xf32>
    %cst_20 = arith.constant 0.000000e+00 : f32
    %31 = vector.broadcast %cst_20 : f32 to vector<8x64xf32>
    %32 = arith.maximumf %30, %31 : vector<8x64xf32>
    %c0_21 = arith.constant 0 : index
    %c0_22 = arith.constant 0 : index
    %33 = vector.load %arg6[%c0_21, %c0_22] : memref<144x32xbf16, #tpu.memory_space<vmem>>, vector<64x32xbf16>
    %c4 = arith.constant 4 : index
    %c0_23 = arith.constant 0 : index
    %34 = vector.load %arg7[%c4, %c0_23] : memref<9x512xf32, #tpu.memory_space<vmem>>, vector<1x32xf32>
    %35 = arith.truncf %32 : vector<8x64xf32> to vector<8x64xbf16>
    %cst_24 = arith.constant dense<0.000000e+00> : vector<8x32xf32>
    %36 = tpu.matmul %35, %33, %cst_24 {dimension_numbers = #tpu.dot_dimension_numbers<[1], [0], [0], [1], [0, 0, 1, 1], [], []>} : vector<8x64xbf16>, vector<64x32xbf16>, vector<8x32xf32> -> vector<8x32xf32>
    %37 = vector.broadcast %34 : vector<1x32xf32> to vector<8x32xf32>
    %38 = arith.addf %36, %37 : vector<8x32xf32>
    %cst_25 = arith.constant 0.000000e+00 : f32
    %39 = vector.broadcast %cst_25 : f32 to vector<8x32xf32>
    %40 = arith.maximumf %38, %39 : vector<8x32xf32>
    %c64 = arith.constant 64 : index
    %c0_26 = arith.constant 0 : index
    %41 = vector.load %arg6[%c64, %c0_26] : memref<144x32xbf16, #tpu.memory_space<vmem>>, vector<32x16xbf16>
    %c5 = arith.constant 5 : index
    %c0_27 = arith.constant 0 : index
    %42 = vector.load %arg7[%c5, %c0_27] : memref<9x512xf32, #tpu.memory_space<vmem>>, vector<1x16xf32>
    %43 = arith.truncf %40 : vector<8x32xf32> to vector<8x32xbf16>
    %cst_28 = arith.constant dense<0.000000e+00> : vector<8x16xf32>
    %44 = tpu.matmul %43, %41, %cst_28 {dimension_numbers = #tpu.dot_dimension_numbers<[1], [0], [0], [1], [0, 0, 1, 1], [], []>} : vector<8x32xbf16>, vector<32x16xbf16>, vector<8x16xf32> -> vector<8x16xf32>
    %45 = vector.broadcast %42 : vector<1x16xf32> to vector<8x16xf32>
    %46 = arith.addf %44, %45 : vector<8x16xf32>
    %cst_29 = arith.constant 0.000000e+00 : f32
    %47 = vector.broadcast %cst_29 : f32 to vector<8x16xf32>
    %48 = arith.maximumf %46, %47 : vector<8x16xf32>
    %c96 = arith.constant 96 : index
    %c0_30 = arith.constant 0 : index
    %49 = vector.load %arg6[%c96, %c0_30] : memref<144x32xbf16, #tpu.memory_space<vmem>>, vector<16x16xbf16>
    %c6 = arith.constant 6 : index
    %c0_31 = arith.constant 0 : index
    %50 = vector.load %arg7[%c6, %c0_31] : memref<9x512xf32, #tpu.memory_space<vmem>>, vector<1x16xf32>
    %51 = arith.truncf %48 : vector<8x16xf32> to vector<8x16xbf16>
    %cst_32 = arith.constant dense<0.000000e+00> : vector<8x16xf32>
    %52 = tpu.matmul %51, %49, %cst_32 {dimension_numbers = #tpu.dot_dimension_numbers<[1], [0], [0], [1], [0, 0, 1, 1], [], []>} : vector<8x16xbf16>, vector<16x16xbf16>, vector<8x16xf32> -> vector<8x16xf32>
    %53 = vector.broadcast %50 : vector<1x16xf32> to vector<8x16xf32>
    %54 = arith.addf %52, %53 : vector<8x16xf32>
    %cst_33 = arith.constant 0.000000e+00 : f32
    %55 = vector.broadcast %cst_33 : f32 to vector<8x16xf32>
    %56 = arith.maximumf %54, %55 : vector<8x16xf32>
    %c112 = arith.constant 112 : index
    %c0_34 = arith.constant 0 : index
    %57 = vector.load %arg6[%c112, %c0_34] : memref<144x32xbf16, #tpu.memory_space<vmem>>, vector<16x16xbf16>
    %c7 = arith.constant 7 : index
    %c0_35 = arith.constant 0 : index
    %58 = vector.load %arg7[%c7, %c0_35] : memref<9x512xf32, #tpu.memory_space<vmem>>, vector<1x16xf32>
    %59 = arith.truncf %56 : vector<8x16xf32> to vector<8x16xbf16>
    %cst_36 = arith.constant dense<0.000000e+00> : vector<8x16xf32>
    %60 = tpu.matmul %59, %57, %cst_36 {dimension_numbers = #tpu.dot_dimension_numbers<[1], [0], [0], [1], [0, 0, 1, 1], [], []>} : vector<8x16xbf16>, vector<16x16xbf16>, vector<8x16xf32> -> vector<8x16xf32>
    %61 = vector.broadcast %58 : vector<1x16xf32> to vector<8x16xf32>
    %62 = arith.addf %60, %61 : vector<8x16xf32>
    %cst_37 = arith.constant 0.000000e+00 : f32
    %63 = vector.broadcast %cst_37 : f32 to vector<8x16xf32>
    %64 = arith.maximumf %62, %63 : vector<8x16xf32>
    %c128 = arith.constant 128 : index
    %c0_38 = arith.constant 0 : index
    %65 = vector.load %arg6[%c128, %c0_38] : memref<144x32xbf16, #tpu.memory_space<vmem>>, vector<16x10xbf16>
    %c8 = arith.constant 8 : index
    %c0_39 = arith.constant 0 : index
    %66 = vector.load %arg7[%c8, %c0_39] : memref<9x512xf32, #tpu.memory_space<vmem>>, vector<1x10xf32>
    %67 = arith.truncf %64 : vector<8x16xf32> to vector<8x16xbf16>
    %cst_40 = arith.constant dense<0.000000e+00> : vector<8x10xf32>
    %68 = tpu.matmul %67, %65, %cst_40 {dimension_numbers = #tpu.dot_dimension_numbers<[1], [0], [0], [1], [0, 0, 1, 1], [], []>} : vector<8x16xbf16>, vector<16x10xbf16>, vector<8x10xf32> -> vector<8x10xf32>
    %69 = vector.broadcast %66 : vector<1x10xf32> to vector<8x10xf32>
    %70 = arith.addf %68, %69 : vector<8x10xf32>
    %cst_41 = arith.constant dense<0xFF800000> : vector<8xf32>
    %71 = vector.multi_reduction <maximumf>, %70, %cst_41 [1] : vector<8x10xf32> to vector<8xf32>
    %72 = vector.shape_cast %71 : vector<8xf32> to vector<8x1xf32>
    %73 = vector.broadcast %72 : vector<8x1xf32> to vector<8x10xf32>
    %74 = arith.subf %70, %73 : vector<8x10xf32>
    %75 = math.exp %74 : vector<8x10xf32>
    %cst_42 = arith.constant dense<0.000000e+00> : vector<8xf32>
    %76 = vector.multi_reduction <add>, %75, %cst_42 [1] : vector<8x10xf32> to vector<8xf32>
    %77 = vector.shape_cast %76 : vector<8xf32> to vector<8x1xf32>
    %78 = tpu.reciprocal %77 : vector<8x1xf32> -> vector<8x1xf32>
    %79 = vector.broadcast %78 : vector<8x1xf32> to vector<8x10xf32>
    %80 = arith.mulf %75, %79 : vector<8x10xf32>
    %c0_43 = arith.constant 0 : index
    %c0_44 = arith.constant 0 : index
    %81 = vector.load %arg8[%c0_43, %c0_44] : memref<8x10xf32, #tpu.memory_space<vmem>>, vector<8x10xf32>
    tpu.vector_store %arg8[%c0_43, %c0_44], %80 {strides = array<i32>} : memref<8x10xf32, #tpu.memory_space<vmem>>, vector<8x10xf32>,
    return
  }
  func.func @transform_0(%arg0: i32) -> (i32, i32) {
    %c0_i32 = arith.constant 0 : i32
    %c0_i32_0 = arith.constant 0 : i32
    return %arg0, %c0_i32 : i32, i32
  }
  func.func @transform_1(%arg0: i32) -> (i32, i32) {
    %c0_i32 = arith.constant 0 : i32
    %c0_i32_0 = arith.constant 0 : i32
    %c0_i32_1 = arith.constant 0 : i32
    return %c0_i32, %c0_i32_0 : i32, i32
  }
  func.func @transform_2(%arg0: i32) -> (i32, i32) {
    %c0_i32 = arith.constant 0 : i32
    %c0_i32_0 = arith.constant 0 : i32
    %c0_i32_1 = arith.constant 0 : i32
    return %c0_i32, %c0_i32_0 : i32, i32
  }
  func.func @transform_3(%arg0: i32) -> (i32, i32) {
    %c0_i32 = arith.constant 0 : i32
    %c0_i32_0 = arith.constant 0 : i32
    %c0_i32_1 = arith.constant 0 : i32
    return %c0_i32, %c0_i32_0 : i32, i32
  }
  func.func @transform_4(%arg0: i32) -> (i32, i32) {
    %c0_i32 = arith.constant 0 : i32
    %c0_i32_0 = arith.constant 0 : i32
    %c0_i32_1 = arith.constant 0 : i32
    return %c0_i32, %c0_i32_0 : i32, i32
  }
  func.func @transform_5(%arg0: i32) -> (i32, i32) {
    %c0_i32 = arith.constant 0 : i32
    %c0_i32_0 = arith.constant 0 : i32
    %c0_i32_1 = arith.constant 0 : i32
    return %c0_i32, %c0_i32_0 : i32, i32
  }
  func.func @transform_6(%arg0: i32) -> (i32, i32) {
    %c0_i32 = arith.constant 0 : i32
    %c0_i32_0 = arith.constant 0 : i32
    %c0_i32_1 = arith.constant 0 : i32
    return %c0_i32, %c0_i32_0 : i32, i32
  }
  func.func @transform_7(%arg0: i32) -> (i32, i32) {
    %c0_i32 = arith.constant 0 : i32
    %c0_i32_0 = arith.constant 0 : i32
    return %arg0, %c0_i32 : i32, i32
  }
}

</mosaic_0001>

<bundles_post_ra>
// kernel: net_forward.1
= control target key start
LH: loop header
LB: loop body
LE: loop exit
PB: predicated region body
PF: predicated region fallthrough
CT: control target
= control target key end

     0   :  { %12 = vsyncpa [#allocation3], 0  ;;  %s11826_s0 = inlined_call_operand.hbm [shape: f32[8,3072], index: 0, kind: input, shape index: {}]   ;;  %s11827_s1 = inlined_call_operand.hbm [shape: bf16[3072,512], index: 1, kind: input, shape index: {}]   ;;  %s11828_s2 = inlined_call_operand.hbm [shape: bf16[512,256], index: 2, kind: input, shape index: {}]   ;;  %s11829_s3 = inlined_call_operand.hbm [shape: bf16[256,128], index: 3, kind: input, shape index: {}]   ;;  %s11830_s4 = inlined_call_operand.vmem [shape: bf16[128,64], index: 4, kind: input, shape index: {}]   ;;  %s11831_s5 = inlined_call_operand.vmem [shape: bf16[144,32], index: 5, kind: input, shape index: {}]   ;;  %s11832_s6 = inlined_call_operand.hbm [shape: f32[9,512], index: 6, kind: input, shape index: {}]   ;;  %s11833_s7 = inlined_call_operand.hbm [shape: f32[8,10], index: 7, kind: output, shape index: {}]  }
   0x1   :  { %13 = vsyncpa [#allocation6], 0 }
   0x2   :  { %14 = vsyncpa [#allocation9], 0  ;;  %s31_s26 = sshll.u32 %s11827_s1, 4  ;;  %s32_s26 = int_to_ptr.hbm [resolvable:$true] %s31_s26 }
   0x3   :  { %15 = vsyncpa [#allocation4], 0  ;;  %s11478_s27 = smov [#allocation5]   ;;  %s57_s8 = sshll.u32 %s11829_s3, 4  ;;  %s58_s8 = int_to_ptr.hbm [resolvable:$true] %s57_s8 }
   0x4   :  { %s33_s28 = sshll.u32 %s11478_s27, 4  ;;  %s11479_s9 = smov 256   ;;  %s34_s28 = int_to_ptr.vmem [resolvable:$true] %s33_s28 }
   0x5   :  { %s11480_s10 = smov 16   ;;  %s11481_s11 = smov [#allocation8]  }
   0x6   :  { %39 = dma.hbm_to_vmem [thread:$0]  %s32_s26, 98304, %s34_s28, [#allocation6], %s11479_s9, %s11479_s9, %s11480_s10  }
   0x7   :  { %s59_s12 = sshll.u32 %s11481_s11, 4  ;;  %s11482_s13 = smov 64   ;;  %s60_s12 = int_to_ptr.vmem [resolvable:$true] %s59_s12 }
   0x8   :  { %s11483_s14 = smov 4   ;;  %s21_s16 = sshll.u32 %s11826_s0, 4  ;;  %s22_s16 = int_to_ptr.hbm [resolvable:$true] %s21_s16 }
   0x9   :  { %65 = dma.hbm_to_vmem [thread:$0]  %s58_s8, 2048, %s60_s12, [#allocation9], %s11482_s13, %s11482_s13, %s11483_s14  }
   0xa   :  { %s11484_s17 = smov [#allocation2]   ;;  %s44_s20 = sshll.u32 %s11828_s2, 4  ;;  %s45_s20 = int_to_ptr.hbm [resolvable:$true] %s44_s20 }
   0xb   :  { %s23_s18 = sshll.u32 %s11484_s17, 4  ;;  %s11485_s21 = smov [#allocation7]   ;;  %s24_s18 = int_to_ptr.vmem [resolvable:$true] %s23_s18 }
   0xc   :  { %26 = dma.hbm_to_vmem [thread:$0]  %s22_s16, 3072, %s24_s18, [#allocation3]  }
   0xd   :  { %s46_s22 = sshll.u32 %s11485_s21, 4  ;;  %s11486_s23 = smov 128   ;;  %s47_s22 = int_to_ptr.vmem [resolvable:$true] %s46_s22 }
   0xe   :  { %s11487_s24 = smov 8   ;;  %s74_s0 = sshll.u32 %s11832_s6, 4  ;;  %s75_s0 = int_to_ptr.hbm [resolvable:$true] %s74_s0 }
   0xf   :  { %52 = dma.hbm_to_vmem [thread:$0]  %s45_s20, 8192, %s47_s22, [#allocation6], %s11486_s23, %s11486_s23, %s11487_s24  }
  0x10   :  { %s11488_s27 = smov [#allocation10]   ;;  %s11489_s29 = smov 512  }
  0x11   :  { %s76_s28 = sshll.u32 %s11488_s27, 4  ;;  %s11490_s30 = smov 32   ;;  %s77_s28 = int_to_ptr.vmem [resolvable:$true] %s76_s28 }
  0x12   :  { %82 = dma.hbm_to_vmem [thread:$0]  %s75_s0, 1024, %s77_s28, [#allocation9], %s11489_s29, %s11489_s29, %s11490_s30  }
  0x13   :  { %11470 = dma.done.wait [#allocation3], 3072  }
  0x14   :  { %11471 = vsyncadd [#allocation3], 4294964224 }
  0x15   :  { %11472 = dma.done.wait [#allocation6], 106496  }
  0x16   :  { %11473 = vsyncadd [#allocation6], 4294860800 }
  0x17   :  { %11474 = dma.done.wait [#allocation9], 3072  }
  0x18   :  { %11475 = vsyncadd [#allocation9], 4294964224  ;;  %v7089_v0 = vld [vmem:[#allocation5 + $0xe0] sm:$0xf]  ;;  %v10470_v1 = vld [vmem:[#allocation5 + $0xec] sm:$0xf0] }
  0x19   :  { %v7217_v2 = vld [vmem:[#allocation5 + $0x1e0] sm:$0xf]  ;;  %v7090_v3 = vor.u32 %v10470_v1, %v7089_v0  ;;  %v10502_v4 = vld [vmem:[#allocation5 + $0x1ec] sm:$0xf0]  ;;  %vm6795_vm0 = vcmask 523264   ;;  %vm6831_vm1 = vcmask 261120  }
  0x1a   :  { %v7345_v5 = vld [vmem:[#allocation5 + $0x2e0] sm:$0xf]  ;;  %v10534_v6 = vld [vmem:[#allocation5 + $0x2ec] sm:$0xf0]  ;;  %v7218_v7 = vor.u32 %v10502_v4, %v7217_v2  ;;  %vm6859_vm2 = vcmask 130048   ;;  %vm6930_vm3 = vcmask 80896  }
  0x1b   :  { %v7346_v8 = vor.u32 %v10534_v6, %v7345_v5  ;;  %v7473_v9 = vld [vmem:[#allocation5 + $0x3e0] sm:$0xf]  ;;  %v10566_v10 = vld [vmem:[#allocation5 + $0x3ec] sm:$0xf0]  ;;  %4770 = vmatpush.bf16.msra.mxu0 %v7090_v3  ;;  %s6963_s14 = sshll.u32 %s11833_s7, 4  ;;  %s6964_s14 = int_to_ptr.hbm [resolvable:$true] %s6963_s14 }
  0x1c   :  { %v7073_v11 = vld [vmem:[#allocation5 + $0xc0] sm:$0xf]  ;;  %v7474_v12 = vor.u32 %v10566_v10, %v7473_v9  ;;  %v10466_v13 = vld [vmem:[#allocation5 + $0xcc] sm:$0xf0]  ;;  %4783 = vmatpush.bf16.msra.mxu1 %v7218_v7 }
  0x1d   :  { %v7201_v14 = vld [vmem:[#allocation5 + $0x1c0] sm:$0xf]  ;;  %v10498_v15 = vld [vmem:[#allocation5 + $0x1cc] sm:$0xf0]  ;;  %4796 = vmatpush.bf16.msra.mxu2 %v7346_v8  ;;  %v7074_v16 = vor.u32 %v10466_v13, %v7073_v11 }
  0x1e   :  { %v7202_v17 = vor.u32 %v10498_v15, %v7201_v14  ;;  %v7329_v18 = vld [vmem:[#allocation5 + $0x2c0] sm:$0xf]  ;;  %v10530_v19 = vld [vmem:[#allocation5 + $0x2cc] sm:$0xf0]  ;;  %4809 = vmatpush.bf16.msra.mxu3 %v7474_v12 }
  0x1f   :  { %v7457_v20 = vld [vmem:[#allocation5 + $0x3c0] sm:$0xf]  ;;  %v7330_v21 = vor.u32 %v10530_v19, %v7329_v18  ;;  %v10562_v22 = vld [vmem:[#allocation5 + $0x3cc] sm:$0xf0]  ;;  %4771 = vmatpush.bf16.msra.mxu0 %v7074_v16 }
  0x20   :  { %v7057_v23 = vld [vmem:[#allocation5 + $0xa0] sm:$0xf]  ;;  %v10462_v24 = vld [vmem:[#allocation5 + $0xac] sm:$0xf0]  ;;  %v7458_v25 = vor.u32 %v10562_v22, %v7457_v20  ;;  %4784 = vmatpush.bf16.msra.mxu1 %v7202_v17 }
  0x21   :  { %v7185_v26 = vld [vmem:[#allocation5 + $0x1a0] sm:$0xf]  ;;  %v10494_v27 = vld [vmem:[#allocation5 + $0x1ac] sm:$0xf0]  ;;  %v7058_v29 = vor.u32 %v10462_v24, %v7057_v23  ;;  %4797 = vmatpush.bf16.msra.mxu2 %v7330_v21 }
  0x22   :  { %v7313_v28 = vld [vmem:[#allocation5 + $0x2a0] sm:$0xf]  ;;  %v10526_v30 = vld [vmem:[#allocation5 + $0x2ac] sm:$0xf0]  ;;  %v7186_v33 = vor.u32 %v10494_v27, %v7185_v26  ;;  %4810 = vmatpush.bf16.msra.mxu3 %v7458_v25 }
  0x23   :  { %v7441_v31 = vld [vmem:[#allocation5 + $0x3a0] sm:$0xf]  ;;  %v10558_v32 = vld [vmem:[#allocation5 + $0x3ac] sm:$0xf0]  ;;  %v7314_v34 = vor.u32 %v10526_v30, %v7313_v28  ;;  %4772 = vmatpush.bf16.msra.mxu0 %v7058_v29 }
  0x24   :  { %v7041_v35 = vld [vmem:[#allocation5 + $0x80] sm:$0xf]  ;;  %v10458_v36 = vld [vmem:[#allocation5 + $0x8c] sm:$0xf0]  ;;  %v7442_v38 = vor.u32 %v10558_v32, %v7441_v31  ;;  %4785 = vmatpush.bf16.msra.mxu1 %v7186_v33 }
  0x25   :  { %v7169_v37 = vld [vmem:[#allocation5 + $0x180] sm:$0xf]  ;;  %v10490_v39 = vld [vmem:[#allocation5 + $0x18c] sm:$0xf0]  ;;  %v7042_v44 = vor.u32 %v10458_v36, %v7041_v35  ;;  %4798 = vmatpush.bf16.msra.mxu2 %v7314_v34 }
  0x26   :  { %v7297_v40 = vld [vmem:[#allocation5 + $0x280] sm:$0xf]  ;;  %v10522_v41 = vld [vmem:[#allocation5 + $0x28c] sm:$0xf0]  ;;  %v7170_v45 = vor.u32 %v10490_v39, %v7169_v37  ;;  %4811 = vmatpush.bf16.msra.mxu3 %v7442_v38 }
  0x27   :  { %v7425_v42 = vld [vmem:[#allocation5 + $0x380] sm:$0xf]  ;;  %v10554_v43 = vld [vmem:[#allocation5 + $0x38c] sm:$0xf0]  ;;  %v7298_v46 = vor.u32 %v10522_v41, %v7297_v40  ;;  %4773 = vmatpush.bf16.msra.mxu0 %v7042_v44 }
  0x28   :  { %v7025_v47 = vld [vmem:[#allocation5 + $0x60] sm:$0xf]  ;;  %v10454_v48 = vld [vmem:[#allocation5 + $0x6c] sm:$0xf0]  ;;  %v7426_v50 = vor.u32 %v10554_v43, %v7425_v42  ;;  %4786 = vmatpush.bf16.msra.mxu1 %v7170_v45 }
  0x29   :  { %v7153_v49 = vld [vmem:[#allocation5 + $0x160] sm:$0xf]  ;;  %v10486_v51 = vld [vmem:[#allocation5 + $0x16c] sm:$0xf0]  ;;  %v7026_v56 = vor.u32 %v10454_v48, %v7025_v47  ;;  %4799 = vmatpush.bf16.msra.mxu2 %v7298_v46 }
  0x2a   :  { %v7281_v52 = vld [vmem:[#allocation5 + $0x260] sm:$0xf]  ;;  %v10518_v53 = vld [vmem:[#allocation5 + $0x26c] sm:$0xf0]  ;;  %v7154_v57 = vor.u32 %v10486_v51, %v7153_v49  ;;  %4812 = vmatpush.bf16.msra.mxu3 %v7426_v50 }
  0x2b   :  { %v7409_v54 = vld [vmem:[#allocation5 + $0x360] sm:$0xf]  ;;  %v10550_v55 = vld [vmem:[#allocation5 + $0x36c] sm:$0xf0]  ;;  %v7282_v58 = vor.u32 %v10518_v53, %v7281_v52  ;;  %4774 = vmatpush.bf16.msra.mxu0 %v7026_v56 }
  0x2c   :  { %v7009_v59 = vld [vmem:[#allocation5 + $0x40] sm:$0xf]  ;;  %v10450_v60 = vld [vmem:[#allocation5 + $0x4c] sm:$0xf0]  ;;  %v7410_v62 = vor.u32 %v10550_v55, %v7409_v54  ;;  %4787 = vmatpush.bf16.msra.mxu1 %v7154_v57 }
  0x2d   :  { %v7137_v61 = vld [vmem:[#allocation5 + $0x140] sm:$0xf]  ;;  %v10482_v63 = vld [vmem:[#allocation5 + $0x14c] sm:$0xf0]  ;;  %v7010_v4 = vor.u32 %v10450_v60, %v7009_v59  ;;  %4800 = vmatpush.bf16.msra.mxu2 %v7282_v58 }
  0x2e   :  { %v7265_v0 = vld [vmem:[#allocation5 + $0x240] sm:$0xf]  ;;  %v10514_v1 = vld [vmem:[#allocation5 + $0x24c] sm:$0xf0]  ;;  %v7138_v5 = vor.u32 %v10482_v63, %v7137_v61  ;;  %4813 = vmatpush.bf16.msra.mxu3 %v7410_v62 }
  0x2f   :  { %v7393_v2 = vld [vmem:[#allocation5 + $0x340] sm:$0xf]  ;;  %v10546_v3 = vld [vmem:[#allocation5 + $0x34c] sm:$0xf0]  ;;  %v7266_v6 = vor.u32 %v10514_v1, %v7265_v0  ;;  %4775 = vmatpush.bf16.msra.mxu0 %v7010_v4 }
  0x30   :  { %v6993_v7 = vld [vmem:[#allocation5 + $0x20] sm:$0xf]  ;;  %v10446_v8 = vld [vmem:[#allocation5 + $0x2c] sm:$0xf0]  ;;  %v7394_v10 = vor.u32 %v10546_v3, %v7393_v2  ;;  %4788 = vmatpush.bf16.msra.mxu1 %v7138_v5 }
  0x31   :  { %v7121_v9 = vld [vmem:[#allocation5 + $0x120] sm:$0xf]  ;;  %v10478_v11 = vld [vmem:[#allocation5 + $0x12c] sm:$0xf0]  ;;  %v6994_v16 = vor.u32 %v10446_v8, %v6993_v7  ;;  %4801 = vmatpush.bf16.msra.mxu2 %v7266_v6 }
  0x32   :  { %v7249_v12 = vld [vmem:[#allocation5 + $0x220] sm:$0xf]  ;;  %v10510_v13 = vld [vmem:[#allocation5 + $0x22c] sm:$0xf0]  ;;  %v7122_v19 = vor.u32 %v10478_v11, %v7121_v9  ;;  %4814 = vmatpush.bf16.msra.mxu3 %v7394_v10  ;;  %v107_v10 = vld [vmem:[#allocation2 + $0x18] sm:$0xff] }
  0x33   :  { %v7377_v14 = vld [vmem:[#allocation5 + $0x320] sm:$0xf]  ;;  %v10542_v15 = vld [vmem:[#allocation5 + $0x32c] sm:$0xf0]  ;;  %v7250_v20 = vor.u32 %v10510_v13, %v7249_v12  ;;  %4776 = vmatpush.bf16.msra.mxu0 %v6994_v16 }
  0x34   :  { %v6977_v17 = vld [vmem:[#allocation5] sm:$0xf]  ;;  %v10442_v18 = vld [vmem:[#allocation5 + $0xc] sm:$0xf0]  ;;  %v7378_v24 = vor.u32 %v10542_v15, %v7377_v14  ;;  %4789 = vmatpush.bf16.msra.mxu1 %v7122_v19  ;;  %v11551_v15 = vpack.c.bf16 %v107_v10, %v107_v10  ;;  %v105_v19 = vld [vmem:[#allocation2 + $0x8] sm:$0xff] }
  0x35   :  { %v7105_v21 = vld [vmem:[#allocation5 + $0x100] sm:$0xf]  ;;  %v10474_v22 = vld [vmem:[#allocation5 + $0x10c] sm:$0xf0]  ;;  %v6978_v31 = vor.u32 %v10442_v18, %v6977_v17  ;;  %4802 = vmatpush.bf16.msra.mxu2 %v7250_v20 }
  0x36   :  { %v7233_v23 = vld [vmem:[#allocation5 + $0x200] sm:$0xf]  ;;  %v10506_v25 = vld [vmem:[#allocation5 + $0x20c] sm:$0xf0]  ;;  %v7106_v35 = vor.u32 %v10474_v22, %v7105_v21  ;;  %4815 = vmatpush.bf16.msra.mxu3 %v7378_v24 }
  0x37   :  { %v7361_v26 = vld [vmem:[#allocation5 + $0x300] sm:$0xf]  ;;  %v10538_v27 = vld [vmem:[#allocation5 + $0x30c] sm:$0xf0]  ;;  %v7234_v36 = vor.u32 %v10506_v25, %v7233_v23  ;;  %4777 = vmatpush.bf16.msra.mxu0 %v6978_v31  ;;  %v11556_v25 = vpack.c.bf16 %v105_v19, %v105_v19 }
  0x38   :  { %v7601_v28 = vld [vmem:[#allocation5 + $0x4e0] sm:$0xf]  ;;  %v10598_v29 = vld [vmem:[#allocation5 + $0x4ec] sm:$0xf0]  ;;  %v7362_v39 = vor.u32 %v10538_v27, %v7361_v26  ;;  %4790 = vmatpush.bf16.msra.mxu1 %v7106_v35 }
  0x39   :  { %v7729_v30 = vld [vmem:[#allocation5 + $0x5e0] sm:$0xf]  ;;  %v10630_v32 = vld [vmem:[#allocation5 + $0x5ec] sm:$0xf0]  ;;  %v7602_v40 = vor.u32 %v10598_v29, %v7601_v28  ;;  %4803 = vmatpush.bf16.msra.mxu2 %v7234_v36 }
  0x3a   :  { %v7857_v33 = vld [vmem:[#allocation5 + $0x6e0] sm:$0xf]  ;;  %v10662_v34 = vld [vmem:[#allocation5 + $0x6ec] sm:$0xf0]  ;;  %v7730_v41 = vor.u32 %v10630_v32, %v7729_v30  ;;  %4816 = vmatpush.bf16.msra.mxu3 %v7362_v39 }
  0x3b   :  { %v7985_v37 = vld [vmem:[#allocation5 + $0x7e0] sm:$0xf]  ;;  %v10694_v38 = vld [vmem:[#allocation5 + $0x7ec] sm:$0xf0]  ;;  %v7858_v42 = vor.u32 %v10662_v34, %v7857_v33  ;;  %4822 = vmatpush.bf16.msrb.mxu0 %v7602_v40  ;;  %4791 = vmatmul.bf16.vlgmr.msra.gmra.mxu1 %v11556_v25 }
  0x3c   :  { %v7585_v43 = vld [vmem:[#allocation5 + $0x4c0] sm:$0xf]  ;;  %v10594_v44 = vld [vmem:[#allocation5 + $0x4cc] sm:$0xf0]  ;;  %v7986_v46 = vor.u32 %v10694_v38, %v7985_v37  ;;  %4835 = vmatpush.bf16.msrb.mxu1 %v7730_v41 }
  0x3d   :  { %v7713_v45 = vld [vmem:[#allocation5 + $0x5c0] sm:$0xf]  ;;  %v10626_v47 = vld [vmem:[#allocation5 + $0x5cc] sm:$0xf0]  ;;  %v7586_v52 = vor.u32 %v10594_v44, %v7585_v43  ;;  %4848 = vmatpush.bf16.msrb.mxu2 %v7858_v42  ;;  %4817 = vmatmul.bf16.vlgmr.msra.gmra.mxu3 %v11551_v15 }
  0x3e   :  { %v7841_v48 = vld [vmem:[#allocation5 + $0x6c0] sm:$0xf]  ;;  %v10658_v49 = vld [vmem:[#allocation5 + $0x6cc] sm:$0xf0]  ;;  %v7714_v54 = vor.u32 %v10626_v47, %v7713_v45  ;;  %4861 = vmatpush.bf16.msrb.mxu3 %v7986_v46 }
  0x3f   :  { %v7969_v50 = vld [vmem:[#allocation5 + $0x7c0] sm:$0xf]  ;;  %v10690_v51 = vld [vmem:[#allocation5 + $0x7cc] sm:$0xf0]  ;;  %v7842_v55 = vor.u32 %v10658_v49, %v7841_v48  ;;  %4823 = vmatpush.bf16.msrb.mxu0 %v7586_v52 }
  0x40   :  { %v7569_v53 = vld [vmem:[#allocation5 + $0x4a0] sm:$0xf]  ;;  %v10590_v56 = vld [vmem:[#allocation5 + $0x4ac] sm:$0xf0]  ;;  %v7970_v59 = vor.u32 %v10690_v51, %v7969_v50  ;;  %4836 = vmatpush.bf16.msrb.mxu1 %v7714_v54 }
  0x41   :  { %v7697_v57 = vld [vmem:[#allocation5 + $0x5a0] sm:$0xf]  ;;  %v10622_v58 = vld [vmem:[#allocation5 + $0x5ac] sm:$0xf0]  ;;  %v7570_v0 = vor.u32 %v10590_v56, %v7569_v53  ;;  %4849 = vmatpush.bf16.msrb.mxu2 %v7842_v55 }
  0x42   :  { %v7825_v60 = vld [vmem:[#allocation5 + $0x6a0] sm:$0xf]  ;;  %v10654_v61 = vld [vmem:[#allocation5 + $0x6ac] sm:$0xf0]  ;;  %v7698_v1 = vor.u32 %v10622_v58, %v7697_v57  ;;  %4862 = vmatpush.bf16.msrb.mxu3 %v7970_v59 }
  0x43   :  { %v7953_v62 = vld [vmem:[#allocation5 + $0x7a0] sm:$0xf]  ;;  %v10686_v63 = vld [vmem:[#allocation5 + $0x7ac] sm:$0xf0]  ;;  %v7826_v5 = vor.u32 %v10654_v61, %v7825_v60  ;;  %4824 = vmatpush.bf16.msrb.mxu0 %v7570_v0 }
  0x44   :  { %v7553_v2 = vld [vmem:[#allocation5 + $0x480] sm:$0xf]  ;;  %v106_v3 = vld [vmem:[#allocation2 + $0x10] sm:$0xff]  ;;  %v7954_v11 = vor.u32 %v10686_v63, %v7953_v62  ;;  %4837 = vmatpush.bf16.msrb.mxu1 %v7698_v1 }
  0x45   :  { %v104_v4 = vld [vmem:[#allocation2] sm:$0xff]  ;;  %v10586_v6 = vld [vmem:[#allocation5 + $0x48c] sm:$0xf0]  ;;  %v11547_v8 = vpack.c.bf16 %v106_v3, %v106_v3  ;;  %4850 = vmatpush.bf16.msrb.mxu2 %v7826_v5 }
  0x46   :  { %v7681_v7 = vld [vmem:[#allocation5 + $0x580] sm:$0xf]  ;;  %v11549_v9 = vpack.c.bf16 %v104_v4, %v104_v4  ;;  %v10618_v12 = vld [vmem:[#allocation5 + $0x58c] sm:$0xf0]  ;;  %v7554_v18 = vor.u32 %v10586_v6, %v7553_v2  ;;  %4863 = vmatpush.bf16.msrb.mxu3 %v7954_v11 }
  0x47   :  { %v7809_v13 = vld [vmem:[#allocation5 + $0x680] sm:$0xf]  ;;  %v10650_v14 = vld [vmem:[#allocation5 + $0x68c] sm:$0xf0]  ;;  %4804 = vmatmul.bf16.vlgmr.msra.gmra.mxu2 %v11547_v8  ;;  %v7682_v20 = vor.u32 %v10618_v12, %v7681_v7 }
  0x48   :  { %v7937_v16 = vld [vmem:[#allocation5 + $0x780] sm:$0xf]  ;;  %v10682_v17 = vld [vmem:[#allocation5 + $0x78c] sm:$0xf0]  ;;  %4778 = vmatmul.bf16.vlgmr.msra.gmra.mxu0 %v11549_v9  ;;  %v7810_v21 = vor.u32 %v10650_v14, %v7809_v13 }
  0x49   :  { %v7537_v22 = vld [vmem:[#allocation5 + $0x460] sm:$0xf]  ;;  %v10582_v23 = vld [vmem:[#allocation5 + $0x46c] sm:$0xf0]  ;;  %v7938_v26 = vor.u32 %v10682_v17, %v7937_v16  ;;  %4825 = vmatpush.bf16.msrb.mxu0 %v7554_v18  ;;  %4838 = vmatpush.bf16.msrb.mxu1 %v7682_v20 }
  0x4a   :  { %v7665_v24 = vld [vmem:[#allocation5 + $0x560] sm:$0xf]  ;;  %v10614_v27 = vld [vmem:[#allocation5 + $0x56c] sm:$0xf0]  ;;  %v7538_v32 = vor.u32 %v10582_v23, %v7537_v22  ;;  %4851 = vmatpush.bf16.msrb.mxu2 %v7810_v21  ;;  %v111_v23 = vld [vmem:[#allocation2 + $0x38] sm:$0xff] }
  0x4b   :  { %v7793_v28 = vld [vmem:[#allocation5 + $0x660] sm:$0xf]  ;;  %v10646_v29 = vld [vmem:[#allocation5 + $0x66c] sm:$0xf0]  ;;  %v7666_v33 = vor.u32 %v10614_v27, %v7665_v24  ;;  %4864 = vmatpush.bf16.msrb.mxu3 %v7938_v26 }
  0x4c   :  { %v7921_v30 = vld [vmem:[#allocation5 + $0x760] sm:$0xf]  ;;  %v10678_v31 = vld [vmem:[#allocation5 + $0x76c] sm:$0xf0]  ;;  %v7794_v34 = vor.u32 %v10646_v29, %v7793_v28  ;;  %v109_v29 = vld [vmem:[#allocation2 + $0x28] sm:$0xff] }
  0x4d   :  { %v7521_v35 = vld [vmem:[#allocation5 + $0x440] sm:$0xf]  ;;  %v10578_v36 = vld [vmem:[#allocation5 + $0x44c] sm:$0xf0]  ;;  %v7922_v38 = vor.u32 %v10678_v31, %v7921_v30  ;;  %4826 = vmatpush.bf16.msrb.mxu0 %v7538_v32  ;;  %4839 = vmatpush.bf16.msrb.mxu1 %v7666_v33 }
  0x4e   :  { %v7649_v37 = vld [vmem:[#allocation5 + $0x540] sm:$0xf]  ;;  %v10610_v39 = vld [vmem:[#allocation5 + $0x54c] sm:$0xf0]  ;;  %v7522_v44 = vor.u32 %v10578_v36, %v7521_v35  ;;  %4852 = vmatpush.bf16.msrb.mxu2 %v7794_v34 }
  0x4f   :  { %v7777_v40 = vld [vmem:[#allocation5 + $0x640] sm:$0xf]  ;;  %v10642_v41 = vld [vmem:[#allocation5 + $0x64c] sm:$0xf0]  ;;  %v7650_v45 = vor.u32 %v10610_v39, %v7649_v37  ;;  %4865 = vmatpush.bf16.msrb.mxu3 %v7922_v38  ;;  %v11563_v38 = vpack.c.bf16 %v111_v23, %v111_v23 }
  0x50   :  { %v7905_v42 = vld [vmem:[#allocation5 + $0x740] sm:$0xf]  ;;  %v10674_v43 = vld [vmem:[#allocation5 + $0x74c] sm:$0xf0]  ;;  %v7778_v46 = vor.u32 %v10642_v41, %v7777_v40  ;;  %v11565_v40 = vpack.c.bf16 %v109_v29, %v109_v29 }
  0x51   :  { %v7505_v47 = vld [vmem:[#allocation5 + $0x420] sm:$0xf]  ;;  %v10574_v48 = vld [vmem:[#allocation5 + $0x42c] sm:$0xf0]  ;;  %v7906_v50 = vor.u32 %v10674_v43, %v7905_v42  ;;  %4827 = vmatpush.bf16.msrb.mxu0 %v7522_v44  ;;  %4840 = vmatpush.bf16.msrb.mxu1 %v7650_v45 }
  0x52   :  { %v7633_v49 = vld [vmem:[#allocation5 + $0x520] sm:$0xf]  ;;  %v10606_v51 = vld [vmem:[#allocation5 + $0x52c] sm:$0xf0]  ;;  %v7506_v56 = vor.u32 %v10574_v48, %v7505_v47  ;;  %4853 = vmatpush.bf16.msrb.mxu2 %v7778_v46 }
  0x53   :  { %v7761_v52 = vld [vmem:[#allocation5 + $0x620] sm:$0xf]  ;;  %v10638_v53 = vld [vmem:[#allocation5 + $0x62c] sm:$0xf0]  ;;  %v7634_v59 = vor.u32 %v10606_v51, %v7633_v49  ;;  %4866 = vmatpush.bf16.msrb.mxu3 %v7906_v50 }
  0x54   :  { %v7889_v54 = vld [vmem:[#allocation5 + $0x720] sm:$0xf]  ;;  %v10670_v55 = vld [vmem:[#allocation5 + $0x72c] sm:$0xf0]  ;;  %v7762_v60 = vor.u32 %v10638_v53, %v7761_v52 }
  0x55   :  { %v7489_v57 = vld [vmem:[#allocation5 + $0x400] sm:$0xf]  ;;  %v10570_v58 = vld [vmem:[#allocation5 + $0x40c] sm:$0xf0]  ;;  %v7890_v0 = vor.u32 %v10670_v55, %v7889_v54  ;;  %4828 = vmatpush.bf16.msrb.mxu0 %v7506_v56  ;;  %4841 = vmatpush.bf16.msrb.mxu1 %v7634_v59 }
  0x56   :  { %v7617_v61 = vld [vmem:[#allocation5 + $0x500] sm:$0xf]  ;;  %v10602_v62 = vld [vmem:[#allocation5 + $0x50c] sm:$0xf0]  ;;  %v7490_v7 = vor.u32 %v10570_v58, %v7489_v57  ;;  %4854 = vmatpush.bf16.msrb.mxu2 %v7762_v60 }
  0x57   :  { %v7745_v63 = vld [vmem:[#allocation5 + $0x600] sm:$0xf]  ;;  %v10634_v1 = vld [vmem:[#allocation5 + $0x60c] sm:$0xf0]  ;;  %v7618_v13 = vor.u32 %v10602_v62, %v7617_v61  ;;  %4867 = vmatpush.bf16.msrb.mxu3 %v7890_v0 }
  0x58   :  { %v7873_v2 = vld [vmem:[#allocation5 + $0x700] sm:$0xf]  ;;  %v10666_v3 = vld [vmem:[#allocation5 + $0x70c] sm:$0xf0]  ;;  %v7746_v14 = vor.u32 %v10634_v1, %v7745_v63 }
  0x59   :  { %v8113_v4 = vld [vmem:[#allocation5 + $0x8e0] sm:$0xf]  ;;  %v10726_v5 = vld [vmem:[#allocation5 + $0x8ec] sm:$0xf0]  ;;  %v7874_v19 = vor.u32 %v10666_v3, %v7873_v2  ;;  %4829 = vmatpush.bf16.msrb.mxu0 %v7490_v7  ;;  %4842 = vmatpush.bf16.msrb.mxu1 %v7618_v13 }
  0x5a   :  { %v8241_v6 = vld [vmem:[#allocation5 + $0x9e0] sm:$0xf]  ;;  %v10758_v10 = vld [vmem:[#allocation5 + $0x9ec] sm:$0xf0]  ;;  %v8114_v20 = vor.u32 %v10726_v5, %v8113_v4  ;;  %4855 = vmatpush.bf16.msrb.mxu2 %v7746_v14 }
  0x5b   :  { %v8369_v11 = vld [vmem:[#allocation5 + $0xae0] sm:$0xf]  ;;  %v10790_v12 = vld [vmem:[#allocation5 + $0xaec] sm:$0xf0]  ;;  %v8242_v24 = vor.u32 %v10758_v10, %v8241_v6  ;;  %4868 = vmatpush.bf16.msrb.mxu3 %v7874_v19 }
  0x5c   :  { %v8497_v16 = vld [vmem:[#allocation5 + $0xbe0] sm:$0xf]  ;;  %v10822_v17 = vld [vmem:[#allocation5 + $0xbec] sm:$0xf0]  ;;  %v8370_v26 = vor.u32 %v10790_v12, %v8369_v11  ;;  %4843 = vmatmul.bf16.vlgmr.msrb.gmra.mxu1 %v11565_v40 }
  0x5d   :  { %v110_v18 = vld [vmem:[#allocation2 + $0x30] sm:$0xff]  ;;  %v8097_v21 = vld [vmem:[#allocation5 + $0x8c0] sm:$0xf]  ;;  %v8498_v30 = vor.u32 %v10822_v17, %v8497_v16  ;;  %4874 = vmatpush.bf16.msra.mxu0 %v8114_v20  ;;  %4887 = vmatpush.bf16.msra.mxu1 %v8242_v24 }
  0x5e   :  { %v108_v22 = vld [vmem:[#allocation2 + $0x20] sm:$0xff]  ;;  %v10722_v27 = vld [vmem:[#allocation5 + $0x8cc] sm:$0xf0]  ;;  %v11559_v34 = vpack.c.bf16 %v110_v18, %v110_v18  ;;  %4900 = vmatpush.bf16.msra.mxu2 %v8370_v26  ;;  %4869 = vmatmul.bf16.vlgmr.msrb.gmra.mxu3 %v11563_v38 }
  0x5f   :  { %v8225_v28 = vld [vmem:[#allocation5 + $0x9c0] sm:$0xf]  ;;  %v10754_v31 = vld [vmem:[#allocation5 + $0x9cc] sm:$0xf0]  ;;  %v11561_v37 = vpack.c.bf16 %v108_v22, %v108_v22  ;;  %v8098_v39 = vor.u32 %v10722_v27, %v8097_v21  ;;  %4913 = vmatpush.bf16.msra.mxu3 %v8498_v30 }
  0x60   :  { %v8353_v32 = vld [vmem:[#allocation5 + $0xac0] sm:$0xf]  ;;  %v10786_v33 = vld [vmem:[#allocation5 + $0xacc] sm:$0xf0]  ;;  %v8226_v41 = vor.u32 %v10754_v31, %v8225_v28  ;;  %4856 = vmatmul.bf16.vlgmr.msrb.gmra.mxu2 %v11559_v34 }
  0x61   :  { %v8481_v35 = vld [vmem:[#allocation5 + $0xbc0] sm:$0xf]  ;;  %v10818_v36 = vld [vmem:[#allocation5 + $0xbcc] sm:$0xf0]  ;;  %v8354_v42 = vor.u32 %v10786_v33, %v8353_v32  ;;  %4830 = vmatmul.bf16.vlgmr.msrb.gmra.mxu0 %v11561_v37 }
  0x62   :  { %v8081_v43 = vld [vmem:[#allocation5 + $0x8a0] sm:$0xf]  ;;  %v10718_v44 = vld [vmem:[#allocation5 + $0x8ac] sm:$0xf0]  ;;  %v8482_v46 = vor.u32 %v10818_v36, %v8481_v35  ;;  %4875 = vmatpush.bf16.msra.mxu0 %v8098_v39  ;;  %4888 = vmatpush.bf16.msra.mxu1 %v8226_v41 }
  0x63   :  { %v8209_v45 = vld [vmem:[#allocation5 + $0x9a0] sm:$0xf]  ;;  %v10750_v47 = vld [vmem:[#allocation5 + $0x9ac] sm:$0xf0]  ;;  %v8082_v52 = vor.u32 %v10718_v44, %v8081_v43  ;;  %4901 = vmatpush.bf16.msra.mxu2 %v8354_v42 }
  0x64   :  { %v8337_v48 = vld [vmem:[#allocation5 + $0xaa0] sm:$0xf]  ;;  %v10782_v49 = vld [vmem:[#allocation5 + $0xaac] sm:$0xf0]  ;;  %v8210_v53 = vor.u32 %v10750_v47, %v8209_v45  ;;  %4914 = vmatpush.bf16.msra.mxu3 %v8482_v46 }
  0x65   :  { %v8465_v50 = vld [vmem:[#allocation5 + $0xba0] sm:$0xf]  ;;  %v10814_v51 = vld [vmem:[#allocation5 + $0xbac] sm:$0xf0]  ;;  %v8338_v54 = vor.u32 %v10782_v49, %v8337_v48 }
  0x66   :  { %v8065_v55 = vld [vmem:[#allocation5 + $0x880] sm:$0xf]  ;;  %v10714_v56 = vld [vmem:[#allocation5 + $0x88c] sm:$0xf0]  ;;  %v8466_v58 = vor.u32 %v10814_v51, %v8465_v50  ;;  %4876 = vmatpush.bf16.msra.mxu0 %v8082_v52  ;;  %4889 = vmatpush.bf16.msra.mxu1 %v8210_v53 }
  0x67   :  { %v8193_v57 = vld [vmem:[#allocation5 + $0x980] sm:$0xf]  ;;  %v10746_v59 = vld [vmem:[#allocation5 + $0x98c] sm:$0xf0]  ;;  %v8066_v0 = vor.u32 %v10714_v56, %v8065_v55  ;;  %4902 = vmatpush.bf16.msra.mxu2 %v8338_v54 }
  0x68   :  { %v8321_v60 = vld [vmem:[#allocation5 + $0xa80] sm:$0xf]  ;;  %v10778_v61 = vld [vmem:[#allocation5 + $0xa8c] sm:$0xf0]  ;;  %v8194_v1 = vor.u32 %v10746_v59, %v8193_v57  ;;  %4915 = vmatpush.bf16.msra.mxu3 %v8466_v58 }
  0x69   :  { %v8449_v62 = vld [vmem:[#allocation5 + $0xb80] sm:$0xf]  ;;  %v10810_v63 = vld [vmem:[#allocation5 + $0xb8c] sm:$0xf0]  ;;  %v8322_v2 = vor.u32 %v10778_v61, %v8321_v60 }
  0x6a   :  { %v8049_v3 = vld [vmem:[#allocation5 + $0x860] sm:$0xf]  ;;  %v10710_v4 = vld [vmem:[#allocation5 + $0x86c] sm:$0xf0]  ;;  %v8450_v6 = vor.u32 %v10810_v63, %v8449_v62  ;;  %4877 = vmatpush.bf16.msra.mxu0 %v8066_v0  ;;  %4890 = vmatpush.bf16.msra.mxu1 %v8194_v1 }
  0x6b   :  { %v8177_v5 = vld [vmem:[#allocation5 + $0x960] sm:$0xf]  ;;  %v10742_v7 = vld [vmem:[#allocation5 + $0x96c] sm:$0xf0]  ;;  %v8050_v14 = vor.u32 %v10710_v4, %v8049_v3  ;;  %4903 = vmatpush.bf16.msra.mxu2 %v8322_v2 }
  0x6c   :  { %v8305_v10 = vld [vmem:[#allocation5 + $0xa60] sm:$0xf]  ;;  %v10774_v11 = vld [vmem:[#allocation5 + $0xa6c] sm:$0xf0]  ;;  %v8178_v16 = vor.u32 %v10742_v7, %v8177_v5  ;;  %4916 = vmatpush.bf16.msra.mxu3 %v8450_v6  ;;  %v113_v7 = vld [vmem:[#allocation2 + $0x48] sm:$0xff] }
  0x6d   :  { %v8433_v12 = vld [vmem:[#allocation5 + $0xb60] sm:$0xf]  ;;  %v10806_v13 = vld [vmem:[#allocation5 + $0xb6c] sm:$0xf0]  ;;  %v8306_v17 = vor.u32 %v10774_v11, %v8305_v10  ;;  %v115_v10 = vld [vmem:[#allocation2 + $0x58] sm:$0xff] }
  0x6e   :  { %v8033_v18 = vld [vmem:[#allocation5 + $0x840] sm:$0xf]  ;;  %v10706_v19 = vld [vmem:[#allocation5 + $0x84c] sm:$0xf0]  ;;  %v8434_v21 = vor.u32 %v10806_v13, %v8433_v12  ;;  %4878 = vmatpush.bf16.msra.mxu0 %v8050_v14  ;;  %4891 = vmatpush.bf16.msra.mxu1 %v8178_v16 }
  0x6f   :  { %v8161_v20 = vld [vmem:[#allocation5 + $0x940] sm:$0xf]  ;;  %v10738_v22 = vld [vmem:[#allocation5 + $0x94c] sm:$0xf0]  ;;  %v8034_v28 = vor.u32 %v10706_v19, %v8033_v18  ;;  %4904 = vmatpush.bf16.msra.mxu2 %v8306_v17 }
  0x70   :  { %v8289_v23 = vld [vmem:[#allocation5 + $0xa40] sm:$0xf]  ;;  %v10770_v24 = vld [vmem:[#allocation5 + $0xa4c] sm:$0xf0]  ;;  %v8162_v29 = vor.u32 %v10738_v22, %v8161_v20  ;;  %4917 = vmatpush.bf16.msra.mxu3 %v8434_v21 }
  0x71   :  { %v8417_v26 = vld [vmem:[#allocation5 + $0xb40] sm:$0xf]  ;;  %v10802_v27 = vld [vmem:[#allocation5 + $0xb4c] sm:$0xf0]  ;;  %v8290_v30 = vor.u32 %v10770_v24, %v8289_v23  ;;  %v11575_v23 = vpack.c.bf16 %v113_v7, %v113_v7 }
  0x72   :  { %v8017_v31 = vld [vmem:[#allocation5 + $0x820] sm:$0xf]  ;;  %v10702_v32 = vld [vmem:[#allocation5 + $0x82c] sm:$0xf0]  ;;  %v8418_v35 = vor.u32 %v10802_v27, %v8417_v26  ;;  %4879 = vmatpush.bf16.msra.mxu0 %v8034_v28  ;;  %4892 = vmatpush.bf16.msra.mxu1 %v8162_v29  ;;  %v11577_v27 = vpack.c.bf16 %v115_v10, %v115_v10 }
  0x73   :  { %v8145_v33 = vld [vmem:[#allocation5 + $0x920] sm:$0xf]  ;;  %v10734_v36 = vld [vmem:[#allocation5 + $0x92c] sm:$0xf0]  ;;  %v8018_v44 = vor.u32 %v10702_v32, %v8017_v31  ;;  %4905 = vmatpush.bf16.msra.mxu2 %v8290_v30 }
  0x74   :  { %v8273_v39 = vld [vmem:[#allocation5 + $0xa20] sm:$0xf]  ;;  %v10766_v41 = vld [vmem:[#allocation5 + $0xa2c] sm:$0xf0]  ;;  %v8146_v47 = vor.u32 %v10734_v36, %v8145_v33  ;;  %4918 = vmatpush.bf16.msra.mxu3 %v8418_v35 }
  0x75   :  { %v8401_v42 = vld [vmem:[#allocation5 + $0xb20] sm:$0xf]  ;;  %v10798_v43 = vld [vmem:[#allocation5 + $0xb2c] sm:$0xf0]  ;;  %v8274_v48 = vor.u32 %v10766_v41, %v8273_v39 }
  0x76   :  { %v8001_v45 = vld [vmem:[#allocation5 + $0x800] sm:$0xf]  ;;  %v10698_v46 = vld [vmem:[#allocation5 + $0x80c] sm:$0xf0]  ;;  %v8402_v52 = vor.u32 %v10798_v43, %v8401_v42  ;;  %4880 = vmatpush.bf16.msra.mxu0 %v8018_v44  ;;  %4893 = vmatpush.bf16.msra.mxu1 %v8146_v47 }
  0x77   :  { %v8129_v49 = vld [vmem:[#allocation5 + $0x900] sm:$0xf]  ;;  %v10730_v50 = vld [vmem:[#allocation5 + $0x90c] sm:$0xf0]  ;;  %v8002_v59 = vor.u32 %v10698_v46, %v8001_v45  ;;  %4906 = vmatpush.bf16.msra.mxu2 %v8274_v48 }
  0x78   :  { %v8257_v51 = vld [vmem:[#allocation5 + $0xa00] sm:$0xf]  ;;  %v10762_v53 = vld [vmem:[#allocation5 + $0xa0c] sm:$0xf0]  ;;  %v8130_v63 = vor.u32 %v10730_v50, %v8129_v49  ;;  %4919 = vmatpush.bf16.msra.mxu3 %v8402_v52 }
  0x79   :  { %v8385_v54 = vld [vmem:[#allocation5 + $0xb00] sm:$0xf]  ;;  %v10794_v55 = vld [vmem:[#allocation5 + $0xb0c] sm:$0xf0]  ;;  %v8258_v0 = vor.u32 %v10762_v53, %v8257_v51 }
  0x7a   :  { %v8625_v56 = vld [vmem:[#allocation5 + $0xce0] sm:$0xf]  ;;  %v10854_v57 = vld [vmem:[#allocation5 + $0xcec] sm:$0xf0]  ;;  %v8386_v4 = vor.u32 %v10794_v55, %v8385_v54  ;;  %4881 = vmatpush.bf16.msra.mxu0 %v8002_v59  ;;  %4894 = vmatpush.bf16.msra.mxu1 %v8130_v63 }
  0x7b   :  { %v8753_v58 = vld [vmem:[#allocation5 + $0xde0] sm:$0xf]  ;;  %v10886_v60 = vld [vmem:[#allocation5 + $0xdec] sm:$0xf0]  ;;  %v8626_v5 = vor.u32 %v10854_v57, %v8625_v56  ;;  %4907 = vmatpush.bf16.msra.mxu2 %v8258_v0 }
  0x7c   :  { %v8881_v61 = vld [vmem:[#allocation5 + $0xee0] sm:$0xf]  ;;  %v10918_v62 = vld [vmem:[#allocation5 + $0xeec] sm:$0xf0]  ;;  %v8754_v11 = vor.u32 %v10886_v60, %v8753_v58  ;;  %4920 = vmatpush.bf16.msra.mxu3 %v8386_v4 }
  0x7d   :  { %v9009_v1 = vld [vmem:[#allocation5 + $0xfe0] sm:$0xf]  ;;  %v10950_v2 = vld [vmem:[#allocation5 + $0xfec] sm:$0xf0]  ;;  %v8882_v12 = vor.u32 %v10918_v62, %v8881_v61  ;;  %4895 = vmatmul.bf16.vlgmr.msra.gmra.mxu1 %v11575_v23 }
  0x7e   :  { %v112_v3 = vld [vmem:[#allocation2 + $0x40] sm:$0xff]  ;;  %v114_v6 = vld [vmem:[#allocation2 + $0x50] sm:$0xff]  ;;  %v9010_v17 = vor.u32 %v10950_v2, %v9009_v1  ;;  %4926 = vmatpush.bf16.msrb.mxu0 %v8626_v5  ;;  %4939 = vmatpush.bf16.msrb.mxu1 %v8754_v11 }
  0x7f   :  { %v8609_v13 = vld [vmem:[#allocation5 + $0xcc0] sm:$0xf]  ;;  %v10850_v14 = vld [vmem:[#allocation5 + $0xccc] sm:$0xf0]  ;;  %v11571_v18 = vpack.c.bf16 %v112_v3, %v112_v3  ;;  %v11573_v22 = vpack.c.bf16 %v114_v6, %v114_v6  ;;  %4952 = vmatpush.bf16.msrb.mxu2 %v8882_v12  ;;  %4921 = vmatmul.bf16.vlgmr.msra.gmra.mxu3 %v11577_v27 }
  0x80   :  { %v8737_v16 = vld [vmem:[#allocation5 + $0xdc0] sm:$0xf]  ;;  %v10882_v19 = vld [vmem:[#allocation5 + $0xdcc] sm:$0xf0]  ;;  %v8610_v28 = vor.u32 %v10850_v14, %v8609_v13  ;;  %4965 = vmatpush.bf16.msrb.mxu3 %v9010_v17 }
  0x81   :  { %v8865_v20 = vld [vmem:[#allocation5 + $0xec0] sm:$0xf]  ;;  %v10914_v21 = vld [vmem:[#allocation5 + $0xecc] sm:$0xf0]  ;;  %v8738_v29 = vor.u32 %v10882_v19, %v8737_v16  ;;  %4882 = vmatmul.bf16.vlgmr.msra.gmra.mxu0 %v11571_v18  ;;  %4908 = vmatmul.bf16.vlgmr.msra.gmra.mxu2 %v11573_v22 }
  0x82   :  { %v8993_v24 = vld [vmem:[#allocation5 + $0xfc0] sm:$0xf]  ;;  %v10946_v26 = vld [vmem:[#allocation5 + $0xfcc] sm:$0xf0]  ;;  %v8866_v30 = vor.u32 %v10914_v21, %v8865_v20  ;;  %4927 = vmatpush.bf16.msrb.mxu0 %v8610_v28 }
  0x83   :  { %v8593_v31 = vld [vmem:[#allocation5 + $0xca0] sm:$0xf]  ;;  %v10846_v32 = vld [vmem:[#allocation5 + $0xcac] sm:$0xf0]  ;;  %v8994_v35 = vor.u32 %v10946_v26, %v8993_v24  ;;  %4940 = vmatpush.bf16.msrb.mxu1 %v8738_v29 }
  0x84   :  { %v8721_v33 = vld [vmem:[#allocation5 + $0xda0] sm:$0xf]  ;;  %v10878_v36 = vld [vmem:[#allocation5 + $0xdac] sm:$0xf0]  ;;  %v8594_v44 = vor.u32 %v10846_v32, %v8593_v31  ;;  %4953 = vmatpush.bf16.msrb.mxu2 %v8866_v30 }
  0x85   :  { %v8849_v39 = vld [vmem:[#allocation5 + $0xea0] sm:$0xf]  ;;  %v10910_v41 = vld [vmem:[#allocation5 + $0xeac] sm:$0xf0]  ;;  %v8722_v45 = vor.u32 %v10878_v36, %v8721_v33  ;;  %4966 = vmatpush.bf16.msrb.mxu3 %v8994_v35 }
  0x86   :  { %v8977_v42 = vld [vmem:[#allocation5 + $0xfa0] sm:$0xf]  ;;  %v10942_v43 = vld [vmem:[#allocation5 + $0xfac] sm:$0xf0]  ;;  %v8850_v46 = vor.u32 %v10910_v41, %v8849_v39  ;;  %4928 = vmatpush.bf16.msrb.mxu0 %v8594_v44 }
  0x87   :  { %v8577_v47 = vld [vmem:[#allocation5 + $0xc80] sm:$0xf]  ;;  %v10842_v48 = vld [vmem:[#allocation5 + $0xc8c] sm:$0xf0]  ;;  %v8978_v50 = vor.u32 %v10942_v43, %v8977_v42  ;;  %4941 = vmatpush.bf16.msrb.mxu1 %v8722_v45 }
  0x88   :  { %v8705_v49 = vld [vmem:[#allocation5 + $0xd80] sm:$0xf]  ;;  %v10874_v51 = vld [vmem:[#allocation5 + $0xd8c] sm:$0xf0]  ;;  %v8578_v56 = vor.u32 %v10842_v48, %v8577_v47  ;;  %4954 = vmatpush.bf16.msrb.mxu2 %v8850_v46 }
  0x89   :  { %v8833_v52 = vld [vmem:[#allocation5 + $0xe80] sm:$0xf]  ;;  %v10906_v53 = vld [vmem:[#allocation5 + $0xe8c] sm:$0xf0]  ;;  %v8706_v57 = vor.u32 %v10874_v51, %v8705_v49  ;;  %4967 = vmatpush.bf16.msrb.mxu3 %v8978_v50 }
  0x8a   :  { %v8961_v54 = vld [vmem:[#allocation5 + $0xf80] sm:$0xf]  ;;  %v10938_v55 = vld [vmem:[#allocation5 + $0xf8c] sm:$0xf0]  ;;  %v8834_v58 = vor.u32 %v10906_v53, %v8833_v52  ;;  %4929 = vmatpush.bf16.msrb.mxu0 %v8578_v56 }
  0x8b   :  { %v8561_v59 = vld [vmem:[#allocation5 + $0xc60] sm:$0xf]  ;;  %v10838_v60 = vld [vmem:[#allocation5 + $0xc6c] sm:$0xf0]  ;;  %v8962_v62 = vor.u32 %v10938_v55, %v8961_v54  ;;  %4942 = vmatpush.bf16.msrb.mxu1 %v8706_v57 }
  0x8c   :  { %v8689_v61 = vld [vmem:[#allocation5 + $0xd60] sm:$0xf]  ;;  %v10870_v63 = vld [vmem:[#allocation5 + $0xd6c] sm:$0xf0]  ;;  %v8562_v4 = vor.u32 %v10838_v60, %v8561_v59  ;;  %4955 = vmatpush.bf16.msrb.mxu2 %v8834_v58 }
  0x8d   :  { %v8817_v0 = vld [vmem:[#allocation5 + $0xe60] sm:$0xf]  ;;  %v10902_v1 = vld [vmem:[#allocation5 + $0xe6c] sm:$0xf0]  ;;  %v8690_v5 = vor.u32 %v10870_v63, %v8689_v61  ;;  %4968 = vmatpush.bf16.msrb.mxu3 %v8962_v62 }
  0x8e   :  { %v8945_v2 = vld [vmem:[#allocation5 + $0xf60] sm:$0xf]  ;;  %v10934_v3 = vld [vmem:[#allocation5 + $0xf6c] sm:$0xf0]  ;;  %v8818_v6 = vor.u32 %v10902_v1, %v8817_v0  ;;  %4930 = vmatpush.bf16.msrb.mxu0 %v8562_v4  ;;  %v119_v4 = vld [vmem:[#allocation2 + $0x78] sm:$0xff] }
  0x8f   :  { %v8545_v7 = vld [vmem:[#allocation5 + $0xc40] sm:$0xf]  ;;  %v10834_v10 = vld [vmem:[#allocation5 + $0xc4c] sm:$0xf0]  ;;  %v8946_v12 = vor.u32 %v10934_v3, %v8945_v2  ;;  %4943 = vmatpush.bf16.msrb.mxu1 %v8690_v5  ;;  %v117_v3 = vld [vmem:[#allocation2 + $0x68] sm:$0xff] }
  0x90   :  { %v8673_v11 = vld [vmem:[#allocation5 + $0xd40] sm:$0xf]  ;;  %v10866_v13 = vld [vmem:[#allocation5 + $0xd4c] sm:$0xf0]  ;;  %v8546_v20 = vor.u32 %v10834_v10, %v8545_v7  ;;  %4956 = vmatpush.bf16.msrb.mxu2 %v8818_v6 }
  0x91   :  { %v8801_v14 = vld [vmem:[#allocation5 + $0xe40] sm:$0xf]  ;;  %v10898_v16 = vld [vmem:[#allocation5 + $0xe4c] sm:$0xf0]  ;;  %v8674_v21 = vor.u32 %v10866_v13, %v8673_v11  ;;  %4969 = vmatpush.bf16.msrb.mxu3 %v8946_v12 }
  0x92   :  { %v8929_v17 = vld [vmem:[#allocation5 + $0xf40] sm:$0xf]  ;;  %v10930_v19 = vld [vmem:[#allocation5 + $0xf4c] sm:$0xf0]  ;;  %v8802_v24 = vor.u32 %v10898_v16, %v8801_v14  ;;  %4931 = vmatpush.bf16.msrb.mxu0 %v8546_v20  ;;  %v11587_v20 = vpack.c.bf16 %v117_v3, %v117_v3 }
  0x93   :  { %v8529_v26 = vld [vmem:[#allocation5 + $0xc20] sm:$0xf]  ;;  %v10830_v28 = vld [vmem:[#allocation5 + $0xc2c] sm:$0xf0]  ;;  %v8930_v30 = vor.u32 %v10930_v19, %v8929_v17  ;;  %4944 = vmatpush.bf16.msrb.mxu1 %v8674_v21 }
  0x94   :  { %v8657_v29 = vld [vmem:[#allocation5 + $0xd20] sm:$0xf]  ;;  %v10862_v31 = vld [vmem:[#allocation5 + $0xd2c] sm:$0xf0]  ;;  %v8530_v39 = vor.u32 %v10830_v28, %v8529_v26  ;;  %4957 = vmatpush.bf16.msrb.mxu2 %v8802_v24  ;;  %v11589_v26 = vpack.c.bf16 %v119_v4, %v119_v4 }
  0x95   :  { %v8785_v32 = vld [vmem:[#allocation5 + $0xe20] sm:$0xf]  ;;  %v10894_v33 = vld [vmem:[#allocation5 + $0xe2c] sm:$0xf0]  ;;  %v8658_v43 = vor.u32 %v10862_v31, %v8657_v29  ;;  %4970 = vmatpush.bf16.msrb.mxu3 %v8930_v30 }
  0x96   :  { %v8913_v35 = vld [vmem:[#allocation5 + $0xf20] sm:$0xf]  ;;  %v10926_v36 = vld [vmem:[#allocation5 + $0xf2c] sm:$0xf0]  ;;  %v8786_v44 = vor.u32 %v10894_v33, %v8785_v32  ;;  %4932 = vmatpush.bf16.msrb.mxu0 %v8530_v39 }
  0x97   :  { %v8513_v41 = vld [vmem:[#allocation5 + $0xc00] sm:$0xf]  ;;  %v10826_v42 = vld [vmem:[#allocation5 + $0xc0c] sm:$0xf0]  ;;  %v8914_v48 = vor.u32 %v10926_v36, %v8913_v35  ;;  %4945 = vmatpush.bf16.msrb.mxu1 %v8658_v43 }
  0x98   :  { %v8641_v45 = vld [vmem:[#allocation5 + $0xd00] sm:$0xf]  ;;  %v10858_v46 = vld [vmem:[#allocation5 + $0xd0c] sm:$0xf0]  ;;  %v8514_v55 = vor.u32 %v10826_v42, %v8513_v41  ;;  %4958 = vmatpush.bf16.msrb.mxu2 %v8786_v44 }
  0x99   :  { %v8769_v47 = vld [vmem:[#allocation5 + $0xe00] sm:$0xf]  ;;  %v10890_v49 = vld [vmem:[#allocation5 + $0xe0c] sm:$0xf0]  ;;  %v8642_v59 = vor.u32 %v10858_v46, %v8641_v45  ;;  %4971 = vmatpush.bf16.msrb.mxu3 %v8914_v48 }
  0x9a   :  { %v8897_v50 = vld [vmem:[#allocation5 + $0xf00] sm:$0xf]  ;;  %v10922_v51 = vld [vmem:[#allocation5 + $0xf0c] sm:$0xf0]  ;;  %v8770_v60 = vor.u32 %v10890_v49, %v8769_v47  ;;  %4933 = vmatpush.bf16.msrb.mxu0 %v8514_v55 }
  0x9b   :  { %v9137_v52 = vld [vmem:[#allocation5 + $0x10e0] sm:$0xf]  ;;  %v10982_v53 = vld [vmem:[#allocation5 + $0x10ec] sm:$0xf0]  ;;  %v8898_v0 = vor.u32 %v10922_v51, %v8897_v50  ;;  %4946 = vmatpush.bf16.msrb.mxu1 %v8642_v59 }
  0x9c   :  { %v9265_v54 = vld [vmem:[#allocation5 + $0x11e0] sm:$0xf]  ;;  %v11014_v56 = vld [vmem:[#allocation5 + $0x11ec] sm:$0xf0]  ;;  %v9138_v1 = vor.u32 %v10982_v53, %v9137_v52  ;;  %4959 = vmatpush.bf16.msrb.mxu2 %v8770_v60 }
  0x9d   :  { %v9393_v57 = vld [vmem:[#allocation5 + $0x12e0] sm:$0xf]  ;;  %v11046_v58 = vld [vmem:[#allocation5 + $0x12ec] sm:$0xf0]  ;;  %v9266_v5 = vor.u32 %v11014_v56, %v9265_v54  ;;  %4972 = vmatpush.bf16.msrb.mxu3 %v8898_v0 }
  0x9e   :  { %v9521_v61 = vld [vmem:[#allocation5 + $0x13e0] sm:$0xf]  ;;  %v11078_v62 = vld [vmem:[#allocation5 + $0x13ec] sm:$0xf0]  ;;  %v9394_v6 = vor.u32 %v11046_v58, %v9393_v57  ;;  %4978 = vmatpush.bf16.msra.mxu0 %v9138_v1  ;;  %4947 = vmatmul.bf16.vlgmr.msrb.gmra.mxu1 %v11587_v20 }
  0x9f   :  { %v116_v63 = vld [vmem:[#allocation2 + $0x60] sm:$0xff]  ;;  %v118_v2 = vld [vmem:[#allocation2 + $0x70] sm:$0xff]  ;;  %v9522_v12 = vor.u32 %v11078_v62, %v9521_v61  ;;  %4991 = vmatpush.bf16.msra.mxu1 %v9266_v5 }
  0xa0   :  { %v9121_v7 = vld [vmem:[#allocation5 + $0x10c0] sm:$0xf]  ;;  %v10978_v10 = vld [vmem:[#allocation5 + $0x10cc] sm:$0xf0]  ;;  %v11583_v13 = vpack.c.bf16 %v116_v63, %v116_v63  ;;  %v11585_v19 = vpack.c.bf16 %v118_v2, %v118_v2  ;;  %5004 = vmatpush.bf16.msra.mxu2 %v9394_v6  ;;  %4973 = vmatmul.bf16.vlgmr.msrb.gmra.mxu3 %v11589_v26 }
  0xa1   :  { %v9249_v11 = vld [vmem:[#allocation5 + $0x11c0] sm:$0xf]  ;;  %v11010_v14 = vld [vmem:[#allocation5 + $0x11cc] sm:$0xf0]  ;;  %v9122_v28 = vor.u32 %v10978_v10, %v9121_v7  ;;  %5017 = vmatpush.bf16.msra.mxu3 %v9522_v12 }
  0xa2   :  { %v9377_v16 = vld [vmem:[#allocation5 + $0x12c0] sm:$0xf]  ;;  %v11042_v17 = vld [vmem:[#allocation5 + $0x12cc] sm:$0xf0]  ;;  %v9250_v29 = vor.u32 %v11010_v14, %v9249_v11  ;;  %4934 = vmatmul.bf16.vlgmr.msrb.gmra.mxu0 %v11583_v13  ;;  %4960 = vmatmul.bf16.vlgmr.msrb.gmra.mxu2 %v11585_v19 }
  0xa3   :  { %v9505_v21 = vld [vmem:[#allocation5 + $0x13c0] sm:$0xf]  ;;  %v11074_v24 = vld [vmem:[#allocation5 + $0x13cc] sm:$0xf0]  ;;  %v9378_v30 = vor.u32 %v11042_v17, %v9377_v16  ;;  %4979 = vmatpush.bf16.msra.mxu0 %v9122_v28 }
  0xa4   :  { %v9105_v31 = vld [vmem:[#allocation5 + $0x10a0] sm:$0xf]  ;;  %v10974_v32 = vld [vmem:[#allocation5 + $0x10ac] sm:$0xf0]  ;;  %v9506_v35 = vor.u32 %v11074_v24, %v9505_v21  ;;  %4992 = vmatpush.bf16.msra.mxu1 %v9250_v29 }
  0xa5   :  { %v9233_v33 = vld [vmem:[#allocation5 + $0x11a0] sm:$0xf]  ;;  %v11006_v36 = vld [vmem:[#allocation5 + $0x11ac] sm:$0xf0]  ;;  %v9106_v44 = vor.u32 %v10974_v32, %v9105_v31  ;;  %5005 = vmatpush.bf16.msra.mxu2 %v9378_v30 }
  0xa6   :  { %v9361_v39 = vld [vmem:[#allocation5 + $0x12a0] sm:$0xf]  ;;  %v11038_v41 = vld [vmem:[#allocation5 + $0x12ac] sm:$0xf0]  ;;  %v9234_v45 = vor.u32 %v11006_v36, %v9233_v33  ;;  %5018 = vmatpush.bf16.msra.mxu3 %v9506_v35 }
  0xa7   :  { %v9489_v42 = vld [vmem:[#allocation5 + $0x13a0] sm:$0xf]  ;;  %v11070_v43 = vld [vmem:[#allocation5 + $0x13ac] sm:$0xf0]  ;;  %v9362_v46 = vor.u32 %v11038_v41, %v9361_v39  ;;  %4980 = vmatpush.bf16.msra.mxu0 %v9106_v44 }
  0xa8   :  { %v9089_v47 = vld [vmem:[#allocation5 + $0x1080] sm:$0xf]  ;;  %v10970_v48 = vld [vmem:[#allocation5 + $0x108c] sm:$0xf0]  ;;  %v9490_v50 = vor.u32 %v11070_v43, %v9489_v42  ;;  %4993 = vmatpush.bf16.msra.mxu1 %v9234_v45 }
  0xa9   :  { %v9217_v49 = vld [vmem:[#allocation5 + $0x1180] sm:$0xf]  ;;  %v11002_v51 = vld [vmem:[#allocation5 + $0x118c] sm:$0xf0]  ;;  %v9090_v56 = vor.u32 %v10970_v48, %v9089_v47  ;;  %5006 = vmatpush.bf16.msra.mxu2 %v9362_v46 }
  0xaa   :  { %v9345_v52 = vld [vmem:[#allocation5 + $0x1280] sm:$0xf]  ;;  %v11034_v53 = vld [vmem:[#allocation5 + $0x128c] sm:$0xf0]  ;;  %v9218_v57 = vor.u32 %v11002_v51, %v9217_v49  ;;  %5019 = vmatpush.bf16.msra.mxu3 %v9490_v50 }
  0xab   :  { %v9473_v54 = vld [vmem:[#allocation5 + $0x1380] sm:$0xf]  ;;  %v11066_v55 = vld [vmem:[#allocation5 + $0x138c] sm:$0xf0]  ;;  %v9346_v58 = vor.u32 %v11034_v53, %v9345_v52  ;;  %4981 = vmatpush.bf16.msra.mxu0 %v9090_v56 }
  0xac   :  { %v9073_v59 = vld [vmem:[#allocation5 + $0x1060] sm:$0xf]  ;;  %v10966_v60 = vld [vmem:[#allocation5 + $0x106c] sm:$0xf0]  ;;  %v9474_v62 = vor.u32 %v11066_v55, %v9473_v54  ;;  %4994 = vmatpush.bf16.msra.mxu1 %v9218_v57 }
  0xad   :  { %v9201_v61 = vld [vmem:[#allocation5 + $0x1160] sm:$0xf]  ;;  %v10998_v63 = vld [vmem:[#allocation5 + $0x116c] sm:$0xf0]  ;;  %v9074_v4 = vor.u32 %v10966_v60, %v9073_v59  ;;  %5007 = vmatpush.bf16.msra.mxu2 %v9346_v58 }
  0xae   :  { %v9329_v0 = vld [vmem:[#allocation5 + $0x1260] sm:$0xf]  ;;  %v11030_v1 = vld [vmem:[#allocation5 + $0x126c] sm:$0xf0]  ;;  %v9202_v5 = vor.u32 %v10998_v63, %v9201_v61  ;;  %5020 = vmatpush.bf16.msra.mxu3 %v9474_v62 }
  0xaf   :  { %v9457_v2 = vld [vmem:[#allocation5 + $0x1360] sm:$0xf]  ;;  %v11062_v3 = vld [vmem:[#allocation5 + $0x136c] sm:$0xf0]  ;;  %v9330_v6 = vor.u32 %v11030_v1, %v9329_v0  ;;  %4982 = vmatpush.bf16.msra.mxu0 %v9074_v4 }
  0xb0   :  { %v9057_v7 = vld [vmem:[#allocation5 + $0x1040] sm:$0xf]  ;;  %v10962_v10 = vld [vmem:[#allocation5 + $0x104c] sm:$0xf0]  ;;  %v9458_v12 = vor.u32 %v11062_v3, %v9457_v2  ;;  %4995 = vmatpush.bf16.msra.mxu1 %v9202_v5 }
  0xb1   :  { %v9185_v11 = vld [vmem:[#allocation5 + $0x1140] sm:$0xf]  ;;  %v10994_v14 = vld [vmem:[#allocation5 + $0x114c] sm:$0xf0]  ;;  %v9058_v28 = vor.u32 %v10962_v10, %v9057_v7  ;;  %5008 = vmatpush.bf16.msra.mxu2 %v9330_v6  ;;  %v121_v7 = vld [vmem:[#allocation2 + $0x88] sm:$0xff] }
  0xb2   :  { %v9313_v16 = vld [vmem:[#allocation5 + $0x1240] sm:$0xf]  ;;  %v11026_v17 = vld [vmem:[#allocation5 + $0x124c] sm:$0xf0]  ;;  %v9186_v29 = vor.u32 %v10994_v14, %v9185_v11  ;;  %5021 = vmatpush.bf16.msra.mxu3 %v9458_v12  ;;  %v123_v10 = vld [vmem:[#allocation2 + $0x98] sm:$0xff] }
  0xb3   :  { %v9441_v21 = vld [vmem:[#allocation5 + $0x1340] sm:$0xf]  ;;  %v11058_v24 = vld [vmem:[#allocation5 + $0x134c] sm:$0xf0]  ;;  %v9314_v30 = vor.u32 %v11026_v17, %v9313_v16  ;;  %4983 = vmatpush.bf16.msra.mxu0 %v9058_v28 }
  0xb4   :  { %v9041_v31 = vld [vmem:[#allocation5 + $0x1020] sm:$0xf]  ;;  %v10958_v32 = vld [vmem:[#allocation5 + $0x102c] sm:$0xf0]  ;;  %v9442_v35 = vor.u32 %v11058_v24, %v9441_v21  ;;  %4996 = vmatpush.bf16.msra.mxu1 %v9186_v29 }
  0xb5   :  { %v9169_v33 = vld [vmem:[#allocation5 + $0x1120] sm:$0xf]  ;;  %v10990_v36 = vld [vmem:[#allocation5 + $0x112c] sm:$0xf0]  ;;  %v9042_v44 = vor.u32 %v10958_v32, %v9041_v31  ;;  %5009 = vmatpush.bf16.msra.mxu2 %v9314_v30  ;;  %v11599_v32 = vpack.c.bf16 %v121_v7, %v121_v7 }
  0xb6   :  { %v9297_v39 = vld [vmem:[#allocation5 + $0x1220] sm:$0xf]  ;;  %v11022_v41 = vld [vmem:[#allocation5 + $0x122c] sm:$0xf0]  ;;  %v9170_v47 = vor.u32 %v10990_v36, %v9169_v33  ;;  %5022 = vmatpush.bf16.msra.mxu3 %v9442_v35  ;;  %v11601_v36 = vpack.c.bf16 %v123_v10, %v123_v10 }
  0xb7   :  { %v9425_v42 = vld [vmem:[#allocation5 + $0x1320] sm:$0xf]  ;;  %v11054_v43 = vld [vmem:[#allocation5 + $0x132c] sm:$0xf0]  ;;  %v9298_v48 = vor.u32 %v11022_v41, %v9297_v39  ;;  %4984 = vmatpush.bf16.msra.mxu0 %v9042_v44 }
  0xb8   :  { %v9025_v45 = vld [vmem:[#allocation5 + $0x1000] sm:$0xf]  ;;  %v10954_v46 = vld [vmem:[#allocation5 + $0x100c] sm:$0xf0]  ;;  %v9426_v52 = vor.u32 %v11054_v43, %v9425_v42  ;;  %4997 = vmatpush.bf16.msra.mxu1 %v9170_v47 }
  0xb9   :  { %v9153_v49 = vld [vmem:[#allocation5 + $0x1100] sm:$0xf]  ;;  %v10986_v50 = vld [vmem:[#allocation5 + $0x110c] sm:$0xf0]  ;;  %v9026_v59 = vor.u32 %v10954_v46, %v9025_v45  ;;  %5010 = vmatpush.bf16.msra.mxu2 %v9298_v48 }
  0xba   :  { %v9281_v51 = vld [vmem:[#allocation5 + $0x1200] sm:$0xf]  ;;  %v11018_v53 = vld [vmem:[#allocation5 + $0x120c] sm:$0xf0]  ;;  %v9154_v63 = vor.u32 %v10986_v50, %v9153_v49  ;;  %5023 = vmatpush.bf16.msra.mxu3 %v9426_v52 }
  0xbb   :  { %v9409_v54 = vld [vmem:[#allocation5 + $0x1300] sm:$0xf]  ;;  %v11050_v55 = vld [vmem:[#allocation5 + $0x130c] sm:$0xf0]  ;;  %v9282_v0 = vor.u32 %v11018_v53, %v9281_v51  ;;  %4985 = vmatpush.bf16.msra.mxu0 %v9026_v59 }
  0xbc   :  { %v9649_v56 = vld [vmem:[#allocation5 + $0x14e0] sm:$0xf]  ;;  %v11110_v57 = vld [vmem:[#allocation5 + $0x14ec] sm:$0xf0]  ;;  %v9410_v4 = vor.u32 %v11050_v55, %v9409_v54  ;;  %4998 = vmatpush.bf16.msra.mxu1 %v9154_v63 }
  0xbd   :  { %v9777_v58 = vld [vmem:[#allocation5 + $0x15e0] sm:$0xf]  ;;  %v11142_v60 = vld [vmem:[#allocation5 + $0x15ec] sm:$0xf0]  ;;  %v9650_v5 = vor.u32 %v11110_v57, %v9649_v56  ;;  %5011 = vmatpush.bf16.msra.mxu2 %v9282_v0 }
  0xbe   :  { %v9905_v61 = vld [vmem:[#allocation5 + $0x16e0] sm:$0xf]  ;;  %v11174_v62 = vld [vmem:[#allocation5 + $0x16ec] sm:$0xf0]  ;;  %v9778_v11 = vor.u32 %v11142_v60, %v9777_v58  ;;  %5024 = vmatpush.bf16.msra.mxu3 %v9410_v4 }
  0xbf   :  { %v10033_v1 = vld [vmem:[#allocation5 + $0x17e0] sm:$0xf]  ;;  %v11206_v2 = vld [vmem:[#allocation5 + $0x17ec] sm:$0xf0]  ;;  %v9906_v12 = vor.u32 %v11174_v62, %v9905_v61  ;;  %5030 = vmatpush.bf16.msrb.mxu0 %v9650_v5  ;;  %4999 = vmatmul.bf16.vlgmr.msra.gmra.mxu1 %v11599_v32 }
  0xc0   :  { %v120_v3 = vld [vmem:[#allocation2 + $0x80] sm:$0xff]  ;;  %v122_v6 = vld [vmem:[#allocation2 + $0x90] sm:$0xff]  ;;  %v10034_v21 = vor.u32 %v11206_v2, %v10033_v1  ;;  %5043 = vmatpush.bf16.msrb.mxu1 %v9778_v11 }
  0xc1   :  { %v9633_v14 = vld [vmem:[#allocation5 + $0x14c0] sm:$0xf]  ;;  %v11106_v16 = vld [vmem:[#allocation5 + $0x14cc] sm:$0xf0]  ;;  %v11595_v24 = vpack.c.bf16 %v120_v3, %v120_v3  ;;  %v11597_v31 = vpack.c.bf16 %v122_v6, %v122_v6  ;;  %5056 = vmatpush.bf16.msrb.mxu2 %v9906_v12  ;;  %5025 = vmatmul.bf16.vlgmr.msra.gmra.mxu3 %v11601_v36 }
  0xc2   :  { %v9761_v17 = vld [vmem:[#allocation5 + $0x15c0] sm:$0xf]  ;;  %v11138_v28 = vld [vmem:[#allocation5 + $0x15cc] sm:$0xf0]  ;;  %v9634_v39 = vor.u32 %v11106_v16, %v9633_v14  ;;  %5069 = vmatpush.bf16.msrb.mxu3 %v10034_v21 }
  0xc3   :  { %v9889_v29 = vld [vmem:[#allocation5 + $0x16c0] sm:$0xf]  ;;  %v11170_v30 = vld [vmem:[#allocation5 + $0x16cc] sm:$0xf0]  ;;  %v9762_v41 = vor.u32 %v11138_v28, %v9761_v17  ;;  %4986 = vmatmul.bf16.vlgmr.msra.gmra.mxu0 %v11595_v24  ;;  %5012 = vmatmul.bf16.vlgmr.msra.gmra.mxu2 %v11597_v31 }
  0xc4   :  { %v10017_v33 = vld [vmem:[#allocation5 + $0x17c0] sm:$0xf]  ;;  %v11202_v35 = vld [vmem:[#allocation5 + $0x17cc] sm:$0xf0]  ;;  %v9890_v42 = vor.u32 %v11170_v30, %v9889_v29  ;;  %5031 = vmatpush.bf16.msrb.mxu0 %v9634_v39 }
  0xc5   :  { %v9617_v43 = vld [vmem:[#allocation5 + $0x14a0] sm:$0xf]  ;;  %v11102_v44 = vld [vmem:[#allocation5 + $0x14ac] sm:$0xf0]  ;;  %v10018_v46 = vor.u32 %v11202_v35, %v10017_v33  ;;  %5044 = vmatpush.bf16.msrb.mxu1 %v9762_v41  ;;  %v4779_v28 = vpop.f32.mrf.mxu0 }
  0xc6   :  { %v9745_v45 = vld [vmem:[#allocation5 + $0x15a0] sm:$0xf]  ;;  %v11134_v47 = vld [vmem:[#allocation5 + $0x15ac] sm:$0xf0]  ;;  %v9618_v52 = vor.u32 %v11102_v44, %v9617_v43  ;;  %5057 = vmatpush.bf16.msrb.mxu2 %v9890_v42 }
  0xc7   :  { %v9873_v48 = vld [vmem:[#allocation5 + $0x16a0] sm:$0xf]  ;;  %v11166_v49 = vld [vmem:[#allocation5 + $0x16ac] sm:$0xf0]  ;;  %v9746_v55 = vor.u32 %v11134_v47, %v9745_v45  ;;  %5070 = vmatpush.bf16.msrb.mxu3 %v10018_v46 }
  0xc8   :  { %v10001_v50 = vld [vmem:[#allocation5 + $0x17a0] sm:$0xf]  ;;  %v11198_v51 = vld [vmem:[#allocation5 + $0x17ac] sm:$0xf0]  ;;  %v9874_v56 = vor.u32 %v11166_v49, %v9873_v48  ;;  %5032 = vmatpush.bf16.msrb.mxu0 %v9618_v52  ;;  %v4792_v49 = vpop.f32.mrf.mxu1 }
  0xc9   :  { %v9601_v53 = vld [vmem:[#allocation5 + $0x1480] sm:$0xf]  ;;  %v11098_v54 = vld [vmem:[#allocation5 + $0x148c] sm:$0xf0]  ;;  %v10002_v60 = vor.u32 %v11198_v51, %v10001_v50  ;;  %5045 = vmatpush.bf16.msrb.mxu1 %v9746_v55 }
  0xca   :  { %v9729_v57 = vld [vmem:[#allocation5 + $0x1580] sm:$0xf]  ;;  %v11130_v58 = vld [vmem:[#allocation5 + $0x158c] sm:$0xf0]  ;;  %v9602_v1 = vor.u32 %v11098_v54, %v9601_v53  ;;  %5058 = vmatpush.bf16.msrb.mxu2 %v9874_v56 }
  0xcb   :  { %v9857_v59 = vld [vmem:[#allocation5 + $0x1680] sm:$0xf]  ;;  %v11162_v61 = vld [vmem:[#allocation5 + $0x168c] sm:$0xf0]  ;;  %v9730_v3 = vor.u32 %v11130_v58, %v9729_v57  ;;  %5071 = vmatpush.bf16.msrb.mxu3 %v10002_v60  ;;  %v4805_v60 = vpop.f32.mrf.mxu2 }
  0xcc   :  { %v128_v62 = vld [vmem:[#allocation10] ss:$8 sm:$0xf]  ;;  %v9858_v4 = vor.u32 %v11162_v61, %v9857_v59  ;;  %5033 = vmatpush.bf16.msrb.mxu0 %v9602_v1 }
  0xcd   :  { %v9985_v63 = vld [vmem:[#allocation5 + $0x1780] sm:$0xf]  ;;  %v11194_v0 = vld [vmem:[#allocation5 + $0x178c] sm:$0xf0]  ;;  %v922_v7 = vperm.slane %v128_v62, 0  ;;  %5046 = vmatpush.bf16.msrb.mxu1 %v9730_v3 }
  0xce   :  { %v9585_v2 = vld [vmem:[#allocation5 + $0x1460] sm:$0xf]  ;;  %v11094_v5 = vld [vmem:[#allocation5 + $0x146c] sm:$0xf0]  ;;  %v9986_v10 = vor.u32 %v11194_v0, %v9985_v63  ;;  %5059 = vmatpush.bf16.msrb.mxu2 %v9858_v4  ;;  %v4818_v0 = vpop.f32.mrf.mxu3  ;;  %v4781_v4 = vpop.f32.mrf.mxu0 }
  0xcf   :  { %v9713_v6 = vld [vmem:[#allocation5 + $0x1560] sm:$0xf]  ;;  %v11126_v11 = vld [vmem:[#allocation5 + $0x156c] sm:$0xf0]  ;;  %v9586_v21 = vor.u32 %v11094_v5, %v9585_v2  ;;  %v4780_v41 = vadd.f32 %v4779_v28, %v922_v7  ;;  %v10468_v28 = vld [vmem:[#allocation5 + $0xe4] sm:$0xf] }
  0xd0   :  { %v9841_v12 = vld [vmem:[#allocation5 + $0x1660] sm:$0xf]  ;;  %v11158_v14 = vld [vmem:[#allocation5 + $0x166c] sm:$0xf0]  ;;  %v9714_v29 = vor.u32 %v11126_v11, %v9713_v6  ;;  %5072 = vmatpush.bf16.msrb.mxu3 %v9986_v10  ;;  %v7459_v4 = vld [vmem:[#allocation5 + $0x3d0] sm:$0xf0] }
  0xd1   :  { %v9969_v16 = vld [vmem:[#allocation5 + $0x1760] sm:$0xf]  ;;  %v11190_v17 = vld [vmem:[#allocation5 + $0x176c] sm:$0xf0]  ;;  %v9842_v30 = vor.u32 %v11158_v14, %v9841_v12  ;;  %5034 = vmatpush.bf16.msrb.mxu0 %v9586_v21  ;;  %v4793_v55 = vadd.f32 %v4792_v49, %v4780_v41  ;;  %v7347_v41 = vld [vmem:[#allocation5 + $0x2f0] sm:$0xf0] }
  0xd2   :  { %v9569_v33 = vld [vmem:[#allocation5 + $0x1440] sm:$0xf]  ;;  %v11090_v35 = vld [vmem:[#allocation5 + $0x144c] sm:$0xf0]  ;;  %v9970_v42 = vor.u32 %v11190_v17, %v9969_v16  ;;  %5047 = vmatpush.bf16.msrb.mxu1 %v9714_v29  ;;  %v7091_v29 = vld [vmem:[#allocation5 + $0xf0] sm:$0xf0] }
  0xd3   :  { %v9697_v39 = vld [vmem:[#allocation5 + $0x1540] sm:$0xf]  ;;  %v11122_v43 = vld [vmem:[#allocation5 + $0x154c] sm:$0xf0]  ;;  %v9570_v48 = vor.u32 %v11090_v35, %v9569_v33  ;;  %5060 = vmatpush.bf16.msrb.mxu2 %v9842_v30  ;;  %v4806_v63 = vadd.f32 %v4805_v60, %v4793_v55  ;;  %v10500_v30 = vld [vmem:[#allocation5 + $0x1e4] sm:$0xf]  ;;  %v7094_v49 = vor.u32 %v10468_v28, %v7091_v29 }
  0xd4   :  { %v9825_v44 = vld [vmem:[#allocation5 + $0x1640] sm:$0xf]  ;;  %v11154_v45 = vld [vmem:[#allocation5 + $0x164c] sm:$0xf0]  ;;  %v9698_v50 = vor.u32 %v11122_v43, %v9697_v39  ;;  %5073 = vmatpush.bf16.msrb.mxu3 %v9970_v42  ;;  %v7219_v35 = vld [vmem:[#allocation5 + $0x1f0] sm:$0xf0]  ;;  %v4794_v42 = vpop.f32.mrf.mxu1 }
  0xd5   :  { %v9953_v46 = vld [vmem:[#allocation5 + $0x1740] sm:$0xf]  ;;  %v11186_v47 = vld [vmem:[#allocation5 + $0x174c] sm:$0xf0]  ;;  %v9826_v51 = vor.u32 %v11154_v45, %v9825_v44  ;;  %5035 = vmatpush.bf16.msrb.mxu0 %v9570_v48  ;;  %v11607_v12 = vadd.f32 %v4818_v0, %v4806_v63  ;;  %v10532_v39 = vld [vmem:[#allocation5 + $0x2e4] sm:$0xf] }
  0xd6   :  { %v9553_v52 = vld [vmem:[#allocation5 + $0x1420] sm:$0xf]  ;;  %v11086_v53 = vld [vmem:[#allocation5 + $0x142c] sm:$0xf0]  ;;  %v9954_v56 = vor.u32 %v11186_v47, %v9953_v46  ;;  %5048 = vmatpush.bf16.msrb.mxu1 %v9698_v50  ;;  %v10564_v45 = vld [vmem:[#allocation5 + $0x3e4] sm:$0xf]  ;;  %v7350_v55 = vor.u32 %v10532_v39, %v7347_v41 }
  0xd7   :  { %v9681_v54 = vld [vmem:[#allocation5 + $0x1520] sm:$0xf]  ;;  %v11118_v57 = vld [vmem:[#allocation5 + $0x152c] sm:$0xf0]  ;;  %v9554_v1 = vor.u32 %v11086_v53, %v9553_v52  ;;  %5061 = vmatpush.bf16.msrb.mxu2 %v9826_v51  ;;  %v7475_v46 = vld [vmem:[#allocation5 + $0x3f0] sm:$0xf0]  ;;  %v4807_v53 = vpop.f32.mrf.mxu2 }
  0xd8   :  { %v9809_v58 = vld [vmem:[#allocation5 + $0x1620] sm:$0xf]  ;;  %v11150_v59 = vld [vmem:[#allocation5 + $0x162c] sm:$0xf0]  ;;  %v9682_v5 = vor.u32 %v11118_v57, %v9681_v54  ;;  %5074 = vmatpush.bf16.msrb.mxu3 %v9954_v56  ;;  %v125_v51 = vld [vmem:[#allocation2 + $0xa8] sm:$0xff]  ;;  %v7222_v54 = vor.u32 %v10500_v30, %v7219_v35  ;;  %v7478_v60 = vor.u32 %v10564_v45, %v7475_v46 }
  0xd9   :  { %v9937_v61 = vld [vmem:[#allocation5 + $0x1720] sm:$0xf]  ;;  %v11182_v62 = vld [vmem:[#allocation5 + $0x172c] sm:$0xf0]  ;;  %v9810_v6 = vor.u32 %v11150_v59, %v9809_v58  ;;  %5036 = vmatpush.bf16.msrb.mxu0 %v9554_v1  ;;  %v127_v52 = vld [vmem:[#allocation2 + $0xb8] sm:$0xff]  ;;  %v4820_v59 = vpop.f32.mrf.mxu3 }
  0xda   :  { %v9537_v2 = vld [vmem:[#allocation5 + $0x1400] sm:$0xf]  ;;  %v11082_v3 = vld [vmem:[#allocation5 + $0x140c] sm:$0xf0]  ;;  %v9938_v14 = vor.u32 %v11182_v62, %v9937_v61  ;;  %5049 = vmatpush.bf16.msrb.mxu1 %v9682_v5  ;;  %v10464_v56 = vld [vmem:[#allocation5 + $0xc4] sm:$0xf]  ;;  %v11615_v5 = vpack.c.bf16 %v127_v52, %v127_v52 }
  0xdb   :  { %v9665_v7 = vld [vmem:[#allocation5 + $0x1500] sm:$0xf]  ;;  %v11114_v10 = vld [vmem:[#allocation5 + $0x150c] sm:$0xf0]  ;;  %v9538_v33 = vor.u32 %v11082_v3, %v9537_v2  ;;  %5062 = vmatpush.bf16.msrb.mxu2 %v9810_v6  ;;  %v7075_v57 = vld [vmem:[#allocation5 + $0xd0] sm:$0xf0]  ;;  %v11613_v2 = vpack.c.bf16 %v125_v51, %v125_v51 }
  0xdc   :  { %v9793_v11 = vld [vmem:[#allocation5 + $0x1600] sm:$0xf]  ;;  %v11146_v16 = vld [vmem:[#allocation5 + $0x160c] sm:$0xf0]  ;;  %v9666_v43 = vor.u32 %v11114_v10, %v9665_v7  ;;  %5075 = vmatpush.bf16.msrb.mxu3 %v9938_v14  ;;  %v10496_v58 = vld [vmem:[#allocation5 + $0x1c4] sm:$0xf]  ;;  %v7078_v6 = vor.u32 %v10464_v56, %v7075_v57  ;;  %v4844_v59 = vpop.f32.mrf.mxu1 }
  0xdd   :  { %v9921_v17 = vld [vmem:[#allocation5 + $0x1700] sm:$0xf]  ;;  %v11178_v21 = vld [vmem:[#allocation5 + $0x170c] sm:$0xf0]  ;;  %v9794_v44 = vor.u32 %v11146_v16, %v9793_v11  ;;  %5037 = vmatpush.bf16.msrb.mxu0 %v9538_v33  ;;  %v7203_v62 = vld [vmem:[#allocation5 + $0x1d0] sm:$0xf0] }
  0xde   :  { %v124_v47 = vld [vmem:[#allocation2 + $0xa0] sm:$0xff]  ;;  %v9922_v48 = vor.u32 %v11178_v21, %v9921_v17  ;;  %v126_v50 = vld [vmem:[#allocation2 + $0xb0] sm:$0xff]  ;;  %5050 = vmatpush.bf16.msrb.mxu1 %v9666_v43  ;;  %v7206_v7 = vor.u32 %v10496_v58, %v7203_v62  ;;  %v4831_v52 = vpop.f32.mrf.mxu0 }
  0xdf   :  { %v11609_v61 = vpack.c.bf16 %v124_v47, %v124_v47  ;;  %v10528_v63 = vld [vmem:[#allocation5 + $0x2c4] sm:$0xf]  ;;  %v7331_v0 = vld [vmem:[#allocation5 + $0x2d0] sm:$0xf0]  ;;  %5063 = vmatpush.bf16.msrb.mxu2 %v9794_v44  ;;  %v11611_v1 = vpack.c.bf16 %v126_v50, %v126_v50  ;;  %v4832_v58 = vadd.f32 %v4831_v52, %v11607_v12 }
  0xe0   :  { %v10560_v3 = vld [vmem:[#allocation5 + $0x3c4] sm:$0xf]  ;;  %5076 = vmatpush.bf16.msrb.mxu3 %v9922_v48  ;;  %v7334_v10 = vor.u32 %v10528_v63, %v7331_v0  ;;  %v7059_v14 = vld [vmem:[#allocation5 + $0xb0] sm:$0xf0] }
  0xe1   :  { %5082 = vmatpush.bf16.msra.mxu0 %v7094_v49  ;;  %v10460_v11 = vld [vmem:[#allocation5 + $0xa4] sm:$0xf]  ;;  %v7462_v17 = vor.u32 %v10560_v3, %v7459_v4  ;;  %v7187_v21 = vld [vmem:[#allocation5 + $0x1b0] sm:$0xf0]  ;;  %5051 = vmatmul.bf16.vlgmr.msrb.gmra.mxu1 %v11613_v2 }
  0xe2   :  { %5095 = vmatpush.bf16.msra.mxu1 %v7222_v54  ;;  %v10492_v16 = vld [vmem:[#allocation5 + $0x1a4] sm:$0xf]  ;;  %5038 = vmatmul.bf16.vlgmr.msrb.gmra.mxu0 %v11609_v61  ;;  %v7315_v29 = vld [vmem:[#allocation5 + $0x2b0] sm:$0xf0]  ;;  %v7062_v35 = vor.u32 %v10460_v11, %v7059_v14 }
  0xe3   :  { %5108 = vmatpush.bf16.msra.mxu2 %v7350_v55  ;;  %v10524_v28 = vld [vmem:[#allocation5 + $0x2a4] sm:$0xf]  ;;  %v7443_v33 = vld [vmem:[#allocation5 + $0x3b0] sm:$0xf0]  ;;  %5077 = vmatmul.bf16.vlgmr.msrb.gmra.mxu3 %v11615_v5  ;;  %v7190_v39 = vor.u32 %v10492_v16, %v7187_v21  ;;  %v4857_v21 = vpop.f32.mrf.mxu2 }
  0xe4   :  { %5121 = vmatpush.bf16.msra.mxu3 %v7478_v60  ;;  %5064 = vmatmul.bf16.vlgmr.msrb.gmra.mxu2 %v11611_v1  ;;  %v10556_v30 = vld [vmem:[#allocation5 + $0x3a4] sm:$0xf]  ;;  %v7318_v41 = vor.u32 %v10524_v28, %v7315_v29  ;;  %v7043_v43 = vld [vmem:[#allocation5 + $0x90] sm:$0xf0] }
  0xe5   :  { %5083 = vmatpush.bf16.msra.mxu0 %v7078_v6  ;;  %v10456_v42 = vld [vmem:[#allocation5 + $0x84] sm:$0xf]  ;;  %v7446_v45 = vor.u32 %v10556_v30, %v7443_v33  ;;  %v7171_v46 = vld [vmem:[#allocation5 + $0x190] sm:$0xf0]  ;;  %v4845_v6 = vadd.f32 %v4844_v59, %v4832_v58 }
  0xe6   :  { %5096 = vmatpush.bf16.msra.mxu1 %v7206_v7  ;;  %v10488_v44 = vld [vmem:[#allocation5 + $0x184] sm:$0xf]  ;;  %v7299_v48 = vld [vmem:[#allocation5 + $0x290] sm:$0xf0]  ;;  %v7046_v51 = vor.u32 %v10456_v42, %v7043_v43 }
  0xe7   :  { %5109 = vmatpush.bf16.msra.mxu2 %v7334_v10  ;;  %v10520_v47 = vld [vmem:[#allocation5 + $0x284] sm:$0xf]  ;;  %v7427_v50 = vld [vmem:[#allocation5 + $0x390] sm:$0xf0]  ;;  %v7174_v53 = vor.u32 %v10488_v44, %v7171_v46  ;;  %v4858_v33 = vadd.f32 %v4857_v21, %v4845_v6  ;;  %v4833_v44 = vpop.f32.mrf.mxu0 }
  0xe8   :  { %5122 = vmatpush.bf16.msra.mxu3 %v7462_v17  ;;  %v10552_v49 = vld [vmem:[#allocation5 + $0x384] sm:$0xf]  ;;  %v7302_v54 = vor.u32 %v10520_v47, %v7299_v48  ;;  %v7027_v56 = vld [vmem:[#allocation5 + $0x70] sm:$0xf0] }
  0xe9   :  { %5084 = vmatpush.bf16.msra.mxu0 %v7062_v35  ;;  %v10452_v55 = vld [vmem:[#allocation5 + $0x64] sm:$0xf]  ;;  %v7430_v60 = vor.u32 %v10552_v49, %v7427_v50  ;;  %v7155_v62 = vld [vmem:[#allocation5 + $0x170] sm:$0xf0]  ;;  %v4870_v35 = vpop.f32.mrf.mxu3  ;;  %v4846_v50 = vpop.f32.mrf.mxu1 }
  0xea   :  { %5097 = vmatpush.bf16.msra.mxu1 %v7190_v39  ;;  %v10484_v57 = vld [vmem:[#allocation5 + $0x164] sm:$0xf]  ;;  %v7283_v0 = vld [vmem:[#allocation5 + $0x270] sm:$0xf0]  ;;  %v7030_v7 = vor.u32 %v10452_v55, %v7027_v56  ;;  %v11622_v43 = vadd.f32 %v4870_v35, %v4858_v33 }
  0xeb   :  { %5110 = vmatpush.bf16.msra.mxu2 %v7318_v41  ;;  %v10516_v63 = vld [vmem:[#allocation5 + $0x264] sm:$0xf]  ;;  %v7411_v4 = vld [vmem:[#allocation5 + $0x370] sm:$0xf0]  ;;  %v7158_v10 = vor.u32 %v10484_v57, %v7155_v62 }
  0xec   :  { %5123 = vmatpush.bf16.msra.mxu3 %v7446_v45  ;;  %v10548_v3 = vld [vmem:[#allocation5 + $0x364] sm:$0xf]  ;;  %v7286_v11 = vor.u32 %v10516_v63, %v7283_v0  ;;  %v7011_v16 = vld [vmem:[#allocation5 + $0x50] sm:$0xf0] }
  0xed   :  { %5085 = vmatpush.bf16.msra.mxu0 %v7046_v51  ;;  %v10448_v14 = vld [vmem:[#allocation5 + $0x44] sm:$0xf]  ;;  %v7414_v12 = vor.u32 %v10548_v3, %v7411_v4  ;;  %v7139_v28 = vld [vmem:[#allocation5 + $0x150] sm:$0xf0]  ;;  %v4859_v4 = vpop.f32.mrf.mxu2 }
  0xee   :  { %5098 = vmatpush.bf16.msra.mxu1 %v7174_v53  ;;  %v10480_v17 = vld [vmem:[#allocation5 + $0x144] sm:$0xf]  ;;  %v7267_v30 = vld [vmem:[#allocation5 + $0x250] sm:$0xf0]  ;;  %v7014_v42 = vor.u32 %v10448_v14, %v7011_v16 }
  0xef   :  { %5111 = vmatpush.bf16.msra.mxu2 %v7302_v54  ;;  %v10512_v29 = vld [vmem:[#allocation5 + $0x244] sm:$0xf]  ;;  %v7395_v41 = vld [vmem:[#allocation5 + $0x350] sm:$0xf0]  ;;  %v7142_v45 = vor.u32 %v10480_v17, %v7139_v28 }
  0xf0   :  { %5124 = vmatpush.bf16.msra.mxu3 %v7430_v60  ;;  %v10544_v39 = vld [vmem:[#allocation5 + $0x344] sm:$0xf]  ;;  %v7270_v46 = vor.u32 %v10512_v29, %v7267_v30  ;;  %v6995_v48 = vld [vmem:[#allocation5 + $0x30] sm:$0xf0] }
  0xf1   :  { %5086 = vmatpush.bf16.msra.mxu0 %v7030_v7  ;;  %v10444_v47 = vld [vmem:[#allocation5 + $0x24] sm:$0xf]  ;;  %v7398_v51 = vor.u32 %v10544_v39, %v7395_v41  ;;  %v7123_v52 = vld [vmem:[#allocation5 + $0x130] sm:$0xf0]  ;;  %v4872_v14 = vpop.f32.mrf.mxu3 }
  0xf2   :  { %5099 = vmatpush.bf16.msra.mxu1 %v7158_v10  ;;  %v10476_v49 = vld [vmem:[#allocation5 + $0x124] sm:$0xf]  ;;  %v7251_v54 = vld [vmem:[#allocation5 + $0x230] sm:$0xf0]  ;;  %v6998_v57 = vor.u32 %v10444_v47, %v6995_v48 }
  0xf3   :  { %5112 = vmatpush.bf16.msra.mxu2 %v7286_v11  ;;  %v10508_v53 = vld [vmem:[#allocation5 + $0x224] sm:$0xf]  ;;  %v7379_v56 = vld [vmem:[#allocation5 + $0x330] sm:$0xf0]  ;;  %v7126_v60 = vor.u32 %v10476_v49, %v7123_v52 }
  0xf4   :  { %5125 = vmatpush.bf16.msra.mxu3 %v7414_v12  ;;  %v10540_v55 = vld [vmem:[#allocation5 + $0x324] sm:$0xf]  ;;  %v6979_v59 = vld [vmem:[#allocation5 + $0x10] sm:$0xf0]  ;;  %v7254_v62 = vor.u32 %v10508_v53, %v7251_v54 }
  0xf5   :  { %5087 = vmatpush.bf16.msra.mxu0 %v7014_v42  ;;  %v10440_v58 = vld [vmem:[#allocation5 + $0x4] sm:$0xf]  ;;  %v7107_v0 = vld [vmem:[#allocation5 + $0x110] sm:$0xf0]  ;;  %v7382_v6 = vor.u32 %v10540_v55, %v7379_v56 }
  0xf6   :  { %5100 = vmatpush.bf16.msra.mxu1 %v7142_v45  ;;  %v10472_v63 = vld [vmem:[#allocation5 + $0x104] sm:$0xf]  ;;  %v7235_v7 = vld [vmem:[#allocation5 + $0x210] sm:$0xf0]  ;;  %v6982_v12 = vor.u32 %v10440_v58, %v6979_v59 }
  0xf7   :  { %5113 = vmatpush.bf16.msra.mxu2 %v7270_v46  ;;  %v10504_v3 = vld [vmem:[#allocation5 + $0x204] sm:$0xf]  ;;  %v7363_v11 = vld [vmem:[#allocation5 + $0x310] sm:$0xf0]  ;;  %v7110_v33 = vor.u32 %v10472_v63, %v7107_v0 }
  0xf8   :  { %5126 = vmatpush.bf16.msra.mxu3 %v7398_v51  ;;  %v10536_v10 = vld [vmem:[#allocation5 + $0x304] sm:$0xf]  ;;  %v7603_v17 = vld [vmem:[#allocation5 + $0x4f0] sm:$0xf0]  ;;  %v7238_v35 = vor.u32 %v10504_v3, %v7235_v7 }
  0xf9   :  { %v10596_v16 = vld [vmem:[#allocation5 + $0x4e4] sm:$0xf]  ;;  %5088 = vmatpush.bf16.msra.mxu0 %v6998_v57  ;;  %v7731_v28 = vld [vmem:[#allocation5 + $0x5f0] sm:$0xf0]  ;;  %v7366_v42 = vor.u32 %v10536_v10, %v7363_v11 }
  0xfa   :  { %v10628_v21 = vld [vmem:[#allocation5 + $0x5e4] sm:$0xf]  ;;  %v7859_v30 = vld [vmem:[#allocation5 + $0x6f0] sm:$0xf0]  ;;  %5101 = vmatpush.bf16.msra.mxu1 %v7126_v60  ;;  %v7606_v44 = vor.u32 %v10596_v16, %v7603_v17 }
  0xfb   :  { %v10660_v29 = vld [vmem:[#allocation5 + $0x6e4] sm:$0xf]  ;;  %5114 = vmatpush.bf16.msra.mxu2 %v7254_v62  ;;  %v7987_v41 = vld [vmem:[#allocation5 + $0x7f0] sm:$0xf0]  ;;  %v7734_v45 = vor.u32 %v10628_v21, %v7731_v28 }
  0xfc   :  { %v10692_v39 = vld [vmem:[#allocation5 + $0x7e4] sm:$0xf]  ;;  %5127 = vmatpush.bf16.msra.mxu3 %v7382_v6  ;;  %v7862_v46 = vor.u32 %v10660_v29, %v7859_v30  ;;  %v7587_v48 = vld [vmem:[#allocation5 + $0x4d0] sm:$0xf0] }
  0xfd   :  { %v10592_v47 = vld [vmem:[#allocation5 + $0x4c4] sm:$0xf]  ;;  %5089 = vmatpush.bf16.msra.mxu0 %v6982_v12  ;;  %v7990_v50 = vor.u32 %v10692_v39, %v7987_v41  ;;  %v7715_v51 = vld [vmem:[#allocation5 + $0x5d0] sm:$0xf0] }
  0xfe   :  { %v10624_v49 = vld [vmem:[#allocation5 + $0x5c4] sm:$0xf]  ;;  %v7843_v53 = vld [vmem:[#allocation5 + $0x6d0] sm:$0xf0]  ;;  %5102 = vmatpush.bf16.msra.mxu1 %v7110_v33  ;;  %v7590_v56 = vor.u32 %v10592_v47, %v7587_v48  ;;  %v4883_v33 = vpop.f32.mrf.mxu0 }
  0xff   :  { %v10656_v52 = vld [vmem:[#allocation5 + $0x6c4] sm:$0xf]  ;;  %5115 = vmatpush.bf16.msra.mxu2 %v7238_v35  ;;  %v7971_v55 = vld [vmem:[#allocation5 + $0x7d0] sm:$0xf0]  ;;  %v7718_v57 = vor.u32 %v10624_v49, %v7715_v51  ;;  %v4884_v41 = vadd.f32 %v4883_v33, %v11622_v43 }
 0x100   :  { %v10688_v54 = vld [vmem:[#allocation5 + $0x7c4] sm:$0xf]  ;;  %5128 = vmatpush.bf16.msra.mxu3 %v7366_v42  ;;  %v7846_v58 = vor.u32 %v10656_v52, %v7843_v53  ;;  %v7571_v60 = vld [vmem:[#allocation5 + $0x4b0] sm:$0xf0]  ;;  %5090 = vmatmul.bf16.vlgmr.msra.gmra.mxu0 %v11549_v9 }
 0x101   :  { %5134 = vmatpush.bf16.msrb.mxu0 %v7606_v44  ;;  %v10588_v59 = vld [vmem:[#allocation5 + $0x4a4] sm:$0xf]  ;;  %v7974_v63 = vor.u32 %v10688_v54, %v7971_v55  ;;  %v7699_v0 = vld [vmem:[#allocation5 + $0x5b0] sm:$0xf0]  ;;  %5103 = vmatmul.bf16.vlgmr.msra.gmra.mxu1 %v11556_v25  ;;  %v4896_v44 = vpop.f32.mrf.mxu1 }
 0x102   :  { %5147 = vmatpush.bf16.msrb.mxu1 %v7734_v45  ;;  %v10620_v62 = vld [vmem:[#allocation5 + $0x5a4] sm:$0xf]  ;;  %v7827_v4 = vld [vmem:[#allocation5 + $0x6b0] sm:$0xf0]  ;;  %5116 = vmatmul.bf16.vlgmr.msra.gmra.mxu2 %v11547_v8  ;;  %v7574_v10 = vor.u32 %v10588_v59, %v7571_v60  ;;  %v4897_v51 = vadd.f32 %v4896_v44, %v4884_v41 }
 0x103   :  { %5160 = vmatpush.bf16.msrb.mxu2 %v7862_v46  ;;  %v10652_v3 = vld [vmem:[#allocation5 + $0x6a4] sm:$0xf]  ;;  %v7955_v7 = vld [vmem:[#allocation5 + $0x7b0] sm:$0xf0]  ;;  %5129 = vmatmul.bf16.vlgmr.msra.gmra.mxu3 %v11551_v15  ;;  %v7702_v11 = vor.u32 %v10620_v62, %v7699_v0 }
 0x104   :  { %5173 = vmatpush.bf16.msrb.mxu3 %v7990_v50  ;;  %v10684_v6 = vld [vmem:[#allocation5 + $0x7a4] sm:$0xf]  ;;  %v7830_v14 = vor.u32 %v10652_v3, %v7827_v4  ;;  %v7555_v17 = vld [vmem:[#allocation5 + $0x490] sm:$0xf0]  ;;  %v4909_v0 = vpop.f32.mrf.mxu2 }
 0x105   :  { %5135 = vmatpush.bf16.msrb.mxu0 %v7590_v56  ;;  %v10584_v16 = vld [vmem:[#allocation5 + $0x484] sm:$0xf]  ;;  %v7958_v12 = vor.u32 %v10684_v6, %v7955_v7  ;;  %v7683_v28 = vld [vmem:[#allocation5 + $0x590] sm:$0xf0]  ;;  %v4910_v7 = vadd.f32 %v4909_v0, %v4897_v51 }
 0x106   :  { %5148 = vmatpush.bf16.msrb.mxu1 %v7718_v57  ;;  %v10616_v21 = vld [vmem:[#allocation5 + $0x584] sm:$0xf]  ;;  %v7811_v30 = vld [vmem:[#allocation5 + $0x690] sm:$0xf0]  ;;  %v7558_v42 = vor.u32 %v10584_v16, %v7555_v17  ;;  %v4885_v16 = vpop.f32.mrf.mxu0 }
 0x107   :  { %5161 = vmatpush.bf16.msrb.mxu2 %v7846_v58  ;;  %v10648_v29 = vld [vmem:[#allocation5 + $0x684] sm:$0xf]  ;;  %v7939_v39 = vld [vmem:[#allocation5 + $0x790] sm:$0xf0]  ;;  %v7686_v45 = vor.u32 %v10616_v21, %v7683_v28 }
 0x108   :  { %5174 = vmatpush.bf16.msrb.mxu3 %v7974_v63  ;;  %v10680_v35 = vld [vmem:[#allocation5 + $0x784] sm:$0xf]  ;;  %v7814_v46 = vor.u32 %v10648_v29, %v7811_v30  ;;  %v7539_v48 = vld [vmem:[#allocation5 + $0x470] sm:$0xf0] }
 0x109   :  { %5136 = vmatpush.bf16.msrb.mxu0 %v7574_v10  ;;  %v10580_v47 = vld [vmem:[#allocation5 + $0x464] sm:$0xf]  ;;  %v7942_v50 = vor.u32 %v10680_v35, %v7939_v39  ;;  %v7667_v52 = vld [vmem:[#allocation5 + $0x570] sm:$0xf0]  ;;  %v4922_v10 = vpop.f32.mrf.mxu3  ;;  %v4898_v21 = vpop.f32.mrf.mxu1 }
 0x10a   :  { %5149 = vmatpush.bf16.msrb.mxu1 %v7702_v11  ;;  %v10612_v49 = vld [vmem:[#allocation5 + $0x564] sm:$0xf]  ;;  %v7795_v54 = vld [vmem:[#allocation5 + $0x670] sm:$0xf0]  ;;  %v7542_v57 = vor.u32 %v10580_v47, %v7539_v48 }
 0x10b   :  { %5162 = vmatpush.bf16.msrb.mxu2 %v7830_v14  ;;  %v10644_v53 = vld [vmem:[#allocation5 + $0x664] sm:$0xf]  ;;  %v7923_v56 = vld [vmem:[#allocation5 + $0x770] sm:$0xf0]  ;;  %v7670_v43 = vor.u32 %v10612_v49, %v7667_v52 }
 0x10c   :  { %5175 = vmatpush.bf16.msrb.mxu3 %v7958_v12  ;;  %v10676_v55 = vld [vmem:[#allocation5 + $0x764] sm:$0xf]  ;;  %v7798_v58 = vor.u32 %v10644_v53, %v7795_v54  ;;  %v7523_v60 = vld [vmem:[#allocation5 + $0x450] sm:$0xf0]  ;;  %v11629_v12 = vadd.f32 %v4922_v10, %v4910_v7 }
 0x10d   :  { %5137 = vmatpush.bf16.msrb.mxu0 %v7558_v42  ;;  %v10576_v59 = vld [vmem:[#allocation5 + $0x444] sm:$0xf]  ;;  %v7926_v63 = vor.u32 %v10676_v55, %v7923_v56  ;;  %v7651_v3 = vld [vmem:[#allocation5 + $0x550] sm:$0xf0] }
 0x10e   :  { %5150 = vmatpush.bf16.msrb.mxu1 %v7686_v45  ;;  %v10608_v62 = vld [vmem:[#allocation5 + $0x544] sm:$0xf]  ;;  %v7779_v6 = vld [vmem:[#allocation5 + $0x650] sm:$0xf0]  ;;  %v7526_v17 = vor.u32 %v10576_v59, %v7523_v60 }
 0x10f   :  { %5163 = vmatpush.bf16.msrb.mxu2 %v7814_v46  ;;  %v10640_v4 = vld [vmem:[#allocation5 + $0x644] sm:$0xf]  ;;  %v7907_v14 = vld [vmem:[#allocation5 + $0x750] sm:$0xf0]  ;;  %v7654_v28 = vor.u32 %v10608_v62, %v7651_v3 }
 0x110   :  { %5176 = vmatpush.bf16.msrb.mxu3 %v7942_v50  ;;  %v10672_v11 = vld [vmem:[#allocation5 + $0x744] sm:$0xf]  ;;  %v7782_v29 = vor.u32 %v10640_v4, %v7779_v6  ;;  %v7507_v33 = vld [vmem:[#allocation5 + $0x430] sm:$0xf0] }
 0x111   :  { %5138 = vmatpush.bf16.msrb.mxu0 %v7542_v57  ;;  %v10572_v30 = vld [vmem:[#allocation5 + $0x424] sm:$0xf]  ;;  %v7910_v39 = vor.u32 %v10672_v11, %v7907_v14  ;;  %v7635_v41 = vld [vmem:[#allocation5 + $0x530] sm:$0xf0] }
 0x112   :  { %5151 = vmatpush.bf16.msrb.mxu1 %v7670_v43  ;;  %v10604_v35 = vld [vmem:[#allocation5 + $0x524] sm:$0xf]  ;;  %v7763_v44 = vld [vmem:[#allocation5 + $0x630] sm:$0xf0]  ;;  %v7510_v47 = vor.u32 %v10572_v30, %v7507_v33 }
 0x113   :  { %5164 = vmatpush.bf16.msrb.mxu2 %v7798_v58  ;;  %v10636_v42 = vld [vmem:[#allocation5 + $0x624] sm:$0xf]  ;;  %v7891_v46 = vld [vmem:[#allocation5 + $0x730] sm:$0xf0]  ;;  %v7638_v50 = vor.u32 %v10604_v35, %v7635_v41  ;;  %v4911_v58 = vpop.f32.mrf.mxu2 }
 0x114   :  { %5177 = vmatpush.bf16.msrb.mxu3 %v7926_v63  ;;  %v10668_v45 = vld [vmem:[#allocation5 + $0x724] sm:$0xf]  ;;  %v7491_v49 = vld [vmem:[#allocation5 + $0x410] sm:$0xf0]  ;;  %v7766_v51 = vor.u32 %v10636_v42, %v7763_v44  ;;  %v4924_v63 = vpop.f32.mrf.mxu3 }
 0x115   :  { %5139 = vmatpush.bf16.msrb.mxu0 %v7526_v17  ;;  %v10568_v48 = vld [vmem:[#allocation5 + $0x404] sm:$0xf]  ;;  %v7619_v53 = vld [vmem:[#allocation5 + $0x510] sm:$0xf0]  ;;  %v7894_v55 = vor.u32 %v10668_v45, %v7891_v46 }
 0x116   :  { %5152 = vmatpush.bf16.msrb.mxu1 %v7654_v28  ;;  %v10600_v52 = vld [vmem:[#allocation5 + $0x504] sm:$0xf]  ;;  %v7747_v56 = vld [vmem:[#allocation5 + $0x610] sm:$0xf0]  ;;  %v7494_v0 = vor.u32 %v10568_v48, %v7491_v49 }
 0x117   :  { %5165 = vmatpush.bf16.msrb.mxu2 %v7782_v29  ;;  %v10632_v54 = vld [vmem:[#allocation5 + $0x604] sm:$0xf]  ;;  %v7875_v43 = vld [vmem:[#allocation5 + $0x710] sm:$0xf0]  ;;  %v7622_v7 = vor.u32 %v10600_v52, %v7619_v53 }
 0x118   :  { %5178 = vmatpush.bf16.msrb.mxu3 %v7910_v39  ;;  %v10664_v57 = vld [vmem:[#allocation5 + $0x704] sm:$0xf]  ;;  %v8115_v60 = vld [vmem:[#allocation5 + $0x8f0] sm:$0xf0]  ;;  %v7750_v10 = vor.u32 %v10632_v54, %v7747_v56 }
 0x119   :  { %v10724_v59 = vld [vmem:[#allocation5 + $0x8e4] sm:$0xf]  ;;  %5140 = vmatpush.bf16.msrb.mxu0 %v7510_v47  ;;  %v8243_v3 = vld [vmem:[#allocation5 + $0x9f0] sm:$0xf0]  ;;  %v7878_v16 = vor.u32 %v10664_v57, %v7875_v43 }
 0x11a   :  { %v10756_v62 = vld [vmem:[#allocation5 + $0x9e4] sm:$0xf]  ;;  %v8371_v6 = vld [vmem:[#allocation5 + $0xaf0] sm:$0xf0]  ;;  %5153 = vmatpush.bf16.msrb.mxu1 %v7638_v50  ;;  %v8118_v17 = vor.u32 %v10724_v59, %v8115_v60 }
 0x11b   :  { %v10788_v4 = vld [vmem:[#allocation5 + $0xae4] sm:$0xf]  ;;  %5166 = vmatpush.bf16.msrb.mxu2 %v7766_v51  ;;  %v8499_v14 = vld [vmem:[#allocation5 + $0xbf0] sm:$0xf0]  ;;  %v8246_v21 = vor.u32 %v10756_v62, %v8243_v3 }
 0x11c   :  { %v10820_v11 = vld [vmem:[#allocation5 + $0xbe4] sm:$0xf]  ;;  %5179 = vmatpush.bf16.msrb.mxu3 %v7894_v55  ;;  %v8374_v28 = vor.u32 %v10788_v4, %v8371_v6  ;;  %v8099_v30 = vld [vmem:[#allocation5 + $0x8d0] sm:$0xf0] }
 0x11d   :  { %v10720_v29 = vld [vmem:[#allocation5 + $0x8c4] sm:$0xf]  ;;  %5141 = vmatpush.bf16.msrb.mxu0 %v7494_v0  ;;  %v8502_v35 = vor.u32 %v10820_v11, %v8499_v14  ;;  %v8227_v39 = vld [vmem:[#allocation5 + $0x9d0] sm:$0xf0] }
 0x11e   :  { %v10752_v33 = vld [vmem:[#allocation5 + $0x9c4] sm:$0xf]  ;;  %v8355_v42 = vld [vmem:[#allocation5 + $0xad0] sm:$0xf0]  ;;  %5154 = vmatpush.bf16.msrb.mxu1 %v7622_v7  ;;  %v8102_v46 = vor.u32 %v10720_v29, %v8099_v30 }
 0x11f   :  { %v10784_v41 = vld [vmem:[#allocation5 + $0xac4] sm:$0xf]  ;;  %5167 = vmatpush.bf16.msrb.mxu2 %v7750_v10  ;;  %v8483_v45 = vld [vmem:[#allocation5 + $0xbd0] sm:$0xf0]  ;;  %v8230_v47 = vor.u32 %v10752_v33, %v8227_v39  ;;  %v4935_v7 = vpop.f32.mrf.mxu0 }
 0x120   :  { %v10816_v44 = vld [vmem:[#allocation5 + $0xbc4] sm:$0xf]  ;;  %5180 = vmatpush.bf16.msrb.mxu3 %v7878_v16  ;;  %v8358_v48 = vor.u32 %v10784_v41, %v8355_v42  ;;  %v8083_v50 = vld [vmem:[#allocation5 + $0x8b0] sm:$0xf0]  ;;  %5142 = vmatmul.bf16.vlgmr.msrb.gmra.mxu0 %v11561_v37  ;;  %v4936_v14 = vadd.f32 %v4935_v7, %v11629_v12 }
 0x121   :  { %5186 = vmatpush.bf16.msra.mxu0 %v8118_v17  ;;  %v10716_v49 = vld [vmem:[#allocation5 + $0x8a4] sm:$0xf]  ;;  %v8486_v52 = vor.u32 %v10816_v44, %v8483_v45  ;;  %v8211_v53 = vld [vmem:[#allocation5 + $0x9b0] sm:$0xf0]  ;;  %5155 = vmatmul.bf16.vlgmr.msrb.gmra.mxu1 %v11565_v40  ;;  %v4948_v17 = vpop.f32.mrf.mxu1 }
 0x122   :  { %5199 = vmatpush.bf16.msra.mxu1 %v8246_v21  ;;  %v10748_v51 = vld [vmem:[#allocation5 + $0x9a4] sm:$0xf]  ;;  %5168 = vmatmul.bf16.vlgmr.msrb.gmra.mxu2 %v11559_v34  ;;  %v8339_v55 = vld [vmem:[#allocation5 + $0xab0] sm:$0xf0]  ;;  %v8086_v43 = vor.u32 %v10716_v49, %v8083_v50  ;;  %v4949_v39 = vadd.f32 %v4948_v17, %v4936_v14 }
 0x123   :  { %5212 = vmatpush.bf16.msra.mxu2 %v8374_v28  ;;  %v10780_v54 = vld [vmem:[#allocation5 + $0xaa4] sm:$0xf]  ;;  %v8467_v57 = vld [vmem:[#allocation5 + $0xbb0] sm:$0xf0]  ;;  %5181 = vmatmul.bf16.vlgmr.msrb.gmra.mxu3 %v11563_v38  ;;  %v8214_v58 = vor.u32 %v10748_v51, %v8211_v53 }
 0x124   :  { %5225 = vmatpush.bf16.msra.mxu3 %v8502_v35  ;;  %v10812_v56 = vld [vmem:[#allocation5 + $0xba4] sm:$0xf]  ;;  %v8342_v59 = vor.u32 %v10780_v54, %v8339_v55  ;;  %v8067_v62 = vld [vmem:[#allocation5 + $0x890] sm:$0xf0] }
 0x125   :  { %5187 = vmatpush.bf16.msra.mxu0 %v8102_v46  ;;  %v10712_v60 = vld [vmem:[#allocation5 + $0x884] sm:$0xf]  ;;  %v8470_v0 = vor.u32 %v10812_v56, %v8467_v57  ;;  %v8195_v3 = vld [vmem:[#allocation5 + $0x990] sm:$0xf0]  ;;  %v4961_v53 = vpop.f32.mrf.mxu2 }
 0x126   :  { %5200 = vmatpush.bf16.msra.mxu1 %v8230_v47  ;;  %v10744_v63 = vld [vmem:[#allocation5 + $0x984] sm:$0xf]  ;;  %v8323_v6 = vld [vmem:[#allocation5 + $0xa90] sm:$0xf0]  ;;  %v8070_v16 = vor.u32 %v10712_v60, %v8067_v62  ;;  %v4962_v57 = vadd.f32 %v4961_v53, %v4949_v39 }
 0x127   :  { %5213 = vmatpush.bf16.msra.mxu2 %v8358_v48  ;;  %v10776_v4 = vld [vmem:[#allocation5 + $0xa84] sm:$0xf]  ;;  %v8451_v11 = vld [vmem:[#allocation5 + $0xb90] sm:$0xf0]  ;;  %v8198_v21 = vor.u32 %v10744_v63, %v8195_v3  ;;  %v4937_v60 = vpop.f32.mrf.mxu0 }
 0x128   :  { %5226 = vmatpush.bf16.msra.mxu3 %v8486_v52  ;;  %v10808_v10 = vld [vmem:[#allocation5 + $0xb84] sm:$0xf]  ;;  %v8326_v28 = vor.u32 %v10776_v4, %v8323_v6  ;;  %v8051_v30 = vld [vmem:[#allocation5 + $0x870] sm:$0xf0] }
 0x129   :  { %5188 = vmatpush.bf16.msra.mxu0 %v8086_v43  ;;  %v10708_v29 = vld [vmem:[#allocation5 + $0x864] sm:$0xf]  ;;  %v8454_v35 = vor.u32 %v10808_v10, %v8451_v11  ;;  %v8179_v41 = vld [vmem:[#allocation5 + $0x970] sm:$0xf0]  ;;  %v4974_v43 = vpop.f32.mrf.mxu3  ;;  %v4950_v63 = vpop.f32.mrf.mxu1 }
 0x12a   :  { %5201 = vmatpush.bf16.msra.mxu1 %v8214_v58  ;;  %v10740_v33 = vld [vmem:[#allocation5 + $0x964] sm:$0xf]  ;;  %v8307_v44 = vld [vmem:[#allocation5 + $0xa70] sm:$0xf0]  ;;  %v8054_v47 = vor.u32 %v10708_v29, %v8051_v30 }
 0x12b   :  { %5214 = vmatpush.bf16.msra.mxu2 %v8342_v59  ;;  %v10772_v42 = vld [vmem:[#allocation5 + $0xa64] sm:$0xf]  ;;  %v8435_v46 = vld [vmem:[#allocation5 + $0xb70] sm:$0xf0]  ;;  %v8182_v12 = vor.u32 %v10740_v33, %v8179_v41 }
 0x12c   :  { %5227 = vmatpush.bf16.msra.mxu3 %v8470_v0  ;;  %v10804_v45 = vld [vmem:[#allocation5 + $0xb64] sm:$0xf]  ;;  %v8310_v48 = vor.u32 %v10772_v42, %v8307_v44  ;;  %v8035_v50 = vld [vmem:[#allocation5 + $0x850] sm:$0xf0]  ;;  %v11636_v0 = vadd.f32 %v4974_v43, %v4962_v57 }
 0x12d   :  { %5189 = vmatpush.bf16.msra.mxu0 %v8070_v16  ;;  %v10704_v49 = vld [vmem:[#allocation5 + $0x844] sm:$0xf]  ;;  %v8438_v52 = vor.u32 %v10804_v45, %v8435_v46  ;;  %v8163_v54 = vld [vmem:[#allocation5 + $0x950] sm:$0xf0] }
 0x12e   :  { %5202 = vmatpush.bf16.msra.mxu1 %v8198_v21  ;;  %v10736_v51 = vld [vmem:[#allocation5 + $0x944] sm:$0xf]  ;;  %v8291_v56 = vld [vmem:[#allocation5 + $0xa50] sm:$0xf0]  ;;  %v8038_v62 = vor.u32 %v10704_v49, %v8035_v50 }
 0x12f   :  { %5215 = vmatpush.bf16.msra.mxu2 %v8326_v28  ;;  %v10768_v55 = vld [vmem:[#allocation5 + $0xa44] sm:$0xf]  ;;  %v8419_v59 = vld [vmem:[#allocation5 + $0xb50] sm:$0xf0]  ;;  %v8166_v3 = vor.u32 %v10736_v51, %v8163_v54 }
 0x130   :  { %5228 = vmatpush.bf16.msra.mxu3 %v8454_v35  ;;  %v10800_v58 = vld [vmem:[#allocation5 + $0xb44] sm:$0xf]  ;;  %v8294_v4 = vor.u32 %v10768_v55, %v8291_v56  ;;  %v8019_v7 = vld [vmem:[#allocation5 + $0x830] sm:$0xf0] }
 0x131   :  { %5190 = vmatpush.bf16.msra.mxu0 %v8054_v47  ;;  %v10700_v6 = vld [vmem:[#allocation5 + $0x824] sm:$0xf]  ;;  %v8422_v11 = vor.u32 %v10800_v58, %v8419_v59  ;;  %v8147_v14 = vld [vmem:[#allocation5 + $0x930] sm:$0xf0] }
 0x132   :  { %5203 = vmatpush.bf16.msra.mxu1 %v8182_v12  ;;  %v10732_v10 = vld [vmem:[#allocation5 + $0x924] sm:$0xf]  ;;  %v8275_v17 = vld [vmem:[#allocation5 + $0xa30] sm:$0xf0]  ;;  %v8022_v29 = vor.u32 %v10700_v6, %v8019_v7 }
 0x133   :  { %5216 = vmatpush.bf16.msra.mxu2 %v8310_v48  ;;  %v10764_v16 = vld [vmem:[#allocation5 + $0xa24] sm:$0xf]  ;;  %v8403_v28 = vld [vmem:[#allocation5 + $0xb30] sm:$0xf0]  ;;  %v8150_v35 = vor.u32 %v10732_v10, %v8147_v14  ;;  %v4963_v48 = vpop.f32.mrf.mxu2 }
 0x134   :  { %5229 = vmatpush.bf16.msra.mxu3 %v8438_v52  ;;  %v10796_v21 = vld [vmem:[#allocation5 + $0xb24] sm:$0xf]  ;;  %v8003_v33 = vld [vmem:[#allocation5 + $0x810] sm:$0xf0]  ;;  %v8278_v39 = vor.u32 %v10764_v16, %v8275_v17  ;;  %v4976_v52 = vpop.f32.mrf.mxu3 }
 0x135   :  { %5191 = vmatpush.bf16.msra.mxu0 %v8038_v62  ;;  %v10696_v30 = vld [vmem:[#allocation5 + $0x804] sm:$0xf]  ;;  %v8131_v42 = vld [vmem:[#allocation5 + $0x910] sm:$0xf0]  ;;  %v8406_v45 = vor.u32 %v10796_v21, %v8403_v28 }
 0x136   :  { %5204 = vmatpush.bf16.msra.mxu1 %v8166_v3  ;;  %v10728_v41 = vld [vmem:[#allocation5 + $0x904] sm:$0xf]  ;;  %v8259_v46 = vld [vmem:[#allocation5 + $0xa10] sm:$0xf0]  ;;  %v8006_v53 = vor.u32 %v10696_v30, %v8003_v33 }
 0x137   :  { %5217 = vmatpush.bf16.msra.mxu2 %v8294_v4  ;;  %v10760_v44 = vld [vmem:[#allocation5 + $0xa04] sm:$0xf]  ;;  %v8387_v12 = vld [vmem:[#allocation5 + $0xb10] sm:$0xf0]  ;;  %v8134_v57 = vor.u32 %v10728_v41, %v8131_v42 }
 0x138   :  { %5230 = vmatpush.bf16.msra.mxu3 %v8422_v11  ;;  %v10792_v47 = vld [vmem:[#allocation5 + $0xb04] sm:$0xf]  ;;  %v8627_v50 = vld [vmem:[#allocation5 + $0xcf0] sm:$0xf0]  ;;  %v8262_v43 = vor.u32 %v10760_v44, %v8259_v46 }
 0x139   :  { %v10852_v49 = vld [vmem:[#allocation5 + $0xce4] sm:$0xf]  ;;  %5192 = vmatpush.bf16.msra.mxu0 %v8022_v29  ;;  %v8755_v54 = vld [vmem:[#allocation5 + $0xdf0] sm:$0xf0]  ;;  %v8390_v60 = vor.u32 %v10792_v47, %v8387_v12 }
 0x13a   :  { %v10884_v51 = vld [vmem:[#allocation5 + $0xde4] sm:$0xf]  ;;  %v8883_v56 = vld [vmem:[#allocation5 + $0xef0] sm:$0xf0]  ;;  %5205 = vmatpush.bf16.msra.mxu1 %v8150_v35  ;;  %v8630_v62 = vor.u32 %v10852_v49, %v8627_v50 }
 0x13b   :  { %v10916_v55 = vld [vmem:[#allocation5 + $0xee4] sm:$0xf]  ;;  %5218 = vmatpush.bf16.msra.mxu2 %v8278_v39  ;;  %v9011_v59 = vld [vmem:[#allocation5 + $0xff0] sm:$0xf0]  ;;  %v8758_v63 = vor.u32 %v10884_v51, %v8755_v54 }
 0x13c   :  { %v10948_v58 = vld [vmem:[#allocation5 + $0xfe4] sm:$0xf]  ;;  %5231 = vmatpush.bf16.msra.mxu3 %v8406_v45  ;;  %v8886_v3 = vor.u32 %v10916_v55, %v8883_v56  ;;  %v8611_v6 = vld [vmem:[#allocation5 + $0xcd0] sm:$0xf0] }
 0x13d   :  { %v10848_v4 = vld [vmem:[#allocation5 + $0xcc4] sm:$0xf]  ;;  %5193 = vmatpush.bf16.msra.mxu0 %v8006_v53  ;;  %v9014_v10 = vor.u32 %v10948_v58, %v9011_v59  ;;  %v8739_v11 = vld [vmem:[#allocation5 + $0xdd0] sm:$0xf0] }
 0x13e   :  { %v10880_v7 = vld [vmem:[#allocation5 + $0xdc4] sm:$0xf]  ;;  %v8867_v16 = vld [vmem:[#allocation5 + $0xed0] sm:$0xf0]  ;;  %5206 = vmatpush.bf16.msra.mxu1 %v8134_v57  ;;  %v8614_v28 = vor.u32 %v10848_v4, %v8611_v6 }
 0x13f   :  { %v10912_v14 = vld [vmem:[#allocation5 + $0xec4] sm:$0xf]  ;;  %5219 = vmatpush.bf16.msra.mxu2 %v8262_v43  ;;  %v8995_v21 = vld [vmem:[#allocation5 + $0xfd0] sm:$0xf0]  ;;  %v8742_v29 = vor.u32 %v10880_v7, %v8739_v11 }
 0x140   :  { %v10944_v17 = vld [vmem:[#allocation5 + $0xfc4] sm:$0xf]  ;;  %5232 = vmatpush.bf16.msra.mxu3 %v8390_v60  ;;  %v8870_v30 = vor.u32 %v10912_v14, %v8867_v16  ;;  %v8595_v35 = vld [vmem:[#allocation5 + $0xcb0] sm:$0xf0]  ;;  %5194 = vmatmul.bf16.vlgmr.msra.gmra.mxu0 %v11571_v18  ;;  %v4987_v57 = vpop.f32.mrf.mxu0 }
 0x141   :  { %5238 = vmatpush.bf16.msrb.mxu0 %v8630_v62  ;;  %v10844_v33 = vld [vmem:[#allocation5 + $0xca4] sm:$0xf]  ;;  %v8998_v41 = vor.u32 %v10944_v17, %v8995_v21  ;;  %v8723_v42 = vld [vmem:[#allocation5 + $0xdb0] sm:$0xf0]  ;;  %5207 = vmatmul.bf16.vlgmr.msra.gmra.mxu1 %v11575_v23  ;;  %v4988_v59 = vadd.f32 %v4987_v57, %v11636_v0  ;;  %v5000_v62 = vpop.f32.mrf.mxu1 }
 0x142   :  { %5251 = vmatpush.bf16.msrb.mxu1 %v8758_v63  ;;  %v10876_v39 = vld [vmem:[#allocation5 + $0xda4] sm:$0xf]  ;;  %v8851_v45 = vld [vmem:[#allocation5 + $0xeb0] sm:$0xf0]  ;;  %5220 = vmatmul.bf16.vlgmr.msra.gmra.mxu2 %v11573_v22  ;;  %v8598_v12 = vor.u32 %v10844_v33, %v8595_v35 }
 0x143   :  { %5264 = vmatpush.bf16.msrb.mxu2 %v8886_v3  ;;  %v10908_v44 = vld [vmem:[#allocation5 + $0xea4] sm:$0xf]  ;;  %v8979_v47 = vld [vmem:[#allocation5 + $0xfb0] sm:$0xf0]  ;;  %5233 = vmatmul.bf16.vlgmr.msra.gmra.mxu3 %v11577_v27  ;;  %v8726_v48 = vor.u32 %v10876_v39, %v8723_v42  ;;  %v5001_v11 = vadd.f32 %v5000_v62, %v4988_v59 }
 0x144   :  { %5277 = vmatpush.bf16.msrb.mxu3 %v9014_v10  ;;  %v10940_v46 = vld [vmem:[#allocation5 + $0xfa4] sm:$0xf]  ;;  %v8854_v49 = vor.u32 %v10908_v44, %v8851_v45  ;;  %v8579_v51 = vld [vmem:[#allocation5 + $0xc90] sm:$0xf0] }
 0x145   :  { %5239 = vmatpush.bf16.msrb.mxu0 %v8614_v28  ;;  %v10840_v50 = vld [vmem:[#allocation5 + $0xc84] sm:$0xf]  ;;  %v8982_v53 = vor.u32 %v10940_v46, %v8979_v47  ;;  %v8707_v54 = vld [vmem:[#allocation5 + $0xd90] sm:$0xf0] }
 0x146   :  { %5252 = vmatpush.bf16.msrb.mxu1 %v8742_v29  ;;  %v10872_v52 = vld [vmem:[#allocation5 + $0xd84] sm:$0xf]  ;;  %v8835_v56 = vld [vmem:[#allocation5 + $0xe90] sm:$0xf0]  ;;  %v8582_v60 = vor.u32 %v10840_v50, %v8579_v51  ;;  %v5013_v42 = vpop.f32.mrf.mxu2 }
 0x147   :  { %5265 = vmatpush.bf16.msrb.mxu2 %v8870_v30  ;;  %v10904_v55 = vld [vmem:[#allocation5 + $0xe84] sm:$0xf]  ;;  %v8963_v58 = vld [vmem:[#allocation5 + $0xf90] sm:$0xf0]  ;;  %v8710_v63 = vor.u32 %v10872_v52, %v8707_v54  ;;  %v5014_v47 = vadd.f32 %v5013_v42, %v5001_v11 }
 0x148   :  { %5278 = vmatpush.bf16.msrb.mxu3 %v8998_v41  ;;  %v10936_v43 = vld [vmem:[#allocation5 + $0xf84] sm:$0xf]  ;;  %v8838_v3 = vor.u32 %v10904_v55, %v8835_v56  ;;  %v8563_v6 = vld [vmem:[#allocation5 + $0xc70] sm:$0xf0]  ;;  %v4989_v50 = vpop.f32.mrf.mxu0 }
 0x149   :  { %5240 = vmatpush.bf16.msrb.mxu0 %v8598_v12  ;;  %v10836_v4 = vld [vmem:[#allocation5 + $0xc64] sm:$0xf]  ;;  %v8966_v10 = vor.u32 %v10936_v43, %v8963_v58  ;;  %v8691_v14 = vld [vmem:[#allocation5 + $0xd70] sm:$0xf0]  ;;  %v5026_v12 = vpop.f32.mrf.mxu3  ;;  %v5002_v52 = vpop.f32.mrf.mxu1 }
 0x14a   :  { %5253 = vmatpush.bf16.msrb.mxu1 %v8726_v48  ;;  %v10868_v7 = vld [vmem:[#allocation5 + $0xd64] sm:$0xf]  ;;  %v8819_v17 = vld [vmem:[#allocation5 + $0xe70] sm:$0xf0]  ;;  %v8566_v29 = vor.u32 %v10836_v4, %v8563_v6 }
 0x14b   :  { %5266 = vmatpush.bf16.msrb.mxu2 %v8854_v49  ;;  %v10900_v16 = vld [vmem:[#allocation5 + $0xe64] sm:$0xf]  ;;  %v8947_v28 = vld [vmem:[#allocation5 + $0xf70] sm:$0xf0]  ;;  %v8694_v0 = vor.u32 %v10868_v7, %v8691_v14 }
 0x14c   :  { %5279 = vmatpush.bf16.msrb.mxu3 %v8982_v53  ;;  %v10932_v21 = vld [vmem:[#allocation5 + $0xf64] sm:$0xf]  ;;  %v8822_v30 = vor.u32 %v10900_v16, %v8819_v17  ;;  %v8547_v35 = vld [vmem:[#allocation5 + $0xc50] sm:$0xf0]  ;;  %v11643_v53 = vadd.f32 %v5026_v12, %v5014_v47 }
 0x14d   :  { %5241 = vmatpush.bf16.msrb.mxu0 %v8582_v60  ;;  %v10832_v33 = vld [vmem:[#allocation5 + $0xc44] sm:$0xf]  ;;  %v8950_v41 = vor.u32 %v10932_v21, %v8947_v28  ;;  %v8675_v44 = vld [vmem:[#allocation5 + $0xd50] sm:$0xf0] }
 0x14e   :  { %5254 = vmatpush.bf16.msrb.mxu1 %v8710_v63  ;;  %v10864_v39 = vld [vmem:[#allocation5 + $0xd44] sm:$0xf]  ;;  %v8803_v46 = vld [vmem:[#allocation5 + $0xe50] sm:$0xf0]  ;;  %v8550_v51 = vor.u32 %v10832_v33, %v8547_v35 }
 0x14f   :  { %5267 = vmatpush.bf16.msrb.mxu2 %v8838_v3  ;;  %v10896_v45 = vld [vmem:[#allocation5 + $0xe44] sm:$0xf]  ;;  %v8931_v49 = vld [vmem:[#allocation5 + $0xf50] sm:$0xf0]  ;;  %v8678_v54 = vor.u32 %v10864_v39, %v8675_v44 }
 0x150   :  { %5280 = vmatpush.bf16.msrb.mxu3 %v8966_v10  ;;  %v10928_v48 = vld [vmem:[#allocation5 + $0xf44] sm:$0xf]  ;;  %v8806_v55 = vor.u32 %v10896_v45, %v8803_v46  ;;  %v8531_v57 = vld [vmem:[#allocation5 + $0xc30] sm:$0xf0] }
 0x151   :  { %5242 = vmatpush.bf16.msrb.mxu0 %v8566_v29  ;;  %v10828_v56 = vld [vmem:[#allocation5 + $0xc24] sm:$0xf]  ;;  %v8934_v58 = vor.u32 %v10928_v48, %v8931_v49  ;;  %v8659_v59 = vld [vmem:[#allocation5 + $0xd30] sm:$0xf0] }
 0x152   :  { %5255 = vmatpush.bf16.msrb.mxu1 %v8694_v0  ;;  %v10860_v43 = vld [vmem:[#allocation5 + $0xd24] sm:$0xf]  ;;  %v8787_v62 = vld [vmem:[#allocation5 + $0xe30] sm:$0xf0]  ;;  %v8534_v4 = vor.u32 %v10828_v56, %v8531_v57 }
 0x153   :  { %5268 = vmatpush.bf16.msrb.mxu2 %v8822_v30  ;;  %v10892_v60 = vld [vmem:[#allocation5 + $0xe24] sm:$0xf]  ;;  %v8915_v3 = vld [vmem:[#allocation5 + $0xf30] sm:$0xf0]  ;;  %v8662_v10 = vor.u32 %v10860_v43, %v8659_v59  ;;  %v5015_v30 = vpop.f32.mrf.mxu2 }
 0x154   :  { %5281 = vmatpush.bf16.msrb.mxu3 %v8950_v41  ;;  %v10924_v63 = vld [vmem:[#allocation5 + $0xf24] sm:$0xf]  ;;  %v8515_v7 = vld [vmem:[#allocation5 + $0xc10] sm:$0xf0]  ;;  %v8790_v11 = vor.u32 %v10892_v60, %v8787_v62  ;;  %v5028_v41 = vpop.f32.mrf.mxu3 }
 0x155   :  { %5243 = vmatpush.bf16.msrb.mxu0 %v8550_v51  ;;  %v10824_v6 = vld [vmem:[#allocation5 + $0xc04] sm:$0xf]  ;;  %v8643_v16 = vld [vmem:[#allocation5 + $0xd10] sm:$0xf0]  ;;  %v8918_v21 = vor.u32 %v10924_v63, %v8915_v3 }
 0x156   :  { %5256 = vmatpush.bf16.msrb.mxu1 %v8678_v54  ;;  %v10856_v14 = vld [vmem:[#allocation5 + $0xd04] sm:$0xf]  ;;  %v8771_v28 = vld [vmem:[#allocation5 + $0xe10] sm:$0xf0]  ;;  %v8518_v42 = vor.u32 %v10824_v6, %v8515_v7 }
 0x157   :  { %5269 = vmatpush.bf16.msrb.mxu2 %v8806_v55  ;;  %v10888_v17 = vld [vmem:[#allocation5 + $0xe04] sm:$0xf]  ;;  %v8899_v0 = vld [vmem:[#allocation5 + $0xf10] sm:$0xf0]  ;;  %v8646_v47 = vor.u32 %v10856_v14, %v8643_v16 }
 0x158   :  { %5282 = vmatpush.bf16.msrb.mxu3 %v8934_v58  ;;  %v10920_v29 = vld [vmem:[#allocation5 + $0xf04] sm:$0xf]  ;;  %v9139_v35 = vld [vmem:[#allocation5 + $0x10f0] sm:$0xf0]  ;;  %v8774_v12 = vor.u32 %v10888_v17, %v8771_v28 }
 0x159   :  { %v10980_v33 = vld [vmem:[#allocation5 + $0x10e4] sm:$0xf]  ;;  %5244 = vmatpush.bf16.msrb.mxu0 %v8534_v4  ;;  %v9267_v44 = vld [vmem:[#allocation5 + $0x11f0] sm:$0xf0]  ;;  %v8902_v50 = vor.u32 %v10920_v29, %v8899_v0 }
 0x15a   :  { %v11012_v39 = vld [vmem:[#allocation5 + $0x11e4] sm:$0xf]  ;;  %v9395_v46 = vld [vmem:[#allocation5 + $0x12f0] sm:$0xf0]  ;;  %5257 = vmatpush.bf16.msrb.mxu1 %v8662_v10  ;;  %v9142_v51 = vor.u32 %v10980_v33, %v9139_v35 }
 0x15b   :  { %v11044_v45 = vld [vmem:[#allocation5 + $0x12e4] sm:$0xf]  ;;  %5270 = vmatpush.bf16.msrb.mxu2 %v8790_v11  ;;  %v9523_v49 = vld [vmem:[#allocation5 + $0x13f0] sm:$0xf0]  ;;  %v9270_v52 = vor.u32 %v11012_v39, %v9267_v44 }
 0x15c   :  { %v11076_v48 = vld [vmem:[#allocation5 + $0x13e4] sm:$0xf]  ;;  %5283 = vmatpush.bf16.msrb.mxu3 %v8918_v21  ;;  %v9398_v54 = vor.u32 %v11044_v45, %v9395_v46  ;;  %v9123_v56 = vld [vmem:[#allocation5 + $0x10d0] sm:$0xf0] }
 0x15d   :  { %v10976_v55 = vld [vmem:[#allocation5 + $0x10c4] sm:$0xf]  ;;  %5245 = vmatpush.bf16.msrb.mxu0 %v8518_v42  ;;  %v9526_v43 = vor.u32 %v11076_v48, %v9523_v49  ;;  %v9251_v58 = vld [vmem:[#allocation5 + $0x11d0] sm:$0xf0] }
 0x15e   :  { %v11008_v57 = vld [vmem:[#allocation5 + $0x11c4] sm:$0xf]  ;;  %v9379_v60 = vld [vmem:[#allocation5 + $0x12d0] sm:$0xf0]  ;;  %5258 = vmatpush.bf16.msrb.mxu1 %v8646_v47  ;;  %v9126_v3 = vor.u32 %v10976_v55, %v9123_v56 }
 0x15f   :  { %v11040_v59 = vld [vmem:[#allocation5 + $0x12c4] sm:$0xf]  ;;  %5271 = vmatpush.bf16.msrb.mxu2 %v8774_v12  ;;  %v9507_v63 = vld [vmem:[#allocation5 + $0x13d0] sm:$0xf0]  ;;  %v9254_v4 = vor.u32 %v11008_v57, %v9251_v58  ;;  %v5039_v47 = vpop.f32.mrf.mxu0 }
 0x160   :  { %v11072_v62 = vld [vmem:[#allocation5 + $0x13c4] sm:$0xf]  ;;  %5284 = vmatpush.bf16.msrb.mxu3 %v8902_v50  ;;  %v9382_v6 = vor.u32 %v11040_v59, %v9379_v60  ;;  %v9107_v10 = vld [vmem:[#allocation5 + $0x10b0] sm:$0xf0]  ;;  %5246 = vmatmul.bf16.vlgmr.msrb.gmra.mxu0 %v11583_v13  ;;  %v5040_v49 = vadd.f32 %v5039_v47, %v11643_v53 }
 0x161   :  { %5290 = vmatpush.bf16.msra.mxu0 %v9142_v51  ;;  %v10972_v7 = vld [vmem:[#allocation5 + $0x10a4] sm:$0xf]  ;;  %v9510_v14 = vor.u32 %v11072_v62, %v9507_v63  ;;  %v9235_v16 = vld [vmem:[#allocation5 + $0x11b0] sm:$0xf0]  ;;  %5259 = vmatmul.bf16.vlgmr.msrb.gmra.mxu1 %v11587_v20  ;;  %v5052_v51 = vpop.f32.mrf.mxu1 }
 0x162   :  { %5303 = vmatpush.bf16.msra.mxu1 %v9270_v52  ;;  %v11004_v11 = vld [vmem:[#allocation5 + $0x11a4] sm:$0xf]  ;;  %v9363_v21 = vld [vmem:[#allocation5 + $0x12b0] sm:$0xf0]  ;;  %5272 = vmatmul.bf16.vlgmr.msrb.gmra.mxu2 %v11585_v19  ;;  %v9110_v0 = vor.u32 %v10972_v7, %v9107_v10  ;;  %v5053_v58 = vadd.f32 %v5052_v51, %v5040_v49 }
 0x163   :  { %5316 = vmatpush.bf16.msra.mxu2 %v9398_v54  ;;  %v11036_v17 = vld [vmem:[#allocation5 + $0x12a4] sm:$0xf]  ;;  %v9491_v29 = vld [vmem:[#allocation5 + $0x13b0] sm:$0xf0]  ;;  %5285 = vmatmul.bf16.vlgmr.msrb.gmra.mxu3 %v11589_v26  ;;  %v9238_v30 = vor.u32 %v11004_v11, %v9235_v16 }
 0x164   :  { %5329 = vmatpush.bf16.msra.mxu3 %v9526_v43  ;;  %v11068_v28 = vld [vmem:[#allocation5 + $0x13a4] sm:$0xf]  ;;  %v9366_v33 = vor.u32 %v11036_v17, %v9363_v21  ;;  %v9091_v39 = vld [vmem:[#allocation5 + $0x1090] sm:$0xf0] }
 0x165   :  { %5291 = vmatpush.bf16.msra.mxu0 %v9126_v3  ;;  %v10968_v35 = vld [vmem:[#allocation5 + $0x1084] sm:$0xf]  ;;  %v9494_v42 = vor.u32 %v11068_v28, %v9491_v29  ;;  %v9219_v44 = vld [vmem:[#allocation5 + $0x1190] sm:$0xf0] }
 0x166   :  { %5304 = vmatpush.bf16.msra.mxu1 %v9254_v4  ;;  %v11000_v41 = vld [vmem:[#allocation5 + $0x1184] sm:$0xf]  ;;  %v9347_v46 = vld [vmem:[#allocation5 + $0x1290] sm:$0xf0]  ;;  %v9094_v50 = vor.u32 %v10968_v35, %v9091_v39 }
 0x167   :  { %5317 = vmatpush.bf16.msra.mxu2 %v9382_v6  ;;  %v11032_v45 = vld [vmem:[#allocation5 + $0x1284] sm:$0xf]  ;;  %v9475_v48 = vld [vmem:[#allocation5 + $0x1390] sm:$0xf0]  ;;  %v9222_v52 = vor.u32 %v11000_v41, %v9219_v44  ;;  %v5065_v16 = vpop.f32.mrf.mxu2  ;;  %v5041_v35 = vpop.f32.mrf.mxu0 }
 0x168   :  { %5330 = vmatpush.bf16.msra.mxu3 %v9510_v14  ;;  %v11064_v12 = vld [vmem:[#allocation5 + $0x1384] sm:$0xf]  ;;  %v9350_v54 = vor.u32 %v11032_v45, %v9347_v46  ;;  %v9075_v56 = vld [vmem:[#allocation5 + $0x1070] sm:$0xf0]  ;;  %v5066_v29 = vadd.f32 %v5065_v16, %v5053_v58 }
 0x169   :  { %5292 = vmatpush.bf16.msra.mxu0 %v9110_v0  ;;  %v10964_v55 = vld [vmem:[#allocation5 + $0x1064] sm:$0xf]  ;;  %v9478_v43 = vor.u32 %v11064_v12, %v9475_v48  ;;  %v9203_v59 = vld [vmem:[#allocation5 + $0x1170] sm:$0xf0]  ;;  %v5078_v0 = vpop.f32.mrf.mxu3  ;;  %v5054_v41 = vpop.f32.mrf.mxu1 }
 0x16a   :  { %5305 = vmatpush.bf16.msra.mxu1 %v9238_v30  ;;  %v10996_v57 = vld [vmem:[#allocation5 + $0x1164] sm:$0xf]  ;;  %v9331_v62 = vld [vmem:[#allocation5 + $0x1270] sm:$0xf0]  ;;  %v9078_v4 = vor.u32 %v10964_v55, %v9075_v56 }
 0x16b   :  { %5318 = vmatpush.bf16.msra.mxu2 %v9366_v33  ;;  %v11028_v60 = vld [vmem:[#allocation5 + $0x1264] sm:$0xf]  ;;  %v9459_v3 = vld [vmem:[#allocation5 + $0x1370] sm:$0xf0]  ;;  %v9206_v53 = vor.u32 %v10996_v57, %v9203_v59 }
 0x16c   :  { %5331 = vmatpush.bf16.msra.mxu3 %v9494_v42  ;;  %v11060_v63 = vld [vmem:[#allocation5 + $0x1364] sm:$0xf]  ;;  %v9334_v6 = vor.u32 %v11028_v60, %v9331_v62  ;;  %v9059_v10 = vld [vmem:[#allocation5 + $0x1050] sm:$0xf0]  ;;  %v11650_v42 = vadd.f32 %v5078_v0, %v5066_v29 }
 0x16d   :  { %5293 = vmatpush.bf16.msra.mxu0 %v9094_v50  ;;  %v10960_v7 = vld [vmem:[#allocation5 + $0x1044] sm:$0xf]  ;;  %v9462_v14 = vor.u32 %v11060_v63, %v9459_v3  ;;  %v9187_v17 = vld [vmem:[#allocation5 + $0x1150] sm:$0xf0] }
 0x16e   :  { %5306 = vmatpush.bf16.msra.mxu1 %v9222_v52  ;;  %v10992_v11 = vld [vmem:[#allocation5 + $0x1144] sm:$0xf]  ;;  %v9315_v28 = vld [vmem:[#allocation5 + $0x1250] sm:$0xf0]  ;;  %v9062_v39 = vor.u32 %v10960_v7, %v9059_v10 }
 0x16f   :  { %5319 = vmatpush.bf16.msra.mxu2 %v9350_v54  ;;  %v11024_v21 = vld [vmem:[#allocation5 + $0x1244] sm:$0xf]  ;;  %v9443_v33 = vld [vmem:[#allocation5 + $0x1350] sm:$0xf0]  ;;  %v9190_v44 = vor.u32 %v10992_v11, %v9187_v17 }
 0x170   :  { %5332 = vmatpush.bf16.msra.mxu3 %v9478_v43  ;;  %v11056_v30 = vld [vmem:[#allocation5 + $0x1344] sm:$0xf]  ;;  %v9318_v45 = vor.u32 %v11024_v21, %v9315_v28  ;;  %v9043_v47 = vld [vmem:[#allocation5 + $0x1030] sm:$0xf0] }
 0x171   :  { %5294 = vmatpush.bf16.msra.mxu0 %v9078_v4  ;;  %v10956_v46 = vld [vmem:[#allocation5 + $0x1024] sm:$0xf]  ;;  %v9446_v48 = vor.u32 %v11056_v30, %v9443_v33  ;;  %v9171_v49 = vld [vmem:[#allocation5 + $0x1130] sm:$0xf0] }
 0x172   :  { %5307 = vmatpush.bf16.msra.mxu1 %v9206_v53  ;;  %v10988_v12 = vld [vmem:[#allocation5 + $0x1124] sm:$0xf]  ;;  %v9299_v51 = vld [vmem:[#allocation5 + $0x1230] sm:$0xf0]  ;;  %v9046_v55 = vor.u32 %v10956_v46, %v9043_v47 }
 0x173   :  { %5320 = vmatpush.bf16.msra.mxu2 %v9334_v6  ;;  %v11020_v50 = vld [vmem:[#allocation5 + $0x1224] sm:$0xf]  ;;  %v9427_v54 = vld [vmem:[#allocation5 + $0x1330] sm:$0xf0]  ;;  %v9174_v43 = vor.u32 %v10988_v12, %v9171_v49  ;;  %v5067_v6 = vpop.f32.mrf.mxu2 }
 0x174   :  { %5333 = vmatpush.bf16.msra.mxu3 %v9462_v14  ;;  %v11052_v52 = vld [vmem:[#allocation5 + $0x1324] sm:$0xf]  ;;  %v9027_v57 = vld [vmem:[#allocation5 + $0x1010] sm:$0xf0]  ;;  %v9302_v58 = vor.u32 %v11020_v50, %v9299_v51  ;;  %v5080_v14 = vpop.f32.mrf.mxu3 }
 0x175   :  { %5295 = vmatpush.bf16.msra.mxu0 %v9062_v39  ;;  %v10952_v56 = vld [vmem:[#allocation5 + $0x1004] sm:$0xf]  ;;  %v9155_v60 = vld [vmem:[#allocation5 + $0x1110] sm:$0xf0]  ;;  %v9430_v63 = vor.u32 %v11052_v52, %v9427_v54 }
 0x176   :  { %5308 = vmatpush.bf16.msra.mxu1 %v9190_v44  ;;  %v10984_v59 = vld [vmem:[#allocation5 + $0x1104] sm:$0xf]  ;;  %v9283_v3 = vld [vmem:[#allocation5 + $0x1210] sm:$0xf0]  ;;  %v9030_v16 = vor.u32 %v10952_v56, %v9027_v57 }
 0x177   :  { %5321 = vmatpush.bf16.msra.mxu2 %v9318_v45  ;;  %v11016_v62 = vld [vmem:[#allocation5 + $0x1204] sm:$0xf]  ;;  %v9411_v53 = vld [vmem:[#allocation5 + $0x1310] sm:$0xf0]  ;;  %v9158_v29 = vor.u32 %v10984_v59, %v9155_v60 }
 0x178   :  { %5334 = vmatpush.bf16.msra.mxu3 %v9446_v48  ;;  %v11048_v4 = vld [vmem:[#allocation5 + $0x1304] sm:$0xf]  ;;  %v9651_v10 = vld [vmem:[#allocation5 + $0x14f0] sm:$0xf0]  ;;  %v9286_v0 = vor.u32 %v11016_v62, %v9283_v3 }
 0x179   :  { %v11108_v7 = vld [vmem:[#allocation5 + $0x14e4] sm:$0xf]  ;;  %5296 = vmatpush.bf16.msra.mxu0 %v9046_v55  ;;  %v9779_v17 = vld [vmem:[#allocation5 + $0x15f0] sm:$0xf0]  ;;  %v9414_v35 = vor.u32 %v11048_v4, %v9411_v53 }
 0x17a   :  { %v11140_v11 = vld [vmem:[#allocation5 + $0x15e4] sm:$0xf]  ;;  %v9907_v28 = vld [vmem:[#allocation5 + $0x16f0] sm:$0xf0]  ;;  %5309 = vmatpush.bf16.msra.mxu1 %v9174_v43  ;;  %v9654_v39 = vor.u32 %v11108_v7, %v9651_v10 }
 0x17b   :  { %v11172_v21 = vld [vmem:[#allocation5 + $0x16e4] sm:$0xf]  ;;  %5322 = vmatpush.bf16.msra.mxu2 %v9302_v58  ;;  %v10035_v33 = vld [vmem:[#allocation5 + $0x17f0] sm:$0xf0]  ;;  %v9782_v41 = vor.u32 %v11140_v11, %v9779_v17 }
 0x17c   :  { %v11204_v30 = vld [vmem:[#allocation5 + $0x17e4] sm:$0xf]  ;;  %5335 = vmatpush.bf16.msra.mxu3 %v9430_v63  ;;  %v9910_v44 = vor.u32 %v11172_v21, %v9907_v28  ;;  %v9635_v46 = vld [vmem:[#allocation5 + $0x14d0] sm:$0xf0] }
 0x17d   :  { %v11104_v45 = vld [vmem:[#allocation5 + $0x14c4] sm:$0xf]  ;;  %5297 = vmatpush.bf16.msra.mxu0 %v9030_v16  ;;  %v10038_v12 = vor.u32 %v11204_v30, %v10035_v33  ;;  %v9763_v48 = vld [vmem:[#allocation5 + $0x15d0] sm:$0xf0] }
 0x17e   :  { %v11136_v47 = vld [vmem:[#allocation5 + $0x15c4] sm:$0xf]  ;;  %v9891_v50 = vld [vmem:[#allocation5 + $0x16d0] sm:$0xf0]  ;;  %5310 = vmatpush.bf16.msra.mxu1 %v9158_v29  ;;  %v9638_v54 = vor.u32 %v11104_v45, %v9635_v46 }
 0x17f   :  { %v11168_v49 = vld [vmem:[#allocation5 + $0x16c4] sm:$0xf]  ;;  %5323 = vmatpush.bf16.msra.mxu2 %v9286_v0  ;;  %v10019_v52 = vld [vmem:[#allocation5 + $0x17d0] sm:$0xf0]  ;;  %v9766_v55 = vor.u32 %v11136_v47, %v9763_v48  ;;  %v5104_v48 = vpop.f32.mrf.mxu1 }
 0x180   :  { %v11200_v51 = vld [vmem:[#allocation5 + $0x17c4] sm:$0xf]  ;;  %5336 = vmatpush.bf16.msra.mxu3 %v9414_v35  ;;  %v9894_v56 = vor.u32 %v11168_v49, %v9891_v50  ;;  %v9619_v43 = vld [vmem:[#allocation5 + $0x14b0] sm:$0xf0]  ;;  %5298 = vmatmul.bf16.vlgmr.msra.gmra.mxu0 %v11595_v24 }
 0x181   :  { %5342 = vmatpush.bf16.msrb.mxu0 %v9654_v39  ;;  %v11100_v57 = vld [vmem:[#allocation5 + $0x14a4] sm:$0xf]  ;;  %v10022_v59 = vor.u32 %v11200_v51, %v10019_v52  ;;  %v9747_v60 = vld [vmem:[#allocation5 + $0x15b0] sm:$0xf0]  ;;  %5311 = vmatmul.bf16.vlgmr.msra.gmra.mxu1 %v11599_v32  ;;  %v5091_v39 = vpop.f32.mrf.mxu0 }
 0x182   :  { %5355 = vmatpush.bf16.msrb.mxu1 %v9782_v41  ;;  %v11132_v58 = vld [vmem:[#allocation5 + $0x15a4] sm:$0xf]  ;;  %v9875_v63 = vld [vmem:[#allocation5 + $0x16b0] sm:$0xf0]  ;;  %5324 = vmatmul.bf16.vlgmr.msra.gmra.mxu2 %v11597_v31  ;;  %v9622_v53 = vor.u32 %v11100_v57, %v9619_v43 }
 0x183   :  { %5368 = vmatpush.bf16.msrb.mxu2 %v9910_v44  ;;  %v11164_v62 = vld [vmem:[#allocation5 + $0x16a4] sm:$0xf]  ;;  %v10003_v4 = vld [vmem:[#allocation5 + $0x17b0] sm:$0xf0]  ;;  %5337 = vmatmul.bf16.vlgmr.msra.gmra.mxu3 %v11601_v36  ;;  %v9750_v7 = vor.u32 %v11132_v58, %v9747_v60 }
 0x184   :  { %5381 = vmatpush.bf16.msrb.mxu3 %v10038_v12  ;;  %v11196_v3 = vld [vmem:[#allocation5 + $0x17a4] sm:$0xf]  ;;  %v9878_v10 = vor.u32 %v11164_v62, %v9875_v63  ;;  %v9603_v11 = vld [vmem:[#allocation5 + $0x1490] sm:$0xf0] }
 0x185   :  { %5343 = vmatpush.bf16.msrb.mxu0 %v9638_v54  ;;  %v11096_v6 = vld [vmem:[#allocation5 + $0x1484] sm:$0xf]  ;;  %v11323_v16 = vld [vmem:[#allocation10] ss:$8 sm:$0xf]  ;;  %v10006_v21 = vor.u32 %v11196_v3, %v10003_v4  ;;  %v5117_v63 = vpop.f32.mrf.mxu2 }
 0x186   :  { %5356 = vmatpush.bf16.msrb.mxu1 %v9766_v55  ;;  %v11128_v14 = vld [vmem:[#allocation5 + $0x1584] sm:$0xf]  ;;  %v923_v17 = vperm.slane %v11323_v16, 1  ;;  %v9731_v28 = vld [vmem:[#allocation5 + $0x1590] sm:$0xf0]  ;;  %v9606_v35 = vor.u32 %v11096_v6, %v9603_v11 }
 0x187   :  { %5369 = vmatpush.bf16.msrb.mxu2 %v9894_v56  ;;  %v11160_v29 = vld [vmem:[#allocation5 + $0x1684] sm:$0xf]  ;;  %v9859_v0 = vld [vmem:[#allocation5 + $0x1690] sm:$0xf0]  ;;  %v9734_v41 = vor.u32 %v11128_v14, %v9731_v28 }
 0x188   :  { %5382 = vmatpush.bf16.msrb.mxu3 %v10022_v59  ;;  %v11192_v30 = vld [vmem:[#allocation5 + $0x1784] sm:$0xf]  ;;  %v9987_v33 = vld [vmem:[#allocation5 + $0x1790] sm:$0xf0]  ;;  %v9862_v44 = vor.u32 %v11160_v29, %v9859_v0  ;;  %v5092_v12 = vadd.f32 %v5091_v39, %v923_v17 }
 0x189   :  { %5344 = vmatpush.bf16.msrb.mxu0 %v9622_v53  ;;  %v11092_v45 = vld [vmem:[#allocation5 + $0x1464] sm:$0xf]  ;;  %v9587_v46 = vld [vmem:[#allocation5 + $0x1470] sm:$0xf0]  ;;  %v9990_v49 = vor.u32 %v11192_v30, %v9987_v33 }
 0x18a   :  { %5357 = vmatpush.bf16.msrb.mxu1 %v9750_v7  ;;  %v11124_v47 = vld [vmem:[#allocation5 + $0x1564] sm:$0xf]  ;;  %v9715_v50 = vld [vmem:[#allocation5 + $0x1570] sm:$0xf0]  ;;  %v5105_v56 = vadd.f32 %v5104_v48, %v5092_v12  ;;  %v9590_v57 = vor.u32 %v11092_v45, %v9587_v46 }
 0x18b   :  { %5370 = vmatpush.bf16.msrb.mxu2 %v9878_v10  ;;  %v11156_v51 = vld [vmem:[#allocation5 + $0x1664] sm:$0xf]  ;;  %v9843_v52 = vld [vmem:[#allocation5 + $0x1670] sm:$0xf0]  ;;  %v9718_v43 = vor.u32 %v11124_v47, %v9715_v50  ;;  %v5130_v10 = vpop.f32.mrf.mxu3 }
 0x18c   :  { %5383 = vmatpush.bf16.msrb.mxu3 %v10006_v21  ;;  %v11188_v54 = vld [vmem:[#allocation5 + $0x1764] sm:$0xf]  ;;  %v9971_v55 = vld [vmem:[#allocation5 + $0x1770] sm:$0xf0]  ;;  %v9846_v58 = vor.u32 %v11156_v51, %v9843_v52  ;;  %v5118_v7 = vadd.f32 %v5117_v63, %v5105_v56  ;;  %v5093_v21 = vpop.f32.mrf.mxu0  ;;  %v10471_v63 = vld [vmem:[#allocation5 + $0xf4] sm:$0xf0] }
 0x18d   :  { %5345 = vmatpush.bf16.msrb.mxu0 %v9606_v35  ;;  %v11088_v59 = vld [vmem:[#allocation5 + $0x1444] sm:$0xf]  ;;  %v9571_v60 = vld [vmem:[#allocation5 + $0x1450] sm:$0xf0]  ;;  %v9974_v3 = vor.u32 %v11188_v54, %v9971_v55  ;;  %v5106_v35 = vpop.f32.mrf.mxu1  ;;  %v5119_v56 = vpop.f32.mrf.mxu2 }
 0x18e   :  { %5358 = vmatpush.bf16.msrb.mxu1 %v9734_v41  ;;  %v11120_v62 = vld [vmem:[#allocation5 + $0x1544] sm:$0xf]  ;;  %v9699_v4 = vld [vmem:[#allocation5 + $0x1550] sm:$0xf0]  ;;  %v9574_v16 = vor.u32 %v11088_v59, %v9571_v60  ;;  %v11656_v17 = vadd.f32 %v5130_v10, %v5118_v7  ;;  %v10535_v7 = vld [vmem:[#allocation5 + $0x2f4] sm:$0xf0] }
 0x18f   :  { %5371 = vmatpush.bf16.msrb.mxu2 %v9862_v44  ;;  %v11152_v53 = vld [vmem:[#allocation5 + $0x1644] sm:$0xf]  ;;  %v9827_v6 = vld [vmem:[#allocation5 + $0x1650] sm:$0xf0]  ;;  %v9702_v28 = vor.u32 %v11120_v62, %v9699_v4  ;;  %v7097_v62 = vld [vmem:[#allocation5 + $0xe8] sm:$0xf] }
 0x190   :  { %5384 = vmatpush.bf16.msrb.mxu3 %v9990_v49  ;;  %v11184_v11 = vld [vmem:[#allocation5 + $0x1744] sm:$0xf]  ;;  %v9955_v14 = vld [vmem:[#allocation5 + $0x1750] sm:$0xf0]  ;;  %v9830_v29 = vor.u32 %v11152_v53, %v9827_v6  ;;  %v10503_v53 = vld [vmem:[#allocation5 + $0x1f4] sm:$0xf0] }
 0x191   :  { %5346 = vmatpush.bf16.msrb.mxu0 %v9590_v57  ;;  %v11084_v0 = vld [vmem:[#allocation5 + $0x1424] sm:$0xf]  ;;  %v9555_v30 = vld [vmem:[#allocation5 + $0x1430] sm:$0xf0]  ;;  %v9958_v39 = vor.u32 %v11184_v11, %v9955_v14  ;;  %v7353_v6 = vld [vmem:[#allocation5 + $0x2e8] sm:$0xf] }
 0x192   :  { %5359 = vmatpush.bf16.msrb.mxu1 %v9718_v43  ;;  %v11116_v33 = vld [vmem:[#allocation5 + $0x1524] sm:$0xf]  ;;  %v9683_v41 = vld [vmem:[#allocation5 + $0x1530] sm:$0xf0]  ;;  %v9558_v12 = vor.u32 %v11084_v0, %v9555_v30  ;;  %v7481_v14 = vld [vmem:[#allocation5 + $0x3e8] sm:$0xf]  ;;  %v7354_v0 = vor.u32 %v10535_v7, %v7353_v6 }
 0x193   :  { %5372 = vmatpush.bf16.msrb.mxu2 %v9846_v58  ;;  %v11148_v44 = vld [vmem:[#allocation5 + $0x1624] sm:$0xf]  ;;  %v9811_v45 = vld [vmem:[#allocation5 + $0x1630] sm:$0xf0]  ;;  %v9686_v50 = vor.u32 %v11116_v33, %v9683_v41  ;;  %v5132_v60 = vpop.f32.mrf.mxu3  ;;  %v7081_v30 = vld [vmem:[#allocation5 + $0xc8] sm:$0xf] }
 0x194   :  { %5385 = vmatpush.bf16.msrb.mxu3 %v9974_v3  ;;  %v11180_v46 = vld [vmem:[#allocation5 + $0x1724] sm:$0xf]  ;;  %v9939_v47 = vld [vmem:[#allocation5 + $0x1730] sm:$0xf0]  ;;  %v9814_v51 = vor.u32 %v11148_v44, %v9811_v45  ;;  %v7225_v3 = vld [vmem:[#allocation5 + $0x1e8] sm:$0xf] }
 0x195   :  { %5347 = vmatpush.bf16.msrb.mxu0 %v9574_v16  ;;  %v11080_v48 = vld [vmem:[#allocation5 + $0x1404] sm:$0xf]  ;;  %v9539_v49 = vld [vmem:[#allocation5 + $0x1410] sm:$0xf0]  ;;  %v9942_v57 = vor.u32 %v11180_v46, %v9939_v47  ;;  %v10567_v16 = vld [vmem:[#allocation5 + $0x3f4] sm:$0xf0] }
 0x196   :  { %5360 = vmatpush.bf16.msrb.mxu1 %v9702_v28  ;;  %v11112_v52 = vld [vmem:[#allocation5 + $0x1504] sm:$0xf]  ;;  %v9667_v54 = vld [vmem:[#allocation5 + $0x1510] sm:$0xf0]  ;;  %v9542_v4 = vor.u32 %v11080_v48, %v9539_v49  ;;  %v7098_v28 = vor.u32 %v10471_v63, %v7097_v62  ;;  %v10467_v33 = vld [vmem:[#allocation5 + $0xd4] sm:$0xf0] }
 0x197   :  { %5373 = vmatpush.bf16.msrb.mxu2 %v9830_v29  ;;  %v11144_v55 = vld [vmem:[#allocation5 + $0x1604] sm:$0xf]  ;;  %v9795_v43 = vld [vmem:[#allocation5 + $0x1610] sm:$0xf0]  ;;  %v9670_v10 = vor.u32 %v11112_v52, %v9667_v54  ;;  %v7226_v29 = vor.u32 %v10503_v53, %v7225_v3  ;;  %v7209_v35 = vld [vmem:[#allocation5 + $0x1c8] sm:$0xf] }
 0x198   :  { %5386 = vmatpush.bf16.msrb.mxu3 %v9958_v39  ;;  %v11176_v58 = vld [vmem:[#allocation5 + $0x1704] sm:$0xf]  ;;  %v9923_v59 = vld [vmem:[#allocation5 + $0x1710] sm:$0xf0]  ;;  %v9798_v11 = vor.u32 %v11144_v55, %v9795_v43  ;;  %v7482_v39 = vor.u32 %v10567_v16, %v7481_v14  ;;  %v10499_v41 = vld [vmem:[#allocation5 + $0x1d4] sm:$0xf0] }
 0x199   :  { %5348 = vmatpush.bf16.msrb.mxu0 %v9558_v12  ;;  %v9926_v21 = vor.u32 %v11176_v58, %v9923_v59  ;;  %v7337_v44 = vld [vmem:[#allocation5 + $0x2c8] sm:$0xf]  ;;  %v10531_v45 = vld [vmem:[#allocation5 + $0x2d4] sm:$0xf0]  ;;  %v7082_v12 = vor.u32 %v10467_v33, %v7081_v30  ;;  %v7210_v48 = vor.u32 %v10499_v41, %v7209_v35 }
 0x19a   :  { %5361 = vmatpush.bf16.msrb.mxu1 %v9686_v50  ;;  %v7465_v46 = vld [vmem:[#allocation5 + $0x3c8] sm:$0xf]  ;;  %v10563_v47 = vld [vmem:[#allocation5 + $0x3d4] sm:$0xf0]  ;;  %v7338_v49 = vor.u32 %v10531_v45, %v7337_v44 }
 0x19b   :  { %5374 = vmatpush.bf16.msrb.mxu2 %v9814_v51  ;;  %v7065_v50 = vld [vmem:[#allocation5 + $0xa8] sm:$0xf]  ;;  %v10463_v51 = vld [vmem:[#allocation5 + $0xb4] sm:$0xf0]  ;;  %v7466_v54 = vor.u32 %v10563_v47, %v7465_v46 }
 0x19c   :  { %5387 = vmatpush.bf16.msrb.mxu3 %v9942_v57  ;;  %v7193_v52 = vld [vmem:[#allocation5 + $0x1a8] sm:$0xf]  ;;  %v10495_v55 = vld [vmem:[#allocation5 + $0x1b4] sm:$0xf0]  ;;  %v7066_v59 = vor.u32 %v10463_v51, %v7065_v50 }
 0x19d   :  { %5349 = vmatpush.bf16.msrb.mxu0 %v9542_v4  ;;  %v7321_v56 = vld [vmem:[#allocation5 + $0x2a8] sm:$0xf]  ;;  %v10527_v57 = vld [vmem:[#allocation5 + $0x2b4] sm:$0xf0]  ;;  %v7194_v60 = vor.u32 %v10495_v55, %v7193_v52 }
 0x19e   :  { %5362 = vmatpush.bf16.msrb.mxu1 %v9670_v10  ;;  %v7449_v43 = vld [vmem:[#allocation5 + $0x3a8] sm:$0xf]  ;;  %v10559_v58 = vld [vmem:[#allocation5 + $0x3b4] sm:$0xf0]  ;;  %v7322_v62 = vor.u32 %v10527_v57, %v7321_v56 }
 0x19f   :  { %5375 = vmatpush.bf16.msrb.mxu2 %v9798_v11  ;;  %v7049_v63 = vld [vmem:[#allocation5 + $0x88] sm:$0xf]  ;;  %v10459_v3 = vld [vmem:[#allocation5 + $0x94] sm:$0xf0]  ;;  %v7450_v53 = vor.u32 %v10559_v58, %v7449_v43 }
 0x1a0   :  { %5388 = vmatpush.bf16.msrb.mxu3 %v9926_v21  ;;  %5350 = vmatmul.bf16.vlgmr.msrb.gmra.mxu0 %v11609_v61  ;;  %v7177_v4 = vld [vmem:[#allocation5 + $0x188] sm:$0xf]  ;;  %v10491_v6 = vld [vmem:[#allocation5 + $0x194] sm:$0xf0]  ;;  %v7050_v16 = vor.u32 %v10459_v3, %v7049_v63  ;;  %v5143_v21 = vpop.f32.mrf.mxu0 }
 0x1a1   :  { %5394 = vmatpush.bf16.msra.mxu0 %v7098_v28  ;;  %5363 = vmatmul.bf16.vlgmr.msrb.gmra.mxu1 %v11613_v2  ;;  %v7305_v7 = vld [vmem:[#allocation5 + $0x288] sm:$0xf]  ;;  %v10523_v10 = vld [vmem:[#allocation5 + $0x294] sm:$0xf0]  ;;  %v7178_v28 = vor.u32 %v10491_v6, %v7177_v4  ;;  %v5144_v35 = vadd.f32 %v5143_v21, %v11656_v17 }
 0x1a2   :  { %5407 = vmatpush.bf16.msra.mxu1 %v7226_v29  ;;  %5376 = vmatmul.bf16.vlgmr.msrb.gmra.mxu2 %v11611_v1  ;;  %v7433_v11 = vld [vmem:[#allocation5 + $0x388] sm:$0xf]  ;;  %v10555_v14 = vld [vmem:[#allocation5 + $0x394] sm:$0xf0]  ;;  %v7306_v29 = vor.u32 %v10523_v10, %v7305_v7 }
 0x1a3   :  { %5420 = vmatpush.bf16.msra.mxu2 %v7354_v0  ;;  %5389 = vmatmul.bf16.vlgmr.msrb.gmra.mxu3 %v11615_v5  ;;  %v7033_v0 = vld [vmem:[#allocation5 + $0x68] sm:$0xf]  ;;  %v10455_v30 = vld [vmem:[#allocation5 + $0x74] sm:$0xf0]  ;;  %v7434_v41 = vor.u32 %v10555_v14, %v7433_v11 }
 0x1a4   :  { %5433 = vmatpush.bf16.msra.mxu3 %v7482_v39  ;;  %v7161_v33 = vld [vmem:[#allocation5 + $0x168] sm:$0xf]  ;;  %v5156_v39 = vpop.f32.mrf.mxu1  ;;  %v10487_v44 = vld [vmem:[#allocation5 + $0x174] sm:$0xf0] }
 0x1a5   :  { %5395 = vmatpush.bf16.msra.mxu0 %v7082_v12  ;;  %v7289_v45 = vld [vmem:[#allocation5 + $0x268] sm:$0xf]  ;;  %v10519_v46 = vld [vmem:[#allocation5 + $0x274] sm:$0xf0]  ;;  %v7162_v50 = vor.u32 %v10487_v44, %v7161_v33  ;;  %v5169_v56 = vpop.f32.mrf.mxu2 }
 0x1a6   :  { %5408 = vmatpush.bf16.msra.mxu1 %v7210_v48  ;;  %v7417_v47 = vld [vmem:[#allocation5 + $0x368] sm:$0xf]  ;;  %v10551_v12 = vld [vmem:[#allocation5 + $0x374] sm:$0xf0]  ;;  %v5157_v48 = vadd.f32 %v5156_v39, %v5144_v35  ;;  %v7290_v51 = vor.u32 %v10519_v46, %v7289_v45 }
 0x1a7   :  { %5421 = vmatpush.bf16.msra.mxu2 %v7338_v49  ;;  %v7034_v49 = vor.u32 %v10455_v30, %v7033_v0  ;;  %v7017_v52 = vld [vmem:[#allocation5 + $0x48] sm:$0xf]  ;;  %v7418_v17 = vor.u32 %v10551_v12, %v7417_v47  ;;  %v10483_v57 = vld [vmem:[#allocation5 + $0x154] sm:$0xf0] }
 0x1a8   :  { %5434 = vmatpush.bf16.msra.mxu3 %v7466_v54  ;;  %v10451_v54 = vld [vmem:[#allocation5 + $0x54] sm:$0xf0]  ;;  %v7145_v55 = vld [vmem:[#allocation5 + $0x148] sm:$0xf] }
 0x1a9   :  { %5396 = vmatpush.bf16.msra.mxu0 %v7066_v59  ;;  %v7273_v43 = vld [vmem:[#allocation5 + $0x248] sm:$0xf]  ;;  %v10515_v58 = vld [vmem:[#allocation5 + $0x254] sm:$0xf0]  ;;  %v5170_v59 = vadd.f32 %v5169_v56, %v5157_v48  ;;  %v7018_v3 = vor.u32 %v10451_v54, %v7017_v52  ;;  %v7146_v6 = vor.u32 %v10483_v57, %v7145_v55 }
 0x1aa   :  { %5409 = vmatpush.bf16.msra.mxu1 %v7194_v60  ;;  %v5182_v60 = vpop.f32.mrf.mxu3  ;;  %v10547_v63 = vld [vmem:[#allocation5 + $0x354] sm:$0xf0]  ;;  %v7274_v7 = vor.u32 %v10515_v58, %v7273_v43  ;;  %v7001_v10 = vld [vmem:[#allocation5 + $0x28] sm:$0xf] }
 0x1ab   :  { %5422 = vmatpush.bf16.msra.mxu2 %v7322_v62  ;;  %v7401_v62 = vld [vmem:[#allocation5 + $0x348] sm:$0xf]  ;;  %v11663_v4 = vadd.f32 %v5182_v60, %v5170_v59  ;;  %v10447_v11 = vld [vmem:[#allocation5 + $0x34] sm:$0xf0] }
 0x1ac   :  { %5435 = vmatpush.bf16.msra.mxu3 %v7450_v53  ;;  %v5145_v53 = vpop.f32.mrf.mxu0  ;;  %v7129_v14 = vld [vmem:[#allocation5 + $0x128] sm:$0xf]  ;;  %v7402_v21 = vor.u32 %v10547_v63, %v7401_v62  ;;  %v10511_v0 = vld [vmem:[#allocation5 + $0x234] sm:$0xf0]  ;;  %v7002_v35 = vor.u32 %v10447_v11, %v7001_v10 }
 0x1ad   :  { %5397 = vmatpush.bf16.msra.mxu0 %v7050_v16  ;;  %v5158_v16 = vpop.f32.mrf.mxu1  ;;  %v7385_v30 = vld [vmem:[#allocation5 + $0x328] sm:$0xf]  ;;  %v10543_v33 = vld [vmem:[#allocation5 + $0x334] sm:$0xf0]  ;;  %v5171_v48 = vpop.f32.mrf.mxu2 }
 0x1ae   :  { %5410 = vmatpush.bf16.msra.mxu1 %v7178_v28  ;;  %v10479_v28 = vld [vmem:[#allocation5 + $0x134] sm:$0xf0]  ;;  %v6985_v39 = vld [vmem:[#allocation5 + $0x8] sm:$0xf] }
 0x1af   :  { %5423 = vmatpush.bf16.msra.mxu2 %v7306_v29  ;;  %v7257_v29 = vld [vmem:[#allocation5 + $0x228] sm:$0xf]  ;;  %v7130_v44 = vor.u32 %v10479_v28, %v7129_v14  ;;  %v10475_v47 = vld [vmem:[#allocation5 + $0x114] sm:$0xf0] }
 0x1b0   :  { %5436 = vmatpush.bf16.msra.mxu3 %v7434_v41  ;;  %v10443_v41 = vld [vmem:[#allocation5 + $0x14] sm:$0xf0]  ;;  %v7258_v45 = vor.u32 %v10511_v0, %v7257_v29  ;;  %v7113_v46 = vld [vmem:[#allocation5 + $0x108] sm:$0xf] }
 0x1b1   :  { %5398 = vmatpush.bf16.msra.mxu0 %v7034_v49  ;;  %v7241_v12 = vld [vmem:[#allocation5 + $0x208] sm:$0xf]  ;;  %v7386_v49 = vor.u32 %v10543_v33, %v7385_v30  ;;  %v10539_v52 = vld [vmem:[#allocation5 + $0x314] sm:$0xf0]  ;;  %v6986_v57 = vor.u32 %v10443_v41, %v6985_v39  ;;  %v7114_v60 = vor.u32 %v10475_v47, %v7113_v46 }
 0x1b2   :  { %5411 = vmatpush.bf16.msra.mxu1 %v7162_v50  ;;  %v10507_v50 = vld [vmem:[#allocation5 + $0x214] sm:$0xf0]  ;;  %v5184_v54 = vpop.f32.mrf.mxu3  ;;  %v7609_v55 = vld [vmem:[#allocation5 + $0x4e8] sm:$0xf] }
 0x1b3   :  { %5424 = vmatpush.bf16.msra.mxu2 %v7290_v51  ;;  %v7369_v51 = vld [vmem:[#allocation5 + $0x308] sm:$0xf]  ;;  %v10599_v56 = vld [vmem:[#allocation5 + $0x4f4] sm:$0xf0]  ;;  %v7242_v62 = vor.u32 %v10507_v50, %v7241_v12 }
 0x1b4   :  { %5437 = vmatpush.bf16.msra.mxu3 %v7418_v17  ;;  %v7737_v17 = vld [vmem:[#allocation5 + $0x5e8] sm:$0xf]  ;;  %v10631_v43 = vld [vmem:[#allocation5 + $0x5f4] sm:$0xf0]  ;;  %v7370_v53 = vor.u32 %v10539_v52, %v7369_v51 }
 0x1b5   :  { %5399 = vmatpush.bf16.msra.mxu0 %v7018_v3  ;;  %v7865_v58 = vld [vmem:[#allocation5 + $0x6e8] sm:$0xf]  ;;  %v10663_v59 = vld [vmem:[#allocation5 + $0x6f4] sm:$0xf0] }
 0x1b6   :  { %5412 = vmatpush.bf16.msra.mxu1 %v7146_v6  ;;  %v7993_v63 = vld [vmem:[#allocation5 + $0x7e8] sm:$0xf]  ;;  %v10695_v3 = vld [vmem:[#allocation5 + $0x7f4] sm:$0xf0]  ;;  %v7610_v6 = vor.u32 %v10599_v56, %v7609_v55  ;;  %v7866_v10 = vor.u32 %v10663_v59, %v7865_v58 }
 0x1b7   :  { %5425 = vmatpush.bf16.msra.mxu2 %v7274_v7  ;;  %v7738_v7 = vor.u32 %v10631_v43, %v7737_v17  ;;  %v7593_v11 = vld [vmem:[#allocation5 + $0x4c8] sm:$0xf]  ;;  %v10595_v14 = vld [vmem:[#allocation5 + $0x4d4] sm:$0xf0] }
 0x1b8   :  { %5438 = vmatpush.bf16.msra.mxu3 %v7402_v21  ;;  %v7721_v16 = vld [vmem:[#allocation5 + $0x5c8] sm:$0xf]  ;;  %v7994_v21 = vor.u32 %v10695_v3, %v7993_v63  ;;  %v10627_v28 = vld [vmem:[#allocation5 + $0x5d4] sm:$0xf0] }
 0x1b9   :  { %5400 = vmatpush.bf16.msra.mxu0 %v7002_v35  ;;  %v7849_v29 = vld [vmem:[#allocation5 + $0x6c8] sm:$0xf]  ;;  %v10659_v0 = vld [vmem:[#allocation5 + $0x6d4] sm:$0xf0]  ;;  %v7594_v35 = vor.u32 %v10595_v14, %v7593_v11  ;;  %v7722_v39 = vor.u32 %v10627_v28, %v7721_v16 }
 0x1ba   :  { %5413 = vmatpush.bf16.msra.mxu1 %v7130_v44  ;;  %v7977_v30 = vld [vmem:[#allocation5 + $0x7c8] sm:$0xf]  ;;  %v10691_v33 = vld [vmem:[#allocation5 + $0x7d4] sm:$0xf0]  ;;  %v7850_v41 = vor.u32 %v10659_v0, %v7849_v29 }
 0x1bb   :  { %5426 = vmatpush.bf16.msra.mxu2 %v7258_v45  ;;  %v7577_v44 = vld [vmem:[#allocation5 + $0x4a8] sm:$0xf]  ;;  %v10591_v45 = vld [vmem:[#allocation5 + $0x4b4] sm:$0xf0]  ;;  %v7978_v47 = vor.u32 %v10691_v33, %v7977_v30 }
 0x1bc   :  { %5439 = vmatpush.bf16.msra.mxu3 %v7386_v49  ;;  %v7705_v46 = vld [vmem:[#allocation5 + $0x5a8] sm:$0xf]  ;;  %v10623_v12 = vld [vmem:[#allocation5 + $0x5b4] sm:$0xf0]  ;;  %v7578_v52 = vor.u32 %v10591_v45, %v7577_v44 }
 0x1bd   :  { %5401 = vmatpush.bf16.msra.mxu0 %v6986_v57  ;;  %v7833_v48 = vld [vmem:[#allocation5 + $0x6a8] sm:$0xf]  ;;  %v10655_v49 = vld [vmem:[#allocation5 + $0x6b4] sm:$0xf0]  ;;  %v7706_v54 = vor.u32 %v10623_v12, %v7705_v46 }
 0x1be   :  { %5414 = vmatpush.bf16.msra.mxu1 %v7114_v60  ;;  %v7961_v50 = vld [vmem:[#allocation5 + $0x7a8] sm:$0xf]  ;;  %v10687_v51 = vld [vmem:[#allocation5 + $0x7b4] sm:$0xf0]  ;;  %v7834_v55 = vor.u32 %v10655_v49, %v7833_v48 }
 0x1bf   :  { %5427 = vmatpush.bf16.msra.mxu2 %v7242_v62  ;;  %v7561_v56 = vld [vmem:[#allocation5 + $0x488] sm:$0xf]  ;;  %v10587_v17 = vld [vmem:[#allocation5 + $0x494] sm:$0xf0]  ;;  %v7962_v43 = vor.u32 %v10687_v51, %v7961_v50  ;;  %v5195_v62 = vpop.f32.mrf.mxu0 }
 0x1c0   :  { %5440 = vmatpush.bf16.msra.mxu3 %v7370_v53  ;;  %5402 = vmatmul.bf16.vlgmr.msra.gmra.mxu0 %v11549_v9  ;;  %v7689_v57 = vld [vmem:[#allocation5 + $0x588] sm:$0xf]  ;;  %v10619_v58 = vld [vmem:[#allocation5 + $0x594] sm:$0xf0]  ;;  %v5196_v53 = vadd.f32 %v5195_v62, %v11663_v4 }
 0x1c1   :  { %5446 = vmatpush.bf16.msrb.mxu0 %v7610_v6  ;;  %5415 = vmatmul.bf16.vlgmr.msra.gmra.mxu1 %v11556_v25  ;;  %v7817_v59 = vld [vmem:[#allocation5 + $0x688] sm:$0xf]  ;;  %v10651_v60 = vld [vmem:[#allocation5 + $0x694] sm:$0xf0]  ;;  %v7562_v6 = vor.u32 %v10587_v17, %v7561_v56 }
 0x1c2   :  { %5459 = vmatpush.bf16.msrb.mxu1 %v7738_v7  ;;  %5428 = vmatmul.bf16.vlgmr.msra.gmra.mxu2 %v11547_v8  ;;  %v7945_v63 = vld [vmem:[#allocation5 + $0x788] sm:$0xf]  ;;  %v10683_v3 = vld [vmem:[#allocation5 + $0x794] sm:$0xf0]  ;;  %v5208_v7 = vpop.f32.mrf.mxu1  ;;  %v7818_v11 = vor.u32 %v10651_v60, %v7817_v59 }
 0x1c3   :  { %5472 = vmatpush.bf16.msrb.mxu2 %v7866_v10  ;;  %5441 = vmatmul.bf16.vlgmr.msra.gmra.mxu3 %v11551_v15  ;;  %v7690_v10 = vor.u32 %v10619_v58, %v7689_v57  ;;  %v7545_v14 = vld [vmem:[#allocation5 + $0x468] sm:$0xf]  ;;  %v10583_v16 = vld [vmem:[#allocation5 + $0x474] sm:$0xf0]  ;;  %v7946_v28 = vor.u32 %v10683_v3, %v7945_v63  ;;  %v5209_v29 = vadd.f32 %v5208_v7, %v5196_v53 }
 0x1c4   :  { %5485 = vmatpush.bf16.msrb.mxu3 %v7994_v21  ;;  %v7673_v21 = vld [vmem:[#allocation5 + $0x568] sm:$0xf]  ;;  %v10615_v0 = vld [vmem:[#allocation5 + $0x574] sm:$0xf0] }
 0x1c5   :  { %5447 = vmatpush.bf16.msrb.mxu0 %v7594_v35  ;;  %v7801_v30 = vld [vmem:[#allocation5 + $0x668] sm:$0xf]  ;;  %v10647_v33 = vld [vmem:[#allocation5 + $0x674] sm:$0xf0]  ;;  %v7674_v4 = vor.u32 %v10615_v0, %v7673_v21  ;;  %v5221_v48 = vpop.f32.mrf.mxu2 }
 0x1c6   :  { %5460 = vmatpush.bf16.msrb.mxu1 %v7722_v39  ;;  %v7929_v35 = vld [vmem:[#allocation5 + $0x768] sm:$0xf]  ;;  %v10679_v39 = vld [vmem:[#allocation5 + $0x774] sm:$0xf0]  ;;  %v7802_v44 = vor.u32 %v10647_v33, %v7801_v30 }
 0x1c7   :  { %5473 = vmatpush.bf16.msrb.mxu2 %v7850_v41  ;;  %v7546_v41 = vor.u32 %v10583_v16, %v7545_v14  ;;  %v7529_v45 = vld [vmem:[#allocation5 + $0x448] sm:$0xf]  ;;  %v10579_v46 = vld [vmem:[#allocation5 + $0x454] sm:$0xf0]  ;;  %v7930_v12 = vor.u32 %v10679_v39, %v7929_v35  ;;  %v5197_v17 = vpop.f32.mrf.mxu0 }
 0x1c8   :  { %5486 = vmatpush.bf16.msrb.mxu3 %v7978_v47  ;;  %v7657_v47 = vld [vmem:[#allocation5 + $0x548] sm:$0xf]  ;;  %v10611_v49 = vld [vmem:[#allocation5 + $0x554] sm:$0xf0]  ;;  %v7530_v57 = vor.u32 %v10579_v46, %v7529_v45 }
 0x1c9   :  { %5448 = vmatpush.bf16.msrb.mxu0 %v7578_v52  ;;  %v7785_v50 = vld [vmem:[#allocation5 + $0x648] sm:$0xf]  ;;  %v10643_v51 = vld [vmem:[#allocation5 + $0x654] sm:$0xf0]  ;;  %v5222_v52 = vadd.f32 %v5221_v48, %v5209_v29  ;;  %v7658_v59 = vor.u32 %v10611_v49, %v7657_v47 }
 0x1ca   :  { %5461 = vmatpush.bf16.msrb.mxu1 %v7706_v54  ;;  %v5234_v54 = vpop.f32.mrf.mxu3  ;;  %v10675_v56 = vld [vmem:[#allocation5 + $0x754] sm:$0xf0]  ;;  %v7786_v60 = vor.u32 %v10643_v51, %v7785_v50  ;;  %v7513_v62 = vld [vmem:[#allocation5 + $0x428] sm:$0xf] }
 0x1cb   :  { %5474 = vmatpush.bf16.msrb.mxu2 %v7834_v55  ;;  %v7913_v55 = vld [vmem:[#allocation5 + $0x748] sm:$0xf]  ;;  %v11670_v58 = vadd.f32 %v5234_v54, %v5222_v52  ;;  %v10575_v63 = vld [vmem:[#allocation5 + $0x434] sm:$0xf0] }
 0x1cc   :  { %5487 = vmatpush.bf16.msrb.mxu3 %v7962_v43  ;;  %v5210_v43 = vpop.f32.mrf.mxu1  ;;  %v7641_v3 = vld [vmem:[#allocation5 + $0x528] sm:$0xf]  ;;  %v7914_v53 = vor.u32 %v10675_v56, %v7913_v55  ;;  %v10671_v14 = vld [vmem:[#allocation5 + $0x734] sm:$0xf0]  ;;  %v7514_v16 = vor.u32 %v10575_v63, %v7513_v62 }
 0x1cd   :  { %5449 = vmatpush.bf16.msrb.mxu0 %v7562_v6  ;;  %v10607_v6 = vld [vmem:[#allocation5 + $0x534] sm:$0xf0]  ;;  %v7769_v7 = vld [vmem:[#allocation5 + $0x628] sm:$0xf]  ;;  %v5223_v45 = vpop.f32.mrf.mxu2 }
 0x1ce   :  { %5462 = vmatpush.bf16.msrb.mxu1 %v7690_v10  ;;  %v10639_v10 = vld [vmem:[#allocation5 + $0x634] sm:$0xf0]  ;;  %v7497_v21 = vld [vmem:[#allocation5 + $0x408] sm:$0xf]  ;;  %v7642_v29 = vor.u32 %v10607_v6, %v7641_v3 }
 0x1cf   :  { %5475 = vmatpush.bf16.msrb.mxu2 %v7818_v11  ;;  %v7897_v11 = vld [vmem:[#allocation5 + $0x728] sm:$0xf]  ;;  %v7770_v0 = vor.u32 %v10639_v10, %v7769_v7  ;;  %v10603_v33 = vld [vmem:[#allocation5 + $0x514] sm:$0xf0] }
 0x1d0   :  { %5488 = vmatpush.bf16.msrb.mxu3 %v7946_v28  ;;  %v10571_v28 = vld [vmem:[#allocation5 + $0x414] sm:$0xf0]  ;;  %v7625_v30 = vld [vmem:[#allocation5 + $0x508] sm:$0xf]  ;;  %v7898_v39 = vor.u32 %v10671_v14, %v7897_v11 }
 0x1d1   :  { %5450 = vmatpush.bf16.msrb.mxu0 %v7546_v41  ;;  %v7753_v35 = vld [vmem:[#allocation5 + $0x608] sm:$0xf]  ;;  %v10635_v41 = vld [vmem:[#allocation5 + $0x614] sm:$0xf0]  ;;  %v7498_v49 = vor.u32 %v10571_v28, %v7497_v21  ;;  %v7626_v54 = vor.u32 %v10603_v33, %v7625_v30 }
 0x1d2   :  { %5463 = vmatpush.bf16.msrb.mxu1 %v7674_v4  ;;  %v7881_v4 = vld [vmem:[#allocation5 + $0x708] sm:$0xf]  ;;  %v10727_v47 = vld [vmem:[#allocation5 + $0x8f4] sm:$0xf0]  ;;  %v5236_v48 = vpop.f32.mrf.mxu3  ;;  %v7754_v55 = vor.u32 %v10635_v41, %v7753_v35 }
 0x1d3   :  { %5476 = vmatpush.bf16.msrb.mxu2 %v7802_v44  ;;  %v10667_v44 = vld [vmem:[#allocation5 + $0x714] sm:$0xf0]  ;;  %v8121_v46 = vld [vmem:[#allocation5 + $0x8e8] sm:$0xf] }
 0x1d4   :  { %5489 = vmatpush.bf16.msrb.mxu3 %v7930_v12  ;;  %v8249_v12 = vld [vmem:[#allocation5 + $0x9e8] sm:$0xf]  ;;  %v10759_v50 = vld [vmem:[#allocation5 + $0x9f4] sm:$0xf0]  ;;  %v8122_v43 = vor.u32 %v10727_v47, %v8121_v46 }
 0x1d5   :  { %5451 = vmatpush.bf16.msrb.mxu0 %v7530_v57  ;;  %v8377_v51 = vld [vmem:[#allocation5 + $0xae8] sm:$0xf]  ;;  %v10791_v52 = vld [vmem:[#allocation5 + $0xaf4] sm:$0xf0]  ;;  %v7882_v57 = vor.u32 %v10667_v44, %v7881_v4 }
 0x1d6   :  { %5464 = vmatpush.bf16.msrb.mxu1 %v7658_v59  ;;  %v8505_v56 = vld [vmem:[#allocation5 + $0xbe8] sm:$0xf]  ;;  %v10823_v17 = vld [vmem:[#allocation5 + $0xbf4] sm:$0xf0]  ;;  %v8250_v59 = vor.u32 %v10759_v50, %v8249_v12 }
 0x1d7   :  { %5477 = vmatpush.bf16.msrb.mxu2 %v7786_v60  ;;  %v8378_v60 = vor.u32 %v10791_v52, %v8377_v51  ;;  %v8105_v62 = vld [vmem:[#allocation5 + $0x8c8] sm:$0xf]  ;;  %v10723_v63 = vld [vmem:[#allocation5 + $0x8d4] sm:$0xf0] }
 0x1d8   :  { %5490 = vmatpush.bf16.msrb.mxu3 %v7914_v53  ;;  %v8233_v3 = vld [vmem:[#allocation5 + $0x9c8] sm:$0xf]  ;;  %v8506_v53 = vor.u32 %v10823_v17, %v8505_v56  ;;  %v10755_v6 = vld [vmem:[#allocation5 + $0x9d4] sm:$0xf0] }
 0x1d9   :  { %5452 = vmatpush.bf16.msrb.mxu0 %v7514_v16  ;;  %v8361_v7 = vld [vmem:[#allocation5 + $0xac8] sm:$0xf]  ;;  %v10787_v10 = vld [vmem:[#allocation5 + $0xad4] sm:$0xf0]  ;;  %v8106_v16 = vor.u32 %v10723_v63, %v8105_v62  ;;  %v8234_v21 = vor.u32 %v10755_v6, %v8233_v3 }
 0x1da   :  { %5465 = vmatpush.bf16.msrb.mxu1 %v7642_v29  ;;  %v8489_v11 = vld [vmem:[#allocation5 + $0xbc8] sm:$0xf]  ;;  %v10819_v14 = vld [vmem:[#allocation5 + $0xbd4] sm:$0xf0]  ;;  %v8362_v28 = vor.u32 %v10787_v10, %v8361_v7 }
 0x1db   :  { %5478 = vmatpush.bf16.msrb.mxu2 %v7770_v0  ;;  %v8089_v29 = vld [vmem:[#allocation5 + $0x8a8] sm:$0xf]  ;;  %v10719_v0 = vld [vmem:[#allocation5 + $0x8b4] sm:$0xf0]  ;;  %v8490_v33 = vor.u32 %v10819_v14, %v8489_v11 }
 0x1dc   :  { %5491 = vmatpush.bf16.msrb.mxu3 %v7898_v39  ;;  %v8217_v30 = vld [vmem:[#allocation5 + $0x9a8] sm:$0xf]  ;;  %v10751_v35 = vld [vmem:[#allocation5 + $0x9b4] sm:$0xf0]  ;;  %v8090_v45 = vor.u32 %v10719_v0, %v8089_v29 }
 0x1dd   :  { %5453 = vmatpush.bf16.msrb.mxu0 %v7498_v49  ;;  %v8345_v39 = vld [vmem:[#allocation5 + $0xaa8] sm:$0xf]  ;;  %v10783_v41 = vld [vmem:[#allocation5 + $0xab4] sm:$0xf0]  ;;  %v8218_v46 = vor.u32 %v10751_v35, %v8217_v30 }
 0x1de   :  { %5466 = vmatpush.bf16.msrb.mxu1 %v7626_v54  ;;  %v8473_v4 = vld [vmem:[#allocation5 + $0xba8] sm:$0xf]  ;;  %v10815_v44 = vld [vmem:[#allocation5 + $0xbb4] sm:$0xf0]  ;;  %v8346_v47 = vor.u32 %v10783_v41, %v8345_v39 }
 0x1df   :  { %5479 = vmatpush.bf16.msrb.mxu2 %v7754_v55  ;;  %v8073_v12 = vld [vmem:[#allocation5 + $0x888] sm:$0xf]  ;;  %v10715_v48 = vld [vmem:[#allocation5 + $0x894] sm:$0xf0]  ;;  %v8474_v50 = vor.u32 %v10815_v44, %v8473_v4  ;;  %v5247_v55 = vpop.f32.mrf.mxu0 }
 0x1e0   :  { %5492 = vmatpush.bf16.msrb.mxu3 %v7882_v57  ;;  %5454 = vmatmul.bf16.vlgmr.msrb.gmra.mxu0 %v11561_v37  ;;  %v8201_v49 = vld [vmem:[#allocation5 + $0x988] sm:$0xf]  ;;  %v10747_v51 = vld [vmem:[#allocation5 + $0x994] sm:$0xf0]  ;;  %v5248_v57 = vadd.f32 %v5247_v55, %v11670_v58 }
 0x1e1   :  { %5498 = vmatpush.bf16.msra.mxu0 %v8122_v43  ;;  %5467 = vmatmul.bf16.vlgmr.msrb.gmra.mxu1 %v11565_v40  ;;  %v8329_v52 = vld [vmem:[#allocation5 + $0xa88] sm:$0xf]  ;;  %v10779_v54 = vld [vmem:[#allocation5 + $0xa94] sm:$0xf0]  ;;  %v8074_v43 = vor.u32 %v10715_v48, %v8073_v12 }
 0x1e2   :  { %5511 = vmatpush.bf16.msra.mxu1 %v8250_v59  ;;  %5480 = vmatmul.bf16.vlgmr.msrb.gmra.mxu2 %v11559_v34  ;;  %v8457_v56 = vld [vmem:[#allocation5 + $0xb88] sm:$0xf]  ;;  %v10811_v17 = vld [vmem:[#allocation5 + $0xb94] sm:$0xf0]  ;;  %v5260_v59 = vpop.f32.mrf.mxu1  ;;  %v8330_v62 = vor.u32 %v10779_v54, %v8329_v52 }
 0x1e3   :  { %5524 = vmatpush.bf16.msra.mxu2 %v8378_v60  ;;  %5493 = vmatmul.bf16.vlgmr.msrb.gmra.mxu3 %v11563_v38  ;;  %v8202_v60 = vor.u32 %v10747_v51, %v8201_v49  ;;  %v8057_v63 = vld [vmem:[#allocation5 + $0x868] sm:$0xf]  ;;  %v10711_v3 = vld [vmem:[#allocation5 + $0x874] sm:$0xf0]  ;;  %v8458_v6 = vor.u32 %v10811_v17, %v8457_v56  ;;  %v5261_v7 = vadd.f32 %v5260_v59, %v5248_v57 }
 0x1e4   :  { %5537 = vmatpush.bf16.msra.mxu3 %v8506_v53  ;;  %v8185_v53 = vld [vmem:[#allocation5 + $0x968] sm:$0xf]  ;;  %v10743_v10 = vld [vmem:[#allocation5 + $0x974] sm:$0xf0] }
 0x1e5   :  { %5499 = vmatpush.bf16.msra.mxu0 %v8106_v16  ;;  %v8313_v11 = vld [vmem:[#allocation5 + $0xa68] sm:$0xf]  ;;  %v10775_v14 = vld [vmem:[#allocation5 + $0xa74] sm:$0xf0]  ;;  %v8186_v58 = vor.u32 %v10743_v10, %v8185_v53  ;;  %v5273_v39 = vpop.f32.mrf.mxu2 }
 0x1e6   :  { %5512 = vmatpush.bf16.msra.mxu1 %v8234_v21  ;;  %v8441_v16 = vld [vmem:[#allocation5 + $0xb68] sm:$0xf]  ;;  %v10807_v21 = vld [vmem:[#allocation5 + $0xb74] sm:$0xf0]  ;;  %v8314_v29 = vor.u32 %v10775_v14, %v8313_v11 }
 0x1e7   :  { %5525 = vmatpush.bf16.msra.mxu2 %v8362_v28  ;;  %v8058_v28 = vor.u32 %v10711_v3, %v8057_v63  ;;  %v8041_v0 = vld [vmem:[#allocation5 + $0x848] sm:$0xf]  ;;  %v10707_v30 = vld [vmem:[#allocation5 + $0x854] sm:$0xf0]  ;;  %v8442_v35 = vor.u32 %v10807_v21, %v8441_v16  ;;  %v5249_v48 = vpop.f32.mrf.mxu0 }
 0x1e8   :  { %5538 = vmatpush.bf16.msra.mxu3 %v8490_v33  ;;  %v8169_v33 = vld [vmem:[#allocation5 + $0x948] sm:$0xf]  ;;  %v10739_v41 = vld [vmem:[#allocation5 + $0x954] sm:$0xf0]  ;;  %v8042_v49 = vor.u32 %v10707_v30, %v8041_v0 }
 0x1e9   :  { %5500 = vmatpush.bf16.msra.mxu0 %v8090_v45  ;;  %v8297_v4 = vld [vmem:[#allocation5 + $0xa48] sm:$0xf]  ;;  %v10771_v44 = vld [vmem:[#allocation5 + $0xa54] sm:$0xf0]  ;;  %v5274_v45 = vadd.f32 %v5273_v39, %v5261_v7  ;;  %v8170_v52 = vor.u32 %v10739_v41, %v8169_v33 }
 0x1ea   :  { %5513 = vmatpush.bf16.msra.mxu1 %v8218_v46  ;;  %v5286_v46 = vpop.f32.mrf.mxu3  ;;  %v10803_v12 = vld [vmem:[#allocation5 + $0xb54] sm:$0xf0]  ;;  %v8298_v54 = vor.u32 %v10771_v44, %v8297_v4  ;;  %v8025_v55 = vld [vmem:[#allocation5 + $0x828] sm:$0xf] }
 0x1eb   :  { %5526 = vmatpush.bf16.msra.mxu2 %v8346_v47  ;;  %v8425_v47 = vld [vmem:[#allocation5 + $0xb48] sm:$0xf]  ;;  %v11677_v51 = vadd.f32 %v5286_v46, %v5274_v45  ;;  %v10703_v56 = vld [vmem:[#allocation5 + $0x834] sm:$0xf0] }
 0x1ec   :  { %5539 = vmatpush.bf16.msra.mxu3 %v8474_v50  ;;  %v5262_v50 = vpop.f32.mrf.mxu1  ;;  %v8153_v17 = vld [vmem:[#allocation5 + $0x928] sm:$0xf]  ;;  %v8426_v57 = vor.u32 %v10803_v12, %v8425_v47  ;;  %v10799_v63 = vld [vmem:[#allocation5 + $0xb34] sm:$0xf0]  ;;  %v8026_v3 = vor.u32 %v10703_v56, %v8025_v55 }
 0x1ed   :  { %5501 = vmatpush.bf16.msra.mxu0 %v8074_v43  ;;  %v10735_v43 = vld [vmem:[#allocation5 + $0x934] sm:$0xf0]  ;;  %v8281_v59 = vld [vmem:[#allocation5 + $0xa28] sm:$0xf]  ;;  %v5275_v0 = vpop.f32.mrf.mxu2 }
 0x1ee   :  { %5514 = vmatpush.bf16.msra.mxu1 %v8202_v60  ;;  %v10767_v60 = vld [vmem:[#allocation5 + $0xa34] sm:$0xf0]  ;;  %v8009_v53 = vld [vmem:[#allocation5 + $0x808] sm:$0xf]  ;;  %v8154_v7 = vor.u32 %v10735_v43, %v8153_v17 }
 0x1ef   :  { %5527 = vmatpush.bf16.msra.mxu2 %v8330_v62  ;;  %v8409_v62 = vld [vmem:[#allocation5 + $0xb28] sm:$0xf]  ;;  %v8282_v10 = vor.u32 %v10767_v60, %v8281_v59  ;;  %v10731_v14 = vld [vmem:[#allocation5 + $0x914] sm:$0xf0] }
 0x1f0   :  { %5540 = vmatpush.bf16.msra.mxu3 %v8458_v6  ;;  %v10699_v6 = vld [vmem:[#allocation5 + $0x814] sm:$0xf0]  ;;  %v8137_v11 = vld [vmem:[#allocation5 + $0x908] sm:$0xf]  ;;  %v8410_v21 = vor.u32 %v10799_v63, %v8409_v62 }
 0x1f1   :  { %5502 = vmatpush.bf16.msra.mxu0 %v8058_v28  ;;  %v8265_v16 = vld [vmem:[#allocation5 + $0xa08] sm:$0xf]  ;;  %v10763_v28 = vld [vmem:[#allocation5 + $0xa14] sm:$0xf0]  ;;  %v8010_v41 = vor.u32 %v10699_v6, %v8009_v53  ;;  %v8138_v46 = vor.u32 %v10731_v14, %v8137_v11 }
 0x1f2   :  { %5515 = vmatpush.bf16.msra.mxu1 %v8186_v58  ;;  %v8393_v58 = vld [vmem:[#allocation5 + $0xb08] sm:$0xf]  ;;  %v10855_v33 = vld [vmem:[#allocation5 + $0xcf4] sm:$0xf0]  ;;  %v5288_v39 = vpop.f32.mrf.mxu3  ;;  %v8266_v47 = vor.u32 %v10763_v28, %v8265_v16 }
 0x1f3   :  { %5528 = vmatpush.bf16.msra.mxu2 %v8314_v29  ;;  %v10795_v29 = vld [vmem:[#allocation5 + $0xb14] sm:$0xf0]  ;;  %v8633_v30 = vld [vmem:[#allocation5 + $0xce8] sm:$0xf] }
 0x1f4   :  { %5541 = vmatpush.bf16.msra.mxu3 %v8442_v35  ;;  %v8761_v35 = vld [vmem:[#allocation5 + $0xde8] sm:$0xf]  ;;  %v10887_v4 = vld [vmem:[#allocation5 + $0xdf4] sm:$0xf0]  ;;  %v8634_v50 = vor.u32 %v10855_v33, %v8633_v30 }
 0x1f5   :  { %5503 = vmatpush.bf16.msra.mxu0 %v8042_v49  ;;  %v8889_v44 = vld [vmem:[#allocation5 + $0xee8] sm:$0xf]  ;;  %v10919_v45 = vld [vmem:[#allocation5 + $0xef4] sm:$0xf0]  ;;  %v8394_v49 = vor.u32 %v10795_v29, %v8393_v58 }
 0x1f6   :  { %5516 = vmatpush.bf16.msra.mxu1 %v8170_v52  ;;  %v9017_v12 = vld [vmem:[#allocation5 + $0xfe8] sm:$0xf]  ;;  %v10951_v48 = vld [vmem:[#allocation5 + $0xff4] sm:$0xf0]  ;;  %v8762_v52 = vor.u32 %v10887_v4, %v8761_v35 }
 0x1f7   :  { %5529 = vmatpush.bf16.msra.mxu2 %v8298_v54  ;;  %v8890_v54 = vor.u32 %v10919_v45, %v8889_v44  ;;  %v8617_v55 = vld [vmem:[#allocation5 + $0xcc8] sm:$0xf]  ;;  %v10851_v56 = vld [vmem:[#allocation5 + $0xcd4] sm:$0xf0] }
 0x1f8   :  { %5542 = vmatpush.bf16.msra.mxu3 %v8426_v57  ;;  %v8745_v17 = vld [vmem:[#allocation5 + $0xdc8] sm:$0xf]  ;;  %v9018_v57 = vor.u32 %v10951_v48, %v9017_v12  ;;  %v10883_v43 = vld [vmem:[#allocation5 + $0xdd4] sm:$0xf0] }
 0x1f9   :  { %5504 = vmatpush.bf16.msra.mxu0 %v8026_v3  ;;  %v8873_v59 = vld [vmem:[#allocation5 + $0xec8] sm:$0xf]  ;;  %v10915_v60 = vld [vmem:[#allocation5 + $0xed4] sm:$0xf0]  ;;  %v8618_v3 = vor.u32 %v10851_v56, %v8617_v55  ;;  %v8746_v53 = vor.u32 %v10883_v43, %v8745_v17 }
 0x1fa   :  { %5517 = vmatpush.bf16.msra.mxu1 %v8154_v7  ;;  %v9001_v62 = vld [vmem:[#allocation5 + $0xfc8] sm:$0xf]  ;;  %v10947_v63 = vld [vmem:[#allocation5 + $0xfd4] sm:$0xf0]  ;;  %v8874_v6 = vor.u32 %v10915_v60, %v8873_v59 }
 0x1fb   :  { %5530 = vmatpush.bf16.msra.mxu2 %v8282_v10  ;;  %v8601_v7 = vld [vmem:[#allocation5 + $0xca8] sm:$0xf]  ;;  %v10847_v10 = vld [vmem:[#allocation5 + $0xcb4] sm:$0xf0]  ;;  %v9002_v14 = vor.u32 %v10947_v63, %v9001_v62 }
 0x1fc   :  { %5543 = vmatpush.bf16.msra.mxu3 %v8410_v21  ;;  %v8729_v11 = vld [vmem:[#allocation5 + $0xda8] sm:$0xf]  ;;  %v10879_v16 = vld [vmem:[#allocation5 + $0xdb4] sm:$0xf0]  ;;  %v8602_v0 = vor.u32 %v10847_v10, %v8601_v7 }
 0x1fd   :  { %5505 = vmatpush.bf16.msra.mxu0 %v8010_v41  ;;  %v8857_v21 = vld [vmem:[#allocation5 + $0xea8] sm:$0xf]  ;;  %v10911_v28 = vld [vmem:[#allocation5 + $0xeb4] sm:$0xf0]  ;;  %v8730_v30 = vor.u32 %v10879_v16, %v8729_v11 }
 0x1fe   :  { %5518 = vmatpush.bf16.msra.mxu1 %v8138_v46  ;;  %v8985_v58 = vld [vmem:[#allocation5 + $0xfa8] sm:$0xf]  ;;  %v10943_v29 = vld [vmem:[#allocation5 + $0xfb4] sm:$0xf0]  ;;  %v8858_v33 = vor.u32 %v10911_v28, %v8857_v21 }
 0x1ff   :  { %5531 = vmatpush.bf16.msra.mxu2 %v8266_v47  ;;  %v8585_v35 = vld [vmem:[#allocation5 + $0xc88] sm:$0xf]  ;;  %v10843_v39 = vld [vmem:[#allocation5 + $0xc94] sm:$0xf0]  ;;  %v8986_v4 = vor.u32 %v10943_v29, %v8985_v58  ;;  %v5299_v47 = vpop.f32.mrf.mxu0 }
 0x200   :  { %5544 = vmatpush.bf16.msra.mxu3 %v8394_v49  ;;  %5506 = vmatmul.bf16.vlgmr.msra.gmra.mxu0 %v11571_v18  ;;  %v8713_v41 = vld [vmem:[#allocation5 + $0xd88] sm:$0xf]  ;;  %v10875_v44 = vld [vmem:[#allocation5 + $0xd94] sm:$0xf0]  ;;  %v5300_v49 = vadd.f32 %v5299_v47, %v11677_v51 }
 0x201   :  { %5550 = vmatpush.bf16.msrb.mxu0 %v8634_v50  ;;  %5519 = vmatmul.bf16.vlgmr.msra.gmra.mxu1 %v11575_v23  ;;  %v8841_v45 = vld [vmem:[#allocation5 + $0xe88] sm:$0xf]  ;;  %v10907_v46 = vld [vmem:[#allocation5 + $0xe94] sm:$0xf0]  ;;  %v8586_v50 = vor.u32 %v10843_v39, %v8585_v35 }
 0x202   :  { %5563 = vmatpush.bf16.msrb.mxu1 %v8762_v52  ;;  %5532 = vmatmul.bf16.vlgmr.msra.gmra.mxu2 %v11573_v22  ;;  %v8969_v12 = vld [vmem:[#allocation5 + $0xf88] sm:$0xf]  ;;  %v10939_v48 = vld [vmem:[#allocation5 + $0xf94] sm:$0xf0]  ;;  %v5312_v52 = vpop.f32.mrf.mxu1  ;;  %v8842_v55 = vor.u32 %v10907_v46, %v8841_v45 }
 0x203   :  { %5576 = vmatpush.bf16.msrb.mxu2 %v8890_v54  ;;  %5545 = vmatmul.bf16.vlgmr.msra.gmra.mxu3 %v11577_v27  ;;  %v8714_v54 = vor.u32 %v10875_v44, %v8713_v41  ;;  %v8569_v56 = vld [vmem:[#allocation5 + $0xc68] sm:$0xf]  ;;  %v10839_v17 = vld [vmem:[#allocation5 + $0xc74] sm:$0xf0]  ;;  %v8970_v43 = vor.u32 %v10939_v48, %v8969_v12  ;;  %v5313_v59 = vadd.f32 %v5312_v52, %v5300_v49 }
 0x204   :  { %5589 = vmatpush.bf16.msrb.mxu3 %v9018_v57  ;;  %v8697_v57 = vld [vmem:[#allocation5 + $0xd68] sm:$0xf]  ;;  %v10871_v60 = vld [vmem:[#allocation5 + $0xd74] sm:$0xf0] }
 0x205   :  { %5551 = vmatpush.bf16.msrb.mxu0 %v8618_v3  ;;  %v8825_v62 = vld [vmem:[#allocation5 + $0xe68] sm:$0xf]  ;;  %v10903_v63 = vld [vmem:[#allocation5 + $0xe74] sm:$0xf0]  ;;  %v8698_v51 = vor.u32 %v10871_v60, %v8697_v57  ;;  %v5325_v21 = vpop.f32.mrf.mxu2 }
 0x206   :  { %5564 = vmatpush.bf16.msrb.mxu1 %v8746_v53  ;;  %v8953_v3 = vld [vmem:[#allocation5 + $0xf68] sm:$0xf]  ;;  %v10935_v53 = vld [vmem:[#allocation5 + $0xf74] sm:$0xf0]  ;;  %v8826_v7 = vor.u32 %v10903_v63, %v8825_v62 }
 0x207   :  { %5577 = vmatpush.bf16.msrb.mxu2 %v8874_v6  ;;  %v8570_v6 = vor.u32 %v10839_v17, %v8569_v56  ;;  %v8553_v10 = vld [vmem:[#allocation5 + $0xc48] sm:$0xf]  ;;  %v10835_v11 = vld [vmem:[#allocation5 + $0xc54] sm:$0xf0]  ;;  %v8954_v16 = vor.u32 %v10935_v53, %v8953_v3  ;;  %v5301_v39 = vpop.f32.mrf.mxu0 }
 0x208   :  { %5590 = vmatpush.bf16.msrb.mxu3 %v9002_v14  ;;  %v8681_v14 = vld [vmem:[#allocation5 + $0xd48] sm:$0xf]  ;;  %v10867_v28 = vld [vmem:[#allocation5 + $0xd54] sm:$0xf0]  ;;  %v8554_v41 = vor.u32 %v10835_v11, %v8553_v10 }
 0x209   :  { %5552 = vmatpush.bf16.msrb.mxu0 %v8602_v0  ;;  %v8809_v58 = vld [vmem:[#allocation5 + $0xe48] sm:$0xf]  ;;  %v10899_v29 = vld [vmem:[#allocation5 + $0xe54] sm:$0xf0]  ;;  %v5326_v0 = vadd.f32 %v5325_v21, %v5313_v59  ;;  %v8682_v45 = vor.u32 %v10867_v28, %v8681_v14 }
 0x20a   :  { %5565 = vmatpush.bf16.msrb.mxu1 %v8730_v30  ;;  %v5338_v30 = vpop.f32.mrf.mxu3  ;;  %v10931_v35 = vld [vmem:[#allocation5 + $0xf54] sm:$0xf0]  ;;  %v8810_v46 = vor.u32 %v10899_v29, %v8809_v58  ;;  %v8537_v47 = vld [vmem:[#allocation5 + $0xc28] sm:$0xf] }
 0x20b   :  { %5578 = vmatpush.bf16.msrb.mxu2 %v8858_v33  ;;  %v8937_v33 = vld [vmem:[#allocation5 + $0xf48] sm:$0xf]  ;;  %v11684_v44 = vadd.f32 %v5338_v30, %v5326_v0  ;;  %v10831_v12 = vld [vmem:[#allocation5 + $0xc34] sm:$0xf0] }
 0x20c   :  { %5591 = vmatpush.bf16.msrb.mxu3 %v8986_v4  ;;  %v5314_v4 = vpop.f32.mrf.mxu1  ;;  %v8665_v48 = vld [vmem:[#allocation5 + $0xd28] sm:$0xf]  ;;  %v8938_v49 = vor.u32 %v10931_v35, %v8937_v33  ;;  %v10927_v56 = vld [vmem:[#allocation5 + $0xf34] sm:$0xf0]  ;;  %v8538_v17 = vor.u32 %v10831_v12, %v8537_v47 }
 0x20d   :  { %5553 = vmatpush.bf16.msrb.mxu0 %v8586_v50  ;;  %v10863_v50 = vld [vmem:[#allocation5 + $0xd34] sm:$0xf0]  ;;  %v8793_v52 = vld [vmem:[#allocation5 + $0xe28] sm:$0xf]  ;;  %v5327_v10 = vpop.f32.mrf.mxu2 }
 0x20e   :  { %5566 = vmatpush.bf16.msrb.mxu1 %v8714_v54  ;;  %v10895_v54 = vld [vmem:[#allocation5 + $0xe34] sm:$0xf0]  ;;  %v8521_v57 = vld [vmem:[#allocation5 + $0xc08] sm:$0xf]  ;;  %v8666_v59 = vor.u32 %v10863_v50, %v8665_v48 }
 0x20f   :  { %5579 = vmatpush.bf16.msrb.mxu2 %v8842_v55  ;;  %v8921_v55 = vld [vmem:[#allocation5 + $0xf28] sm:$0xf]  ;;  %v8794_v60 = vor.u32 %v10895_v54, %v8793_v52  ;;  %v10859_v63 = vld [vmem:[#allocation5 + $0xd14] sm:$0xf0] }
 0x210   :  { %5592 = vmatpush.bf16.msrb.mxu3 %v8970_v43  ;;  %v10827_v43 = vld [vmem:[#allocation5 + $0xc14] sm:$0xf0]  ;;  %v8649_v62 = vld [vmem:[#allocation5 + $0xd08] sm:$0xf]  ;;  %v8922_v53 = vor.u32 %v10927_v56, %v8921_v55 }
 0x211   :  { %5554 = vmatpush.bf16.msrb.mxu0 %v8570_v6  ;;  %v8777_v3 = vld [vmem:[#allocation5 + $0xe08] sm:$0xf]  ;;  %v10891_v6 = vld [vmem:[#allocation5 + $0xe14] sm:$0xf0]  ;;  %v8522_v28 = vor.u32 %v10827_v43, %v8521_v57  ;;  %v8650_v30 = vor.u32 %v10859_v63, %v8649_v62 }
 0x212   :  { %5567 = vmatpush.bf16.msrb.mxu1 %v8698_v51  ;;  %v8905_v51 = vld [vmem:[#allocation5 + $0xf08] sm:$0xf]  ;;  %v10983_v14 = vld [vmem:[#allocation5 + $0x10f4] sm:$0xf0]  ;;  %v5340_v21 = vpop.f32.mrf.mxu3  ;;  %v8778_v33 = vor.u32 %v10891_v6, %v8777_v3 }
 0x213   :  { %5580 = vmatpush.bf16.msrb.mxu2 %v8826_v7  ;;  %v10923_v7 = vld [vmem:[#allocation5 + $0xf14] sm:$0xf0]  ;;  %v9145_v11 = vld [vmem:[#allocation5 + $0x10e8] sm:$0xf] }
 0x214   :  { %5593 = vmatpush.bf16.msrb.mxu3 %v8954_v16  ;;  %v9273_v16 = vld [vmem:[#allocation5 + $0x11e8] sm:$0xf]  ;;  %v11015_v58 = vld [vmem:[#allocation5 + $0x11f4] sm:$0xf0]  ;;  %v9146_v4 = vor.u32 %v10983_v14, %v9145_v11 }
 0x215   :  { %5555 = vmatpush.bf16.msrb.mxu0 %v8554_v41  ;;  %v9401_v29 = vld [vmem:[#allocation5 + $0x12e8] sm:$0xf]  ;;  %v11047_v0 = vld [vmem:[#allocation5 + $0x12f4] sm:$0xf0]  ;;  %v8906_v41 = vor.u32 %v10923_v7, %v8905_v51 }
 0x216   :  { %5568 = vmatpush.bf16.msrb.mxu1 %v8682_v45  ;;  %v9529_v35 = vld [vmem:[#allocation5 + $0x13e8] sm:$0xf]  ;;  %v11079_v39 = vld [vmem:[#allocation5 + $0x13f4] sm:$0xf0]  ;;  %v9274_v45 = vor.u32 %v11015_v58, %v9273_v16 }
 0x217   :  { %5581 = vmatpush.bf16.msrb.mxu2 %v8810_v46  ;;  %v9402_v46 = vor.u32 %v11047_v0, %v9401_v29  ;;  %v9129_v47 = vld [vmem:[#allocation5 + $0x10c8] sm:$0xf]  ;;  %v10979_v12 = vld [vmem:[#allocation5 + $0x10d4] sm:$0xf0] }
 0x218   :  { %5594 = vmatpush.bf16.msrb.mxu3 %v8938_v49  ;;  %v9257_v48 = vld [vmem:[#allocation5 + $0x11c8] sm:$0xf]  ;;  %v9530_v49 = vor.u32 %v11079_v39, %v9529_v35  ;;  %v11011_v50 = vld [vmem:[#allocation5 + $0x11d4] sm:$0xf0] }
 0x219   :  { %5556 = vmatpush.bf16.msrb.mxu0 %v8538_v17  ;;  %v9385_v52 = vld [vmem:[#allocation5 + $0x12c8] sm:$0xf]  ;;  %v11043_v54 = vld [vmem:[#allocation5 + $0x12d4] sm:$0xf0]  ;;  %v9130_v17 = vor.u32 %v10979_v12, %v9129_v47  ;;  %v9258_v57 = vor.u32 %v11011_v50, %v9257_v48 }
 0x21a   :  { %5569 = vmatpush.bf16.msrb.mxu1 %v8666_v59  ;;  %v9513_v55 = vld [vmem:[#allocation5 + $0x13c8] sm:$0xf]  ;;  %v11075_v56 = vld [vmem:[#allocation5 + $0x13d4] sm:$0xf0]  ;;  %v9386_v43 = vor.u32 %v11043_v54, %v9385_v52 }
 0x21b   :  { %5582 = vmatpush.bf16.msrb.mxu2 %v8794_v60  ;;  %v9113_v59 = vld [vmem:[#allocation5 + $0x10a8] sm:$0xf]  ;;  %v10975_v60 = vld [vmem:[#allocation5 + $0x10b4] sm:$0xf0]  ;;  %v9514_v63 = vor.u32 %v11075_v56, %v9513_v55 }
 0x21c   :  { %5595 = vmatpush.bf16.msrb.mxu3 %v8922_v53  ;;  %v9241_v62 = vld [vmem:[#allocation5 + $0x11a8] sm:$0xf]  ;;  %v11007_v3 = vld [vmem:[#allocation5 + $0x11b4] sm:$0xf0]  ;;  %v9114_v10 = vor.u32 %v10975_v60, %v9113_v59 }
 0x21d   :  { %5557 = vmatpush.bf16.msrb.mxu0 %v8522_v28  ;;  %v9369_v53 = vld [vmem:[#allocation5 + $0x12a8] sm:$0xf]  ;;  %v11039_v6 = vld [vmem:[#allocation5 + $0x12b4] sm:$0xf0]  ;;  %v9242_v11 = vor.u32 %v11007_v3, %v9241_v62 }
 0x21e   :  { %5570 = vmatpush.bf16.msrb.mxu1 %v8650_v30  ;;  %v9497_v51 = vld [vmem:[#allocation5 + $0x13a8] sm:$0xf]  ;;  %v11071_v7 = vld [vmem:[#allocation5 + $0x13b4] sm:$0xf0]  ;;  %v9370_v14 = vor.u32 %v11039_v6, %v9369_v53 }
 0x21f   :  { %5583 = vmatpush.bf16.msrb.mxu2 %v8778_v33  ;;  %v9097_v16 = vld [vmem:[#allocation5 + $0x1088] sm:$0xf]  ;;  %v10971_v21 = vld [vmem:[#allocation5 + $0x1094] sm:$0xf0]  ;;  %v9498_v58 = vor.u32 %v11071_v7, %v9497_v51  ;;  %v5351_v33 = vpop.f32.mrf.mxu0 }
 0x220   :  { %5596 = vmatpush.bf16.msrb.mxu3 %v8906_v41  ;;  %5558 = vmatmul.bf16.vlgmr.msrb.gmra.mxu0 %v11583_v13  ;;  %v9225_v28 = vld [vmem:[#allocation5 + $0x1188] sm:$0xf]  ;;  %v11003_v29 = vld [vmem:[#allocation5 + $0x1194] sm:$0xf0]  ;;  %v5352_v41 = vadd.f32 %v5351_v33, %v11684_v44 }
 0x221   :  { %5602 = vmatpush.bf16.msra.mxu0 %v9146_v4  ;;  %5571 = vmatmul.bf16.vlgmr.msrb.gmra.mxu1 %v11587_v20  ;;  %v9353_v0 = vld [vmem:[#allocation5 + $0x1288] sm:$0xf]  ;;  %v11035_v30 = vld [vmem:[#allocation5 + $0x1294] sm:$0xf0]  ;;  %v9098_v4 = vor.u32 %v10971_v21, %v9097_v16 }
 0x222   :  { %5615 = vmatpush.bf16.msra.mxu1 %v9274_v45  ;;  %5584 = vmatmul.bf16.vlgmr.msrb.gmra.mxu2 %v11585_v19  ;;  %v9481_v35 = vld [vmem:[#allocation5 + $0x1388] sm:$0xf]  ;;  %v11067_v39 = vld [vmem:[#allocation5 + $0x1394] sm:$0xf0]  ;;  %v5364_v45 = vpop.f32.mrf.mxu1  ;;  %v9354_v47 = vor.u32 %v11035_v30, %v9353_v0 }
 0x223   :  { %5628 = vmatpush.bf16.msra.mxu2 %v9402_v46  ;;  %5597 = vmatmul.bf16.vlgmr.msrb.gmra.mxu3 %v11589_v26  ;;  %v9226_v46 = vor.u32 %v11003_v29, %v9225_v28  ;;  %v9081_v12 = vld [vmem:[#allocation5 + $0x1068] sm:$0xf]  ;;  %v10967_v48 = vld [vmem:[#allocation5 + $0x1074] sm:$0xf0]  ;;  %v9482_v50 = vor.u32 %v11067_v39, %v9481_v35  ;;  %v5365_v52 = vadd.f32 %v5364_v45, %v5352_v41 }
 0x224   :  { %5641 = vmatpush.bf16.msra.mxu3 %v9530_v49  ;;  %v9209_v49 = vld [vmem:[#allocation5 + $0x1168] sm:$0xf]  ;;  %v10999_v54 = vld [vmem:[#allocation5 + $0x1174] sm:$0xf0] }
 0x225   :  { %5603 = vmatpush.bf16.msra.mxu0 %v9130_v17  ;;  %v9337_v55 = vld [vmem:[#allocation5 + $0x1268] sm:$0xf]  ;;  %v11031_v56 = vld [vmem:[#allocation5 + $0x1274] sm:$0xf0]  ;;  %v9210_v44 = vor.u32 %v10999_v54, %v9209_v49  ;;  %v5377_v53 = vpop.f32.mrf.mxu2 }
 0x226   :  { %5616 = vmatpush.bf16.msra.mxu1 %v9258_v57  ;;  %v9465_v17 = vld [vmem:[#allocation5 + $0x1368] sm:$0xf]  ;;  %v11063_v57 = vld [vmem:[#allocation5 + $0x1374] sm:$0xf0]  ;;  %v9338_v59 = vor.u32 %v11031_v56, %v9337_v55 }
 0x227   :  { %5629 = vmatpush.bf16.msra.mxu2 %v9386_v43  ;;  %v9082_v43 = vor.u32 %v10967_v48, %v9081_v12  ;;  %v9065_v60 = vld [vmem:[#allocation5 + $0x1048] sm:$0xf]  ;;  %v10963_v62 = vld [vmem:[#allocation5 + $0x1054] sm:$0xf0]  ;;  %v9466_v3 = vor.u32 %v11063_v57, %v9465_v17  ;;  %v5353_v21 = vpop.f32.mrf.mxu0 }
 0x228   :  { %5642 = vmatpush.bf16.msra.mxu3 %v9514_v63  ;;  %v9193_v63 = vld [vmem:[#allocation5 + $0x1148] sm:$0xf]  ;;  %v10995_v6 = vld [vmem:[#allocation5 + $0x1154] sm:$0xf0]  ;;  %v9066_v28 = vor.u32 %v10963_v62, %v9065_v60 }
 0x229   :  { %5604 = vmatpush.bf16.msra.mxu0 %v9114_v10  ;;  %v9321_v51 = vld [vmem:[#allocation5 + $0x1248] sm:$0xf]  ;;  %v11027_v7 = vld [vmem:[#allocation5 + $0x1254] sm:$0xf0]  ;;  %v5378_v10 = vadd.f32 %v5377_v53, %v5365_v52  ;;  %v9194_v0 = vor.u32 %v10995_v6, %v9193_v63 }
 0x22a   :  { %5617 = vmatpush.bf16.msra.mxu1 %v9242_v11  ;;  %v5390_v11 = vpop.f32.mrf.mxu3  ;;  %v11059_v16 = vld [vmem:[#allocation5 + $0x1354] sm:$0xf0]  ;;  %v9322_v30 = vor.u32 %v11027_v7, %v9321_v51  ;;  %v9049_v33 = vld [vmem:[#allocation5 + $0x1028] sm:$0xf] }
 0x22b   :  { %5630 = vmatpush.bf16.msra.mxu2 %v9370_v14  ;;  %v9449_v14 = vld [vmem:[#allocation5 + $0x1348] sm:$0xf]  ;;  %v11691_v29 = vadd.f32 %v5390_v11, %v5378_v10  ;;  %v10959_v35 = vld [vmem:[#allocation5 + $0x1034] sm:$0xf0] }
 0x22c   :  { %5643 = vmatpush.bf16.msra.mxu3 %v9498_v58  ;;  %v5366_v58 = vpop.f32.mrf.mxu1  ;;  %v9177_v39 = vld [vmem:[#allocation5 + $0x1128] sm:$0xf]  ;;  %v9450_v41 = vor.u32 %v11059_v16, %v9449_v14  ;;  %v11055_v12 = vld [vmem:[#allocation5 + $0x1334] sm:$0xf0]  ;;  %v9050_v48 = vor.u32 %v10959_v35, %v9049_v33 }
 0x22d   :  { %5605 = vmatpush.bf16.msra.mxu0 %v9098_v4  ;;  %v10991_v4 = vld [vmem:[#allocation5 + $0x1134] sm:$0xf0]  ;;  %v9305_v45 = vld [vmem:[#allocation5 + $0x1228] sm:$0xf]  ;;  %v5379_v60 = vpop.f32.mrf.mxu2 }
 0x22e   :  { %5618 = vmatpush.bf16.msra.mxu1 %v9226_v46  ;;  %v11023_v46 = vld [vmem:[#allocation5 + $0x1234] sm:$0xf0]  ;;  %v9033_v49 = vld [vmem:[#allocation5 + $0x1008] sm:$0xf]  ;;  %v9178_v52 = vor.u32 %v10991_v4, %v9177_v39 }
 0x22f   :  { %5631 = vmatpush.bf16.msra.mxu2 %v9354_v47  ;;  %v9433_v47 = vld [vmem:[#allocation5 + $0x1328] sm:$0xf]  ;;  %v9306_v54 = vor.u32 %v11023_v46, %v9305_v45  ;;  %v10987_v56 = vld [vmem:[#allocation5 + $0x1114] sm:$0xf0] }
 0x230   :  { %5644 = vmatpush.bf16.msra.mxu3 %v9482_v50  ;;  %v10955_v50 = vld [vmem:[#allocation5 + $0x1014] sm:$0xf0]  ;;  %v9161_v55 = vld [vmem:[#allocation5 + $0x1108] sm:$0xf]  ;;  %v9434_v57 = vor.u32 %v11055_v12, %v9433_v47 }
 0x231   :  { %5606 = vmatpush.bf16.msra.mxu0 %v9082_v43  ;;  %v9289_v17 = vld [vmem:[#allocation5 + $0x1208] sm:$0xf]  ;;  %v11019_v43 = vld [vmem:[#allocation5 + $0x1214] sm:$0xf0]  ;;  %v9034_v6 = vor.u32 %v10955_v50, %v9033_v49  ;;  %v9162_v11 = vor.u32 %v10987_v56, %v9161_v55 }
 0x232   :  { %5619 = vmatpush.bf16.msra.mxu1 %v9210_v44  ;;  %v9417_v44 = vld [vmem:[#allocation5 + $0x1308] sm:$0xf]  ;;  %v11111_v63 = vld [vmem:[#allocation5 + $0x14f4] sm:$0xf0]  ;;  %v5392_v53 = vpop.f32.mrf.mxu3  ;;  %v9290_v14 = vor.u32 %v11019_v43, %v9289_v17 }
 0x233   :  { %5632 = vmatpush.bf16.msra.mxu2 %v9338_v59  ;;  %v11051_v59 = vld [vmem:[#allocation5 + $0x1314] sm:$0xf0]  ;;  %v9657_v62 = vld [vmem:[#allocation5 + $0x14e8] sm:$0xf] }
 0x234   :  { %5645 = vmatpush.bf16.msra.mxu3 %v9466_v3  ;;  %v9785_v3 = vld [vmem:[#allocation5 + $0x15e8] sm:$0xf]  ;;  %v11143_v51 = vld [vmem:[#allocation5 + $0x15f4] sm:$0xf0]  ;;  %v9658_v58 = vor.u32 %v11111_v63, %v9657_v62 }
 0x235   :  { %5607 = vmatpush.bf16.msra.mxu0 %v9066_v28  ;;  %v9913_v7 = vld [vmem:[#allocation5 + $0x16e8] sm:$0xf]  ;;  %v11175_v10 = vld [vmem:[#allocation5 + $0x16f4] sm:$0xf0]  ;;  %v9418_v28 = vor.u32 %v11051_v59, %v9417_v44 }
 0x236   :  { %5620 = vmatpush.bf16.msra.mxu1 %v9194_v0  ;;  %v10041_v16 = vld [vmem:[#allocation5 + $0x17e8] sm:$0xf]  ;;  %v11207_v21 = vld [vmem:[#allocation5 + $0x17f4] sm:$0xf0]  ;;  %v9786_v0 = vor.u32 %v11143_v51, %v9785_v3 }
 0x237   :  { %5633 = vmatpush.bf16.msra.mxu2 %v9322_v30  ;;  %v9914_v30 = vor.u32 %v11175_v10, %v9913_v7  ;;  %v9641_v33 = vld [vmem:[#allocation5 + $0x14c8] sm:$0xf]  ;;  %v11107_v35 = vld [vmem:[#allocation5 + $0x14d4] sm:$0xf0] }
 0x238   :  { %5646 = vmatpush.bf16.msra.mxu3 %v9450_v41  ;;  %v9769_v39 = vld [vmem:[#allocation5 + $0x15c8] sm:$0xf]  ;;  %v10042_v41 = vor.u32 %v11207_v21, %v10041_v16  ;;  %v11139_v4 = vld [vmem:[#allocation5 + $0x15d4] sm:$0xf0] }
 0x239   :  { %5608 = vmatpush.bf16.msra.mxu0 %v9050_v48  ;;  %v9897_v45 = vld [vmem:[#allocation5 + $0x16c8] sm:$0xf]  ;;  %v11171_v46 = vld [vmem:[#allocation5 + $0x16d4] sm:$0xf0]  ;;  %v9642_v48 = vor.u32 %v11107_v35, %v9641_v33  ;;  %v9770_v49 = vor.u32 %v11139_v4, %v9769_v39 }
 0x23a   :  { %5621 = vmatpush.bf16.msra.mxu1 %v9178_v52  ;;  %v10025_v47 = vld [vmem:[#allocation5 + $0x17c8] sm:$0xf]  ;;  %v11203_v12 = vld [vmem:[#allocation5 + $0x17d4] sm:$0xf0]  ;;  %v9898_v50 = vor.u32 %v11171_v46, %v9897_v45 }
 0x23b   :  { %5634 = vmatpush.bf16.msra.mxu2 %v9306_v54  ;;  %v9625_v52 = vld [vmem:[#allocation5 + $0x14a8] sm:$0xf]  ;;  %v11103_v54 = vld [vmem:[#allocation5 + $0x14b4] sm:$0xf0]  ;;  %v10026_v56 = vor.u32 %v11203_v12, %v10025_v47 }
 0x23c   :  { %5647 = vmatpush.bf16.msra.mxu3 %v9434_v57  ;;  %v9753_v55 = vld [vmem:[#allocation5 + $0x15a8] sm:$0xf]  ;;  %v11135_v17 = vld [vmem:[#allocation5 + $0x15b4] sm:$0xf0]  ;;  %v9626_v60 = vor.u32 %v11103_v54, %v9625_v52 }
 0x23d   :  { %5609 = vmatpush.bf16.msra.mxu0 %v9034_v6  ;;  %v9881_v57 = vld [vmem:[#allocation5 + $0x16a8] sm:$0xf]  ;;  %v11167_v43 = vld [vmem:[#allocation5 + $0x16b4] sm:$0xf0]  ;;  %v9754_v63 = vor.u32 %v11135_v17, %v9753_v55 }
 0x23e   :  { %5622 = vmatpush.bf16.msra.mxu1 %v9162_v11  ;;  %v10009_v44 = vld [vmem:[#allocation5 + $0x17a8] sm:$0xf]  ;;  %v11199_v59 = vld [vmem:[#allocation5 + $0x17b4] sm:$0xf0]  ;;  %v9882_v3 = vor.u32 %v11167_v43, %v9881_v57  ;;  %v5416_v45 = vpop.f32.mrf.mxu1 }
 0x23f   :  { %5635 = vmatpush.bf16.msra.mxu2 %v9290_v14  ;;  %v9609_v62 = vld [vmem:[#allocation5 + $0x1488] sm:$0xf]  ;;  %v11099_v53 = vld [vmem:[#allocation5 + $0x1494] sm:$0xf0]  ;;  %v10010_v10 = vor.u32 %v11199_v59, %v10009_v44 }
 0x240   :  { %5648 = vmatpush.bf16.msra.mxu3 %v9418_v28  ;;  %5610 = vmatmul.bf16.vlgmr.msra.gmra.mxu0 %v11595_v24  ;;  %v9737_v6 = vld [vmem:[#allocation5 + $0x1588] sm:$0xf]  ;;  %v11131_v11 = vld [vmem:[#allocation5 + $0x1594] sm:$0xf0] }
 0x241   :  { %5654 = vmatpush.bf16.msrb.mxu0 %v9658_v58  ;;  %5623 = vmatmul.bf16.vlgmr.msra.gmra.mxu1 %v11599_v32  ;;  %v11324_v51 = vld [vmem:[#allocation10] ss:$8 sm:$0xf]  ;;  %v9610_v58 = vor.u32 %v11099_v53, %v9609_v62 }
 0x242   :  { %5667 = vmatpush.bf16.msrb.mxu1 %v9786_v0  ;;  %5636 = vmatmul.bf16.vlgmr.msra.gmra.mxu2 %v11597_v31  ;;  %v924_v7 = vperm.slane %v11324_v51, 2  ;;  %v9865_v14 = vld [vmem:[#allocation5 + $0x1688] sm:$0xf]  ;;  %v11163_v16 = vld [vmem:[#allocation5 + $0x1694] sm:$0xf0]  ;;  %v5403_v0 = vpop.f32.mrf.mxu0 }
 0x243   :  { %5680 = vmatpush.bf16.msrb.mxu2 %v9914_v30  ;;  %5649 = vmatmul.bf16.vlgmr.msra.gmra.mxu3 %v11601_v36  ;;  %v9993_v21 = vld [vmem:[#allocation5 + $0x1788] sm:$0xf]  ;;  %v11195_v28 = vld [vmem:[#allocation5 + $0x1794] sm:$0xf0]  ;;  %v9738_v30 = vor.u32 %v11131_v11, %v9737_v6  ;;  %v9866_v33 = vor.u32 %v11163_v16, %v9865_v14 }
 0x244   :  { %5693 = vmatpush.bf16.msrb.mxu3 %v10042_v41  ;;  %v9593_v35 = vld [vmem:[#allocation5 + $0x1468] sm:$0xf]  ;;  %v11095_v39 = vld [vmem:[#allocation5 + $0x1474] sm:$0xf0]  ;;  %v5404_v4 = vadd.f32 %v5403_v0, %v924_v7  ;;  %v9994_v46 = vor.u32 %v11195_v28, %v9993_v21 }
 0x245   :  { %5655 = vmatpush.bf16.msrb.mxu0 %v9642_v48  ;;  %v9721_v41 = vld [vmem:[#allocation5 + $0x1568] sm:$0xf]  ;;  %v11127_v47 = vld [vmem:[#allocation5 + $0x1574] sm:$0xf0]  ;;  %v9594_v54 = vor.u32 %v11095_v39, %v9593_v35  ;;  %v5429_v44 = vpop.f32.mrf.mxu2 }
 0x246   :  { %5668 = vmatpush.bf16.msrb.mxu1 %v9770_v49  ;;  %v9849_v12 = vld [vmem:[#allocation5 + $0x1668] sm:$0xf]  ;;  %v11159_v48 = vld [vmem:[#allocation5 + $0x1674] sm:$0xf0]  ;;  %v5417_v52 = vadd.f32 %v5416_v45, %v5404_v4  ;;  %v9722_v55 = vor.u32 %v11127_v47, %v9721_v41  ;;  %v5442_v53 = vpop.f32.mrf.mxu3  ;;  %v5418_v0 = vpop.f32.mrf.mxu1 }
 0x247   :  { %5681 = vmatpush.bf16.msrb.mxu2 %v9898_v50  ;;  %v9977_v49 = vld [vmem:[#allocation5 + $0x1768] sm:$0xf]  ;;  %v11191_v50 = vld [vmem:[#allocation5 + $0x1774] sm:$0xf0]  ;;  %v7083_v0 = vld [vmem:[#allocation5 + $0xd8] sm:$0xf0] }
 0x248   :  { %5694 = vmatpush.bf16.msrb.mxu3 %v10026_v56  ;;  %v9850_v56 = vor.u32 %v11159_v48, %v9849_v12  ;;  %v9577_v17 = vld [vmem:[#allocation5 + $0x1448] sm:$0xf]  ;;  %v11091_v57 = vld [vmem:[#allocation5 + $0x1454] sm:$0xf0]  ;;  %v9978_v59 = vor.u32 %v11191_v50, %v9977_v49 }
 0x249   :  { %5656 = vmatpush.bf16.msrb.mxu0 %v9626_v60  ;;  %v9705_v43 = vld [vmem:[#allocation5 + $0x1548] sm:$0xf]  ;;  %v11123_v60 = vld [vmem:[#allocation5 + $0x1554] sm:$0xf0]  ;;  %v9578_v7 = vor.u32 %v11091_v57, %v9577_v17 }
 0x24a   :  { %5669 = vmatpush.bf16.msrb.mxu1 %v9754_v63  ;;  %v9833_v62 = vld [vmem:[#allocation5 + $0x1648] sm:$0xf]  ;;  %v11155_v63 = vld [vmem:[#allocation5 + $0x1654] sm:$0xf0]  ;;  %v5405_v11 = vpop.f32.mrf.mxu0  ;;  %v9706_v14 = vor.u32 %v11123_v60, %v9705_v43  ;;  %v10501_v60 = vld [vmem:[#allocation5 + $0x1ec] sm:$0xf] }
 0x24b   :  { %5682 = vmatpush.bf16.msrb.mxu2 %v9882_v3  ;;  %v5430_v3 = vadd.f32 %v5429_v44, %v5417_v52  ;;  %v9961_v6 = vld [vmem:[#allocation5 + $0x1748] sm:$0xf]  ;;  %v11187_v51 = vld [vmem:[#allocation5 + $0x1754] sm:$0xf0]  ;;  %v9834_v16 = vor.u32 %v11155_v63, %v9833_v62  ;;  %v10469_v44 = vld [vmem:[#allocation5 + $0xec] sm:$0xf] }
 0x24c   :  { %5695 = vmatpush.bf16.msrb.mxu3 %v10010_v10  ;;  %v9561_v21 = vld [vmem:[#allocation5 + $0x1428] sm:$0xf]  ;;  %v11087_v28 = vld [vmem:[#allocation5 + $0x1434] sm:$0xf0]  ;;  %v7227_v63 = vld [vmem:[#allocation5 + $0x1f8] sm:$0xf0] }
 0x24d   :  { %5657 = vmatpush.bf16.msrb.mxu0 %v9610_v58  ;;  %v11697_v10 = vadd.f32 %v5442_v53, %v5430_v3  ;;  %v9689_v58 = vld [vmem:[#allocation5 + $0x1528] sm:$0xf]  ;;  %v11151_v39 = vld [vmem:[#allocation5 + $0x1634] sm:$0xf0]  ;;  %v9562_v45 = vor.u32 %v11087_v28, %v9561_v21  ;;  %v10533_v3 = vld [vmem:[#allocation5 + $0x2ec] sm:$0xf]  ;;  %v7230_v21 = vor.u32 %v10501_v60, %v7227_v63 }
 0x24e   :  { %5670 = vmatpush.bf16.msrb.mxu1 %v9738_v30  ;;  %v9962_v30 = vor.u32 %v11187_v51, %v9961_v6  ;;  %v9817_v35 = vld [vmem:[#allocation5 + $0x1628] sm:$0xf]  ;;  %v11183_v4 = vld [vmem:[#allocation5 + $0x1734] sm:$0xf0]  ;;  %v5444_v43 = vpop.f32.mrf.mxu3  ;;  %v7355_v53 = vld [vmem:[#allocation5 + $0x2f8] sm:$0xf0] }
 0x24f   :  { %5683 = vmatpush.bf16.msrb.mxu2 %v9866_v33  ;;  %v11119_v33 = vld [vmem:[#allocation5 + $0x1534] sm:$0xf0]  ;;  %v9945_v41 = vld [vmem:[#allocation5 + $0x1728] sm:$0xf]  ;;  %v9818_v48 = vor.u32 %v11151_v39, %v9817_v35  ;;  %v7483_v11 = vld [vmem:[#allocation5 + $0x3f8] sm:$0xf0]  ;;  %v7358_v28 = vor.u32 %v10533_v3, %v7355_v53 }
 0x250   :  { %5696 = vmatpush.bf16.msrb.mxu3 %v9994_v46  ;;  %v9545_v46 = vld [vmem:[#allocation5 + $0x1408] sm:$0xf]  ;;  %v11083_v47 = vld [vmem:[#allocation5 + $0x1414] sm:$0xf0]  ;;  %v9690_v12 = vor.u32 %v11119_v33, %v9689_v58  ;;  %v10465_v58 = vld [vmem:[#allocation5 + $0xcc] sm:$0xf] }
 0x251   :  { %5658 = vmatpush.bf16.msrb.mxu0 %v9594_v54  ;;  %v9673_v49 = vld [vmem:[#allocation5 + $0x1508] sm:$0xf]  ;;  %v11115_v50 = vld [vmem:[#allocation5 + $0x1514] sm:$0xf0]  ;;  %v5431_v54 = vpop.f32.mrf.mxu2  ;;  %v9546_v62 = vor.u32 %v11083_v47, %v9545_v46  ;;  %v7211_v35 = vld [vmem:[#allocation5 + $0x1d8] sm:$0xf0]  ;;  %v7086_v46 = vor.u32 %v10465_v58, %v7083_v0 }
 0x252   :  { %5671 = vmatpush.bf16.msrb.mxu1 %v9722_v55  ;;  %v9801_v52 = vld [vmem:[#allocation5 + $0x1608] sm:$0xf]  ;;  %v9946_v55 = vor.u32 %v11183_v4, %v9945_v41  ;;  %v11179_v57 = vld [vmem:[#allocation5 + $0x1714] sm:$0xf0]  ;;  %v9674_v6 = vor.u32 %v11115_v50, %v9673_v49  ;;  %v10529_v39 = vld [vmem:[#allocation5 + $0x2cc] sm:$0xf] }
 0x253   :  { %5684 = vmatpush.bf16.msrb.mxu2 %v9850_v56  ;;  %v11147_v56 = vld [vmem:[#allocation5 + $0x1614] sm:$0xf0]  ;;  %v9929_v17 = vld [vmem:[#allocation5 + $0x1708] sm:$0xf]  ;;  %v7339_v41 = vld [vmem:[#allocation5 + $0x2d8] sm:$0xf0] }
 0x254   :  { %5697 = vmatpush.bf16.msrb.mxu3 %v9978_v59  ;;  %v7099_v59 = vld [vmem:[#allocation5 + $0xf8] sm:$0xf0]  ;;  %v9802_v51 = vor.u32 %v11147_v56, %v9801_v52  ;;  %v10561_v4 = vld [vmem:[#allocation5 + $0x3cc] sm:$0xf] }
 0x255   :  { %5659 = vmatpush.bf16.msrb.mxu0 %v9578_v7  ;;  %v10565_v7 = vld [vmem:[#allocation5 + $0x3ec] sm:$0xf]  ;;  %v7067_v49 = vld [vmem:[#allocation5 + $0xb8] sm:$0xf0] }
 0x256   :  { %5672 = vmatpush.bf16.msrb.mxu1 %v9706_v14  ;;  %v9930_v14 = vor.u32 %v11179_v57, %v9929_v17  ;;  %v7486_v33 = vor.u32 %v10565_v7, %v7483_v11  ;;  %v10493_v50 = vld [vmem:[#allocation5 + $0x1ac] sm:$0xf]  ;;  %v7195_v54 = vld [vmem:[#allocation5 + $0x1b8] sm:$0xf0] }
 0x257   :  { %5685 = vmatpush.bf16.msrb.mxu2 %v9834_v16  ;;  %v7102_v16 = vor.u32 %v10469_v44, %v7099_v59  ;;  %v7323_v56 = vld [vmem:[#allocation5 + $0x2b8] sm:$0xf0]  ;;  %v10557_v17 = vld [vmem:[#allocation5 + $0x3ac] sm:$0xf]  ;;  %v7198_v44 = vor.u32 %v10493_v50, %v7195_v54 }
 0x258   :  { %5698 = vmatpush.bf16.msrb.mxu3 %v9962_v30  ;;  %v10497_v30 = vld [vmem:[#allocation5 + $0x1cc] sm:$0xf]  ;;  %v7451_v57 = vld [vmem:[#allocation5 + $0x3b8] sm:$0xf0] }
 0x259   :  { %5660 = vmatpush.bf16.msrb.mxu0 %v9562_v45  ;;  %v7467_v45 = vld [vmem:[#allocation5 + $0x3d8] sm:$0xf0]  ;;  %v7214_v47 = vor.u32 %v10497_v30, %v7211_v35  ;;  %v10457_v60 = vld [vmem:[#allocation5 + $0x8c] sm:$0xf]  ;;  %v7454_v3 = vor.u32 %v10557_v17, %v7451_v57 }
 0x25a   :  { %5673 = vmatpush.bf16.msrb.mxu1 %v9690_v12  ;;  %v7342_v12 = vor.u32 %v10529_v39, %v7339_v41  ;;  %v7470_v52 = vor.u32 %v10561_v4, %v7467_v45  ;;  %v10489_v63 = vld [vmem:[#allocation5 + $0x18c] sm:$0xf]  ;;  %v7179_v53 = vld [vmem:[#allocation5 + $0x198] sm:$0xf0] }
 0x25b   :  { %5686 = vmatpush.bf16.msrb.mxu2 %v9818_v48  ;;  %v10461_v48 = vld [vmem:[#allocation5 + $0xac] sm:$0xf]  ;;  %v7435_v11 = vld [vmem:[#allocation5 + $0x398] sm:$0xf0] }
 0x25c   :  { %5699 = vmatpush.bf16.msrb.mxu3 %v9946_v55  ;;  %v10525_v55 = vld [vmem:[#allocation5 + $0x2ac] sm:$0xf]  ;;  %v7070_v43 = vor.u32 %v10461_v48, %v7067_v49  ;;  %v7035_v0 = vld [vmem:[#allocation5 + $0x78] sm:$0xf0] }
 0x25d   :  { %5661 = vmatpush.bf16.msrb.mxu0 %v9546_v62  ;;  %v7326_v59 = vor.u32 %v10525_v55, %v7323_v56  ;;  %v7051_v62 = vld [vmem:[#allocation5 + $0x98] sm:$0xf0]  ;;  %v10553_v7 = vld [vmem:[#allocation5 + $0x38c] sm:$0xf] }
 0x25e   :  { %5674 = vmatpush.bf16.msrb.mxu1 %v9674_v6  ;;  %v10521_v6 = vld [vmem:[#allocation5 + $0x28c] sm:$0xf]  ;;  %v5468_v35 = vpop.f32.mrf.mxu1  ;;  %v7438_v39 = vor.u32 %v10553_v7, %v7435_v11  ;;  %v7163_v41 = vld [vmem:[#allocation5 + $0x178] sm:$0xf0] }
 0x25f   :  { %5687 = vmatpush.bf16.msrb.mxu2 %v9802_v51  ;;  %v7307_v51 = vld [vmem:[#allocation5 + $0x298] sm:$0xf0]  ;;  %v10453_v58 = vld [vmem:[#allocation5 + $0x6c] sm:$0xf] }
 0x260   :  { %5700 = vmatpush.bf16.msrb.mxu3 %v9930_v14  ;;  %5662 = vmatmul.bf16.vlgmr.msrb.gmra.mxu0 %v11609_v61  ;;  %v7054_v14 = vor.u32 %v10457_v60, %v7051_v62  ;;  %v10485_v30 = vld [vmem:[#allocation5 + $0x16c] sm:$0xf]  ;;  %v7291_v45 = vld [vmem:[#allocation5 + $0x278] sm:$0xf0]  ;;  %v7038_v48 = vor.u32 %v10453_v58, %v7035_v0 }
 0x261   :  { %5706 = vmatpush.bf16.msra.mxu0 %v7102_v16  ;;  %5675 = vmatmul.bf16.vlgmr.msrb.gmra.mxu1 %v11613_v2  ;;  %v5455_v16 = vpop.f32.mrf.mxu0  ;;  %v10517_v4 = vld [vmem:[#allocation5 + $0x26c] sm:$0xf]  ;;  %v7166_v49 = vor.u32 %v10485_v30, %v7163_v41  ;;  %v7019_v54 = vld [vmem:[#allocation5 + $0x58] sm:$0xf0] }
 0x262   :  { %5719 = vmatpush.bf16.msra.mxu1 %v7230_v21  ;;  %5688 = vmatmul.bf16.vlgmr.msrb.gmra.mxu2 %v11611_v1  ;;  %v7182_v21 = vor.u32 %v10489_v63, %v7179_v53  ;;  %v7294_v50 = vor.u32 %v10517_v4, %v7291_v45  ;;  %v10481_v55 = vld [vmem:[#allocation5 + $0x14c] sm:$0xf]  ;;  %v7147_v17 = vld [vmem:[#allocation5 + $0x158] sm:$0xf0] }
 0x263   :  { %5732 = vmatpush.bf16.msra.mxu2 %v7358_v28  ;;  %5701 = vmatmul.bf16.vlgmr.msrb.gmra.mxu3 %v11615_v5  ;;  %v7310_v28 = vor.u32 %v10521_v6, %v7307_v51  ;;  %v10513_v57 = vld [vmem:[#allocation5 + $0x24c] sm:$0xf]  ;;  %v7403_v62 = vld [vmem:[#allocation5 + $0x358] sm:$0xf0]  ;;  %v7150_v6 = vor.u32 %v10481_v55, %v7147_v17 }
 0x264   :  { %5745 = vmatpush.bf16.msra.mxu3 %v7486_v33  ;;  %v5456_v33 = vadd.f32 %v5455_v16, %v11697_v10  ;;  %v10545_v60 = vld [vmem:[#allocation5 + $0x34c] sm:$0xf]  ;;  %v7003_v11 = vld [vmem:[#allocation5 + $0x38] sm:$0xf0] }
 0x265   :  { %5707 = vmatpush.bf16.msra.mxu0 %v7086_v46  ;;  %v10549_v46 = vld [vmem:[#allocation5 + $0x36c] sm:$0xf]  ;;  %v5481_v56 = vpop.f32.mrf.mxu2  ;;  %v7259_v0 = vld [vmem:[#allocation5 + $0x238] sm:$0xf0] }
 0x266   :  { %5720 = vmatpush.bf16.msra.mxu1 %v7214_v47  ;;  %v7419_v47 = vld [vmem:[#allocation5 + $0x378] sm:$0xf0]  ;;  %v10445_v7 = vld [vmem:[#allocation5 + $0x2c] sm:$0xf]  ;;  %v5470_v16 = vpop.f32.mrf.mxu1 }
 0x267   :  { %5733 = vmatpush.bf16.msra.mxu2 %v7342_v12  ;;  %v5469_v12 = vadd.f32 %v5468_v35, %v5456_v33  ;;  %v7422_v10 = vor.u32 %v10549_v46, %v7419_v47  ;;  %v10509_v58 = vld [vmem:[#allocation5 + $0x22c] sm:$0xf]  ;;  %v7387_v33 = vld [vmem:[#allocation5 + $0x338] sm:$0xf0]  ;;  %v7006_v35 = vor.u32 %v10445_v7, %v7003_v11 }
 0x268   :  { %5746 = vmatpush.bf16.msra.mxu3 %v7470_v52  ;;  %v10449_v52 = vld [vmem:[#allocation5 + $0x4c] sm:$0xf]  ;;  %v6987_v41 = vld [vmem:[#allocation5 + $0x18] sm:$0xf0]  ;;  %v7262_v45 = vor.u32 %v10509_v58, %v7259_v0 }
 0x269   :  { %5708 = vmatpush.bf16.msra.mxu0 %v7070_v43  ;;  %v7275_v43 = vld [vmem:[#allocation5 + $0x258] sm:$0xf0]  ;;  %v7022_v63 = vor.u32 %v10449_v52, %v7019_v54  ;;  %v5457_v53 = vpop.f32.mrf.mxu0  ;;  %v10541_v30 = vld [vmem:[#allocation5 + $0x32c] sm:$0xf] }
 0x26a   :  { %5721 = vmatpush.bf16.msra.mxu1 %v7198_v44  ;;  %v5482_v44 = vadd.f32 %v5481_v56, %v5469_v12  ;;  %v7278_v51 = vor.u32 %v10513_v57, %v7275_v43  ;;  %v10473_v46 = vld [vmem:[#allocation5 + $0x10c] sm:$0xf]  ;;  %v7115_v47 = vld [vmem:[#allocation5 + $0x118] sm:$0xf0] }
 0x26b   :  { %5734 = vmatpush.bf16.msra.mxu2 %v7326_v59  ;;  %v5494_v59 = vpop.f32.mrf.mxu3  ;;  %v10505_v12 = vld [vmem:[#allocation5 + $0x20c] sm:$0xf]  ;;  %v7371_v54 = vld [vmem:[#allocation5 + $0x318] sm:$0xf0] }
 0x26c   :  { %5747 = vmatpush.bf16.msra.mxu3 %v7454_v3  ;;  %v11704_v3 = vadd.f32 %v5494_v59, %v5482_v44  ;;  %v10537_v52 = vld [vmem:[#allocation5 + $0x30c] sm:$0xf]  ;;  %v7739_v43 = vld [vmem:[#allocation5 + $0x5f8] sm:$0xf0] }
 0x26d   :  { %5709 = vmatpush.bf16.msra.mxu0 %v7054_v14  ;;  %v10477_v14 = vld [vmem:[#allocation5 + $0x12c] sm:$0xf]  ;;  %v7867_v59 = vld [vmem:[#allocation5 + $0x6f8] sm:$0xf0] }
 0x26e   :  { %5722 = vmatpush.bf16.msra.mxu1 %v7182_v21  ;;  %v7406_v21 = vor.u32 %v10545_v60, %v7403_v62  ;;  %v10597_v56 = vld [vmem:[#allocation5 + $0x4ec] sm:$0xf]  ;;  %v7118_v60 = vor.u32 %v10473_v46, %v7115_v47  ;;  %v7995_v53 = vld [vmem:[#allocation5 + $0x7f8] sm:$0xf0] }
 0x26f   :  { %5735 = vmatpush.bf16.msra.mxu2 %v7310_v28  ;;  %v7131_v28 = vld [vmem:[#allocation5 + $0x138] sm:$0xf0]  ;;  %v10629_v17 = vld [vmem:[#allocation5 + $0x5ec] sm:$0xf] }
 0x270   :  { %5748 = vmatpush.bf16.msra.mxu3 %v7438_v39  ;;  %v10441_v39 = vld [vmem:[#allocation5 + $0xc] sm:$0xf]  ;;  %v7134_v4 = vor.u32 %v10477_v14, %v7131_v28  ;;  %v7742_v7 = vor.u32 %v10629_v17, %v7739_v43  ;;  %v7595_v16 = vld [vmem:[#allocation5 + $0x4d8] sm:$0xf0] }
 0x271   :  { %5710 = vmatpush.bf16.msra.mxu0 %v7038_v48  ;;  %v5483_v48 = vpop.f32.mrf.mxu2  ;;  %v6990_v57 = vor.u32 %v10441_v39, %v6987_v41  ;;  %v10661_v44 = vld [vmem:[#allocation5 + $0x6ec] sm:$0xf]  ;;  %v7723_v58 = vld [vmem:[#allocation5 + $0x5d8] sm:$0xf0] }
 0x272   :  { %5723 = vmatpush.bf16.msra.mxu1 %v7166_v49  ;;  %v7390_v49 = vor.u32 %v10541_v30, %v7387_v33  ;;  %v7870_v11 = vor.u32 %v10661_v44, %v7867_v59  ;;  %v10593_v14 = vld [vmem:[#allocation5 + $0x4cc] sm:$0xf]  ;;  %v7851_v30 = vld [vmem:[#allocation5 + $0x6d8] sm:$0xf0] }
 0x273   :  { %5736 = vmatpush.bf16.msra.mxu2 %v7294_v50  ;;  %v7243_v50 = vld [vmem:[#allocation5 + $0x218] sm:$0xf0]  ;;  %v5496_v55 = vpop.f32.mrf.mxu3  ;;  %v10657_v0 = vld [vmem:[#allocation5 + $0x6cc] sm:$0xf]  ;;  %v7598_v39 = vor.u32 %v10593_v14, %v7595_v16 }
 0x274   :  { %5749 = vmatpush.bf16.msra.mxu3 %v7422_v10  ;;  %v7611_v10 = vld [vmem:[#allocation5 + $0x4f8] sm:$0xf0]  ;;  %v7246_v62 = vor.u32 %v10505_v12, %v7243_v50  ;;  %v10689_v33 = vld [vmem:[#allocation5 + $0x7cc] sm:$0xf] }
 0x275   :  { %5711 = vmatpush.bf16.msra.mxu0 %v7022_v63  ;;  %v10693_v63 = vld [vmem:[#allocation5 + $0x7ec] sm:$0xf]  ;;  %v7579_v46 = vld [vmem:[#allocation5 + $0x4b8] sm:$0xf0] }
 0x276   :  { %5724 = vmatpush.bf16.msra.mxu1 %v7150_v6  ;;  %v7374_v6 = vor.u32 %v10537_v52, %v7371_v54  ;;  %v7998_v28 = vor.u32 %v10693_v63, %v7995_v53  ;;  %v10621_v47 = vld [vmem:[#allocation5 + $0x5ac] sm:$0xf]  ;;  %v7707_v48 = vld [vmem:[#allocation5 + $0x5b8] sm:$0xf0] }
 0x277   :  { %5737 = vmatpush.bf16.msra.mxu2 %v7278_v51  ;;  %v7614_v51 = vor.u32 %v10597_v56, %v7611_v10  ;;  %v7835_v50 = vld [vmem:[#allocation5 + $0x6b8] sm:$0xf0]  ;;  %v10685_v52 = vld [vmem:[#allocation5 + $0x7ac] sm:$0xf]  ;;  %v7710_v56 = vor.u32 %v10621_v47, %v7707_v48 }
 0x278   :  { %5750 = vmatpush.bf16.msra.mxu3 %v7406_v21  ;;  %v10625_v21 = vld [vmem:[#allocation5 + $0x5cc] sm:$0xf]  ;;  %v7963_v54 = vld [vmem:[#allocation5 + $0x7b8] sm:$0xf0] }
 0x279   :  { %5712 = vmatpush.bf16.msra.mxu0 %v7006_v35  ;;  %v7979_v35 = vld [vmem:[#allocation5 + $0x7d8] sm:$0xf0]  ;;  %v7726_v41 = vor.u32 %v10625_v21, %v7723_v58  ;;  %v10585_v17 = vld [vmem:[#allocation5 + $0x48c] sm:$0xf]  ;;  %v7966_v44 = vor.u32 %v10685_v52, %v7963_v54 }
 0x27a   :  { %5725 = vmatpush.bf16.msra.mxu1 %v7134_v4  ;;  %v7854_v4 = vor.u32 %v10657_v0, %v7851_v30  ;;  %v7982_v12 = vor.u32 %v10689_v33, %v7979_v35  ;;  %v10617_v43 = vld [vmem:[#allocation5 + $0x58c] sm:$0xf]  ;;  %v7947_v63 = vld [vmem:[#allocation5 + $0x798] sm:$0xf0] }
 0x27b   :  { %5738 = vmatpush.bf16.msra.mxu2 %v7262_v45  ;;  %v10589_v45 = vld [vmem:[#allocation5 + $0x4ac] sm:$0xf]  ;;  %v7803_v0 = vld [vmem:[#allocation5 + $0x678] sm:$0xf0] }
 0x27c   :  { %5751 = vmatpush.bf16.msra.mxu3 %v7390_v49  ;;  %v10653_v49 = vld [vmem:[#allocation5 + $0x6ac] sm:$0xf]  ;;  %v7582_v55 = vor.u32 %v10589_v45, %v7579_v46  ;;  %v7931_v33 = vld [vmem:[#allocation5 + $0x778] sm:$0xf0] }
 0x27d   :  { %5713 = vmatpush.bf16.msra.mxu0 %v6990_v57  ;;  %v7838_v10 = vor.u32 %v10653_v49, %v7835_v50  ;;  %v7563_v57 = vld [vmem:[#allocation5 + $0x498] sm:$0xf0]  ;;  %v10649_v59 = vld [vmem:[#allocation5 + $0x68c] sm:$0xf] }
 0x27e   :  { %5726 = vmatpush.bf16.msra.mxu1 %v7118_v60  ;;  %v7819_v60 = vld [vmem:[#allocation5 + $0x698] sm:$0xf0]  ;;  %v7566_v53 = vor.u32 %v10585_v17, %v7563_v57  ;;  %v10613_v14 = vld [vmem:[#allocation5 + $0x56c] sm:$0xf] }
 0x27f   :  { %5739 = vmatpush.bf16.msra.mxu2 %v7246_v62  ;;  %v5507_v62 = vpop.f32.mrf.mxu0  ;;  %v10645_v58 = vld [vmem:[#allocation5 + $0x66c] sm:$0xf]  ;;  %v7787_v49 = vld [vmem:[#allocation5 + $0x658] sm:$0xf0] }
 0x280   :  { %5752 = vmatpush.bf16.msra.mxu3 %v7374_v6  ;;  %5714 = vmatmul.bf16.vlgmr.msra.gmra.mxu0 %v11549_v9  ;;  %v10681_v9 = vld [vmem:[#allocation5 + $0x78c] sm:$0xf] }
 0x281   :  { %5758 = vmatpush.bf16.msrb.mxu0 %v7614_v51  ;;  %5727 = vmatmul.bf16.vlgmr.msra.gmra.mxu1 %v11556_v25  ;;  %v5520_v25 = vpop.f32.mrf.mxu1  ;;  %v7822_v51 = vor.u32 %v10649_v59, %v7819_v60  ;;  %v7950_v16 = vor.u32 %v10681_v9, %v7947_v63  ;;  %v10677_v30 = vld [vmem:[#allocation5 + $0x76c] sm:$0xf]  ;;  %v7515_v59 = vld [vmem:[#allocation5 + $0x438] sm:$0xf0] }
 0x282   :  { %5771 = vmatpush.bf16.msrb.mxu1 %v7742_v7  ;;  %5740 = vmatmul.bf16.vlgmr.msra.gmra.mxu2 %v11547_v8  ;;  %v7691_v8 = vld [vmem:[#allocation5 + $0x598] sm:$0xf0]  ;;  %v10581_v7 = vld [vmem:[#allocation5 + $0x46c] sm:$0xf]  ;;  %v7934_v46 = vor.u32 %v10677_v30, %v7931_v33 }
 0x283   :  { %5784 = vmatpush.bf16.msrb.mxu2 %v7870_v11  ;;  %5753 = vmatmul.bf16.vlgmr.msra.gmra.mxu3 %v11551_v15  ;;  %v5508_v15 = vadd.f32 %v5507_v62, %v11704_v3  ;;  %v7694_v6 = vor.u32 %v10617_v43, %v7691_v8  ;;  %v7547_v11 = vld [vmem:[#allocation5 + $0x478] sm:$0xf0]  ;;  %v10609_v45 = vld [vmem:[#allocation5 + $0x54c] sm:$0xf] }
 0x284   :  { %5797 = vmatpush.bf16.msrb.mxu3 %v7998_v28  ;;  %v7675_v28 = vld [vmem:[#allocation5 + $0x578] sm:$0xf0]  ;;  %v7550_v35 = vor.u32 %v10581_v7, %v7547_v11  ;;  %v10641_v48 = vld [vmem:[#allocation5 + $0x64c] sm:$0xf] }
 0x285   :  { %5759 = vmatpush.bf16.msrb.mxu0 %v7598_v39  ;;  %v5521_v21 = vadd.f32 %v5520_v25, %v5508_v15  ;;  %v7678_v3 = vor.u32 %v10613_v14, %v7675_v28  ;;  %v7806_v39 = vor.u32 %v10645_v58, %v7803_v0  ;;  %v5533_v47 = vpop.f32.mrf.mxu2  ;;  %v10673_v54 = vld [vmem:[#allocation5 + $0x74c] sm:$0xf]  ;;  %v7643_v9 = vld [vmem:[#allocation5 + $0x538] sm:$0xf0] }
 0x286   :  { %5772 = vmatpush.bf16.msrb.mxu1 %v7726_v41  ;;  %v10577_v41 = vld [vmem:[#allocation5 + $0x44c] sm:$0xf]  ;;  %v5546_v52 = vpop.f32.mrf.mxu3  ;;  %v7771_v15 = vld [vmem:[#allocation5 + $0x638] sm:$0xf0] }
 0x287   :  { %5785 = vmatpush.bf16.msrb.mxu2 %v7854_v4  ;;  %v7531_v4 = vld [vmem:[#allocation5 + $0x458] sm:$0xf0]  ;;  %v5534_v50 = vadd.f32 %v5533_v47, %v5521_v21  ;;  %v10573_v8 = vld [vmem:[#allocation5 + $0x42c] sm:$0xf] }
 0x288   :  { %5798 = vmatpush.bf16.msrb.mxu3 %v7982_v12  ;;  %v7659_v12 = vld [vmem:[#allocation5 + $0x558] sm:$0xf0]  ;;  %v10605_v60 = vld [vmem:[#allocation5 + $0x52c] sm:$0xf] }
 0x289   :  { %5760 = vmatpush.bf16.msrb.mxu0 %v7582_v55  ;;  %v7915_v55 = vld [vmem:[#allocation5 + $0x758] sm:$0xf0]  ;;  %v5522_v17 = vpop.f32.mrf.mxu1  ;;  %v11711_v57 = vadd.f32 %v5546_v52, %v5534_v50  ;;  %v7662_v43 = vor.u32 %v10609_v45, %v7659_v12  ;;  %v10637_v63 = vld [vmem:[#allocation5 + $0x62c] sm:$0xf]  ;;  %v7646_v11 = vor.u32 %v10605_v60, %v7643_v9 }
 0x28a   :  { %5773 = vmatpush.bf16.msrb.mxu1 %v7710_v56  ;;  %v5509_v56 = vpop.f32.mrf.mxu0  ;;  %v7918_v62 = vor.u32 %v10673_v54, %v7915_v55  ;;  %v7899_v25 = vld [vmem:[#allocation5 + $0x738] sm:$0xf0]  ;;  %v7774_v14 = vor.u32 %v10637_v63, %v7771_v15  ;;  %v10633_v28 = vld [vmem:[#allocation5 + $0x60c] sm:$0xf] }
 0x28b   :  { %5786 = vmatpush.bf16.msrb.mxu2 %v7838_v10  ;;  %v7534_v10 = vor.u32 %v10577_v41, %v7531_v4  ;;  %v7499_v7 = vld [vmem:[#allocation5 + $0x418] sm:$0xf0]  ;;  %v10665_v30 = vld [vmem:[#allocation5 + $0x70c] sm:$0xf] }
 0x28c   :  { %5799 = vmatpush.bf16.msrb.mxu3 %v7966_v44  ;;  %v7790_v44 = vor.u32 %v10641_v48, %v7787_v49  ;;  %v7627_v21 = vld [vmem:[#allocation5 + $0x518] sm:$0xf0]  ;;  %v10757_v41 = vld [vmem:[#allocation5 + $0x9ec] sm:$0xf] }
 0x28d   :  { %5761 = vmatpush.bf16.msrb.mxu0 %v7566_v53  ;;  %v10669_v53 = vld [vmem:[#allocation5 + $0x72c] sm:$0xf]  ;;  %v7755_v0 = vld [vmem:[#allocation5 + $0x618] sm:$0xf0] }
 0x28e   :  { %5774 = vmatpush.bf16.msrb.mxu1 %v7694_v6  ;;  %v7518_v6 = vor.u32 %v10573_v8, %v7515_v59  ;;  %v7902_v58 = vor.u32 %v10669_v53, %v7899_v25  ;;  %v7883_v33 = vld [vmem:[#allocation5 + $0x718] sm:$0xf0]  ;;  %v5548_v4 = vpop.f32.mrf.mxu3  ;;  %v10789_v47 = vld [vmem:[#allocation5 + $0xaec] sm:$0xf]  ;;  %v7758_v49 = vor.u32 %v10633_v28, %v7755_v0 }
 0x28f   :  { %5787 = vmatpush.bf16.msrb.mxu2 %v7822_v51  ;;  %v10569_v51 = vld [vmem:[#allocation5 + $0x40c] sm:$0xf]  ;;  %v8379_v12 = vld [vmem:[#allocation5 + $0xaf8] sm:$0xf0]  ;;  %v7886_v54 = vor.u32 %v10665_v30, %v7883_v33 }
 0x290   :  { %5800 = vmatpush.bf16.msrb.mxu3 %v7950_v16  ;;  %v10601_v16 = vld [vmem:[#allocation5 + $0x50c] sm:$0xf]  ;;  %v7502_v45 = vor.u32 %v10569_v51, %v7499_v7  ;;  %v8507_v52 = vld [vmem:[#allocation5 + $0xbf8] sm:$0xf0] }
 0x291   :  { %5762 = vmatpush.bf16.msrb.mxu0 %v7550_v35  ;;  %v5535_v35 = vpop.f32.mrf.mxu2  ;;  %v7630_v48 = vor.u32 %v10601_v16, %v7627_v21  ;;  %v10821_v50 = vld [vmem:[#allocation5 + $0xbec] sm:$0xf]  ;;  %v8235_v59 = vld [vmem:[#allocation5 + $0x9d8] sm:$0xf0] }
 0x292   :  { %5775 = vmatpush.bf16.msrb.mxu1 %v7678_v3  ;;  %v10725_v3 = vld [vmem:[#allocation5 + $0x8ec] sm:$0xf]  ;;  %v8510_v8 = vor.u32 %v10821_v50, %v8507_v52  ;;  %v8491_v63 = vld [vmem:[#allocation5 + $0xbd8] sm:$0xf0] }
 0x293   :  { %5788 = vmatpush.bf16.msrb.mxu2 %v7806_v39  ;;  %v8123_v39 = vld [vmem:[#allocation5 + $0x8f8] sm:$0xf0]  ;;  %v10721_v17 = vld [vmem:[#allocation5 + $0x8cc] sm:$0xf] }
 0x294   :  { %5801 = vmatpush.bf16.msrb.mxu3 %v7934_v46  ;;  %v8251_v46 = vld [vmem:[#allocation5 + $0x9f8] sm:$0xf0]  ;;  %v8126_v55 = vor.u32 %v10725_v3, %v8123_v39  ;;  %v10785_v60 = vld [vmem:[#allocation5 + $0xacc] sm:$0xf] }
 0x295   :  { %5763 = vmatpush.bf16.msrb.mxu0 %v7534_v10  ;;  %v8254_v56 = vor.u32 %v10757_v41, %v8251_v46  ;;  %v8382_v10 = vor.u32 %v10789_v47, %v8379_v12  ;;  %v10817_v9 = vld [vmem:[#allocation5 + $0xbcc] sm:$0xf]  ;;  %v8091_v51 = vld [vmem:[#allocation5 + $0x8b8] sm:$0xf0] }
 0x296   :  { %5776 = vmatpush.bf16.msrb.mxu1 %v7662_v43  ;;  %v8107_v43 = vld [vmem:[#allocation5 + $0x8d8] sm:$0xf0]  ;;  %v10749_v7 = vld [vmem:[#allocation5 + $0x9ac] sm:$0xf] }
 0x297   :  { %5789 = vmatpush.bf16.msrb.mxu2 %v7790_v44  ;;  %v10753_v44 = vld [vmem:[#allocation5 + $0x9cc] sm:$0xf]  ;;  %v8110_v15 = vor.u32 %v10721_v17, %v8107_v43  ;;  %v8347_v21 = vld [vmem:[#allocation5 + $0xab8] sm:$0xf0] }
 0x298   :  { %5802 = vmatpush.bf16.msrb.mxu3 %v7918_v62  ;;  %v8363_v62 = vld [vmem:[#allocation5 + $0xad8] sm:$0xf0]  ;;  %v8238_v53 = vor.u32 %v10753_v44, %v8235_v59  ;;  %v10781_v16 = vld [vmem:[#allocation5 + $0xaac] sm:$0xf] }
 0x299   :  { %5764 = vmatpush.bf16.msrb.mxu0 %v7518_v6  ;;  %v8366_v25 = vor.u32 %v10785_v60, %v8363_v62  ;;  %v10717_v6 = vld [vmem:[#allocation5 + $0x8ac] sm:$0xf]  ;;  %v8350_v33 = vor.u32 %v10781_v16, %v8347_v21  ;;  %v8075_v3 = vld [vmem:[#allocation5 + $0x898] sm:$0xf0] }
 0x29a   :  { %5777 = vmatpush.bf16.msrb.mxu1 %v7646_v11  ;;  %v8494_v11 = vor.u32 %v10817_v9, %v8491_v63  ;;  %v10813_v28 = vld [vmem:[#allocation5 + $0xbac] sm:$0xf]  ;;  %v8094_v0 = vor.u32 %v10717_v6, %v8091_v51  ;;  %v8203_v41 = vld [vmem:[#allocation5 + $0x998] sm:$0xf0] }
 0x29b   :  { %5790 = vmatpush.bf16.msrb.mxu2 %v7774_v14  ;;  %v8219_v14 = vld [vmem:[#allocation5 + $0x9b8] sm:$0xf0]  ;;  %v10713_v35 = vld [vmem:[#allocation5 + $0x88c] sm:$0xf] }
 0x29c   :  { %5803 = vmatpush.bf16.msrb.mxu3 %v7902_v58  ;;  %v8475_v58 = vld [vmem:[#allocation5 + $0xbb8] sm:$0xf0]  ;;  %v8222_v30 = vor.u32 %v10749_v7, %v8219_v14  ;;  %v10777_v4 = vld [vmem:[#allocation5 + $0xa8c] sm:$0xf]  ;;  %v8078_v12 = vor.u32 %v10713_v35, %v8075_v3 }
 0x29d   :  { %5765 = vmatpush.bf16.msrb.mxu0 %v7502_v45  ;;  %v8478_v39 = vor.u32 %v10813_v28, %v8475_v58  ;;  %v8331_v45 = vld [vmem:[#allocation5 + $0xa98] sm:$0xf0]  ;;  %v5559_v46 = vpop.f32.mrf.mxu0  ;;  %v10709_v50 = vld [vmem:[#allocation5 + $0x86c] sm:$0xf] }
 0x29e   :  { %5778 = vmatpush.bf16.msrb.mxu1 %v7630_v48  ;;  %v8459_v47 = vld [vmem:[#allocation5 + $0xb98] sm:$0xf0]  ;;  %v10773_v17 = vld [vmem:[#allocation5 + $0xa6c] sm:$0xf] }
 0x29f   :  { %5791 = vmatpush.bf16.msrb.mxu2 %v7758_v49  ;;  %v8334_v49 = vor.u32 %v10777_v4, %v8331_v45  ;;  %v8059_v52 = vld [vmem:[#allocation5 + $0x878] sm:$0xf0]  ;;  %v10805_v44 = vld [vmem:[#allocation5 + $0xb6c] sm:$0xf] }
 0x2a0   :  { %5804 = vmatpush.bf16.msrb.mxu3 %v7886_v54  ;;  %5766 = vmatmul.bf16.vlgmr.msrb.gmra.mxu0 %v11561_v37  ;;  %v10809_v37 = vld [vmem:[#allocation5 + $0xb8c] sm:$0xf]  ;;  %v8315_v43 = vld [vmem:[#allocation5 + $0xa78] sm:$0xf0]  ;;  %v8062_v59 = vor.u32 %v10709_v50, %v8059_v52 }
 0x2a1   :  { %5810 = vmatpush.bf16.msra.mxu0 %v8126_v55  ;;  %5779 = vmatmul.bf16.vlgmr.msrb.gmra.mxu1 %v11565_v40  ;;  %v5572_v40 = vpop.f32.mrf.mxu1  ;;  %v10741_v54 = vld [vmem:[#allocation5 + $0x96c] sm:$0xf]  ;;  %v8462_v55 = vor.u32 %v10809_v37, %v8459_v47  ;;  %v8318_v60 = vor.u32 %v10773_v17, %v8315_v43  ;;  %v8043_v9 = vld [vmem:[#allocation5 + $0x858] sm:$0xf0] }
 0x2a2   :  { %5823 = vmatpush.bf16.msra.mxu1 %v8254_v56  ;;  %5792 = vmatmul.bf16.vlgmr.msrb.gmra.mxu2 %v11559_v34  ;;  %v10745_v34 = vld [vmem:[#allocation5 + $0x98c] sm:$0xf]  ;;  %v8299_v51 = vld [vmem:[#allocation5 + $0xa58] sm:$0xf0] }
 0x2a3   :  { %5836 = vmatpush.bf16.msra.mxu2 %v8382_v10  ;;  %5805 = vmatmul.bf16.vlgmr.msrb.gmra.mxu3 %v11563_v38  ;;  %v5560_v38 = vadd.f32 %v5559_v46, %v11711_v57  ;;  %v8206_v48 = vor.u32 %v10745_v34, %v8203_v41  ;;  %v8187_v10 = vld [vmem:[#allocation5 + $0x978] sm:$0xf0]  ;;  %v10705_v62 = vld [vmem:[#allocation5 + $0x84c] sm:$0xf] }
 0x2a4   :  { %5849 = vmatpush.bf16.msra.mxu3 %v8510_v8  ;;  %v8443_v8 = vld [vmem:[#allocation5 + $0xb78] sm:$0xf0]  ;;  %v8190_v57 = vor.u32 %v10741_v54, %v8187_v10  ;;  %v10737_v63 = vld [vmem:[#allocation5 + $0x94c] sm:$0xf]  ;;  %v8046_v28 = vor.u32 %v10705_v62, %v8043_v9 }
 0x2a5   :  { %5811 = vmatpush.bf16.msra.mxu0 %v8110_v15  ;;  %v5573_v56 = vadd.f32 %v5572_v40, %v5560_v38  ;;  %v8446_v15 = vor.u32 %v10805_v44, %v8443_v8  ;;  %v10769_v6 = vld [vmem:[#allocation5 + $0xa4c] sm:$0xf]  ;;  %v8427_v16 = vld [vmem:[#allocation5 + $0xb58] sm:$0xf0]  ;;  %v5561_v21 = vpop.f32.mrf.mxu0 }
 0x2a6   :  { %5824 = vmatpush.bf16.msra.mxu1 %v8238_v53  ;;  %v5585_v53 = vpop.f32.mrf.mxu2  ;;  %v10801_v14 = vld [vmem:[#allocation5 + $0xb4c] sm:$0xf]  ;;  %v8027_v3 = vld [vmem:[#allocation5 + $0x838] sm:$0xf0] }
 0x2a7   :  { %5837 = vmatpush.bf16.msra.mxu2 %v8366_v25  ;;  %v8171_v25 = vld [vmem:[#allocation5 + $0x958] sm:$0xf0]  ;;  %v5586_v7 = vadd.f32 %v5585_v53, %v5573_v56  ;;  %v10701_v35 = vld [vmem:[#allocation5 + $0x82c] sm:$0xf] }
 0x2a8   :  { %5850 = vmatpush.bf16.msra.mxu3 %v8494_v11  ;;  %v5598_v11 = vpop.f32.mrf.mxu3  ;;  %v10733_v34 = vld [vmem:[#allocation5 + $0x92c] sm:$0xf]  ;;  %v8155_v41 = vld [vmem:[#allocation5 + $0x938] sm:$0xf0]  ;;  %v8030_v47 = vor.u32 %v10701_v35, %v8027_v3 }
 0x2a9   :  { %5812 = vmatpush.bf16.msra.mxu0 %v8094_v0  ;;  %v5574_v58 = vpop.f32.mrf.mxu1  ;;  %v11718_v0 = vadd.f32 %v5598_v11, %v5586_v7  ;;  %v10765_v4 = vld [vmem:[#allocation5 + $0xa2c] sm:$0xf]  ;;  %v8283_v45 = vld [vmem:[#allocation5 + $0xa38] sm:$0xf0]  ;;  %v8158_v40 = vor.u32 %v10733_v34, %v8155_v41 }
 0x2aa   :  { %5825 = vmatpush.bf16.msra.mxu1 %v8222_v30  ;;  %v8174_v30 = vor.u32 %v10737_v63, %v8171_v25  ;;  %v10797_v46 = vld [vmem:[#allocation5 + $0xb2c] sm:$0xf]  ;;  %v8411_v37 = vld [vmem:[#allocation5 + $0xb38] sm:$0xf0] }
 0x2ab   :  { %5838 = vmatpush.bf16.msra.mxu2 %v8350_v33  ;;  %v8302_v33 = vor.u32 %v10769_v6, %v8299_v51  ;;  %v10697_v38 = vld [vmem:[#allocation5 + $0x80c] sm:$0xf]  ;;  %v8139_v50 = vld [vmem:[#allocation5 + $0x918] sm:$0xf0]  ;;  %v8414_v54 = vor.u32 %v10797_v46, %v8411_v37 }
 0x2ac   :  { %5851 = vmatpush.bf16.msra.mxu3 %v8478_v39  ;;  %v8430_v39 = vor.u32 %v10801_v14, %v8427_v16  ;;  %v10761_v52 = vld [vmem:[#allocation5 + $0xa0c] sm:$0xf]  ;;  %v8395_v10 = vld [vmem:[#allocation5 + $0xb18] sm:$0xf0] }
 0x2ad   :  { %5813 = vmatpush.bf16.msra.mxu0 %v8078_v12  ;;  %v8011_v12 = vld [vmem:[#allocation5 + $0x818] sm:$0xf0]  ;;  %v10793_v56 = vld [vmem:[#allocation5 + $0xb0c] sm:$0xf] }
 0x2ae   :  { %5826 = vmatpush.bf16.msra.mxu1 %v8206_v48  ;;  %v8286_v48 = vor.u32 %v10765_v4, %v8283_v45  ;;  %v5587_v17 = vpop.f32.mrf.mxu2  ;;  %v10853_v43 = vld [vmem:[#allocation5 + $0xcec] sm:$0xf]  ;;  %v8635_v44 = vld [vmem:[#allocation5 + $0xcf8] sm:$0xf0]  ;;  %v8398_v6 = vor.u32 %v10793_v56, %v8395_v10 }
 0x2af   :  { %5839 = vmatpush.bf16.msra.mxu2 %v8334_v49  ;;  %v10729_v49 = vld [vmem:[#allocation5 + $0x90c] sm:$0xf]  ;;  %v8891_v9 = vld [vmem:[#allocation5 + $0xef8] sm:$0xf0]  ;;  %v8638_v51 = vor.u32 %v10853_v43, %v8635_v44 }
 0x2b0   :  { %5852 = vmatpush.bf16.msra.mxu3 %v8462_v55  ;;  %v8267_v55 = vld [vmem:[#allocation5 + $0xa18] sm:$0xf0]  ;;  %v10885_v8 = vld [vmem:[#allocation5 + $0xdec] sm:$0xf]  ;;  %v8142_v63 = vor.u32 %v10729_v49, %v8139_v50 }
 0x2b1   :  { %5814 = vmatpush.bf16.msra.mxu0 %v8062_v59  ;;  %v5600_v59 = vpop.f32.mrf.mxu3  ;;  %v10917_v62 = vld [vmem:[#allocation5 + $0xeec] sm:$0xf]  ;;  %v9019_v25 = vld [vmem:[#allocation5 + $0xff8] sm:$0xf0] }
 0x2b2   :  { %5827 = vmatpush.bf16.msra.mxu1 %v8190_v57  ;;  %v8014_v57 = vor.u32 %v10697_v38, %v8011_v12  ;;  %v10949_v53 = vld [vmem:[#allocation5 + $0xfec] sm:$0xf]  ;;  %v8894_v11 = vor.u32 %v10917_v62, %v8891_v9  ;;  %v8619_v16 = vld [vmem:[#allocation5 + $0xcd8] sm:$0xf0] }
 0x2b3   :  { %5840 = vmatpush.bf16.msra.mxu2 %v8318_v60  ;;  %v8763_v60 = vld [vmem:[#allocation5 + $0xdf8] sm:$0xf0]  ;;  %v10849_v14 = vld [vmem:[#allocation5 + $0xccc] sm:$0xf] }
 0x2b4   :  { %5853 = vmatpush.bf16.msra.mxu3 %v8446_v15  ;;  %v8270_v15 = vor.u32 %v10761_v52, %v8267_v55  ;;  %v8766_v7 = vor.u32 %v10885_v8, %v8763_v60  ;;  %v10881_v21 = vld [vmem:[#allocation5 + $0xdcc] sm:$0xf]  ;;  %v8747_v58 = vld [vmem:[#allocation5 + $0xdd8] sm:$0xf0]  ;;  %v8622_v34 = vor.u32 %v10849_v14, %v8619_v16 }
 0x2b5   :  { %5815 = vmatpush.bf16.msra.mxu0 %v8046_v28  ;;  %v9022_v28 = vor.u32 %v10949_v53, %v9019_v25  ;;  %v10945_v35 = vld [vmem:[#allocation5 + $0xfcc] sm:$0xf]  ;;  %v9003_v3 = vld [vmem:[#allocation5 + $0xfd8] sm:$0xf0] }
 0x2b6   :  { %5828 = vmatpush.bf16.msra.mxu1 %v8174_v30  ;;  %v10913_v30 = vld [vmem:[#allocation5 + $0xecc] sm:$0xf]  ;;  %v8603_v45 = vld [vmem:[#allocation5 + $0xcb8] sm:$0xf0]  ;;  %v9006_v37 = vor.u32 %v10945_v35, %v9003_v3 }
 0x2b7   :  { %5841 = vmatpush.bf16.msra.mxu2 %v8302_v33  ;;  %v8875_v33 = vld [vmem:[#allocation5 + $0xed8] sm:$0xf0]  ;;  %v10845_v4 = vld [vmem:[#allocation5 + $0xcac] sm:$0xf] }
 0x2b8   :  { %5854 = vmatpush.bf16.msra.mxu3 %v8430_v39  ;;  %v8750_v39 = vor.u32 %v10881_v21, %v8747_v58  ;;  %v8878_v41 = vor.u32 %v10913_v30, %v8875_v33  ;;  %v10877_v46 = vld [vmem:[#allocation5 + $0xdac] sm:$0xf]  ;;  %v8859_v12 = vld [vmem:[#allocation5 + $0xeb8] sm:$0xf0]  ;;  %v8606_v49 = vor.u32 %v10845_v4, %v8603_v45 }
 0x2b9   :  { %5816 = vmatpush.bf16.msra.mxu0 %v8030_v47  ;;  %v8731_v47 = vld [vmem:[#allocation5 + $0xdb8] sm:$0xf0]  ;;  %v10909_v38 = vld [vmem:[#allocation5 + $0xeac] sm:$0xf] }
 0x2ba   :  { %5829 = vmatpush.bf16.msra.mxu1 %v8158_v40  ;;  %v10941_v40 = vld [vmem:[#allocation5 + $0xfac] sm:$0xf]  ;;  %v8734_v50 = vor.u32 %v10877_v46, %v8731_v47  ;;  %v8862_v52 = vor.u32 %v10909_v38, %v8859_v12  ;;  %v8715_v10 = vld [vmem:[#allocation5 + $0xd98] sm:$0xf0] }
 0x2bb   :  { %5842 = vmatpush.bf16.msra.mxu2 %v8286_v48  ;;  %v8987_v48 = vld [vmem:[#allocation5 + $0xfb8] sm:$0xf0]  ;;  %v10873_v55 = vld [vmem:[#allocation5 + $0xd8c] sm:$0xf] }
 0x2bc   :  { %5855 = vmatpush.bf16.msra.mxu3 %v8414_v54  ;;  %v10841_v54 = vld [vmem:[#allocation5 + $0xc8c] sm:$0xf]  ;;  %v8990_v56 = vor.u32 %v10941_v40, %v8987_v48  ;;  %v8971_v44 = vld [vmem:[#allocation5 + $0xf98] sm:$0xf0] }
 0x2bd   :  { %5817 = vmatpush.bf16.msra.mxu0 %v8014_v57  ;;  %v10905_v17 = vld [vmem:[#allocation5 + $0xe8c] sm:$0xf]  ;;  %v5611_v43 = vpop.f32.mrf.mxu0  ;;  %v8718_v57 = vor.u32 %v10873_v55, %v8715_v10  ;;  %v8571_v9 = vld [vmem:[#allocation5 + $0xc78] sm:$0xf0] }
 0x2be   :  { %5830 = vmatpush.bf16.msra.mxu1 %v8142_v63  ;;  %v5624_v59 = vpop.f32.mrf.mxu1  ;;  %v10837_v62 = vld [vmem:[#allocation5 + $0xc6c] sm:$0xf]  ;;  %v8699_v25 = vld [vmem:[#allocation5 + $0xd78] sm:$0xf0] }
 0x2bf   :  { %5843 = vmatpush.bf16.msra.mxu2 %v8270_v15  ;;  %v10869_v63 = vld [vmem:[#allocation5 + $0xd6c] sm:$0xf]  ;;  %v8574_v14 = vor.u32 %v10837_v62, %v8571_v9  ;;  %v8683_v35 = vld [vmem:[#allocation5 + $0xd58] sm:$0xf0] }
 0x2c0   :  { %5856 = vmatpush.bf16.msra.mxu3 %v8398_v6  ;;  %5818 = vmatmul.bf16.vlgmr.msra.gmra.mxu0 %v11571_v18  ;;  %v8587_v18 = vld [vmem:[#allocation5 + $0xc98] sm:$0xf0]  ;;  %v10901_v6 = vld [vmem:[#allocation5 + $0xe6c] sm:$0xf] }
 0x2c1   :  { %5862 = vmatpush.bf16.msrb.mxu0 %v8638_v51  ;;  %5831 = vmatmul.bf16.vlgmr.msra.gmra.mxu1 %v11575_v23  ;;  %v10937_v23 = vld [vmem:[#allocation5 + $0xf8c] sm:$0xf]  ;;  %v8590_v8 = vor.u32 %v10841_v54, %v8587_v18  ;;  %v8827_v51 = vld [vmem:[#allocation5 + $0xe78] sm:$0xf0] }
 0x2c2   :  { %5875 = vmatpush.bf16.msrb.mxu1 %v8766_v7  ;;  %5844 = vmatmul.bf16.vlgmr.msra.gmra.mxu2 %v11573_v22  ;;  %v8843_v22 = vld [vmem:[#allocation5 + $0xe98] sm:$0xf0]  ;;  %v8974_v15 = vor.u32 %v10937_v23, %v8971_v44  ;;  %v10933_v7 = vld [vmem:[#allocation5 + $0xf6c] sm:$0xf]  ;;  %v8830_v16 = vor.u32 %v10901_v6, %v8827_v51 }
 0x2c3   :  { %5888 = vmatpush.bf16.msrb.mxu2 %v8894_v11  ;;  %5857 = vmatmul.bf16.vlgmr.msra.gmra.mxu3 %v11577_v27  ;;  %v5612_v27 = vadd.f32 %v5611_v43, %v11718_v0  ;;  %v8846_v60 = vor.u32 %v10905_v17, %v8843_v22  ;;  %v8955_v11 = vld [vmem:[#allocation5 + $0xf78] sm:$0xf0]  ;;  %v8702_v0 = vor.u32 %v10869_v63, %v8699_v25  ;;  %v10833_v21 = vld [vmem:[#allocation5 + $0xc4c] sm:$0xf] }
 0x2c4   :  { %5901 = vmatpush.bf16.msrb.mxu3 %v9022_v28  ;;  %v8555_v28 = vld [vmem:[#allocation5 + $0xc58] sm:$0xf0]  ;;  %v10865_v58 = vld [vmem:[#allocation5 + $0xd4c] sm:$0xf]  ;;  %v8958_v30 = vor.u32 %v10933_v7, %v8955_v11 }
 0x2c5   :  { %5863 = vmatpush.bf16.msrb.mxu0 %v8622_v34  ;;  %v5625_v53 = vadd.f32 %v5624_v59, %v5612_v27  ;;  %v5637_v33 = vpop.f32.mrf.mxu2  ;;  %v10897_v3 = vld [vmem:[#allocation5 + $0xe4c] sm:$0xf]  ;;  %v8811_v34 = vld [vmem:[#allocation5 + $0xe58] sm:$0xf0]  ;;  %v5613_v46 = vpop.f32.mrf.mxu0  ;;  %v8686_v12 = vor.u32 %v10865_v58, %v8683_v35 }
 0x2c6   :  { %5876 = vmatpush.bf16.msrb.mxu1 %v8750_v39  ;;  %v10929_v4 = vld [vmem:[#allocation5 + $0xf4c] sm:$0xf]  ;;  %v8939_v45 = vld [vmem:[#allocation5 + $0xf58] sm:$0xf0]  ;;  %v5626_v47 = vpop.f32.mrf.mxu1  ;;  %v8814_v40 = vor.u32 %v10897_v3, %v8811_v34 }
 0x2c7   :  { %5889 = vmatpush.bf16.msrb.mxu2 %v8878_v41  ;;  %v5638_v39 = vadd.f32 %v5637_v33, %v5625_v53  ;;  %v5650_v41 = vpop.f32.mrf.mxu3  ;;  %v10829_v48 = vld [vmem:[#allocation5 + $0xc2c] sm:$0xf]  ;;  %v8667_v54 = vld [vmem:[#allocation5 + $0xd38] sm:$0xf0] }
 0x2c8   :  { %5902 = vmatpush.bf16.msrb.mxu3 %v9006_v37  ;;  %v8558_v37 = vor.u32 %v10833_v21, %v8555_v28  ;;  %v10893_v18 = vld [vmem:[#allocation5 + $0xe2c] sm:$0xf]  ;;  %v8795_v55 = vld [vmem:[#allocation5 + $0xe38] sm:$0xf0] }
 0x2c9   :  { %5864 = vmatpush.bf16.msrb.mxu0 %v8606_v49  ;;  %v11725_v38 = vadd.f32 %v5650_v41, %v5638_v39  ;;  %v8539_v49 = vld [vmem:[#allocation5 + $0xc38] sm:$0xf0]  ;;  %v10825_v22 = vld [vmem:[#allocation5 + $0xc0c] sm:$0xf]  ;;  %v8798_v44 = vor.u32 %v10893_v18, %v8795_v55 }
 0x2ca   :  { %5877 = vmatpush.bf16.msrb.mxu1 %v8734_v50  ;;  %v10861_v50 = vld [vmem:[#allocation5 + $0xd2c] sm:$0xf]  ;;  %v8923_v10 = vld [vmem:[#allocation5 + $0xf38] sm:$0xf0]  ;;  %v8542_v17 = vor.u32 %v10829_v48, %v8539_v49 }
 0x2cb   :  { %5890 = vmatpush.bf16.msrb.mxu2 %v8862_v52  ;;  %v8942_v52 = vor.u32 %v10929_v4, %v8939_v45  ;;  %v8523_v43 = vld [vmem:[#allocation5 + $0xc18] sm:$0xf0]  ;;  %v8670_v23 = vor.u32 %v10861_v50, %v8667_v54  ;;  %v10857_v27 = vld [vmem:[#allocation5 + $0xd0c] sm:$0xf] }
 0x2cc   :  { %5903 = vmatpush.bf16.msrb.mxu3 %v8990_v56  ;;  %v10925_v56 = vld [vmem:[#allocation5 + $0xf2c] sm:$0xf]  ;;  %v8907_v9 = vld [vmem:[#allocation5 + $0xf18] sm:$0xf0]  ;;  %v8526_v51 = vor.u32 %v10825_v22, %v8523_v43 }
 0x2cd   :  { %5865 = vmatpush.bf16.msrb.mxu0 %v8590_v8  ;;  %v8651_v8 = vld [vmem:[#allocation5 + $0xd18] sm:$0xf0]  ;;  %v10889_v59 = vld [vmem:[#allocation5 + $0xe0c] sm:$0xf]  ;;  %v5639_v63 = vpop.f32.mrf.mxu2 }
 0x2ce   :  { %5878 = vmatpush.bf16.msrb.mxu1 %v8718_v57  ;;  %v8926_v57 = vor.u32 %v10925_v56, %v8923_v10  ;;  %v10921_v62 = vld [vmem:[#allocation5 + $0xf0c] sm:$0xf]  ;;  %v9147_v53 = vld [vmem:[#allocation5 + $0x10f8] sm:$0xf0] }
 0x2cf   :  { %5891 = vmatpush.bf16.msrb.mxu2 %v8846_v60  ;;  %v8779_v60 = vld [vmem:[#allocation5 + $0xe18] sm:$0xf0]  ;;  %v11013_v25 = vld [vmem:[#allocation5 + $0x11ec] sm:$0xf]  ;;  %v5652_v6 = vpop.f32.mrf.mxu3  ;;  %v8910_v58 = vor.u32 %v10921_v62, %v8907_v9 }
 0x2d0   :  { %5904 = vmatpush.bf16.msrb.mxu3 %v8974_v15  ;;  %v10981_v15 = vld [vmem:[#allocation5 + $0x10ec] sm:$0xf]  ;;  %v9275_v7 = vld [vmem:[#allocation5 + $0x11f8] sm:$0xf0] }
 0x2d1   :  { %5866 = vmatpush.bf16.msrb.mxu0 %v8574_v14  ;;  %v11045_v11 = vld [vmem:[#allocation5 + $0x12ec] sm:$0xf]  ;;  %v9403_v14 = vld [vmem:[#allocation5 + $0x12f8] sm:$0xf0]  ;;  %v9278_v33 = vor.u32 %v11013_v25, %v9275_v7 }
 0x2d2   :  { %5879 = vmatpush.bf16.msrb.mxu1 %v8702_v0  ;;  %v8654_v0 = vor.u32 %v10857_v27, %v8651_v8  ;;  %v11077_v21 = vld [vmem:[#allocation5 + $0x13ec] sm:$0xf]  ;;  %v9531_v28 = vld [vmem:[#allocation5 + $0x13f8] sm:$0xf0]  ;;  %v9406_v35 = vor.u32 %v11045_v11, %v9403_v14 }
 0x2d3   :  { %5892 = vmatpush.bf16.msrb.mxu2 %v8830_v16  ;;  %v8782_v16 = vor.u32 %v10889_v59, %v8779_v60  ;;  %v10977_v3 = vld [vmem:[#allocation5 + $0x10cc] sm:$0xf]  ;;  %v9131_v34 = vld [vmem:[#allocation5 + $0x10d8] sm:$0xf0]  ;;  %v9534_v41 = vor.u32 %v11077_v21, %v9531_v28 }
 0x2d4   :  { %5905 = vmatpush.bf16.msrb.mxu3 %v8958_v30  ;;  %v9150_v30 = vor.u32 %v10981_v15, %v9147_v53  ;;  %v11009_v39 = vld [vmem:[#allocation5 + $0x11cc] sm:$0xf]  ;;  %v9259_v4 = vld [vmem:[#allocation5 + $0x11d8] sm:$0xf0] }
 0x2d5   :  { %5867 = vmatpush.bf16.msrb.mxu0 %v8558_v37  ;;  %v11041_v45 = vld [vmem:[#allocation5 + $0x12cc] sm:$0xf]  ;;  %v9387_v46 = vld [vmem:[#allocation5 + $0x12d8] sm:$0xf0] }
 0x2d6   :  { %5880 = vmatpush.bf16.msrb.mxu1 %v8686_v12  ;;  %v11073_v37 = vld [vmem:[#allocation5 + $0x13cc] sm:$0xf]  ;;  %v9515_v47 = vld [vmem:[#allocation5 + $0x13d8] sm:$0xf0]  ;;  %v9134_v12 = vor.u32 %v10977_v3, %v9131_v34  ;;  %v9390_v48 = vor.u32 %v11041_v45, %v9387_v46 }
 0x2d7   :  { %5893 = vmatpush.bf16.msrb.mxu2 %v8814_v40  ;;  %v9262_v40 = vor.u32 %v11009_v39, %v9259_v4  ;;  %v10973_v49 = vld [vmem:[#allocation5 + $0x10ac] sm:$0xf]  ;;  %v9115_v50 = vld [vmem:[#allocation5 + $0x10b8] sm:$0xf0]  ;;  %v9518_v54 = vor.u32 %v11073_v37, %v9515_v47 }
 0x2d8   :  { %5906 = vmatpush.bf16.msrb.mxu3 %v8942_v52  ;;  %v11005_v52 = vld [vmem:[#allocation5 + $0x11ac] sm:$0xf]  ;;  %v9243_v18 = vld [vmem:[#allocation5 + $0x11b8] sm:$0xf0]  ;;  %v9118_v22 = vor.u32 %v10973_v49, %v9115_v50 }
 0x2d9   :  { %5868 = vmatpush.bf16.msrb.mxu0 %v8542_v17  ;;  %v11037_v55 = vld [vmem:[#allocation5 + $0x12ac] sm:$0xf]  ;;  %v9371_v56 = vld [vmem:[#allocation5 + $0x12b8] sm:$0xf0]  ;;  %v9246_v43 = vor.u32 %v11005_v52, %v9243_v18 }
 0x2da   :  { %5881 = vmatpush.bf16.msrb.mxu1 %v8670_v23  ;;  %v11069_v10 = vld [vmem:[#allocation5 + $0x13ac] sm:$0xf]  ;;  %v9499_v17 = vld [vmem:[#allocation5 + $0x13b8] sm:$0xf0]  ;;  %v9374_v23 = vor.u32 %v11037_v55, %v9371_v56 }
 0x2db   :  { %5894 = vmatpush.bf16.msrb.mxu2 %v8798_v44  ;;  %v10969_v44 = vld [vmem:[#allocation5 + $0x108c] sm:$0xf]  ;;  %v9502_v8 = vor.u32 %v11069_v10, %v9499_v17  ;;  %v9227_v59 = vld [vmem:[#allocation5 + $0x1198] sm:$0xf0] }
 0x2dc   :  { %5907 = vmatpush.bf16.msrb.mxu3 %v8926_v57  ;;  %v11001_v27 = vld [vmem:[#allocation5 + $0x118c] sm:$0xf]  ;;  %v9483_v62 = vld [vmem:[#allocation5 + $0x1398] sm:$0xf0] }
 0x2dd   :  { %5869 = vmatpush.bf16.msrb.mxu0 %v8526_v51  ;;  %v11033_v57 = vld [vmem:[#allocation5 + $0x128c] sm:$0xf]  ;;  %v5663_v60 = vpop.f32.mrf.mxu0  ;;  %v9230_v15 = vor.u32 %v11001_v27, %v9227_v59  ;;  %v9083_v6 = vld [vmem:[#allocation5 + $0x1078] sm:$0xf0] }
 0x2de   :  { %5882 = vmatpush.bf16.msrb.mxu1 %v8654_v0  ;;  %v5676_v63 = vpop.f32.mrf.mxu1  ;;  %v10965_v25 = vld [vmem:[#allocation5 + $0x106c] sm:$0xf]  ;;  %v9211_v14 = vld [vmem:[#allocation5 + $0x1178] sm:$0xf0] }
 0x2df   :  { %5895 = vmatpush.bf16.msrb.mxu2 %v8782_v16  ;;  %v10997_v51 = vld [vmem:[#allocation5 + $0x116c] sm:$0xf]  ;;  %v9339_v16 = vld [vmem:[#allocation5 + $0x1278] sm:$0xf0] }
 0x2e0   :  { %5908 = vmatpush.bf16.msrb.mxu3 %v8910_v58  ;;  %5870 = vmatmul.bf16.vlgmr.msrb.gmra.mxu0 %v11583_v13  ;;  %v9099_v13 = vld [vmem:[#allocation5 + $0x1098] sm:$0xf0]  ;;  %v11029_v0 = vld [vmem:[#allocation5 + $0x126c] sm:$0xf]  ;;  %v9086_v58 = vor.u32 %v10965_v25, %v9083_v6 }
 0x2e1   :  { %5914 = vmatpush.bf16.msra.mxu0 %v9150_v30  ;;  %5883 = vmatmul.bf16.vlgmr.msrb.gmra.mxu1 %v11587_v20  ;;  %v11065_v20 = vld [vmem:[#allocation5 + $0x138c] sm:$0xf]  ;;  %v9102_v9 = vor.u32 %v10969_v44, %v9099_v13  ;;  %v9467_v28 = vld [vmem:[#allocation5 + $0x1378] sm:$0xf0]  ;;  %v9342_v30 = vor.u32 %v11029_v0, %v9339_v16 }
 0x2e2   :  { %5927 = vmatpush.bf16.msra.mxu1 %v9278_v33  ;;  %5896 = vmatmul.bf16.vlgmr.msrb.gmra.mxu2 %v11585_v19  ;;  %v9355_v19 = vld [vmem:[#allocation5 + $0x1298] sm:$0xf0]  ;;  %v9486_v7 = vor.u32 %v11065_v20, %v9483_v62  ;;  %v11061_v21 = vld [vmem:[#allocation5 + $0x136c] sm:$0xf] }
 0x2e3   :  { %5940 = vmatpush.bf16.msra.mxu2 %v9406_v35  ;;  %5909 = vmatmul.bf16.vlgmr.msrb.gmra.mxu3 %v11589_v26  ;;  %v5664_v26 = vadd.f32 %v5663_v60, %v11725_v38  ;;  %v9358_v53 = vor.u32 %v11033_v57, %v9355_v19  ;;  %v9214_v38 = vor.u32 %v10997_v51, %v9211_v14  ;;  %v10961_v33 = vld [vmem:[#allocation5 + $0x104c] sm:$0xf]  ;;  %v9067_v35 = vld [vmem:[#allocation5 + $0x1058] sm:$0xf0] }
 0x2e4   :  { %5953 = vmatpush.bf16.msra.mxu3 %v9534_v41  ;;  %v10993_v3 = vld [vmem:[#allocation5 + $0x114c] sm:$0xf]  ;;  %v9470_v34 = vor.u32 %v11061_v21, %v9467_v28  ;;  %v9195_v41 = vld [vmem:[#allocation5 + $0x1158] sm:$0xf0] }
 0x2e5   :  { %5915 = vmatpush.bf16.msra.mxu0 %v9134_v12  ;;  %v5677_v11 = vadd.f32 %v5676_v63, %v5664_v26  ;;  %v5689_v39 = vpop.f32.mrf.mxu2  ;;  %v11025_v4 = vld [vmem:[#allocation5 + $0x124c] sm:$0xf]  ;;  %v9323_v45 = vld [vmem:[#allocation5 + $0x1258] sm:$0xf0]  ;;  %v9198_v52 = vor.u32 %v10993_v3, %v9195_v41 }
 0x2e6   :  { %5928 = vmatpush.bf16.msra.mxu1 %v9262_v40  ;;  %v5702_v37 = vpop.f32.mrf.mxu3  ;;  %v11057_v47 = vld [vmem:[#allocation5 + $0x134c] sm:$0xf]  ;;  %v9451_v12 = vld [vmem:[#allocation5 + $0x1358] sm:$0xf0]  ;;  %v5665_v40 = vpop.f32.mrf.mxu0 }
 0x2e7   :  { %5941 = vmatpush.bf16.msra.mxu2 %v9390_v48  ;;  %v5690_v46 = vadd.f32 %v5689_v39, %v5677_v11  ;;  %v9070_v48 = vor.u32 %v10961_v33, %v9067_v35  ;;  %v5678_v49 = vpop.f32.mrf.mxu1  ;;  %v10957_v18 = vld [vmem:[#allocation5 + $0x102c] sm:$0xf]  ;;  %v9051_v55 = vld [vmem:[#allocation5 + $0x1038] sm:$0xf0]  ;;  %v9454_v10 = vor.u32 %v11057_v47, %v9451_v12 }
 0x2e8   :  { %5954 = vmatpush.bf16.msra.mxu3 %v9518_v54  ;;  %v9326_v54 = vor.u32 %v11025_v4, %v9323_v45  ;;  %v10989_v56 = vld [vmem:[#allocation5 + $0x112c] sm:$0xf]  ;;  %v9179_v17 = vld [vmem:[#allocation5 + $0x1138] sm:$0xf0]  ;;  %v9054_v13 = vor.u32 %v10957_v18, %v9051_v55 }
 0x2e9   :  { %5916 = vmatpush.bf16.msra.mxu0 %v9118_v22  ;;  %v11732_v50 = vadd.f32 %v5702_v37, %v5690_v46  ;;  %v11021_v22 = vld [vmem:[#allocation5 + $0x122c] sm:$0xf]  ;;  %v9435_v44 = vld [vmem:[#allocation5 + $0x1338] sm:$0xf0]  ;;  %v9182_v59 = vor.u32 %v10989_v56, %v9179_v17 }
 0x2ea   :  { %5929 = vmatpush.bf16.msra.mxu1 %v9246_v43  ;;  %v9307_v43 = vld [vmem:[#allocation5 + $0x1238] sm:$0xf0]  ;;  %v10953_v27 = vld [vmem:[#allocation5 + $0x100c] sm:$0xf] }
 0x2eb   :  { %5942 = vmatpush.bf16.msra.mxu2 %v9374_v23  ;;  %v11053_v23 = vld [vmem:[#allocation5 + $0x132c] sm:$0xf]  ;;  %v9310_v57 = vor.u32 %v11021_v22, %v9307_v43  ;;  %v9163_v60 = vld [vmem:[#allocation5 + $0x1118] sm:$0xf0] }
 0x2ec   :  { %5955 = vmatpush.bf16.msra.mxu3 %v9502_v8  ;;  %v9035_v8 = vld [vmem:[#allocation5 + $0x1018] sm:$0xf0]  ;;  %v10985_v19 = vld [vmem:[#allocation5 + $0x110c] sm:$0xf]  ;;  %v9438_v62 = vor.u32 %v11053_v23, %v9435_v44 }
 0x2ed   :  { %5917 = vmatpush.bf16.msra.mxu0 %v9102_v9  ;;  %v11017_v20 = vld [vmem:[#allocation5 + $0x120c] sm:$0xf]  ;;  %v9291_v26 = vld [vmem:[#allocation5 + $0x1218] sm:$0xf0]  ;;  %v9166_v16 = vor.u32 %v10985_v19, %v9163_v60 }
 0x2ee   :  { %5930 = vmatpush.bf16.msra.mxu1 %v9230_v15  ;;  %v11049_v9 = vld [vmem:[#allocation5 + $0x130c] sm:$0xf]  ;;  %v9419_v63 = vld [vmem:[#allocation5 + $0x1318] sm:$0xf0]  ;;  %v5691_v15 = vpop.f32.mrf.mxu2  ;;  %v5704_v51 = vpop.f32.mrf.mxu3  ;;  %v9294_v21 = vor.u32 %v11017_v20, %v9291_v26 }
 0x2ef   :  { %5943 = vmatpush.bf16.msra.mxu2 %v9358_v53  ;;  %v11109_v53 = vld [vmem:[#allocation5 + $0x14ec] sm:$0xf]  ;;  %v9659_v25 = vld [vmem:[#allocation5 + $0x14f8] sm:$0xf0] }
 0x2f0   :  { %5956 = vmatpush.bf16.msra.mxu3 %v9486_v7  ;;  %v11141_v6 = vld [vmem:[#allocation5 + $0x15ec] sm:$0xf]  ;;  %v9038_v7 = vor.u32 %v10953_v27, %v9035_v8  ;;  %v9787_v11 = vld [vmem:[#allocation5 + $0x15f8] sm:$0xf0] }
 0x2f1   :  { %5918 = vmatpush.bf16.msra.mxu0 %v9086_v58  ;;  %v11173_v14 = vld [vmem:[#allocation5 + $0x16ec] sm:$0xf]  ;;  %v9915_v0 = vld [vmem:[#allocation5 + $0x16f8] sm:$0xf0]  ;;  %v9790_v33 = vor.u32 %v11141_v6, %v9787_v11 }
 0x2f2   :  { %5931 = vmatpush.bf16.msra.mxu1 %v9214_v38  ;;  %v11205_v28 = vld [vmem:[#allocation5 + $0x17ec] sm:$0xf]  ;;  %v10043_v58 = vld [vmem:[#allocation5 + $0x17f8] sm:$0xf0]  ;;  %v9422_v38 = vor.u32 %v11049_v9, %v9419_v63  ;;  %v9918_v35 = vor.u32 %v11173_v14, %v9915_v0 }
 0x2f3   :  { %5944 = vmatpush.bf16.msra.mxu2 %v9342_v30  ;;  %v9662_v30 = vor.u32 %v11109_v53, %v9659_v25  ;;  %v11105_v3 = vld [vmem:[#allocation5 + $0x14cc] sm:$0xf]  ;;  %v10046_v41 = vor.u32 %v11205_v28, %v10043_v58  ;;  %v9771_v4 = vld [vmem:[#allocation5 + $0x15d8] sm:$0xf0] }
 0x2f4   :  { %5957 = vmatpush.bf16.msra.mxu3 %v9470_v34  ;;  %v9643_v34 = vld [vmem:[#allocation5 + $0x14d8] sm:$0xf0]  ;;  %v11137_v39 = vld [vmem:[#allocation5 + $0x15cc] sm:$0xf] }
 0x2f5   :  { %5919 = vmatpush.bf16.msra.mxu0 %v9070_v48  ;;  %v11169_v45 = vld [vmem:[#allocation5 + $0x16cc] sm:$0xf]  ;;  %v9899_v46 = vld [vmem:[#allocation5 + $0x16d8] sm:$0xf0]  ;;  %v9646_v12 = vor.u32 %v11105_v3, %v9643_v34  ;;  %v9774_v40 = vor.u32 %v11137_v39, %v9771_v4 }
 0x2f6   :  { %5932 = vmatpush.bf16.msra.mxu1 %v9198_v52  ;;  %v11201_v37 = vld [vmem:[#allocation5 + $0x17cc] sm:$0xf]  ;;  %v10027_v47 = vld [vmem:[#allocation5 + $0x17d8] sm:$0xf0]  ;;  %v9902_v48 = vor.u32 %v11169_v45, %v9899_v46 }
 0x2f7   :  { %5945 = vmatpush.bf16.msra.mxu2 %v9326_v54  ;;  %v11101_v49 = vld [vmem:[#allocation5 + $0x14ac] sm:$0xf]  ;;  %v9627_v52 = vld [vmem:[#allocation5 + $0x14b8] sm:$0xf0]  ;;  %v10030_v18 = vor.u32 %v11201_v37, %v10027_v47 }
 0x2f8   :  { %5958 = vmatpush.bf16.msra.mxu3 %v9454_v10  ;;  %v11133_v54 = vld [vmem:[#allocation5 + $0x15ac] sm:$0xf]  ;;  %v9755_v55 = vld [vmem:[#allocation5 + $0x15b8] sm:$0xf0]  ;;  %v9630_v43 = vor.u32 %v11101_v49, %v9627_v52 }
 0x2f9   :  { %5920 = vmatpush.bf16.msra.mxu0 %v9054_v13  ;;  %v11165_v56 = vld [vmem:[#allocation5 + $0x16ac] sm:$0xf]  ;;  %v9883_v10 = vld [vmem:[#allocation5 + $0x16b8] sm:$0xf0]  ;;  %v9758_v44 = vor.u32 %v11133_v54, %v9755_v55 }
 0x2fa   :  { %5933 = vmatpush.bf16.msra.mxu1 %v9182_v59  ;;  %v11197_v17 = vld [vmem:[#allocation5 + $0x17ac] sm:$0xf]  ;;  %v10011_v22 = vld [vmem:[#allocation5 + $0x17b8] sm:$0xf0]  ;;  %v9886_v13 = vor.u32 %v11165_v56, %v9883_v10 }
 0x2fb   :  { %5946 = vmatpush.bf16.msra.mxu2 %v9310_v57  ;;  %v11097_v23 = vld [vmem:[#allocation5 + $0x148c] sm:$0xf]  ;;  %v11325_v8 = vld [vmem:[#allocation10] ss:$8 sm:$0xf]  ;;  %v10014_v57 = vor.u32 %v11197_v17, %v10011_v22 }
 0x2fc   :  { %5959 = vmatpush.bf16.msra.mxu3 %v9438_v62  ;;  %v11129_v27 = vld [vmem:[#allocation5 + $0x158c] sm:$0xf]  ;;  %v925_v59 = vperm.slane %v11325_v8, 3  ;;  %v9995_v20 = vld [vmem:[#allocation5 + $0x1798] sm:$0xf0] }
 0x2fd   :  { %5921 = vmatpush.bf16.msra.mxu0 %v9038_v7  ;;  %v11161_v19 = vld [vmem:[#allocation5 + $0x168c] sm:$0xf]  ;;  %v5715_v62 = vpop.f32.mrf.mxu0  ;;  %v9595_v15 = vld [vmem:[#allocation5 + $0x1478] sm:$0xf0] }
 0x2fe   :  { %5934 = vmatpush.bf16.msra.mxu1 %v9166_v16  ;;  %v11193_v60 = vld [vmem:[#allocation5 + $0x178c] sm:$0xf]  ;;  %v5716_v25 = vadd.f32 %v5715_v62, %v925_v59  ;;  %v5728_v6 = vpop.f32.mrf.mxu1  ;;  %v9723_v7 = vld [vmem:[#allocation5 + $0x1578] sm:$0xf0] }
 0x2ff   :  { %5947 = vmatpush.bf16.msra.mxu2 %v9294_v21  ;;  %v11093_v63 = vld [vmem:[#allocation5 + $0x146c] sm:$0xf]  ;;  %v9998_v51 = vor.u32 %v11193_v60, %v9995_v20  ;;  %v9851_v14 = vld [vmem:[#allocation5 + $0x1678] sm:$0xf0] }
 0x300   :  { %5960 = vmatpush.bf16.msra.mxu3 %v9422_v38  ;;  %5922 = vmatmul.bf16.vlgmr.msra.gmra.mxu0 %v11595_v24  ;;  %v9611_v24 = vld [vmem:[#allocation5 + $0x1498] sm:$0xf0]  ;;  %v11125_v53 = vld [vmem:[#allocation5 + $0x156c] sm:$0xf]  ;;  %v5729_v21 = vadd.f32 %v5728_v6, %v5716_v25  ;;  %v9598_v28 = vor.u32 %v11093_v63, %v9595_v15  ;;  %v11223_v63 = vld [vmem:[#allocation7 + $0x74] sm:$0xf0] }
 0x301   :  { %5966 = vmatpush.bf16.msrb.mxu0 %v9662_v30  ;;  %5935 = vmatmul.bf16.vlgmr.msra.gmra.mxu1 %v11599_v32  ;;  %v9867_v32 = vld [vmem:[#allocation5 + $0x1698] sm:$0xf0]  ;;  %v11157_v11 = vld [vmem:[#allocation5 + $0x166c] sm:$0xf]  ;;  %v9726_v58 = vor.u32 %v11125_v53, %v9723_v7  ;;  %v10169_v15 = vld [vmem:[#allocation7 + $0xf0] sm:$0xf] }
 0x302   :  { %5979 = vmatpush.bf16.msrb.mxu1 %v9790_v33  ;;  %5948 = vmatmul.bf16.vlgmr.msra.gmra.mxu2 %v11597_v31  ;;  %v9739_v31 = vld [vmem:[#allocation5 + $0x1598] sm:$0xf0]  ;;  %v9870_v9 = vor.u32 %v11161_v19, %v9867_v32  ;;  %v11189_v0 = vld [vmem:[#allocation5 + $0x176c] sm:$0xf]  ;;  %v9854_v38 = vor.u32 %v11157_v11, %v9851_v14  ;;  %v11239_v25 = vld [vmem:[#allocation7 + $0xf4] sm:$0xf0] }
 0x303   :  { %5992 = vmatpush.bf16.msrb.mxu2 %v9918_v35  ;;  %5961 = vmatmul.bf16.vlgmr.msra.gmra.mxu3 %v11601_v36  ;;  %v9614_v36 = vor.u32 %v11097_v23, %v9611_v24  ;;  %v9742_v26 = vor.u32 %v11129_v27, %v9739_v31  ;;  %v9979_v16 = vld [vmem:[#allocation5 + $0x1778] sm:$0xf0]  ;;  %v11089_v30 = vld [vmem:[#allocation5 + $0x144c] sm:$0xf]  ;;  %v10233_v6 = vld [vmem:[#allocation7 + $0x170] sm:$0xf] }
 0x304   :  { %6005 = vmatpush.bf16.msrb.mxu3 %v10046_v41  ;;  %v9579_v33 = vld [vmem:[#allocation5 + $0x1458] sm:$0xf0]  ;;  %v11121_v35 = vld [vmem:[#allocation5 + $0x154c] sm:$0xf]  ;;  %v9982_v34 = vor.u32 %v11189_v0, %v9979_v16  ;;  %v10170_v16 = vor.u32 %v11239_v25, %v10169_v15 }
 0x305   :  { %5967 = vmatpush.bf16.msrb.mxu0 %v9646_v12  ;;  %v5741_v3 = vpop.f32.mrf.mxu2  ;;  %v9707_v39 = vld [vmem:[#allocation5 + $0x1558] sm:$0xf0]  ;;  %v11153_v41 = vld [vmem:[#allocation5 + $0x164c] sm:$0xf]  ;;  %v9582_v12 = vor.u32 %v11089_v30, %v9579_v33  ;;  %v11237_v30 = vld [vmem:[#allocation7 + $0xe4] sm:$0xf0] }
 0x306   :  { %5980 = vmatpush.bf16.msrb.mxu1 %v9774_v40  ;;  %v9835_v4 = vld [vmem:[#allocation5 + $0x1658] sm:$0xf0]  ;;  %v5742_v45 = vadd.f32 %v5741_v3, %v5729_v21  ;;  %v5754_v46 = vpop.f32.mrf.mxu3  ;;  %v11185_v37 = vld [vmem:[#allocation5 + $0x174c] sm:$0xf]  ;;  %v9710_v49 = vor.u32 %v11121_v35, %v9707_v39  ;;  %v5730_v56 = vpop.f32.mrf.mxu1  ;;  %v10225_v33 = vld [vmem:[#allocation7 + $0x160] sm:$0xf] }
 0x307   :  { %5993 = vmatpush.bf16.msrb.mxu2 %v9902_v48  ;;  %v9963_v47 = vld [vmem:[#allocation5 + $0x1758] sm:$0xf0]  ;;  %v5717_v48 = vpop.f32.mrf.mxu0  ;;  %v9838_v52 = vor.u32 %v11153_v41, %v9835_v4  ;;  %v11085_v54 = vld [vmem:[#allocation5 + $0x142c] sm:$0xf]  ;;  %v11253_v35 = vld [vmem:[#allocation7 + $0x164] sm:$0xf0] }
 0x308   :  { %6006 = vmatpush.bf16.msrb.mxu3 %v10030_v18  ;;  %v11738_v40 = vadd.f32 %v5754_v46, %v5742_v45  ;;  %v9563_v18 = vld [vmem:[#allocation5 + $0x1438] sm:$0xf0]  ;;  %v11117_v55 = vld [vmem:[#allocation5 + $0x152c] sm:$0xf]  ;;  %v9966_v10 = vor.u32 %v11185_v37, %v9963_v47  ;;  %v10226_v39 = vor.u32 %v11253_v35, %v10225_v33  ;;  %v10089_v41 = vld [vmem:[#allocation7 + $0x50] sm:$0xf] }
 0x309   :  { %5968 = vmatpush.bf16.msrb.mxu0 %v9630_v43  ;;  %v9691_v17 = vld [vmem:[#allocation5 + $0x1538] sm:$0xf0]  ;;  %v11149_v22 = vld [vmem:[#allocation5 + $0x162c] sm:$0xf]  ;;  %v11219_v4 = vld [vmem:[#allocation7 + $0x54] sm:$0xf0] }
 0x30a   :  { %5981 = vmatpush.bf16.msrb.mxu1 %v9758_v44  ;;  %v9819_v43 = vld [vmem:[#allocation5 + $0x1638] sm:$0xf0]  ;;  %v11181_v23 = vld [vmem:[#allocation5 + $0x172c] sm:$0xf]  ;;  %v9694_v8 = vor.u32 %v11117_v55, %v9691_v17  ;;  %v10153_v45 = vld [vmem:[#allocation7 + $0xd0] sm:$0xf] }
 0x30b   :  { %5994 = vmatpush.bf16.msrb.mxu2 %v9886_v13  ;;  %v9947_v44 = vld [vmem:[#allocation5 + $0x1738] sm:$0xf0]  ;;  %v9566_v13 = vor.u32 %v11085_v54, %v9563_v18  ;;  %v11081_v24 = vld [vmem:[#allocation5 + $0x140c] sm:$0xf]  ;;  %v9822_v59 = vor.u32 %v11149_v22, %v9819_v43  ;;  %v11235_v46 = vld [vmem:[#allocation7 + $0xd4] sm:$0xf0] }
 0x30c   :  { %6007 = vmatpush.bf16.msrb.mxu3 %v10014_v57  ;;  %v9547_v27 = vld [vmem:[#allocation5 + $0x1418] sm:$0xf0]  ;;  %v11113_v57 = vld [vmem:[#allocation5 + $0x150c] sm:$0xf]  ;;  %v9950_v60 = vor.u32 %v11181_v23, %v9947_v44  ;;  %v10217_v37 = vld [vmem:[#allocation7 + $0x150] sm:$0xf]  ;;  %v10154_v48 = vor.u32 %v11235_v46, %v10153_v45 }
 0x30d   :  { %5969 = vmatpush.bf16.msrb.mxu0 %v9614_v36  ;;  %v9675_v31 = vld [vmem:[#allocation5 + $0x1518] sm:$0xf0]  ;;  %v11145_v19 = vld [vmem:[#allocation5 + $0x160c] sm:$0xf]  ;;  %v5743_v32 = vpop.f32.mrf.mxu2  ;;  %v9550_v53 = vor.u32 %v11081_v24, %v9547_v27  ;;  %v11251_v47 = vld [vmem:[#allocation7 + $0x154] sm:$0xf0] }
 0x30e   :  { %5982 = vmatpush.bf16.msrb.mxu1 %v9742_v26  ;;  %v9803_v20 = vld [vmem:[#allocation5 + $0x1618] sm:$0xf0]  ;;  %v11177_v36 = vld [vmem:[#allocation5 + $0x170c] sm:$0xf]  ;;  %v5756_v26 = vpop.f32.mrf.mxu3  ;;  %v9678_v7 = vor.u32 %v11113_v57, %v9675_v31  ;;  %v11217_v54 = vld [vmem:[#allocation7 + $0x44] sm:$0xf0] }
 0x30f   :  { %5995 = vmatpush.bf16.msrb.mxu2 %v9870_v9  ;;  %v9931_v62 = vld [vmem:[#allocation5 + $0x1718] sm:$0xf0]  ;;  %v10105_v9 = vld [vmem:[#allocation7 + $0x70] sm:$0xf]  ;;  %v9806_v11 = vor.u32 %v11145_v19, %v9803_v20  ;;  %v10145_v18 = vld [vmem:[#allocation7 + $0xc0] sm:$0xf] }
 0x310   :  { %6008 = vmatpush.bf16.msrb.mxu3 %v9998_v51  ;;  %v11255_v51 = vld [vmem:[#allocation7 + $0x174] sm:$0xf0]  ;;  %v9934_v14 = vor.u32 %v11177_v36, %v9931_v62  ;;  %v10106_v0 = vor.u32 %v11223_v63, %v10105_v9  ;;  %v11233_v55 = vld [vmem:[#allocation7 + $0xc4] sm:$0xf0]  ;;  %v10137_v43 = vld [vmem:[#allocation7 + $0xb0] sm:$0xf] }
 0x311   :  { %5970 = vmatpush.bf16.msrb.mxu0 %v9598_v28  ;;  %v10234_v21 = vor.u32 %v11255_v51, %v10233_v6  ;;  %v10097_v28 = vld [vmem:[#allocation7 + $0x60] sm:$0xf]  ;;  %v11249_v56 = vld [vmem:[#allocation7 + $0x144] sm:$0xf0]  ;;  %v11215_v22 = vld [vmem:[#allocation7 + $0x34] sm:$0xf0] }
 0x312   :  { %5983 = vmatpush.bf16.msrb.mxu1 %v9726_v58  ;;  %v11221_v58 = vld [vmem:[#allocation7 + $0x64] sm:$0xf0]  ;;  %v10201_v24 = vld [vmem:[#allocation7 + $0x130] sm:$0xf]  ;;  %v11247_v27 = vld [vmem:[#allocation7 + $0x134] sm:$0xf0] }
 0x313   :  { %5996 = vmatpush.bf16.msrb.mxu2 %v9854_v38  ;;  %v10161_v38 = vld [vmem:[#allocation7 + $0xe0] sm:$0xf]  ;;  %v10098_v3 = vor.u32 %v11221_v58, %v10097_v28  ;;  %v10202_v31 = vor.u32 %v11247_v27, %v10201_v24  ;;  %v11213_v32 = vld [vmem:[#allocation7 + $0x24] sm:$0xf0]  ;;  %v10057_v51 = vld [vmem:[#allocation7 + $0x10] sm:$0xf] }
 0x314   :  { %6009 = vmatpush.bf16.msrb.mxu3 %v9982_v34  ;;  %v10162_v34 = vor.u32 %v11237_v30, %v10161_v38  ;;  %v10065_v19 = vld [vmem:[#allocation7 + $0x20] sm:$0xf]  ;;  %v11229_v36 = vld [vmem:[#allocation7 + $0xa4] sm:$0xf0]  ;;  %v10107_v46 = vld [vmem:[#allocation7 + $0x78] sm:$0xf0] }
 0x315   :  { %5971 = vmatpush.bf16.msrb.mxu0 %v9582_v12  ;;  %v10090_v12 = vor.u32 %v11219_v4, %v10089_v41  ;;  %v10193_v62 = vld [vmem:[#allocation7 + $0x120] sm:$0xf]  ;;  %v11245_v26 = vld [vmem:[#allocation7 + $0x124] sm:$0xf0]  ;;  %v10066_v63 = vor.u32 %v11213_v32, %v10065_v19  ;;  %v11222_v4 = vld [vmem:[#allocation7 + $0x74] sm:$0xf] }
 0x316   :  { %5984 = vmatpush.bf16.msrb.mxu1 %v9710_v49  ;;  %v10218_v49 = vor.u32 %v11251_v47, %v10217_v37  ;;  %v10194_v6 = vor.u32 %v11245_v26, %v10193_v62  ;;  %v10049_v58 = vld [vmem:[#allocation7] sm:$0xf]  ;;  %v11209_v33 = vld [vmem:[#allocation7 + $0x4] sm:$0xf0]  ;;  %v11238_v37 = vld [vmem:[#allocation7 + $0xf4] sm:$0xf] }
 0x317   :  { %5997 = vmatpush.bf16.msrb.mxu2 %v9838_v52  ;;  %v10081_v52 = vld [vmem:[#allocation7 + $0x40] sm:$0xf]  ;;  %v11241_v41 = vld [vmem:[#allocation7 + $0x104] sm:$0xf0]  ;;  %v10171_v47 = vld [vmem:[#allocation7 + $0xf8] sm:$0xf0] }
 0x318   :  { %6010 = vmatpush.bf16.msrb.mxu3 %v9966_v10  ;;  %v10113_v35 = vld [vmem:[#allocation7 + $0x80] sm:$0xf]  ;;  %v11218_v24 = vld [vmem:[#allocation7 + $0x54] sm:$0xf]  ;;  %v10219_v19 = vld [vmem:[#allocation7 + $0x158] sm:$0xf0] }
 0x319   :  { %5972 = vmatpush.bf16.msrb.mxu0 %v9566_v13  ;;  %v11231_v13 = vld [vmem:[#allocation7 + $0xb4] sm:$0xf0]  ;;  %v10083_v62 = vld [vmem:[#allocation7 + $0x48] sm:$0xf0]  ;;  %v11232_v26 = vld [vmem:[#allocation7 + $0xc4] sm:$0xf] }
 0x31a   :  { %5985 = vmatpush.bf16.msrb.mxu1 %v9694_v8  ;;  %v10138_v57 = vor.u32 %v11231_v13, %v10137_v43  ;;  %v11252_v43 = vld [vmem:[#allocation7 + $0x164] sm:$0xf] }
 0x31b   :  { %5998 = vmatpush.bf16.msrb.mxu2 %v9822_v59 }
 0x31c   :  { %6011 = vmatpush.bf16.msrb.mxu3 %v9950_v60  ;;  %v10129_v60 = vld [vmem:[#allocation7 + $0xa0] sm:$0xf] }
 0x31d   :  { %5973 = vmatpush.bf16.msrb.mxu0 %v9550_v53  ;;  %v5767_v10 = vpop.f32.mrf.mxu0  ;;  %v10130_v25 = vor.u32 %v11229_v36, %v10129_v60 }
 0x31e   :  { %5986 = vmatpush.bf16.msrb.mxu1 %v9678_v7  ;;  %v5768_v23 = vadd.f32 %v5767_v10, %v11738_v40  ;;  %v5780_v44 = vpop.f32.mrf.mxu1  ;;  %v11211_v7 = vld [vmem:[#allocation7 + $0x14] sm:$0xf0]  ;;  %v11220_v10 = vld [vmem:[#allocation7 + $0x64] sm:$0xf] }
 0x31f   :  { %5999 = vmatpush.bf16.msrb.mxu2 %v9806_v11  ;;  %v10121_v11 = vld [vmem:[#allocation7 + $0x90] sm:$0xf]  ;;  %v10058_v28 = vor.u32 %v11211_v7, %v10057_v51 }
 0x320   :  { %6012 = vmatpush.bf16.msrb.mxu3 %v9934_v14  ;;  %5974 = vmatmul.bf16.vlgmr.msrb.gmra.mxu0 %v11609_v61  ;;  %v10209_v61 = vld [vmem:[#allocation7 + $0x140] sm:$0xf]  ;;  %v5781_v8 = vadd.f32 %v5780_v44, %v5768_v23  ;;  %v10227_v23 = vld [vmem:[#allocation7 + $0x168] sm:$0xf0] }
 0x321   :  { %6417 = vmatpush.bf16.msra.mxu0 %v10106_v0  ;;  %5987 = vmatmul.bf16.vlgmr.msrb.gmra.mxu1 %v11613_v2  ;;  %v10082_v2 = vor.u32 %v11217_v54, %v10081_v52  ;;  %v10210_v17 = vor.u32 %v11249_v56, %v10209_v61  ;;  %v11227_v0 = vld [vmem:[#allocation7 + $0x94] sm:$0xf0]  ;;  %v6018_v52 = vmax.f32 %v11650_v42, 0.0  ;;  %v6019_v54 = vmax.f32 %v11691_v29, 0.0 }
 0x322   :  { %6430 = vmatpush.bf16.msra.mxu1 %v10170_v16  ;;  %6000 = vmatmul.bf16.vlgmr.msrb.gmra.mxu2 %v11611_v1  ;;  %v10146_v1 = vor.u32 %v11233_v55, %v10145_v18  ;;  %v10185_v16 = vld [vmem:[#allocation7 + $0x110] sm:$0xf]  ;;  %v10122_v38 = vor.u32 %v11227_v0, %v10121_v11  ;;  %v6020_v61 = vmax.f32 %v11732_v50, 0.0  ;;  %v10110_v56 = vor.u32 %v11222_v4, %v10107_v46  ;;  %v11214_v11 = vld [vmem:[#allocation7 + $0x34] sm:$0xf] }
 0x323   :  { %6443 = vmatpush.bf16.msra.mxu2 %v10234_v21  ;;  %6013 = vmatmul.bf16.vlgmr.msrb.gmra.mxu3 %v11615_v5  ;;  %v10073_v5 = vld [vmem:[#allocation7 + $0x30] sm:$0xf]  ;;  %v11243_v21 = vld [vmem:[#allocation7 + $0x114] sm:$0xf0]  ;;  %v11750_v44 = vpack.c.bf16 %v6018_v52, %v6018_v52  ;;  %v11752_v42 = vpack.c.bf16 %v6019_v54, %v6019_v54  ;;  %v10230_v27 = vor.u32 %v11252_v43, %v10227_v23  ;;  %v10075_v0 = vld [vmem:[#allocation7 + $0x38] sm:$0xf0] }
 0x324   :  { %v10074_v59 = vor.u32 %v11215_v22, %v10073_v5  ;;  %v10186_v30 = vor.u32 %v11243_v21, %v10185_v16  ;;  %v11236_v5 = vld [vmem:[#allocation7 + $0xe4] sm:$0xf]  ;;  %v10163_v22 = vld [vmem:[#allocation7 + $0xe8] sm:$0xf0]  ;;  %v11754_v29 = vpack.c.bf16 %v6020_v61, %v6020_v61  ;;  %v11230_v16 = vld [vmem:[#allocation7 + $0xb4] sm:$0xf] }
 0x325   :  { %6418 = vmatpush.bf16.msra.mxu0 %v10098_v3  ;;  %v5793_v20 = vpop.f32.mrf.mxu2  ;;  %v5769_v53 = vpop.f32.mrf.mxu0  ;;  %v11225_v3 = vld [vmem:[#allocation7 + $0x84] sm:$0xf0]  ;;  %v10166_v13 = vor.u32 %v11236_v5, %v10163_v22  ;;  %v10139_v21 = vld [vmem:[#allocation7 + $0xb8] sm:$0xf0]  ;;  %v11244_v4 = vld [vmem:[#allocation7 + $0x124] sm:$0xf] }
 0x326   :  { %6431 = vmatpush.bf16.msra.mxu1 %v10162_v34  ;;  %v5794_v9 = vadd.f32 %v5793_v20, %v5781_v8  ;;  %v5806_v40 = vpop.f32.mrf.mxu3  ;;  %v5782_v14 = vpop.f32.mrf.mxu1  ;;  %v10114_v18 = vor.u32 %v11225_v3, %v10113_v35  ;;  %v10091_v8 = vld [vmem:[#allocation7 + $0x58] sm:$0xf0]  ;;  %v11216_v20 = vld [vmem:[#allocation7 + $0x44] sm:$0xf]  ;;  %v11226_v61 = vld [vmem:[#allocation7 + $0x94] sm:$0xf] }
 0x327   :  { %6444 = vmatpush.bf16.msra.mxu2 %v10226_v39  ;;  %v10177_v39 = vld [vmem:[#allocation7 + $0x100] sm:$0xf]  ;;  %v10094_v32 = vor.u32 %v11218_v24, %v10091_v8  ;;  %v11212_v35 = vld [vmem:[#allocation7 + $0x24] sm:$0xf]  ;;  %v10051_v43 = vld [vmem:[#allocation7 + $0x8] sm:$0xf0] }
 0x328   :  { %v11745_v15 = vadd.f32 %v5806_v40, %v5794_v9  ;;  %v10178_v55 = vor.u32 %v11241_v41, %v10177_v39  ;;  %v10147_v9 = vld [vmem:[#allocation7 + $0xc8] sm:$0xf0]  ;;  %v11248_v40 = vld [vmem:[#allocation7 + $0x144] sm:$0xf] }
 0x329   :  { %6419 = vmatpush.bf16.msra.mxu0 %v10090_v12  ;;  %v10050_v12 = vor.u32 %v11209_v33, %v10049_v58  ;;  %v10150_v51 = vor.u32 %v11232_v26, %v10147_v9  ;;  %v11246_v58 = vld [vmem:[#allocation7 + $0x134] sm:$0xf]  ;;  %v10142_v33 = vor.u32 %v11230_v16, %v10139_v21  ;;  %v10131_v39 = vld [vmem:[#allocation7 + $0xa8] sm:$0xf0]  ;;  %v11208_v5 = vld [vmem:[#allocation7 + $0x4] sm:$0xf] }
 0x32a   :  { %6432 = vmatpush.bf16.msra.mxu1 %v10154_v48  ;;  %v11254_v48 = vld [vmem:[#allocation7 + $0x174] sm:$0xf]  ;;  %v11224_v23 = vld [vmem:[#allocation7 + $0x84] sm:$0xf]  ;;  %v10179_v24 = vld [vmem:[#allocation7 + $0x108] sm:$0xf0] }
 0x32b   :  { %6445 = vmatpush.bf16.msra.mxu2 %v10218_v49  ;;  %v10235_v49 = vld [vmem:[#allocation7 + $0x178] sm:$0xf0]  ;;  %v11269_v26 = vld [vmem:[#allocation7 + $0x1e4] sm:$0xf0]  ;;  %v10257_v16 = vld [vmem:[#allocation7 + $0x1a0] sm:$0xf] }
 0x32c   :  { %v11261_v21 = vld [vmem:[#allocation7 + $0x1a4] sm:$0xf0] }
 0x32d   :  { %6420 = vmatpush.bf16.msra.mxu0 %v10082_v2  ;;  %v5795_v34 = vpop.f32.mrf.mxu2  ;;  %v10174_v2 = vor.u32 %v11238_v37, %v10171_v47 }
 0x32e   :  { %6433 = vmatpush.bf16.msra.mxu1 %v10146_v1  ;;  %v5808_v45 = vpop.f32.mrf.mxu3  ;;  %v10238_v1 = vor.u32 %v11254_v48, %v10235_v49  ;;  %v11228_v34 = vld [vmem:[#allocation7 + $0xa4] sm:$0xf]  ;;  %v11210_v49 = vld [vmem:[#allocation7 + $0x14] sm:$0xf] }
 0x32f   :  { %6446 = vmatpush.bf16.msra.mxu2 %v10210_v17  ;;  %v10099_v17 = vld [vmem:[#allocation7 + $0x68] sm:$0xf0]  ;;  %v10134_v48 = vor.u32 %v11228_v34, %v10131_v39  ;;  %v11270_v39 = vld [vmem:[#allocation7 + $0x1f4] sm:$0xf] }
 0x330   :  { %v10102_v50 = vor.u32 %v11220_v10, %v10099_v17  ;;  %v10195_v45 = vld [vmem:[#allocation7 + $0x128] sm:$0xf0]  ;;  %v10187_v10 = vld [vmem:[#allocation7 + $0x118] sm:$0xf0] }
 0x331   :  { %6421 = vmatpush.bf16.msra.mxu0 %v10074_v59  ;;  %v11234_v59 = vld [vmem:[#allocation7 + $0xd4] sm:$0xf] }
 0x332   :  { %6434 = vmatpush.bf16.msra.mxu1 %v10138_v57  ;;  %v10155_v57 = vld [vmem:[#allocation7 + $0xd8] sm:$0xf0] }
 0x333   :  { %6447 = vmatpush.bf16.msra.mxu2 %v10202_v31  ;;  %v11250_v31 = vld [vmem:[#allocation7 + $0x154] sm:$0xf]  ;;  %v10158_v60 = vor.u32 %v11234_v59, %v10155_v57  ;;  %v10054_v59 = vor.u32 %v11208_v5, %v10051_v43  ;;  %v10267_v43 = vld [vmem:[#allocation7 + $0x1b8] sm:$0xf0] }
 0x334   :  { %v10222_v36 = vor.u32 %v11250_v31, %v10219_v19  ;;  %v10297_v19 = vld [vmem:[#allocation7 + $0x1f0] sm:$0xf] }
 0x335   :  { %6422 = vmatpush.bf16.msra.mxu0 %v10066_v63  ;;  %v10211_v63 = vld [vmem:[#allocation7 + $0x148] sm:$0xf0] }
 0x336   :  { %6435 = vmatpush.bf16.msra.mxu1 %v10130_v25  ;;  %v10214_v14 = vor.u32 %v11248_v40, %v10211_v63  ;;  %v10281_v40 = vld [vmem:[#allocation7 + $0x1d0] sm:$0xf]  ;;  %v11267_v63 = vld [vmem:[#allocation7 + $0x1d4] sm:$0xf0] }
 0x337   :  { %6448 = vmatpush.bf16.msra.mxu2 %v10194_v6  ;;  %v10086_v6 = vor.u32 %v11216_v20, %v10083_v62  ;;  %v10289_v62 = vld [vmem:[#allocation7 + $0x1e0] sm:$0xf] }
 0x338   :  { %v10290_v9 = vor.u32 %v11269_v26, %v10289_v62 }
 0x339   :  { %6423 = vmatpush.bf16.msra.mxu0 %v10058_v28 }
 0x33a   :  { %6436 = vmatpush.bf16.msra.mxu1 %v10122_v38  ;;  %v10203_v38 = vld [vmem:[#allocation7 + $0x138] sm:$0xf0] }
 0x33b   :  { %6449 = vmatpush.bf16.msra.mxu2 %v10186_v30  ;;  %v10078_v30 = vor.u32 %v11214_v11, %v10075_v0  ;;  %v10206_v3 = vor.u32 %v11246_v58, %v10203_v38  ;;  %v10265_v11 = vld [vmem:[#allocation7 + $0x1b0] sm:$0xf]  ;;  %v10258_v38 = vor.u32 %v11261_v21, %v10257_v16  ;;  %v6023_v21 = vld [vmem:[#allocation10 + $0x1] ss:$8 sm:$0x3] }
 0x33d   :  { %6424 = vmatpush.bf16.msra.mxu0 %v10050_v12  ;;  %v5819_v53 = vpop.f32.mrf.mxu0 }
 0x33e   :  { %6437 = vmatpush.bf16.msra.mxu1 %v10114_v18  ;;  %v5820_v25 = vadd.f32 %v5819_v53, %v11745_v15  ;;  %v5832_v7 = vpop.f32.mrf.mxu1  ;;  %v10067_v15 = vld [vmem:[#allocation7 + $0x28] sm:$0xf0]  ;;  %v10198_v18 = vor.u32 %v11244_v4, %v10195_v45 }
 0x33f   :  { %6450 = vmatpush.bf16.msra.mxu2 %v10178_v55  ;;  %v10070_v12 = vor.u32 %v11212_v35, %v10067_v15  ;;  %v10059_v55 = vld [vmem:[#allocation7 + $0x18] sm:$0xf0]  ;;  %v11257_v15 = vld [vmem:[#allocation7 + $0x184] sm:$0xf0] }
 0x340   :  { %6425 = vmatmul.bf16.vlgmr.msra.gmra.mxu0 %v11750_v44  ;;  %v5833_v28 = vadd.f32 %v5832_v7, %v5820_v25  ;;  %v10282_v25 = vor.u32 %v11267_v63, %v10281_v40 }
 0x341   :  { %6469 = vmatpush.bf16.msrb.mxu0 %v10110_v56  ;;  %6438 = vmatmul.bf16.vlgmr.msra.gmra.mxu1 %v11752_v42  ;;  %v10123_v56 = vld [vmem:[#allocation7 + $0x98] sm:$0xf0] }
 0x342   :  { %6482 = vmatpush.bf16.msrb.mxu1 %v10174_v2  ;;  %6451 = vmatmul.bf16.vlgmr.msra.gmra.mxu2 %v11754_v29  ;;  %v11242_v2 = vld [vmem:[#allocation7 + $0x114] sm:$0xf]  ;;  %v10126_v17 = vor.u32 %v11226_v61, %v10123_v56 }
 0x343   :  { %6495 = vmatpush.bf16.msrb.mxu2 %v10238_v1  ;;  %v10062_v1 = vor.u32 %v11210_v49, %v10059_v55  ;;  %v10190_v22 = vor.u32 %v11242_v2, %v10187_v10  ;;  %v10283_v49 = vld [vmem:[#allocation7 + $0x1d8] sm:$0xf0]  ;;  %v11264_v10 = vld [vmem:[#allocation7 + $0x1c4] sm:$0xf] }
 0x345   :  { %6470 = vmatpush.bf16.msrb.mxu0 %v10102_v50  ;;  %v5845_v41 = vpop.f32.mrf.mxu2  ;;  %v5821_v47 = vpop.f32.mrf.mxu0  ;;  %v10115_v50 = vld [vmem:[#allocation7 + $0x88] sm:$0xf0] }
 0x346   :  { %6483 = vmatpush.bf16.msrb.mxu1 %v10166_v13  ;;  %v5846_v46 = vadd.f32 %v5845_v41, %v5833_v28  ;;  %v5858_v37 = vpop.f32.mrf.mxu3  ;;  %v5834_v52 = vpop.f32.mrf.mxu1  ;;  %v11240_v13 = vld [vmem:[#allocation7 + $0x104] sm:$0xf]  ;;  %v10118_v57 = vor.u32 %v11224_v23, %v10115_v50  ;;  %v10299_v41 = vld [vmem:[#allocation7 + $0x1f8] sm:$0xf0]  ;;  %v10291_v47 = vld [vmem:[#allocation7 + $0x1e8] sm:$0xf0] }
 0x347   :  { %6496 = vmatpush.bf16.msrb.mxu2 %v10230_v27  ;;  %v10182_v31 = vor.u32 %v11240_v13, %v10179_v24  ;;  %v10302_v4 = vor.u32 %v11270_v39, %v10299_v41  ;;  %v11260_v13 = vld [vmem:[#allocation7 + $0x1a4] sm:$0xf]  ;;  %v10259_v24 = vld [vmem:[#allocation7 + $0x1a8] sm:$0xf0]  ;;  %v11279_v39 = vld [vmem:[#allocation8 + $0x38] sm:$0xff] }
 0x348   :  { %v11760_v54 = vadd.f32 %v5858_v37, %v5846_v46  ;;  %v11268_v37 = vld [vmem:[#allocation7 + $0x1e4] sm:$0xf]  ;;  %v11287_v41 = vld [vmem:[#allocation8 + $0x78] sm:$0xff] }
 0x349   :  { %6471 = vmatpush.bf16.msrb.mxu0 %v10094_v32  ;;  %v11271_v32 = vld [vmem:[#allocation7 + $0x1f4] sm:$0xf0] }
 0x34a   :  { %6484 = vmatpush.bf16.msrb.mxu1 %v10158_v60  ;;  %v10298_v60 = vor.u32 %v11271_v32, %v10297_v19 }
 0x34b   :  { %6497 = vmatpush.bf16.msrb.mxu2 %v10222_v36 }
 0x34c   :  { %6456 = vmatpush.bf16.msra.mxu3 %v10298_v60  ;;  %v11256_v60 = vld [vmem:[#allocation7 + $0x184] sm:$0xf] }
 0x34d   :  { %6472 = vmatpush.bf16.msrb.mxu0 %v10086_v6  ;;  %v5847_v27 = vpop.f32.mrf.mxu2 }
 0x34e   :  { %6485 = vmatpush.bf16.msrb.mxu1 %v10150_v51  ;;  %v5860_v8 = vpop.f32.mrf.mxu3  ;;  %v10273_v51 = vld [vmem:[#allocation7 + $0x1c0] sm:$0xf] }
 0x34f   :  { %6498 = vmatpush.bf16.msrb.mxu2 %v10214_v14  ;;  %v11263_v14 = vld [vmem:[#allocation7 + $0x1b4] sm:$0xf0] }
 0x350   :  { %6457 = vmatpush.bf16.msra.mxu3 %v10290_v9  ;;  %v10266_v0 = vor.u32 %v11263_v14, %v10265_v11 }
 0x351   :  { %6473 = vmatpush.bf16.msrb.mxu0 %v10078_v30  ;;  %v10249_v30 = vld [vmem:[#allocation7 + $0x190] sm:$0xf] }
 0x352   :  { %6486 = vmatpush.bf16.msrb.mxu1 %v10142_v33  ;;  %v11259_v33 = vld [vmem:[#allocation7 + $0x194] sm:$0xf0] }
 0x353   :  { %6499 = vmatpush.bf16.msrb.mxu2 %v10206_v3  ;;  %v10250_v35 = vor.u32 %v11259_v33, %v10249_v30  ;;  %v10241_v3 = vld [vmem:[#allocation7 + $0x180] sm:$0xf] }
 0x354   :  { %6458 = vmatpush.bf16.msra.mxu3 %v10282_v25  ;;  %v10242_v34 = vor.u32 %v11257_v15, %v10241_v3 }
 0x355   :  { %6474 = vmatpush.bf16.msrb.mxu0 %v10070_v12  ;;  %v10294_v12 = vor.u32 %v11268_v37, %v10291_v47  ;;  %v11277_v37 = vld [vmem:[#allocation8 + $0x28] sm:$0xff]  ;;  %v11276_v47 = vld [vmem:[#allocation8 + $0x20] sm:$0xff] }
 0x356   :  { %6487 = vmatpush.bf16.msrb.mxu1 %v10134_v48  ;;  %v11266_v48 = vld [vmem:[#allocation7 + $0x1d4] sm:$0xf] }
 0x357   :  { %6500 = vmatpush.bf16.msrb.mxu2 %v10198_v18  ;;  %v10286_v52 = vor.u32 %v11266_v48, %v10283_v49  ;;  %v11275_v48 = vld [vmem:[#allocation8 + $0x18] sm:$0xff] }
 0x359   :  { %6475 = vmatpush.bf16.msrb.mxu0 %v10062_v1  ;;  %v10275_v1 = vld [vmem:[#allocation7 + $0x1c8] sm:$0xf0] }
 0x35a   :  { %6488 = vmatpush.bf16.msrb.mxu1 %v10126_v17  ;;  %v10278_v17 = vor.u32 %v11264_v10, %v10275_v1 }
 0x35b   :  { %6501 = vmatpush.bf16.msrb.mxu2 %v10190_v22  ;;  %v11262_v22 = vld [vmem:[#allocation7 + $0x1b4] sm:$0xf] }
 0x35c   :  { %v10270_v50 = vor.u32 %v11262_v22, %v10267_v43  ;;  %v11285_v22 = vld [vmem:[#allocation8 + $0x68] sm:$0xff]  ;;  %v11272_v43 = vld [vmem:[#allocation8] sm:$0xff] }
 0x35d   :  { %6476 = vmatpush.bf16.msrb.mxu0 %v10054_v59  ;;  %v5871_v20 = vpop.f32.mrf.mxu0  ;;  %v10262_v59 = vor.u32 %v11260_v13, %v10259_v24  ;;  %v11282_v13 = vld [vmem:[#allocation8 + $0x50] sm:$0xff]  ;;  %v11281_v24 = vld [vmem:[#allocation8 + $0x48] sm:$0xff] }
 0x35e   :  { %6489 = vmatpush.bf16.msrb.mxu1 %v10118_v57  ;;  %v5884_v36 = vpop.f32.mrf.mxu1  ;;  %v5872_v55 = vadd.f32 %v5871_v20, %v11760_v54  ;;  %v11258_v54 = vld [vmem:[#allocation7 + $0x194] sm:$0xf]  ;;  %v10251_v57 = vld [vmem:[#allocation7 + $0x198] sm:$0xf0]  ;;  %v10243_v20 = vld [vmem:[#allocation7 + $0x188] sm:$0xf0] }
 0x35f   :  { %6502 = vmatpush.bf16.msrb.mxu2 %v10182_v31  ;;  %v10254_v32 = vor.u32 %v11258_v54, %v10251_v57  ;;  %v10246_v62 = vor.u32 %v11256_v60, %v10243_v20 }
 0x360   :  { %6477 = vmatmul.bf16.vlgmr.msrb.gmra.mxu0 %v11750_v44  ;;  %v5885_v5 = vadd.f32 %v5884_v36, %v5872_v55  ;;  %v11274_v55 = vld [vmem:[#allocation8 + $0x10] sm:$0xff] }
 0x361   :  { %6490 = vmatmul.bf16.vlgmr.msrb.gmra.mxu1 %v11752_v42  ;;  %v11265_v42 = vld [vmem:[#allocation7 + $0x1c4] sm:$0xf0]  ;;  %6654 = vmatpush.bf16.msra.mxu0 %v11279_v39 }
 0x362   :  { %6503 = vmatmul.bf16.vlgmr.msrb.gmra.mxu2 %v11754_v29  ;;  %v10274_v29 = vor.u32 %v11265_v42, %v10273_v51  ;;  %6667 = vmatpush.bf16.msra.mxu1 %v11287_v41 }
 0x364   :  { %6459 = vmatpush.bf16.msra.mxu3 %v10274_v29 }
 0x365   :  { %v5897_v53 = vpop.f32.mrf.mxu2  ;;  %v5873_v44 = vpop.f32.mrf.mxu0 }
 0x366   :  { %v5910_v6 = vpop.f32.mrf.mxu3  ;;  %v5886_v7 = vpop.f32.mrf.mxu1  ;;  %v5898_v23 = vadd.f32 %v5897_v53, %v5885_v5  ;;  %v11273_v5 = vld [vmem:[#allocation8 + $0x8] sm:$0xff] }
 0x368   :  { %6460 = vmatpush.bf16.msra.mxu3 %v10266_v0  ;;  %v5911_v31 = vadd.f32 %v5910_v6, %v5898_v23  ;;  %v11284_v23 = vld [vmem:[#allocation8 + $0x60] sm:$0xff] }
 0x36c   :  { %6461 = vmatpush.bf16.msra.mxu3 %v10258_v38 }
 0x36d   :  { %v5899_v28 = vpop.f32.mrf.mxu2 }
 0x36e   :  { %v5912_v58 = vpop.f32.mrf.mxu3  ;;  %v6093_v28 = vperm.slane %v6023_v21, 0 }
 0x370   :  { %6462 = vmatpush.bf16.msra.mxu3 %v10250_v35 }
 0x374   :  { %6463 = vmatpush.bf16.msra.mxu3 %v10242_v34 }
 0x378   :  { %6508 = vmatpush.bf16.msrb.mxu3 %v10302_v4 }
 0x37c   :  { %6509 = vmatpush.bf16.msrb.mxu3 %v10294_v12  ;;  %v6094_v12 = vperm.slane %v6023_v21, 1 }
 0x37d   :  { %v5923_v45 = vpop.f32.mrf.mxu0 }
 0x37e   :  { %v5936_v46 = vpop.f32.mrf.mxu1  ;;  %v5924_v19 = vadd.f32 %v5923_v45, %v5911_v31  ;;  %v11278_v45 = vld [vmem:[#allocation8 + $0x30] sm:$0xff] }
 0x37f   :  { %6655 = vmatpush.bf16.msra.mxu0 %v11278_v45  ;;  %v6769_v45 = vld [vmem:[#allocation10 + $0x4] ss:$0 sm:$0xff] }
 0x380   :  { %6510 = vmatpush.bf16.msrb.mxu3 %v10286_v52  ;;  %v5937_v36 = vadd.f32 %v5936_v46, %v5924_v19  ;;  %v11286_v46 = vld [vmem:[#allocation8 + $0x70] sm:$0xff] }
 0x381   :  { %6668 = vmatpush.bf16.msra.mxu1 %v11286_v46 }
 0x383   :  { %6656 = vmatpush.bf16.msra.mxu0 %v11277_v37 }
 0x384   :  { %6511 = vmatpush.bf16.msrb.mxu3 %v10278_v17 }
 0x385   :  { %v5949_v18 = vpop.f32.mrf.mxu2  ;;  %v5925_v56 = vpop.f32.mrf.mxu0  ;;  %6669 = vmatpush.bf16.msra.mxu1 %v11285_v22 }
 0x386   :  { %v5962_v61 = vpop.f32.mrf.mxu3  ;;  %v5938_v2 = vpop.f32.mrf.mxu1  ;;  %v5950_v26 = vadd.f32 %v5949_v18, %v5937_v36 }
 0x387   :  { %6657 = vmatpush.bf16.msra.mxu0 %v11276_v47 }
 0x388   :  { %6512 = vmatpush.bf16.msrb.mxu3 %v10270_v50  ;;  %v5963_v9 = vadd.f32 %v5962_v61, %v5950_v26  ;;  %v11283_v50 = vld [vmem:[#allocation8 + $0x58] sm:$0xff] }
 0x389   :  { %6670 = vmatpush.bf16.msra.mxu1 %v11284_v23 }
 0x38b   :  { %6658 = vmatpush.bf16.msra.mxu0 %v11275_v48 }
 0x38c   :  { %6513 = vmatpush.bf16.msrb.mxu3 %v10262_v59  ;;  %v11294_v59 = vld [vmem:[%s11830_s4 + $0x30] sm:$0xff] }
 0x38d   :  { %v5951_v27 = vpop.f32.mrf.mxu2  ;;  %6671 = vmatpush.bf16.msra.mxu1 %v11283_v50  ;;  %v6879_v50 = vld [vmem:[#allocation10 + $0x7] ss:$0 sm:$0xff] }
 0x38e   :  { %v5964_v8 = vpop.f32.mrf.mxu3  ;;  %v11280_v27 = vld [vmem:[#allocation8 + $0x40] sm:$0xff] }
 0x38f   :  { %6659 = vmatpush.bf16.msra.mxu0 %v11274_v55  ;;  %v11295_v8 = vld [vmem:[%s11830_s4 + $0x38] sm:$0xff] }
 0x390   :  { %6514 = vmatpush.bf16.msrb.mxu3 %v10254_v32  ;;  %6747 = vmatpush.bf16.msra.mxu2 %v11295_v8 }
 0x391   :  { %6672 = vmatpush.bf16.msra.mxu1 %v11282_v13 }
 0x393   :  { %6660 = vmatpush.bf16.msra.mxu0 %v11273_v5 }
 0x394   :  { %6515 = vmatpush.bf16.msrb.mxu3 %v10246_v62  ;;  %6748 = vmatpush.bf16.msra.mxu2 %v11294_v59 }
 0x395   :  { %6673 = vmatpush.bf16.msra.mxu1 %v11281_v24 }
 0x397   :  { %6661 = vmatpush.bf16.msra.mxu0 %v11272_v43 }
 0x399   :  { %6674 = vmatpush.bf16.msra.mxu1 %v11280_v27 }
 0x39d   :  { %v5975_v40 = vpop.f32.mrf.mxu0 }
 0x39e   :  { %v5988_v63 = vpop.f32.mrf.mxu1  ;;  %v5976_v53 = vadd.f32 %v5975_v40, %v5963_v9  ;;  %v11293_v9 = vld [vmem:[%s11830_s4 + $0x28] sm:$0xff]  ;;  %v11292_v40 = vld [vmem:[%s11830_s4 + $0x20] sm:$0xff] }
 0x39f   :  { %6749 = vmatpush.bf16.msra.mxu2 %v11293_v9 }
 0x3a0   :  { %v5989_v25 = vadd.f32 %v5988_v63, %v5976_v53  ;;  %v11291_v63 = vld [vmem:[%s11830_s4 + $0x18] sm:$0xff]  ;;  %v11290_v53 = vld [vmem:[%s11830_s4 + $0x10] sm:$0xff] }
 0x3a3   :  { %6750 = vmatpush.bf16.msra.mxu2 %v11292_v40 }
 0x3a5   :  { %v6001_v44 = vpop.f32.mrf.mxu2  ;;  %v5977_v7 = vpop.f32.mrf.mxu0 }
 0x3a6   :  { %v6014_v51 = vpop.f32.mrf.mxu3  ;;  %v6002_v42 = vadd.f32 %v6001_v44, %v5989_v25  ;;  %v5990_v6 = vpop.f32.mrf.mxu1  ;;  %v11289_v25 = vld [vmem:[%s11830_s4 + $0x8] sm:$0xff]  ;;  %v11288_v44 = vld [vmem:[%s11830_s4] sm:$0xff] }
 0x3a7   :  { %6751 = vmatpush.bf16.msra.mxu2 %v11291_v63  ;;  %v11297_v7 = vld [vmem:[%s11831_s5 + $0x8] sm:$0xff] }
 0x3a8   :  { %v6015_v29 = vadd.f32 %v6014_v51, %v6002_v42  ;;  %v11299_v51 = vld [vmem:[%s11831_s5 + $0x18] sm:$0xff]  ;;  %v11298_v42 = vld [vmem:[%s11831_s5 + $0x10] sm:$0xff] }
 0x3aa   :  { %v6021_v11 = vmax.f32 %v6015_v29, 0.0 }
 0x3ab   :  { %6752 = vmatpush.bf16.msra.mxu2 %v11290_v53 }
 0x3ac   :  { %v6027_v14 = vpack.c.bf16 %v6021_v11, %v6021_v11  ;;  %v6523_v11 = vld [vmem:[#allocation10 + $0x2] ss:$0 sm:$0xff] }
 0x3ad   :  { %v6003_v0 = vpop.f32.mrf.mxu2 }
 0x3ae   :  { %v6016_v16 = vpop.f32.mrf.mxu3  ;;  %6464 = vmatmul.bf16.vlgmr.msra.gmra.mxu3 %v6027_v14 }
 0x3af   :  { %6753 = vmatpush.bf16.msra.mxu2 %v11289_v25  ;;  %6803 = vmatpush.bf16.msra.mxu3 %v11299_v51 }
 0x3b3   :  { %6754 = vmatpush.bf16.msra.mxu2 %v11288_v44  ;;  %6804 = vmatpush.bf16.msra.mxu3 %v11298_v42 }
 0x3b7   :  { %6805 = vmatpush.bf16.msra.mxu3 %v11297_v7 }
 0x3bd   :  { %v6426_v58 = vpop.f32.mrf.mxu0 }
 0x3be   :  { %v6427_v38 = vadd.f32 %v6426_v58, %v6093_v28  ;;  %v6439_v30 = vpop.f32.mrf.mxu1  ;;  %6516 = vmatmul.bf16.vlgmr.msrb.gmra.mxu3 %v6027_v14 }
 0x3c0   :  { %v6440_v33 = vadd.f32 %v6439_v30, %v6427_v38  ;;  %v11296_v38 = vld [vmem:[%s11831_s5] sm:$0xff]  ;;  %v11301_v30 = vld [vmem:[%s11831_s5 + $0x28] sm:$0xff] }
 0x3c1   :  { %6806 = vmatpush.bf16.msra.mxu3 %v11296_v38 }
 0x3c5   :  { %v6452_v35 = vpop.f32.mrf.mxu2  ;;  %v6428_v15 = vpop.f32.mrf.mxu0  ;;  %6841 = vmatpush.bf16.msrb.mxu3 %v11301_v30 }
 0x3c6   :  { %v6453_v3 = vadd.f32 %v6452_v35, %v6440_v33  ;;  %v6441_v34 = vpop.f32.mrf.mxu1  ;;  %v11300_v33 = vld [vmem:[%s11831_s5 + $0x20] sm:$0xff] }
 0x3c7   :  { %v6681_v35 = vld [vmem:[#allocation10 + $0x3] ss:$0 sm:$0xff] }
 0x3c9   :  { %6842 = vmatpush.bf16.msrb.mxu3 %v11300_v33 }
 0x3cd   :  { %v6454_v4 = vpop.f32.mrf.mxu2 }
 0x3ce   :  { %v11302_v4 = vld [vmem:[%s11831_s5 + $0x30] sm:$0xff] }
 0x3cf   :  { %6870 = vmatpush.bf16.msrb.mxu0 %v11302_v4 }
 0x3dd   :  { %v6478_v49 = vpop.f32.mrf.mxu0 }
 0x3de   :  { %v6491_v52 = vpop.f32.mrf.mxu1  ;;  %v6479_v18 = vadd.f32 %v6478_v49, %v6094_v12  ;;  %v11303_v49 = vld [vmem:[%s11831_s5 + $0x38] sm:$0xff] }
 0x3df   :  { %6897 = vmatpush.bf16.msrb.mxu1 %v11303_v49 }
 0x3e0   :  { %v6492_v61 = vadd.f32 %v6491_v52, %v6479_v18  ;;  %v6817_v52 = vld [vmem:[#allocation10 + $0x5] ss:$0 sm:$0xff] }
 0x3e5   :  { %v6504_v56 = vpop.f32.mrf.mxu2  ;;  %v6480_v10 = vpop.f32.mrf.mxu0 }
 0x3e6   :  { %v6505_v2 = vadd.f32 %v6504_v56, %v6492_v61  ;;  %v6493_v1 = vpop.f32.mrf.mxu1  ;;  %v11304_v10 = vld [vmem:[%s11831_s5 + $0x40] sm:$0xff]  ;;  %s11491_s5 = smov [#allocation11]  }
 0x3e7   :  { %6924 = vmatpush.bf16.msrb.mxu2 %v11304_v10  ;;  %v6851_v1 = vld [vmem:[#allocation10 + $0x6] ss:$0 sm:$0xff]  ;;  %s6961_s11 = sshll.u32 %s11491_s5, 4  ;;  %s6962_s11 = int_to_ptr.vmem [resolvable:$true] %s6961_s11 }
 0x3ed   :  { %v6506_v17 = vpop.f32.mrf.mxu2 }
 0x431   :  { %v6465_v54 = vpop.f32.mrf.mxu3 }
 0x432   :  { %v6466_v57 = vadd.f32 %v6465_v54, %v6453_v3  ;;  %v6906_v54 = vld [vmem:[#allocation10 + $0x20] ss:$0 sm:$0xff] }
 0x434   :  { %v6521_v31 = vmax.f32 %v6466_v57, 0.0 }
 0x436   :  { %v6524_v19 = vpack.c.bf16 %v6521_v31, %v6521_v31 }
 0x438   :  { %6662 = vmatmul.bf16.vlgmr.msra.gmra.mxu0 %v6524_v19 }
 0x439   :  { %v6467_v32 = vpop.f32.mrf.mxu3 }
 0x441   :  { %v6517_v60 = vpop.f32.mrf.mxu3 }
 0x442   :  { %v6518_v20 = vadd.f32 %v6517_v60, %v6505_v2 }
 0x444   :  { %v6522_v36 = vmax.f32 %v6518_v20, 0.0 }
 0x446   :  { %v6525_v62 = vpack.c.bf16 %v6522_v36, %v6522_v36 }
 0x448   :  { %6675 = vmatmul.bf16.vlgmr.msra.gmra.mxu1 %v6525_v62 }
 0x449   :  { %v6519_v26 = vpop.f32.mrf.mxu3 }
 0x4b5   :  { %v6663_v6 = vpop.f32.mrf.mxu0 }
 0x4b6   :  { %v6664_v14 = vadd.f32 %v6663_v6, %v6523_v11 }
 0x4bd   :  { %v6665_v29 = vpop.f32.mrf.mxu0 }
 0x4c5   :  { %v6676_v0 = vpop.f32.mrf.mxu1 }
 0x4c6   :  { %v6677_v16 = vadd.f32 %v6676_v0, %v6664_v14 }
 0x4c8   :  { %v6680_v21 = vmax.f32 %v6677_v16, 0.0 }
 0x4ca   :  { %v6682_v28 = vpack.c.bf16 %v6680_v21, %v6680_v21 }
 0x4cc   :  { %6755 = vmatmul.bf16.vlgmr.msra.gmra.mxu2 %v6682_v28 }
 0x4cd   :  { %v6678_v58 = vpop.f32.mrf.mxu1 }
 0x54f   :  { %v6756_v3 = vpop.f32.mrf.mxu2 }
 0x550   :  { %v6757_v15 = vadd.f32 %v6756_v3, %v6681_v35 }
 0x552   :  { %v6760_v34 = vmax.f32 %v6757_v15, 0.0 }
 0x554   :  { %v6770_v39 = vpack.c.bf16 %v6760_v34, %v6760_v34 }
 0x556   :  { %10415 = vmatmul.msk.bf16.vlgmr.msra.gmra.mxu3 %vm6795_vm0, %v6770_v39 }
 0x557   :  { %v6758_v41 = vpop.f32.mrf.mxu2 }
 0x5d9   :  { %v6808_v46 = vpop.f32.mrf.mxu3 }
 0x5da   :  { %v6809_v37 = vadd.f32 %v6808_v46, %v6769_v45 }
 0x5dc   :  { %v6812_v47 = vmax.f32 %v6809_v37, 0.0 }
 0x5de   :  { %v6818_v12 = vpack.c.bf16 %v6812_v47, %v6812_v47 }
 0x5e0   :  { %10424 = vmatmul.msk.bf16.vlgmr.msrb.gmra.mxu3 %vm6831_vm1, %v6818_v12 }
 0x5e1   :  { %v6810_v48 = vpop.f32.mrf.mxu3 }
 0x663   :  { %v6844_v18 = vpop.f32.mrf.mxu3 }
 0x664   :  { %v6845_v55 = vadd.f32 %v6844_v18, %v6817_v52 }
 0x666   :  { %v6848_v61 = vmax.f32 %v6845_v55, 0.0 }
 0x668   :  { %v6852_v56 = vpack.c.bf16 %v6848_v61, %v6848_v61 }
 0x66a   :  { %10429 = vmatmul.msk.bf16.vlgmr.msrb.gmra.mxu0 %vm6859_vm2, %v6852_v56 }
 0x66b   :  { %v6846_v2 = vpop.f32.mrf.mxu3 }
 0x6e7   :  { %v6872_v17 = vpop.f32.mrf.mxu0 }
 0x6e8   :  { %v6873_v5 = vadd.f32 %v6872_v17, %v6851_v1 }
 0x6ea   :  { %v6876_v22 = vmax.f32 %v6873_v5, 0.0 }
 0x6ec   :  { %v6880_v43 = vpack.c.bf16 %v6876_v22, %v6876_v22 }
 0x6ee   :  { %10434 = vmatmul.msk.bf16.vlgmr.msrb.gmra.mxu1 %vm6859_vm2, %v6880_v43 }
 0x6ef   :  { %v6874_v23 = vpop.f32.mrf.mxu0 }
 0x76b   :  { %v6899_v13 = vpop.f32.mrf.mxu1 }
 0x76c   :  { %v6900_v24 = vadd.f32 %v6899_v13, %v6879_v50 }
 0x76e   :  { %v6903_v27 = vmax.f32 %v6900_v24, 0.0 }
 0x770   :  { %v6907_v8 = vpack.c.bf16 %v6903_v27, %v6903_v27 }
 0x772   :  { %10439 = vmatmul.msk.bf16.vlgmr.msrb.gmra.mxu2 %vm6859_vm2, %v6907_v8 }
 0x773   :  { %v6901_v59 = vpop.f32.mrf.mxu1 }
 0x7f5   :  { %v6926_v57 = vpop.f32.mrf.mxu2 }
 0x7f6   :  { %v6927_v31 = vadd.f32 %v6926_v57, %v6906_v54 }
 0x7f8   :  { %v6931_v19 = vsel %vm6930_vm3, %v6927_v31, -inf }
 0x7f9   :  { %6932 = vmax.xlane.f32.xlu0 %v6931_v19 }
 0x7fd   :  { %v6928_v32 = vpop.f32.mrf.mxu2 }
 0x86c   :  { %v6933_v60 = vpop.xlane.xlu0 %6932 }
 0x86d   :  { %v6934_v20 = vsub.f32 %v6927_v31, %v6933_v60 }
 0x86f   :  { %v6935_v36 = vmul.f32 1.442695, %v6934_v20 }
 0x871   :  { %11319 = vpow2.f32 %v6935_v36 }
 0x877   :  { %v11320_v62 = vpop.eup %11319 }
 0x878   :  { %v6937_v26 = vsel %vm6930_vm3, %v11320_v62, 0.0 }
 0x879   :  { %6938 = vadd.xlane.f32.xlu0 %v6937_v26 }
 0x8ec   :  { %v6939_v9 = vpop.xlane.xlu0 %6938 }
 0x8ed   :  { %11321 = vrcp.f32 %v6939_v9  ;;  %v6951_v25 = vand.u32 2147483648, %v6939_v9  ;;  %v6949_v51 = vand.u32 2147483647, %v6939_v9  ;;  %vm6945_vm5 = vweird.f32 %v6939_v9 }
 0x8ef   :  { %v6952_v7 = vor.u32 1.1754944e-38, %v6951_v25  ;;  %vm6950_vm7 = vcmp.eq.f32.partialorder %v6949_v51, 8.507059e+37 }
 0x8f3   :  { %v11322_v40 = vpop.eup %11321 }
 0x8f4   :  { %v6941_v63 = vmul.f32 %v11322_v40, %v6939_v9  ;;  %vm6946_vm4 = vweird.f32 %v11322_v40 }
 0x8f5   :  { %vm6947_vm6 = vmor %vm6945_vm5, %vm6946_vm4 }
 0x8f6   :  { %v6942_v53 = vsub.f32 1.0, %v6941_v63 }
 0x8f8   :  { %v6943_v44 = vmul.f32 %v11322_v40, %v6942_v53 }
 0x8fa   :  { %v6944_v42 = vadd.f32 %v11322_v40, %v6943_v44 }
 0x8fc   :  { %v6948_v6 = vsel %vm6947_vm6, %v11322_v40, %v6944_v42 }
 0x8fd   :  { %v6953_v29 = vsel %vm6950_vm7, %v6952_v7, %v6948_v6 }
 0x8fe   :  { %v6954_v11 = vmul.f32 %v11320_v62, %v6953_v29 }
 0x900   :  { %6955 = vst.msk [vmem:[#allocation11] sm:$0xff] %vm6930_vm3, %v6954_v11 }
 0x901   :  { %6966 = dma.vmem_to_hbm [thread:$0]  %s6962_s11, 128, %s6964_s14, [#allocation4]  }
 0x902   :  { %11476 = dma.done.wait [#allocation4], 128  }
 0x903   :  { %11477 = vsyncadd [#allocation4], 4294967168 }
 0x904   :  { %6971 = vsyncpa [#allocation3], 1 }
 0x905   :  { %6972 = vsyncpa [#allocation6], 1 }
 0x906   :  { %6973 = vsyncpa [#allocation9], 1 }
 0x907   :  { %6974 = vsyncpa [#allocation4], 1 }

</bundles_post_ra>
